<compile_context>
chip_gen: v5e
topology: v5e:2x2
jax: 0.10.0
libtpu: 0.0.40
codegen_flags: <defaults>
</compile_context>

<pallas_src>
import functools
import math

import jax
import jax.numpy as jnp
import numpy as np
from jax import lax
from jax.experimental import pallas as pl
from jax.experimental.pallas import tpu as pltpu

EMBED = 64          # embedding_size
N_HEAD = 8          # n_head
HEAD_DIM = EMBED // N_HEAD
LN_EPS = 1e-5       # nn.LayerNorm default eps


def _layer_norm(z, g, b):
    mu = jnp.mean(z, axis=-1, keepdims=True)
    var = jnp.mean(jnp.square(z - mu), axis=-1, keepdims=True)
    return (z - mu) / jnp.sqrt(var + LN_EPS) * g + b


def _block_kernel(x_ref,
                  wqkv_ref, bqkv_ref, wproj_ref, bproj_ref,
                  ln1g_ref, ln1b_ref,
                  w1_ref, b1_ref, w2_ref, b2_ref,
                  ln2g_ref, ln2b_ref,
                  o_ref, *, seq_len):
    M = x_ref.shape[0]                       # = block_batch * seq_len
    T = seq_len
    Bb = M // T
    E = EMBED
    D = HEAD_DIM

    x = x_ref[...].astype(jnp.float32)       # (M, E), batch folded into M

    # ---------------- Attention ----------------
    # One fused, lane-dense QKV projection: (M,64) @ (64,192) + (1,192) bias.
    qkv = jnp.dot(x, wqkv_ref[...],
                  preferred_element_type=jnp.float32) + bqkv_ref[...]
    qkv = qkv.reshape(Bb, T, 3 * E)          # per-sequence view for attention

    # Per-sequence (T,T) causal mask, built once and hoisted out of the head
    # loop.  Finite -1e30 fill (diagonal is always unmasked, so no NaN hazard).
    ri = lax.broadcasted_iota(jnp.int32, (T, T), 0)
    ci = lax.broadcasted_iota(jnp.int32, (T, T), 1)
    causal = (ri >= ci)[None]                # (1, T, T)
    neg_big = jnp.float32(-1e30)
    scale = jnp.float32(1.0 / math.sqrt(D))

    head_outs = []
    for h in range(N_HEAD):                  # static unroll over heads
        # Per-head lane sub-slices of the fused QKV result (static slices).
        qh = qkv[:, :, h * D:(h + 1) * D] * scale        # fold 1/sqrt(D) into q
        kh = qkv[:, :, E + h * D:E + (h + 1) * D]
        vh = qkv[:, :, 2 * E + h * D:2 * E + (h + 1) * D]

        # Batched q.k^T per sequence: contracts the last dims directly.
        s = jnp.einsum('bqd,bkd->bqk', qh, kh,
                       preferred_element_type=jnp.float32)   # (Bb, T, T)
        s = jnp.where(causal, s, neg_big)
        s = s - jnp.max(s, axis=-1, keepdims=True)
        p = jnp.exp(s)
        inv = 1.0 / jnp.sum(p, axis=-1, keepdims=True)       # exact recip
        p = p * inv                                          # no per-elem divide
        head_outs.append(jnp.einsum('bqk,bkd->bqd', p, vh,
                                    preferred_element_type=jnp.float32))

    # Assemble heads side-by-side -> (M, E), then ONE output projection.
    concat = jnp.concatenate(head_outs, axis=-1).reshape(M, E)
    attn = jnp.dot(concat, wproj_ref[...],
                   preferred_element_type=jnp.float32) + bproj_ref[...]

    # residual + LayerNorm 1
    x1 = _layer_norm(attn + x, ln1g_ref[...], ln1b_ref[...])

    # FeedForward (ReLU after BOTH linears, exactly as in the reference module)
    h1 = jnp.maximum(
        jnp.dot(x1, w1_ref[...], preferred_element_type=jnp.float32) + b1_ref[...],
        0.0)
    h2 = jnp.maximum(
        jnp.dot(h1, w2_ref[...], preferred_element_type=jnp.float32) + b2_ref[...],
        0.0)

    # residual + LayerNorm 2
    out = _layer_norm(h2 + x1, ln2g_ref[...], ln2b_ref[...])
    o_ref[...] = out.astype(o_ref.dtype)


def block_forward(x, params):
    (wqkv, bqkv, wproj, bproj, ln1g, ln1b, w1, b1, w2, b2, ln2g, ln2b) = params
    B, T, E = x.shape
    assert E == EMBED
    M = B * T

    # Weights are consumed in their original (in, out) layouts: no per-call
    # reshapes/transposes in the jitted path.
    kernel_params = (wqkv, bqkv, wproj, bproj, ln1g, ln1b,
                     w1, b1, w2, b2, ln2g, ln2b)

    def _full_spec(a):
        nd = a.ndim
        return pl.BlockSpec(a.shape, lambda i, _nd=nd: (0,) * _nd)

    xf = x.reshape(M, E)          # fold batch into the matmul M dimension
    out = pl.pallas_call(
        functools.partial(_block_kernel, seq_len=T),
        out_shape=jax.ShapeDtypeStruct((M, E), x.dtype),
        grid=(1,),                # single step: compute << per-step overhead
        in_specs=[pl.BlockSpec((M, E), lambda i: (0, 0))]
                 + [_full_spec(a) for a in kernel_params],
        out_specs=pl.BlockSpec((M, E), lambda i: (0, 0)),
        compiler_params=pltpu.CompilerParams(
            dimension_semantics=("arbitrary",)),
    )(xf, *kernel_params)
    return out.reshape(B, T, E)


def block_reference(x, params):
    """Pure-JAX reference mirroring the PyTorch forward exactly."""
    (wqkv, bqkv, wproj, bproj, ln1g, ln1b, w1, b1, w2, b2, ln2g, ln2b) = params
    B, T, E = x.shape
    qkv = x @ wqkv + bqkv[0]
    q, k, v = jnp.split(qkv, 3, axis=-1)
    q = q.reshape(B, T, N_HEAD, HEAD_DIM).transpose(0, 2, 1, 3)
    k = k.reshape(B, T, N_HEAD, HEAD_DIM).transpose(0, 2, 1, 3)
    v = v.reshape(B, T, N_HEAD, HEAD_DIM).transpose(0, 2, 1, 3)
    s = (q @ k.transpose(0, 1, 3, 2)) / math.sqrt(HEAD_DIM)
    mask = jnp.tril(jnp.ones((T, T), bool))
    s = jnp.where(mask[None, None], s, -jnp.inf)
    p = jax.nn.softmax(s, axis=-1)
    o = (p @ v).transpose(0, 2, 1, 3).reshape(B, T, E)
    attn = o @ wproj + bproj[0]
    x1 = attn + x

    def ln(z, g, b):
        mu = z.mean(-1, keepdims=True)
        var = ((z - mu) ** 2).mean(-1, keepdims=True)
        return (z - mu) / jnp.sqrt(var + LN_EPS) * g[0] + b[0]

    x1 = ln(x1, ln1g, ln1b)
    h = jnp.maximum(x1 @ w1 + b1[0], 0.0)
    h = jnp.maximum(h @ w2 + b2[0], 0.0)   # ReLU after both linears, per module
    return ln(h + x1, ln2g, ln2b)


if __name__ == "__main__":
    B, T = 4, 16   # small shapes; T <= block_size (64), E fixed at 64 by module
    key = jax.random.PRNGKey(0)
    ks = jax.random.split(key, 10)

    def init(k, shape, scale=0.02):
        return scale * jax.random.normal(k, shape, jnp.float32)

    # Linear weights stored already transposed to (in, out); biases as (1, out).
    wqkv = init(ks[0], (EMBED, 3 * EMBED))
    bqkv = init(ks[1], (1, 3 * EMBED))
    wproj = init(ks[2], (EMBED, EMBED))
    bproj = init(ks[3], (1, EMBED))
    ln1g = jnp.ones((1, EMBED), jnp.float32)
    ln1b = jnp.zeros((1, EMBED), jnp.float32)
    w1 = init(ks[4], (EMBED, 4 * EMBED))
    b1 = init(ks[5], (1, 4 * EMBED))
    w2 = init(ks[6], (4 * EMBED, EMBED))
    b2 = init(ks[7], (1, EMBED))
    ln2g = jnp.ones((1, EMBED), jnp.float32)
    ln2b = jnp.zeros((1, EMBED), jnp.float32)
    params = (wqkv, bqkv, wproj, bproj, ln1g, ln1b,
              w1, b1, w2, b2, ln2g, ln2b)

    x = jax.random.normal(ks[8], (B, T, EMBED), jnp.float32)

    fwd = jax.jit(block_forward)
    out = jax.block_until_ready(fwd(x, params))

    ref = block_reference(x, params)
    np.testing.assert_allclose(np.asarray(out), np.asarray(ref),
                               rtol=1e-4, atol=1e-4)
    print("KERNEL_OK")
</pallas_src>

<mosaic_0001>
module attributes {stable_mosaic.version = 11 : i64} {
  func.func @_block_kernel(%arg0: i32, %arg1: memref<64x64xf32, #tpu.memory_space<vmem>>, %arg2: memref<64x192xf32, #tpu.memory_space<vmem>>, %arg3: memref<1x192xf32, #tpu.memory_space<vmem>>, %arg4: memref<64x64xf32, #tpu.memory_space<vmem>>, %arg5: memref<1x64xf32, #tpu.memory_space<vmem>>, %arg6: memref<1x64xf32, #tpu.memory_space<vmem>>, %arg7: memref<1x64xf32, #tpu.memory_space<vmem>>, %arg8: memref<64x256xf32, #tpu.memory_space<vmem>>, %arg9: memref<1x256xf32, #tpu.memory_space<vmem>>, %arg10: memref<256x64xf32, #tpu.memory_space<vmem>>, %arg11: memref<1x64xf32, #tpu.memory_space<vmem>>, %arg12: memref<1x64xf32, #tpu.memory_space<vmem>>, %arg13: memref<1x64xf32, #tpu.memory_space<vmem>>, %arg14: memref<64x64xf32, #tpu.memory_space<vmem>>) attributes {dimension_semantics = [#tpu.dimension_semantics<arbitrary>], iteration_bounds = array<i64: 1>, scalar_prefetch = 0 : i64, scratch_operands = 0 : i64, tpu.core_type = #tpu.core_type<tc>, window_params = [{pipeline_mode = #tpu.pipeline_mode<synchronous>, transform_indices = @transform_0, window_bounds = array<i64: 64, 64>}, {pipeline_mode = #tpu.pipeline_mode<synchronous>, transform_indices = @transform_1, window_bounds = array<i64: 64, 192>}, {pipeline_mode = #tpu.pipeline_mode<synchronous>, transform_indices = @transform_2, window_bounds = array<i64: 1, 192>}, {pipeline_mode = #tpu.pipeline_mode<synchronous>, transform_indices = @transform_3, window_bounds = array<i64: 64, 64>}, {pipeline_mode = #tpu.pipeline_mode<synchronous>, transform_indices = @transform_4, window_bounds = array<i64: 1, 64>}, {pipeline_mode = #tpu.pipeline_mode<synchronous>, transform_indices = @transform_5, window_bounds = array<i64: 1, 64>}, {pipeline_mode = #tpu.pipeline_mode<synchronous>, transform_indices = @transform_6, window_bounds = array<i64: 1, 64>}, {pipeline_mode = #tpu.pipeline_mode<synchronous>, transform_indices = @transform_7, window_bounds = array<i64: 64, 256>}, {pipeline_mode = #tpu.pipeline_mode<synchronous>, transform_indices = @transform_8, window_bounds = array<i64: 1, 256>}, {pipeline_mode = #tpu.pipeline_mode<synchronous>, transform_indices = @transform_9, window_bounds = array<i64: 256, 64>}, {pipeline_mode = #tpu.pipeline_mode<synchronous>, transform_indices = @transform_10, window_bounds = array<i64: 1, 64>}, {pipeline_mode = #tpu.pipeline_mode<synchronous>, transform_indices = @transform_11, window_bounds = array<i64: 1, 64>}, {pipeline_mode = #tpu.pipeline_mode<synchronous>, transform_indices = @transform_12, window_bounds = array<i64: 1, 64>}, {pipeline_mode = #tpu.pipeline_mode<synchronous>, transform_indices = @transform_13, window_bounds = array<i64: 64, 64>}]} {
    %c0 = arith.constant 0 : index
    %c0_0 = arith.constant 0 : index
    %0 = vector.load %arg1[%c0, %c0_0] : memref<64x64xf32, #tpu.memory_space<vmem>>, vector<64x64xf32>
    %c0_1 = arith.constant 0 : index
    %c0_2 = arith.constant 0 : index
    %1 = vector.load %arg2[%c0_1, %c0_2] : memref<64x192xf32, #tpu.memory_space<vmem>>, vector<64x192xf32>
    %cst = arith.constant dense<0.000000e+00> : vector<64x192xf32>
    %2 = tpu.matmul %0, %1, %cst {dimension_numbers = #tpu.dot_dimension_numbers<[1], [0], [0], [1], [0, 0, 1, 1], [], []>} : vector<64x64xf32>, vector<64x192xf32>, vector<64x192xf32> -> vector<64x192xf32>
    %c0_3 = arith.constant 0 : index
    %c0_4 = arith.constant 0 : index
    %3 = vector.load %arg3[%c0_3, %c0_4] : memref<1x192xf32, #tpu.memory_space<vmem>>, vector<1x192xf32>
    %4 = vector.broadcast %3 : vector<1x192xf32> to vector<64x192xf32>
    %5 = arith.addf %2, %4 : vector<64x192xf32>
    %6 = vector.shape_cast %5 : vector<64x192xf32> to vector<4x16x192xf32>
    %7 = tpu.iota {dimensions = array<i32: 0>} : vector<16x16xi32>
    %8 = tpu.iota {dimensions = array<i32: 1>} : vector<16x16xi32>
    %9 = arith.cmpi sge, %7, %8 : vector<16x16xi32>
    %10 = vector.shape_cast %9 : vector<16x16xi1> to vector<1x16x16xi1>
    %11 = vector.extract_strided_slice %6 {offsets = [0, 0, 0], sizes = [4, 16, 8], strides = [1, 1, 1]} : vector<4x16x192xf32> to vector<4x16x8xf32>
    %cst_5 = arith.constant 0.353553385 : f32
    %12 = vector.broadcast %cst_5 : f32 to vector<4x16x8xf32>
    %13 = arith.mulf %11, %12 : vector<4x16x8xf32>
    %14 = vector.extract_strided_slice %6 {offsets = [0, 0, 64], sizes = [4, 16, 8], strides = [1, 1, 1]} : vector<4x16x192xf32> to vector<4x16x8xf32>
    %15 = vector.extract_strided_slice %6 {offsets = [0, 0, 128], sizes = [4, 16, 8], strides = [1, 1, 1]} : vector<4x16x192xf32> to vector<4x16x8xf32>
    "tpu.trace_start"() <{level = 10 : i32, message = "bqd,bkd->bqk"}> : () -> ()
    %cst_6 = arith.constant dense<0.000000e+00> : vector<4x16x16xf32>
    %16 = tpu.matmul %13, %14, %cst_6 {dimension_numbers = #tpu.dot_dimension_numbers<[2], [2], [1], [1], [0, 0, 0, 1, 1, 1], [0], [0]>} : vector<4x16x8xf32>, vector<4x16x8xf32>, vector<4x16x16xf32> -> vector<4x16x16xf32>
    %cst_7 = arith.constant -1.000000e+30 : f32
    "tpu.trace_stop"() : () -> ()
    %17 = vector.shape_cast %10 : vector<1x16x16xi1> to vector<1x16x16xi1>
    %18 = vector.broadcast %17 : vector<1x16x16xi1> to vector<4x16x16xi1>
    %19 = vector.broadcast %cst_7 : f32 to vector<4x16x16xf32>
    %20 = arith.select %18, %16, %19 : vector<4x16x16xi1>, vector<4x16x16xf32>
    %cst_8 = arith.constant dense<0xFF800000> : vector<4x16xf32>
    %21 = vector.multi_reduction <maximumf>, %20, %cst_8 [2] : vector<4x16x16xf32> to vector<4x16xf32>
    %22 = vector.shape_cast %21 : vector<4x16xf32> to vector<4x16x1xf32>
    %23 = vector.broadcast %22 : vector<4x16x1xf32> to vector<4x16x16xf32>
    %24 = arith.subf %20, %23 : vector<4x16x16xf32>
    %25 = math.exp %24 : vector<4x16x16xf32>
    %cst_9 = arith.constant dense<0.000000e+00> : vector<4x16xf32>
    %26 = vector.multi_reduction <add>, %25, %cst_9 [2] : vector<4x16x16xf32> to vector<4x16xf32>
    %27 = vector.shape_cast %26 : vector<4x16xf32> to vector<4x16x1xf32>
    %cst_10 = arith.constant 1.000000e+00 : f32
    %28 = vector.broadcast %cst_10 : f32 to vector<4x16x1xf32>
    %29 = arith.divf %28, %27 : vector<4x16x1xf32>
    %30 = vector.broadcast %29 : vector<4x16x1xf32> to vector<4x16x16xf32>
    %31 = arith.mulf %25, %30 : vector<4x16x16xf32>
    "tpu.trace_start"() <{level = 10 : i32, message = "bqk,bkd->bqd"}> : () -> ()
    %cst_11 = arith.constant dense<0.000000e+00> : vector<4x16x8xf32>
    %32 = tpu.matmul %31, %15, %cst_11 {dimension_numbers = #tpu.dot_dimension_numbers<[2], [1], [1], [2], [0, 0, 0, 1, 1, 2], [0], [0]>} : vector<4x16x16xf32>, vector<4x16x8xf32>, vector<4x16x8xf32> -> vector<4x16x8xf32>
    "tpu.trace_stop"() : () -> ()
    %33 = vector.extract_strided_slice %6 {offsets = [0, 0, 8], sizes = [4, 16, 8], strides = [1, 1, 1]} : vector<4x16x192xf32> to vector<4x16x8xf32>
    %cst_12 = arith.constant 0.353553385 : f32
    %34 = vector.broadcast %cst_12 : f32 to vector<4x16x8xf32>
    %35 = arith.mulf %33, %34 : vector<4x16x8xf32>
    %36 = vector.extract_strided_slice %6 {offsets = [0, 0, 72], sizes = [4, 16, 8], strides = [1, 1, 1]} : vector<4x16x192xf32> to vector<4x16x8xf32>
    %37 = vector.extract_strided_slice %6 {offsets = [0, 0, 136], sizes = [4, 16, 8], strides = [1, 1, 1]} : vector<4x16x192xf32> to vector<4x16x8xf32>
    "tpu.trace_start"() <{level = 10 : i32, message = "bqd,bkd->bqk"}> : () -> ()
    %cst_13 = arith.constant dense<0.000000e+00> : vector<4x16x16xf32>
    %38 = tpu.matmul %35, %36, %cst_13 {dimension_numbers = #tpu.dot_dimension_numbers<[2], [2], [1], [1], [0, 0, 0, 1, 1, 1], [0], [0]>} : vector<4x16x8xf32>, vector<4x16x8xf32>, vector<4x16x16xf32> -> vector<4x16x16xf32>
    %cst_14 = arith.constant -1.000000e+30 : f32
    "tpu.trace_stop"() : () -> ()
    %39 = vector.shape_cast %10 : vector<1x16x16xi1> to vector<1x16x16xi1>
    %40 = vector.broadcast %39 : vector<1x16x16xi1> to vector<4x16x16xi1>
    %41 = vector.broadcast %cst_14 : f32 to vector<4x16x16xf32>
    %42 = arith.select %40, %38, %41 : vector<4x16x16xi1>, vector<4x16x16xf32>
    %cst_15 = arith.constant dense<0xFF800000> : vector<4x16xf32>
    %43 = vector.multi_reduction <maximumf>, %42, %cst_15 [2] : vector<4x16x16xf32> to vector<4x16xf32>
    %44 = vector.shape_cast %43 : vector<4x16xf32> to vector<4x16x1xf32>
    %45 = vector.broadcast %44 : vector<4x16x1xf32> to vector<4x16x16xf32>
    %46 = arith.subf %42, %45 : vector<4x16x16xf32>
    %47 = math.exp %46 : vector<4x16x16xf32>
    %cst_16 = arith.constant dense<0.000000e+00> : vector<4x16xf32>
    %48 = vector.multi_reduction <add>, %47, %cst_16 [2] : vector<4x16x16xf32> to vector<4x16xf32>
    %49 = vector.shape_cast %48 : vector<4x16xf32> to vector<4x16x1xf32>
    %cst_17 = arith.constant 1.000000e+00 : f32
    %50 = vector.broadcast %cst_17 : f32 to vector<4x16x1xf32>
    %51 = arith.divf %50, %49 : vector<4x16x1xf32>
    %52 = vector.broadcast %51 : vector<4x16x1xf32> to vector<4x16x16xf32>
    %53 = arith.mulf %47, %52 : vector<4x16x16xf32>
    "tpu.trace_start"() <{level = 10 : i32, message = "bqk,bkd->bqd"}> : () -> ()
    %cst_18 = arith.constant dense<0.000000e+00> : vector<4x16x8xf32>
    %54 = tpu.matmul %53, %37, %cst_18 {dimension_numbers = #tpu.dot_dimension_numbers<[2], [1], [1], [2], [0, 0, 0, 1, 1, 2], [0], [0]>} : vector<4x16x16xf32>, vector<4x16x8xf32>, vector<4x16x8xf32> -> vector<4x16x8xf32>
    "tpu.trace_stop"() : () -> ()
    %55 = vector.extract_strided_slice %6 {offsets = [0, 0, 16], sizes = [4, 16, 8], strides = [1, 1, 1]} : vector<4x16x192xf32> to vector<4x16x8xf32>
    %cst_19 = arith.constant 0.353553385 : f32
    %56 = vector.broadcast %cst_19 : f32 to vector<4x16x8xf32>
    %57 = arith.mulf %55, %56 : vector<4x16x8xf32>
    %58 = vector.extract_strided_slice %6 {offsets = [0, 0, 80], sizes = [4, 16, 8], strides = [1, 1, 1]} : vector<4x16x192xf32> to vector<4x16x8xf32>
    %59 = vector.extract_strided_slice %6 {offsets = [0, 0, 144], sizes = [4, 16, 8], strides = [1, 1, 1]} : vector<4x16x192xf32> to vector<4x16x8xf32>
    "tpu.trace_start"() <{level = 10 : i32, message = "bqd,bkd->bqk"}> : () -> ()
    %cst_20 = arith.constant dense<0.000000e+00> : vector<4x16x16xf32>
    %60 = tpu.matmul %57, %58, %cst_20 {dimension_numbers = #tpu.dot_dimension_numbers<[2], [2], [1], [1], [0, 0, 0, 1, 1, 1], [0], [0]>} : vector<4x16x8xf32>, vector<4x16x8xf32>, vector<4x16x16xf32> -> vector<4x16x16xf32>
    %cst_21 = arith.constant -1.000000e+30 : f32
    "tpu.trace_stop"() : () -> ()
    %61 = vector.shape_cast %10 : vector<1x16x16xi1> to vector<1x16x16xi1>
    %62 = vector.broadcast %61 : vector<1x16x16xi1> to vector<4x16x16xi1>
    %63 = vector.broadcast %cst_21 : f32 to vector<4x16x16xf32>
    %64 = arith.select %62, %60, %63 : vector<4x16x16xi1>, vector<4x16x16xf32>
    %cst_22 = arith.constant dense<0xFF800000> : vector<4x16xf32>
    %65 = vector.multi_reduction <maximumf>, %64, %cst_22 [2] : vector<4x16x16xf32> to vector<4x16xf32>
    %66 = vector.shape_cast %65 : vector<4x16xf32> to vector<4x16x1xf32>
    %67 = vector.broadcast %66 : vector<4x16x1xf32> to vector<4x16x16xf32>
    %68 = arith.subf %64, %67 : vector<4x16x16xf32>
    %69 = math.exp %68 : vector<4x16x16xf32>
    %cst_23 = arith.constant dense<0.000000e+00> : vector<4x16xf32>
    %70 = vector.multi_reduction <add>, %69, %cst_23 [2] : vector<4x16x16xf32> to vector<4x16xf32>
    %71 = vector.shape_cast %70 : vector<4x16xf32> to vector<4x16x1xf32>
    %cst_24 = arith.constant 1.000000e+00 : f32
    %72 = vector.broadcast %cst_24 : f32 to vector<4x16x1xf32>
    %73 = arith.divf %72, %71 : vector<4x16x1xf32>
    %74 = vector.broadcast %73 : vector<4x16x1xf32> to vector<4x16x16xf32>
    %75 = arith.mulf %69, %74 : vector<4x16x16xf32>
    "tpu.trace_start"() <{level = 10 : i32, message = "bqk,bkd->bqd"}> : () -> ()
    %cst_25 = arith.constant dense<0.000000e+00> : vector<4x16x8xf32>
    %76 = tpu.matmul %75, %59, %cst_25 {dimension_numbers = #tpu.dot_dimension_numbers<[2], [1], [1], [2], [0, 0, 0, 1, 1, 2], [0], [0]>} : vector<4x16x16xf32>, vector<4x16x8xf32>, vector<4x16x8xf32> -> vector<4x16x8xf32>
    "tpu.trace_stop"() : () -> ()
    %77 = vector.extract_strided_slice %6 {offsets = [0, 0, 24], sizes = [4, 16, 8], strides = [1, 1, 1]} : vector<4x16x192xf32> to vector<4x16x8xf32>
    %cst_26 = arith.constant 0.353553385 : f32
    %78 = vector.broadcast %cst_26 : f32 to vector<4x16x8xf32>
    %79 = arith.mulf %77, %78 : vector<4x16x8xf32>
    %80 = vector.extract_strided_slice %6 {offsets = [0, 0, 88], sizes = [4, 16, 8], strides = [1, 1, 1]} : vector<4x16x192xf32> to vector<4x16x8xf32>
    %81 = vector.extract_strided_slice %6 {offsets = [0, 0, 152], sizes = [4, 16, 8], strides = [1, 1, 1]} : vector<4x16x192xf32> to vector<4x16x8xf32>
    "tpu.trace_start"() <{level = 10 : i32, message = "bqd,bkd->bqk"}> : () -> ()
    %cst_27 = arith.constant dense<0.000000e+00> : vector<4x16x16xf32>
    %82 = tpu.matmul %79, %80, %cst_27 {dimension_numbers = #tpu.dot_dimension_numbers<[2], [2], [1], [1], [0, 0, 0, 1, 1, 1], [0], [0]>} : vector<4x16x8xf32>, vector<4x16x8xf32>, vector<4x16x16xf32> -> vector<4x16x16xf32>
    %cst_28 = arith.constant -1.000000e+30 : f32
    "tpu.trace_stop"() : () -> ()
    %83 = vector.shape_cast %10 : vector<1x16x16xi1> to vector<1x16x16xi1>
    %84 = vector.broadcast %83 : vector<1x16x16xi1> to vector<4x16x16xi1>
    %85 = vector.broadcast %cst_28 : f32 to vector<4x16x16xf32>
    %86 = arith.select %84, %82, %85 : vector<4x16x16xi1>, vector<4x16x16xf32>
    %cst_29 = arith.constant dense<0xFF800000> : vector<4x16xf32>
    %87 = vector.multi_reduction <maximumf>, %86, %cst_29 [2] : vector<4x16x16xf32> to vector<4x16xf32>
    %88 = vector.shape_cast %87 : vector<4x16xf32> to vector<4x16x1xf32>
    %89 = vector.broadcast %88 : vector<4x16x1xf32> to vector<4x16x16xf32>
    %90 = arith.subf %86, %89 : vector<4x16x16xf32>
    %91 = math.exp %90 : vector<4x16x16xf32>
    %cst_30 = arith.constant dense<0.000000e+00> : vector<4x16xf32>
    %92 = vector.multi_reduction <add>, %91, %cst_30 [2] : vector<4x16x16xf32> to vector<4x16xf32>
    %93 = vector.shape_cast %92 : vector<4x16xf32> to vector<4x16x1xf32>
    %cst_31 = arith.constant 1.000000e+00 : f32
    %94 = vector.broadcast %cst_31 : f32 to vector<4x16x1xf32>
    %95 = arith.divf %94, %93 : vector<4x16x1xf32>
    %96 = vector.broadcast %95 : vector<4x16x1xf32> to vector<4x16x16xf32>
    %97 = arith.mulf %91, %96 : vector<4x16x16xf32>
    "tpu.trace_start"() <{level = 10 : i32, message = "bqk,bkd->bqd"}> : () -> ()
    %cst_32 = arith.constant dense<0.000000e+00> : vector<4x16x8xf32>
    %98 = tpu.matmul %97, %81, %cst_32 {dimension_numbers = #tpu.dot_dimension_numbers<[2], [1], [1], [2], [0, 0, 0, 1, 1, 2], [0], [0]>} : vector<4x16x16xf32>, vector<4x16x8xf32>, vector<4x16x8xf32> -> vector<4x16x8xf32>
    "tpu.trace_stop"() : () -> ()
    %99 = vector.extract_strided_slice %6 {offsets = [0, 0, 32], sizes = [4, 16, 8], strides = [1, 1, 1]} : vector<4x16x192xf32> to vector<4x16x8xf32>
    %cst_33 = arith.constant 0.353553385 : f32
    %100 = vector.broadcast %cst_33 : f32 to vector<4x16x8xf32>
    %101 = arith.mulf %99, %100 : vector<4x16x8xf32>
    %102 = vector.extract_strided_slice %6 {offsets = [0, 0, 96], sizes = [4, 16, 8], strides = [1, 1, 1]} : vector<4x16x192xf32> to vector<4x16x8xf32>
    %103 = vector.extract_strided_slice %6 {offsets = [0, 0, 160], sizes = [4, 16, 8], strides = [1, 1, 1]} : vector<4x16x192xf32> to vector<4x16x8xf32>
    "tpu.trace_start"() <{level = 10 : i32, message = "bqd,bkd->bqk"}> : () -> ()
    %cst_34 = arith.constant dense<0.000000e+00> : vector<4x16x16xf32>
    %104 = tpu.matmul %101, %102, %cst_34 {dimension_numbers = #tpu.dot_dimension_numbers<[2], [2], [1], [1], [0, 0, 0, 1, 1, 1], [0], [0]>} : vector<4x16x8xf32>, vector<4x16x8xf32>, vector<4x16x16xf32> -> vector<4x16x16xf32>
    %cst_35 = arith.constant -1.000000e+30 : f32
    "tpu.trace_stop"() : () -> ()
    %105 = vector.shape_cast %10 : vector<1x16x16xi1> to vector<1x16x16xi1>
    %106 = vector.broadcast %105 : vector<1x16x16xi1> to vector<4x16x16xi1>
    %107 = vector.broadcast %cst_35 : f32 to vector<4x16x16xf32>
    %108 = arith.select %106, %104, %107 : vector<4x16x16xi1>, vector<4x16x16xf32>
    %cst_36 = arith.constant dense<0xFF800000> : vector<4x16xf32>
    %109 = vector.multi_reduction <maximumf>, %108, %cst_36 [2] : vector<4x16x16xf32> to vector<4x16xf32>
    %110 = vector.shape_cast %109 : vector<4x16xf32> to vector<4x16x1xf32>
    %111 = vector.broadcast %110 : vector<4x16x1xf32> to vector<4x16x16xf32>
    %112 = arith.subf %108, %111 : vector<4x16x16xf32>
    %113 = math.exp %112 : vector<4x16x16xf32>
    %cst_37 = arith.constant dense<0.000000e+00> : vector<4x16xf32>
    %114 = vector.multi_reduction <add>, %113, %cst_37 [2] : vector<4x16x16xf32> to vector<4x16xf32>
    %115 = vector.shape_cast %114 : vector<4x16xf32> to vector<4x16x1xf32>
    %cst_38 = arith.constant 1.000000e+00 : f32
    %116 = vector.broadcast %cst_38 : f32 to vector<4x16x1xf32>
    %117 = arith.divf %116, %115 : vector<4x16x1xf32>
    %118 = vector.broadcast %117 : vector<4x16x1xf32> to vector<4x16x16xf32>
    %119 = arith.mulf %113, %118 : vector<4x16x16xf32>
    "tpu.trace_start"() <{level = 10 : i32, message = "bqk,bkd->bqd"}> : () -> ()
    %cst_39 = arith.constant dense<0.000000e+00> : vector<4x16x8xf32>
    %120 = tpu.matmul %119, %103, %cst_39 {dimension_numbers = #tpu.dot_dimension_numbers<[2], [1], [1], [2], [0, 0, 0, 1, 1, 2], [0], [0]>} : vector<4x16x16xf32>, vector<4x16x8xf32>, vector<4x16x8xf32> -> vector<4x16x8xf32>
    "tpu.trace_stop"() : () -> ()
    %121 = vector.extract_strided_slice %6 {offsets = [0, 0, 40], sizes = [4, 16, 8], strides = [1, 1, 1]} : vector<4x16x192xf32> to vector<4x16x8xf32>
    %cst_40 = arith.constant 0.353553385 : f32
    %122 = vector.broadcast %cst_40 : f32 to vector<4x16x8xf32>
    %123 = arith.mulf %121, %122 : vector<4x16x8xf32>
    %124 = vector.extract_strided_slice %6 {offsets = [0, 0, 104], sizes = [4, 16, 8], strides = [1, 1, 1]} : vector<4x16x192xf32> to vector<4x16x8xf32>
    %125 = vector.extract_strided_slice %6 {offsets = [0, 0, 168], sizes = [4, 16, 8], strides = [1, 1, 1]} : vector<4x16x192xf32> to vector<4x16x8xf32>
    "tpu.trace_start"() <{level = 10 : i32, message = "bqd,bkd->bqk"}> : () -> ()
    %cst_41 = arith.constant dense<0.000000e+00> : vector<4x16x16xf32>
    %126 = tpu.matmul %123, %124, %cst_41 {dimension_numbers = #tpu.dot_dimension_numbers<[2], [2], [1], [1], [0, 0, 0, 1, 1, 1], [0], [0]>} : vector<4x16x8xf32>, vector<4x16x8xf32>, vector<4x16x16xf32> -> vector<4x16x16xf32>
    %cst_42 = arith.constant -1.000000e+30 : f32
    "tpu.trace_stop"() : () -> ()
    %127 = vector.shape_cast %10 : vector<1x16x16xi1> to vector<1x16x16xi1>
    %128 = vector.broadcast %127 : vector<1x16x16xi1> to vector<4x16x16xi1>
    %129 = vector.broadcast %cst_42 : f32 to vector<4x16x16xf32>
    %130 = arith.select %128, %126, %129 : vector<4x16x16xi1>, vector<4x16x16xf32>
    %cst_43 = arith.constant dense<0xFF800000> : vector<4x16xf32>
    %131 = vector.multi_reduction <maximumf>, %130, %cst_43 [2] : vector<4x16x16xf32> to vector<4x16xf32>
    %132 = vector.shape_cast %131 : vector<4x16xf32> to vector<4x16x1xf32>
    %133 = vector.broadcast %132 : vector<4x16x1xf32> to vector<4x16x16xf32>
    %134 = arith.subf %130, %133 : vector<4x16x16xf32>
    %135 = math.exp %134 : vector<4x16x16xf32>
    %cst_44 = arith.constant dense<0.000000e+00> : vector<4x16xf32>
    %136 = vector.multi_reduction <add>, %135, %cst_44 [2] : vector<4x16x16xf32> to vector<4x16xf32>
    %137 = vector.shape_cast %136 : vector<4x16xf32> to vector<4x16x1xf32>
    %cst_45 = arith.constant 1.000000e+00 : f32
    %138 = vector.broadcast %cst_45 : f32 to vector<4x16x1xf32>
    %139 = arith.divf %138, %137 : vector<4x16x1xf32>
    %140 = vector.broadcast %139 : vector<4x16x1xf32> to vector<4x16x16xf32>
    %141 = arith.mulf %135, %140 : vector<4x16x16xf32>
    "tpu.trace_start"() <{level = 10 : i32, message = "bqk,bkd->bqd"}> : () -> ()
    %cst_46 = arith.constant dense<0.000000e+00> : vector<4x16x8xf32>
    %142 = tpu.matmul %141, %125, %cst_46 {dimension_numbers = #tpu.dot_dimension_numbers<[2], [1], [1], [2], [0, 0, 0, 1, 1, 2], [0], [0]>} : vector<4x16x16xf32>, vector<4x16x8xf32>, vector<4x16x8xf32> -> vector<4x16x8xf32>
    "tpu.trace_stop"() : () -> ()
    %143 = vector.extract_strided_slice %6 {offsets = [0, 0, 48], sizes = [4, 16, 8], strides = [1, 1, 1]} : vector<4x16x192xf32> to vector<4x16x8xf32>
    %cst_47 = arith.constant 0.353553385 : f32
    %144 = vector.broadcast %cst_47 : f32 to vector<4x16x8xf32>
    %145 = arith.mulf %143, %144 : vector<4x16x8xf32>
    %146 = vector.extract_strided_slice %6 {offsets = [0, 0, 112], sizes = [4, 16, 8], strides = [1, 1, 1]} : vector<4x16x192xf32> to vector<4x16x8xf32>
    %147 = vector.extract_strided_slice %6 {offsets = [0, 0, 176], sizes = [4, 16, 8], strides = [1, 1, 1]} : vector<4x16x192xf32> to vector<4x16x8xf32>
    "tpu.trace_start"() <{level = 10 : i32, message = "bqd,bkd->bqk"}> : () -> ()
    %cst_48 = arith.constant dense<0.000000e+00> : vector<4x16x16xf32>
    %148 = tpu.matmul %145, %146, %cst_48 {dimension_numbers = #tpu.dot_dimension_numbers<[2], [2], [1], [1], [0, 0, 0, 1, 1, 1], [0], [0]>} : vector<4x16x8xf32>, vector<4x16x8xf32>, vector<4x16x16xf32> -> vector<4x16x16xf32>
    %cst_49 = arith.constant -1.000000e+30 : f32
    "tpu.trace_stop"() : () -> ()
    %149 = vector.shape_cast %10 : vector<1x16x16xi1> to vector<1x16x16xi1>
    %150 = vector.broadcast %149 : vector<1x16x16xi1> to vector<4x16x16xi1>
    %151 = vector.broadcast %cst_49 : f32 to vector<4x16x16xf32>
    %152 = arith.select %150, %148, %151 : vector<4x16x16xi1>, vector<4x16x16xf32>
    %cst_50 = arith.constant dense<0xFF800000> : vector<4x16xf32>
    %153 = vector.multi_reduction <maximumf>, %152, %cst_50 [2] : vector<4x16x16xf32> to vector<4x16xf32>
    %154 = vector.shape_cast %153 : vector<4x16xf32> to vector<4x16x1xf32>
    %155 = vector.broadcast %154 : vector<4x16x1xf32> to vector<4x16x16xf32>
    %156 = arith.subf %152, %155 : vector<4x16x16xf32>
    %157 = math.exp %156 : vector<4x16x16xf32>
    %cst_51 = arith.constant dense<0.000000e+00> : vector<4x16xf32>
    %158 = vector.multi_reduction <add>, %157, %cst_51 [2] : vector<4x16x16xf32> to vector<4x16xf32>
    %159 = vector.shape_cast %158 : vector<4x16xf32> to vector<4x16x1xf32>
    %cst_52 = arith.constant 1.000000e+00 : f32
    %160 = vector.broadcast %cst_52 : f32 to vector<4x16x1xf32>
    %161 = arith.divf %160, %159 : vector<4x16x1xf32>
    %162 = vector.broadcast %161 : vector<4x16x1xf32> to vector<4x16x16xf32>
    %163 = arith.mulf %157, %162 : vector<4x16x16xf32>
    "tpu.trace_start"() <{level = 10 : i32, message = "bqk,bkd->bqd"}> : () -> ()
    %cst_53 = arith.constant dense<0.000000e+00> : vector<4x16x8xf32>
    %164 = tpu.matmul %163, %147, %cst_53 {dimension_numbers = #tpu.dot_dimension_numbers<[2], [1], [1], [2], [0, 0, 0, 1, 1, 2], [0], [0]>} : vector<4x16x16xf32>, vector<4x16x8xf32>, vector<4x16x8xf32> -> vector<4x16x8xf32>
    "tpu.trace_stop"() : () -> ()
    %165 = vector.extract_strided_slice %6 {offsets = [0, 0, 56], sizes = [4, 16, 8], strides = [1, 1, 1]} : vector<4x16x192xf32> to vector<4x16x8xf32>
    %cst_54 = arith.constant 0.353553385 : f32
    %166 = vector.broadcast %cst_54 : f32 to vector<4x16x8xf32>
    %167 = arith.mulf %165, %166 : vector<4x16x8xf32>
    %168 = vector.extract_strided_slice %6 {offsets = [0, 0, 120], sizes = [4, 16, 8], strides = [1, 1, 1]} : vector<4x16x192xf32> to vector<4x16x8xf32>
    %169 = vector.extract_strided_slice %6 {offsets = [0, 0, 184], sizes = [4, 16, 8], strides = [1, 1, 1]} : vector<4x16x192xf32> to vector<4x16x8xf32>
    "tpu.trace_start"() <{level = 10 : i32, message = "bqd,bkd->bqk"}> : () -> ()
    %cst_55 = arith.constant dense<0.000000e+00> : vector<4x16x16xf32>
    %170 = tpu.matmul %167, %168, %cst_55 {dimension_numbers = #tpu.dot_dimension_numbers<[2], [2], [1], [1], [0, 0, 0, 1, 1, 1], [0], [0]>} : vector<4x16x8xf32>, vector<4x16x8xf32>, vector<4x16x16xf32> -> vector<4x16x16xf32>
    %cst_56 = arith.constant -1.000000e+30 : f32
    "tpu.trace_stop"() : () -> ()
    %171 = vector.shape_cast %10 : vector<1x16x16xi1> to vector<1x16x16xi1>
    %172 = vector.broadcast %171 : vector<1x16x16xi1> to vector<4x16x16xi1>
    %173 = vector.broadcast %cst_56 : f32 to vector<4x16x16xf32>
    %174 = arith.select %172, %170, %173 : vector<4x16x16xi1>, vector<4x16x16xf32>
    %cst_57 = arith.constant dense<0xFF800000> : vector<4x16xf32>
    %175 = vector.multi_reduction <maximumf>, %174, %cst_57 [2] : vector<4x16x16xf32> to vector<4x16xf32>
    %176 = vector.shape_cast %175 : vector<4x16xf32> to vector<4x16x1xf32>
    %177 = vector.broadcast %176 : vector<4x16x1xf32> to vector<4x16x16xf32>
    %178 = arith.subf %174, %177 : vector<4x16x16xf32>
    %179 = math.exp %178 : vector<4x16x16xf32>
    %cst_58 = arith.constant dense<0.000000e+00> : vector<4x16xf32>
    %180 = vector.multi_reduction <add>, %179, %cst_58 [2] : vector<4x16x16xf32> to vector<4x16xf32>
    %181 = vector.shape_cast %180 : vector<4x16xf32> to vector<4x16x1xf32>
    %cst_59 = arith.constant 1.000000e+00 : f32
    %182 = vector.broadcast %cst_59 : f32 to vector<4x16x1xf32>
    %183 = arith.divf %182, %181 : vector<4x16x1xf32>
    %184 = vector.broadcast %183 : vector<4x16x1xf32> to vector<4x16x16xf32>
    %185 = arith.mulf %179, %184 : vector<4x16x16xf32>
    "tpu.trace_start"() <{level = 10 : i32, message = "bqk,bkd->bqd"}> : () -> ()
    %cst_60 = arith.constant dense<0.000000e+00> : vector<4x16x8xf32>
    %186 = tpu.matmul %185, %169, %cst_60 {dimension_numbers = #tpu.dot_dimension_numbers<[2], [1], [1], [2], [0, 0, 0, 1, 1, 2], [0], [0]>} : vector<4x16x16xf32>, vector<4x16x8xf32>, vector<4x16x8xf32> -> vector<4x16x8xf32>
    "tpu.trace_stop"() : () -> ()
    %187 = tpu.concatenate %32, %54, %76, %98, %120, %142, %164, %186 in 2 : vector<4x16x8xf32>, vector<4x16x8xf32>, vector<4x16x8xf32>, vector<4x16x8xf32>, vector<4x16x8xf32>, vector<4x16x8xf32>, vector<4x16x8xf32>, vector<4x16x8xf32> -> vector<4x16x64xf32>
    %188 = vector.shape_cast %187 : vector<4x16x64xf32> to vector<64x64xf32>
    %c0_61 = arith.constant 0 : index
    %c0_62 = arith.constant 0 : index
    %189 = vector.load %arg4[%c0_61, %c0_62] : memref<64x64xf32, #tpu.memory_space<vmem>>, vector<64x64xf32>
    %cst_63 = arith.constant dense<0.000000e+00> : vector<64x64xf32>
    %190 = tpu.matmul %188, %189, %cst_63 {dimension_numbers = #tpu.dot_dimension_numbers<[1], [0], [0], [1], [0, 0, 1, 1], [], []>} : vector<64x64xf32>, vector<64x64xf32>, vector<64x64xf32> -> vector<64x64xf32>
    %c0_64 = arith.constant 0 : index
    %c0_65 = arith.constant 0 : index
    %191 = vector.load %arg5[%c0_64, %c0_65] : memref<1x64xf32, #tpu.memory_space<vmem>>, vector<1x64xf32>
    %192 = vector.broadcast %191 : vector<1x64xf32> to vector<64x64xf32>
    %193 = arith.addf %190, %192 : vector<64x64xf32>
    %194 = arith.addf %193, %0 : vector<64x64xf32>
    %c0_66 = arith.constant 0 : index
    %c0_67 = arith.constant 0 : index
    %195 = vector.load %arg6[%c0_66, %c0_67] : memref<1x64xf32, #tpu.memory_space<vmem>>, vector<1x64xf32>
    %c0_68 = arith.constant 0 : index
    %c0_69 = arith.constant 0 : index
    %196 = vector.load %arg7[%c0_68, %c0_69] : memref<1x64xf32, #tpu.memory_space<vmem>>, vector<1x64xf32>
    %cst_70 = arith.constant dense<0.000000e+00> : vector<64xf32>
    %197 = vector.multi_reduction <add>, %194, %cst_70 [1] : vector<64x64xf32> to vector<64xf32>
    %198 = vector.shape_cast %197 : vector<64xf32> to vector<64x1xf32>
    %cst_71 = arith.constant 6.400000e+01 : f32
    %199 = vector.broadcast %cst_71 : f32 to vector<64x1xf32>
    %200 = arith.divf %198, %199 : vector<64x1xf32>
    %201 = vector.broadcast %200 : vector<64x1xf32> to vector<64x64xf32>
    %202 = arith.subf %194, %201 : vector<64x64xf32>
    %203 = arith.mulf %202, %202 : vector<64x64xf32>
    %cst_72 = arith.constant dense<0.000000e+00> : vector<64xf32>
    %204 = vector.multi_reduction <add>, %203, %cst_72 [1] : vector<64x64xf32> to vector<64xf32>
    %205 = vector.shape_cast %204 : vector<64xf32> to vector<64x1xf32>
    %cst_73 = arith.constant 6.400000e+01 : f32
    %206 = vector.broadcast %cst_73 : f32 to vector<64x1xf32>
    %207 = arith.divf %205, %206 : vector<64x1xf32>
    %208 = vector.broadcast %200 : vector<64x1xf32> to vector<64x64xf32>
    %209 = arith.subf %194, %208 : vector<64x64xf32>
    %cst_74 = arith.constant 9.99999974E-6 : f32
    %210 = vector.broadcast %cst_74 : f32 to vector<64x1xf32>
    %211 = arith.addf %207, %210 : vector<64x1xf32>
    %212 = math.sqrt %211 : vector<64x1xf32>
    %213 = vector.broadcast %212 : vector<64x1xf32> to vector<64x64xf32>
    %214 = arith.divf %209, %213 : vector<64x64xf32>
    %215 = vector.broadcast %195 : vector<1x64xf32> to vector<64x64xf32>
    %216 = arith.mulf %214, %215 : vector<64x64xf32>
    %217 = vector.broadcast %196 : vector<1x64xf32> to vector<64x64xf32>
    %218 = arith.addf %216, %217 : vector<64x64xf32>
    %c0_75 = arith.constant 0 : index
    %c0_76 = arith.constant 0 : index
    %219 = vector.load %arg8[%c0_75, %c0_76] : memref<64x256xf32, #tpu.memory_space<vmem>>, vector<64x256xf32>
    %cst_77 = arith.constant dense<0.000000e+00> : vector<64x256xf32>
    %220 = tpu.matmul %218, %219, %cst_77 {dimension_numbers = #tpu.dot_dimension_numbers<[1], [0], [0], [1], [0, 0, 1, 1], [], []>} : vector<64x64xf32>, vector<64x256xf32>, vector<64x256xf32> -> vector<64x256xf32>
    %c0_78 = arith.constant 0 : index
    %c0_79 = arith.constant 0 : index
    %221 = vector.load %arg9[%c0_78, %c0_79] : memref<1x256xf32, #tpu.memory_space<vmem>>, vector<1x256xf32>
    %222 = vector.broadcast %221 : vector<1x256xf32> to vector<64x256xf32>
    %223 = arith.addf %220, %222 : vector<64x256xf32>
    %cst_80 = arith.constant 0.000000e+00 : f32
    %224 = vector.broadcast %cst_80 : f32 to vector<64x256xf32>
    %225 = arith.maximumf %223, %224 : vector<64x256xf32>
    %c0_81 = arith.constant 0 : index
    %c0_82 = arith.constant 0 : index
    %226 = vector.load %arg10[%c0_81, %c0_82] : memref<256x64xf32, #tpu.memory_space<vmem>>, vector<256x64xf32>
    %cst_83 = arith.constant dense<0.000000e+00> : vector<64x64xf32>
    %227 = tpu.matmul %225, %226, %cst_83 {dimension_numbers = #tpu.dot_dimension_numbers<[1], [0], [0], [1], [0, 0, 1, 1], [], []>} : vector<64x256xf32>, vector<256x64xf32>, vector<64x64xf32> -> vector<64x64xf32>
    %c0_84 = arith.constant 0 : index
    %c0_85 = arith.constant 0 : index
    %228 = vector.load %arg11[%c0_84, %c0_85] : memref<1x64xf32, #tpu.memory_space<vmem>>, vector<1x64xf32>
    %229 = vector.broadcast %228 : vector<1x64xf32> to vector<64x64xf32>
    %230 = arith.addf %227, %229 : vector<64x64xf32>
    %cst_86 = arith.constant 0.000000e+00 : f32
    %231 = vector.broadcast %cst_86 : f32 to vector<64x64xf32>
    %232 = arith.maximumf %230, %231 : vector<64x64xf32>
    %233 = arith.addf %232, %218 : vector<64x64xf32>
    %c0_87 = arith.constant 0 : index
    %c0_88 = arith.constant 0 : index
    %234 = vector.load %arg12[%c0_87, %c0_88] : memref<1x64xf32, #tpu.memory_space<vmem>>, vector<1x64xf32>
    %c0_89 = arith.constant 0 : index
    %c0_90 = arith.constant 0 : index
    %235 = vector.load %arg13[%c0_89, %c0_90] : memref<1x64xf32, #tpu.memory_space<vmem>>, vector<1x64xf32>
    %cst_91 = arith.constant dense<0.000000e+00> : vector<64xf32>
    %236 = vector.multi_reduction <add>, %233, %cst_91 [1] : vector<64x64xf32> to vector<64xf32>
    %237 = vector.shape_cast %236 : vector<64xf32> to vector<64x1xf32>
    %cst_92 = arith.constant 6.400000e+01 : f32
    %238 = vector.broadcast %cst_92 : f32 to vector<64x1xf32>
    %239 = arith.divf %237, %238 : vector<64x1xf32>
    %240 = vector.broadcast %239 : vector<64x1xf32> to vector<64x64xf32>
    %241 = arith.subf %233, %240 : vector<64x64xf32>
    %242 = arith.mulf %241, %241 : vector<64x64xf32>
    %cst_93 = arith.constant dense<0.000000e+00> : vector<64xf32>
    %243 = vector.multi_reduction <add>, %242, %cst_93 [1] : vector<64x64xf32> to vector<64xf32>
    %244 = vector.shape_cast %243 : vector<64xf32> to vector<64x1xf32>
    %cst_94 = arith.constant 6.400000e+01 : f32
    %245 = vector.broadcast %cst_94 : f32 to vector<64x1xf32>
    %246 = arith.divf %244, %245 : vector<64x1xf32>
    %247 = vector.broadcast %239 : vector<64x1xf32> to vector<64x64xf32>
    %248 = arith.subf %233, %247 : vector<64x64xf32>
    %cst_95 = arith.constant 9.99999974E-6 : f32
    %249 = vector.broadcast %cst_95 : f32 to vector<64x1xf32>
    %250 = arith.addf %246, %249 : vector<64x1xf32>
    %251 = math.sqrt %250 : vector<64x1xf32>
    %252 = vector.broadcast %251 : vector<64x1xf32> to vector<64x64xf32>
    %253 = arith.divf %248, %252 : vector<64x64xf32>
    %254 = vector.broadcast %234 : vector<1x64xf32> to vector<64x64xf32>
    %255 = arith.mulf %253, %254 : vector<64x64xf32>
    %256 = vector.broadcast %235 : vector<1x64xf32> to vector<64x64xf32>
    %257 = arith.addf %255, %256 : vector<64x64xf32>
    %c0_96 = arith.constant 0 : index
    %c0_97 = arith.constant 0 : index
    %258 = vector.load %arg14[%c0_96, %c0_97] : memref<64x64xf32, #tpu.memory_space<vmem>>, vector<64x64xf32>
    tpu.vector_store %arg14[%c0_96, %c0_97], %257 {strides = array<i32>} : memref<64x64xf32, #tpu.memory_space<vmem>>, vector<64x64xf32>,
    return
  }
  func.func @transform_0(%arg0: i32) -> (i32, i32) {
    %c0_i32 = arith.constant 0 : i32
    %c0_i32_0 = arith.constant 0 : i32
    %c0_i32_1 = arith.constant 0 : i32
    return %c0_i32, %c0_i32_0 : i32, i32
  }
  func.func @transform_1(%arg0: i32) -> (i32, i32) {
    %c0_i32 = arith.constant 0 : i32
    %c0_i32_0 = arith.constant 0 : i32
    %c0_i32_1 = arith.constant 0 : i32
    return %c0_i32, %c0_i32_0 : i32, i32
  }
  func.func @transform_2(%arg0: i32) -> (i32, i32) {
    %c0_i32 = arith.constant 0 : i32
    %c0_i32_0 = arith.constant 0 : i32
    %c0_i32_1 = arith.constant 0 : i32
    return %c0_i32, %c0_i32_0 : i32, i32
  }
  func.func @transform_3(%arg0: i32) -> (i32, i32) {
    %c0_i32 = arith.constant 0 : i32
    %c0_i32_0 = arith.constant 0 : i32
    %c0_i32_1 = arith.constant 0 : i32
    return %c0_i32, %c0_i32_0 : i32, i32
  }
  func.func @transform_4(%arg0: i32) -> (i32, i32) {
    %c0_i32 = arith.constant 0 : i32
    %c0_i32_0 = arith.constant 0 : i32
    %c0_i32_1 = arith.constant 0 : i32
    return %c0_i32, %c0_i32_0 : i32, i32
  }
  func.func @transform_5(%arg0: i32) -> (i32, i32) {
    %c0_i32 = arith.constant 0 : i32
    %c0_i32_0 = arith.constant 0 : i32
    %c0_i32_1 = arith.constant 0 : i32
    return %c0_i32, %c0_i32_0 : i32, i32
  }
  func.func @transform_6(%arg0: i32) -> (i32, i32) {
    %c0_i32 = arith.constant 0 : i32
    %c0_i32_0 = arith.constant 0 : i32
    %c0_i32_1 = arith.constant 0 : i32
    return %c0_i32, %c0_i32_0 : i32, i32
  }
  func.func @transform_7(%arg0: i32) -> (i32, i32) {
    %c0_i32 = arith.constant 0 : i32
    %c0_i32_0 = arith.constant 0 : i32
    %c0_i32_1 = arith.constant 0 : i32
    return %c0_i32, %c0_i32_0 : i32, i32
  }
  func.func @transform_8(%arg0: i32) -> (i32, i32) {
    %c0_i32 = arith.constant 0 : i32
    %c0_i32_0 = arith.constant 0 : i32
    %c0_i32_1 = arith.constant 0 : i32
    return %c0_i32, %c0_i32_0 : i32, i32
  }
  func.func @transform_9(%arg0: i32) -> (i32, i32) {
    %c0_i32 = arith.constant 0 : i32
    %c0_i32_0 = arith.constant 0 : i32
    %c0_i32_1 = arith.constant 0 : i32
    return %c0_i32, %c0_i32_0 : i32, i32
  }
  func.func @transform_10(%arg0: i32) -> (i32, i32) {
    %c0_i32 = arith.constant 0 : i32
    %c0_i32_0 = arith.constant 0 : i32
    %c0_i32_1 = arith.constant 0 : i32
    return %c0_i32, %c0_i32_0 : i32, i32
  }
  func.func @transform_11(%arg0: i32) -> (i32, i32) {
    %c0_i32 = arith.constant 0 : i32
    %c0_i32_0 = arith.constant 0 : i32
    %c0_i32_1 = arith.constant 0 : i32
    return %c0_i32, %c0_i32_0 : i32, i32
  }
  func.func @transform_12(%arg0: i32) -> (i32, i32) {
    %c0_i32 = arith.constant 0 : i32
    %c0_i32_0 = arith.constant 0 : i32
    %c0_i32_1 = arith.constant 0 : i32
    return %c0_i32, %c0_i32_0 : i32, i32
  }
  func.func @transform_13(%arg0: i32) -> (i32, i32) {
    %c0_i32 = arith.constant 0 : i32
    %c0_i32_0 = arith.constant 0 : i32
    %c0_i32_1 = arith.constant 0 : i32
    return %c0_i32, %c0_i32_0 : i32, i32
  }
}

</mosaic_0001>

<bundles_post_ra>
// kernel: block_forward.1
= control target key start
LH: loop header
LB: loop body
LE: loop exit
PB: predicated region body
PF: predicated region fallthrough
CT: control target
= control target key end

     0   :  { %18 = vsyncpa [#allocation3], 0  ;;  %s9064_s0 = inlined_call_operand.vmem [shape: f32[64,64], index: 0, kind: input, shape index: {}]   ;;  %s9065_s1 = inlined_call_operand.vmem [shape: f32[64,192], index: 1, kind: input, shape index: {}]   ;;  %s9066_s2 = inlined_call_operand.hbm [shape: f32[1,192], index: 2, kind: input, shape index: {}]   ;;  %s9067_s3 = inlined_call_operand.vmem [shape: f32[64,64], index: 3, kind: input, shape index: {}]   ;;  %s9068_s4 = inlined_call_operand.vmem [shape: f32[1,64], index: 4, kind: input, shape index: {}]   ;;  %s9069_s5 = inlined_call_operand.vmem [shape: f32[1,64], index: 5, kind: input, shape index: {}]   ;;  %s9070_s6 = inlined_call_operand.hbm [shape: f32[1,64], index: 6, kind: input, shape index: {}]   ;;  %s9071_s7 = inlined_call_operand.vmem [shape: f32[64,256], index: 7, kind: input, shape index: {}]   ;;  %s9072_s8 = inlined_call_operand.vmem [shape: f32[1,256], index: 8, kind: input, shape index: {}]   ;;  %s9073_s9 = inlined_call_operand.vmem [shape: f32[256,64], index: 9, kind: input, shape index: {}]   ;;  %s9074_s10 = inlined_call_operand.vmem [shape: f32[1,64], index: 10, kind: input, shape index: {}]   ;;  %s9075_s11 = inlined_call_operand.vmem [shape: f32[1,64], index: 11, kind: input, shape index: {}]   ;;  %s9076_s12 = inlined_call_operand.vmem [shape: f32[1,64], index: 12, kind: input, shape index: {}]   ;;  %s9077_s13 = inlined_call_operand.hbm [shape: f32[64,64], index: 13, kind: output, shape index: {}]  }
   0x1   :  { %19 = vsyncpa [#allocation6], 0 }
   0x2   :  { %20 = vsyncpa [#allocation4], 0  ;;  %s30_s27 = sshll.u32 %s9066_s2, 4  ;;  %s6402_s28 = smov [#allocation2]   ;;  %s31_s27 = int_to_ptr.hbm [resolvable:$true] %s30_s27 }
   0x3   :  { %s32_s29 = sshll.u32 %s6402_s28, 4  ;;  %s47_s15 = sshll.u32 %s9070_s6, 4  ;;  %s33_s29 = int_to_ptr.vmem [resolvable:$true] %s32_s29  ;;  %s48_s15 = int_to_ptr.hbm [resolvable:$true] %s47_s15 }
   0x4   :  { %35 = dma.hbm_to_vmem [thread:$0]  %s31_s27, 32, %s33_s29, [#allocation3]  }
   0x5   :  { %s6403_s16 = smov [#allocation5]  }
   0x6   :  { %s49_s17 = sshll.u32 %s6403_s16, 4  ;;  %s50_s17 = int_to_ptr.vmem [resolvable:$true] %s49_s17 }
   0x7   :  { %52 = dma.hbm_to_vmem [thread:$0]  %s48_s15, 16, %s50_s17, [#allocation6]  }
   0x8   :  { %6396 = dma.done.wait [#allocation3], 32  }
   0x9   :  { %6397 = vsyncadd [#allocation3], 4294967264 }
   0xa   :  { %6398 = dma.done.wait [#allocation6], 16  }
   0xb   :  { %6399 = vsyncadd [#allocation6], 4294967280  ;;  %v95_v0 = vld [vmem:[%s9065_s1 + $0x70] sm:$0xff]  ;;  %v93_v1 = vld [vmem:[%s9065_s1 + $0x60] sm:$0xff]  ;;  %vm103_vm0 = vcmask 523264   ;;  %s6404_s29 = smov 64   ;;  %v210_v50 = vlaneseq }
   0xc   :  { %136 = vmatpush.msra.mxu0 %v95_v0  ;;  %v91_v2 = vld [vmem:[%s9065_s1 + $0x50] sm:$0xff]  ;;  %v89_v3 = vld [vmem:[%s9065_s1 + $0x40] sm:$0xff]  ;;  %v6532_v9 = vld [vmem:[%s9064_s0 + $0x8] sm:$0xff]  ;;  %s6405_s30 = smov 56   ;;  %vm231_vm1 = vcmask 64512   ;;  %vm394_vm3 = vcmask 130048  }
   0xd   :  { %v87_v4 = vld [vmem:[%s9065_s1 + $0x30] sm:$0xff]  ;;  %v85_v5 = vld [vmem:[%s9065_s1 + $0x20] sm:$0xff]  ;;  %v6546_v11 = vld [vmem:[%s9064_s0 + $0x18] sm:$0xff]  ;;  %v211_v51 = vshrl.u32 %v210_v50, 7  ;;  %v214_v52 = vand.u32 127, %v210_v50  ;;  %s6406_s28 = smov 120  }
   0xe   :  { %137 = vmatpush.msra.mxu0 %v93_v1  ;;  %v83_v6 = vld [vmem:[%s9065_s1 + $0x10] sm:$0xff]  ;;  %v81_v7 = vld [vmem:[%s9065_s1] sm:$0xff]  ;;  %v6560_v13 = vld [vmem:[%s9064_s0 + $0x28] sm:$0xff]  ;;  %s6409_s14 = smov 40   ;;  %s6410_s15 = smov 104  }
   0xf   :  { %v6525_v8 = vld [vmem:[%s9064_s0] sm:$0xff]  ;;  %v6539_v10 = vld [vmem:[%s9064_s0 + $0x10] sm:$0xff]  ;;  %v6574_v15 = vld [vmem:[%s9064_s0 + $0x38] sm:$0xff]  ;;  %vm6659_vm2 = vcmp.ge.s32.totalorder %v211_v51, %v214_v52  ;;  %v212_v57 = vadd.s32 8, %v211_v51  ;;  %s6411_s16 = smov 32   ;;  %s6412_s17 = smov 96  }
  0x10   :  { %138 = vmatpush.msra.mxu0 %v91_v2  ;;  %v6553_v12 = vld [vmem:[%s9064_s0 + $0x20] sm:$0xff]  ;;  %v6567_v14 = vld [vmem:[%s9064_s0 + $0x30] sm:$0xff]  ;;  %s6413_s18 = smov 24   ;;  %s6414_s2 = smov 88  }
  0x11   :  { %v6578_v16 = vld [vmem:[#allocation2] sm:$0x3]  ;;  %vm6669_vm4 = vcmp.ge.s32.totalorder %v212_v57, %v214_v52  ;;  %s6415_s19 = smov 16   ;;  %s6416_s20 = smov 80  }
  0x12   :  { %139 = vmatpush.msra.mxu0 %v89_v3  ;;  %v99_v17 = vperm.slane %v6578_v16, 0  ;;  %s6417_s6 = smov 8   ;;  %s6418_s21 = smov 72  }
  0x14   :  { %140 = vmatpush.msra.mxu0 %v87_v4 }
  0x16   :  { %141 = vmatpush.msra.mxu0 %v85_v5 }
  0x18   :  { %142 = vmatpush.msra.mxu0 %v83_v6 }
  0x1a   :  { %143 = vmatpush.msra.mxu0 %v81_v7  ;;  %v96_v7 = vld [vmem:[%s9065_s1 + $0x78] sm:$0xff] }
  0x1b   :  { %5586 = vmatmul.msk.f32.vlgmr.msra.gmra.mxu0 %vm103_vm0, %v6525_v8  ;;  %177 = vmatpush.msra.mxu1 %v96_v7 }
  0x23   :  { %5587 = vmatmul.msk.f32.gmra.mxu0 %vm103_vm0, %v6532_v9 }
  0x2b   :  { %5588 = vmatmul.msk.f32.gmra.mxu0 %vm103_vm0, %v6539_v10 }
  0x33   :  { %5589 = vmatmul.msk.f32.gmra.mxu0 %vm103_vm0, %v6546_v11 }
  0x3b   :  { %5590 = vmatmul.msk.f32.gmra.mxu0 %vm103_vm0, %v6553_v12 }
  0x43   :  { %5591 = vmatmul.msk.f32.gmra.mxu0 %vm103_vm0, %v6560_v13 }
  0x4b   :  { %5592 = vmatmul.msk.f32.gmra.mxu0 %vm103_vm0, %v6567_v14 }
  0x53   :  { %5593 = vmatmul.msk.f32.gmra.mxu0 %vm103_vm0, %v6574_v15 }
  0x98   :  { %v145_v18 = vpop.f32.mrf.mxu0 }
  0x99   :  { %v6581_v19 = vadd.f32 %v145_v18, %v99_v17 }
  0x9b   :  { %227 = vrot.lane.b32.xlu1 %v6581_v19, %s6404_s29  ;;  %v6612_v36 = vmul.f32 0.35355338, %v6581_v19 }
  0xa0   :  { %v148_v20 = vpop.f32.mrf.mxu0 }
  0xa1   :  { %v6584_v21 = vadd.f32 %v148_v20, %v99_v17 }
  0xa3   :  { %229 = vrot.lane.b32.xlu0 %v6584_v21, %s6404_s29  ;;  %v6617_v37 = vmul.f32 0.35355338, %v6584_v21 }
  0xa8   :  { %v151_v22 = vpop.f32.mrf.mxu0 }
  0xa9   :  { %v6587_v23 = vadd.f32 %v151_v22, %v99_v17 }
  0xab   :  { %267 = vrot.lane.b32.xlu1 %v6587_v23, %s6404_s29  ;;  %v6626_v41 = vmul.f32 0.35355338, %v6587_v23 }
  0xb0   :  { %v154_v24 = vpop.f32.mrf.mxu0 }
  0xb1   :  { %v6590_v25 = vadd.f32 %v154_v24, %v99_v17  ;;  %v92_v24 = vld [vmem:[%s9065_s1 + $0x58] sm:$0xff] }
  0xb3   :  { %269 = vrot.lane.b32.xlu0 %v6590_v25, %s6404_s29  ;;  %v6629_v42 = vmul.f32 0.35355338, %v6590_v25 }
  0xb8   :  { %v157_v26 = vpop.f32.mrf.mxu0 }
  0xb9   :  { %v6596_v29 = vadd.f32 %v157_v26, %v99_v17  ;;  %v90_v26 = vld [vmem:[%s9065_s1 + $0x48] sm:$0xff] }
  0xbb   :  { %v6638_v44 = vmul.f32 0.35355338, %v6596_v29 }
  0xc0   :  { %v160_v27 = vpop.f32.mrf.mxu0 }
  0xc1   :  { %v6593_v28 = vadd.f32 %v160_v27, %v99_v17  ;;  %v88_v27 = vld [vmem:[%s9065_s1 + $0x38] sm:$0xff] }
  0xc3   :  { %308 = vrot.lane.b32.xlu2 %v6593_v28, %s6404_s29  ;;  %v6643_v45 = vmul.f32 0.35355338, %v6593_v28 }
  0xc8   :  { %v163_v30 = vpop.f32.mrf.mxu0 }
  0xc9   :  { %v6598_v31 = vadd.f32 %v163_v30, %v99_v17 }
  0xcb   :  { %306 = vrot.lane.b32.xlu2 %v6596_v29, %s6404_s29  ;;  %345 = vrot.lane.b32.xlu1 %v6598_v31, %s6404_s29  ;;  %v6650_v48 = vmul.f32 0.35355338, %v6598_v31 }
  0xd0   :  { %v166_v32 = vpop.f32.mrf.mxu0 }
  0xd1   :  { %v6602_v33 = vadd.f32 %v166_v32, %v99_v17  ;;  %v94_v17 = vld [vmem:[%s9065_s1 + $0x68] sm:$0xff] }
  0xd2   :  { %178 = vmatpush.msra.mxu1 %v94_v17  ;;  %v86_v32 = vld [vmem:[%s9065_s1 + $0x28] sm:$0xff] }
  0xd3   :  { %717 = vrot.lane.b32.xlu2 %v6584_v21, %s6405_s30  ;;  %347 = vrot.lane.b32.xlu0 %v6602_v33, %s6404_s29  ;;  %v6655_v49 = vmul.f32 0.35355338, %v6602_v33  ;;  %s6408_s29 = smov 112  }
  0xd4   :  { %179 = vmatpush.msra.mxu1 %v92_v24 }
  0xd6   :  { %180 = vmatpush.msra.mxu1 %v90_v26  ;;  %v100_v26 = vperm.slane %v6578_v16, 1 }
  0xd8   :  { %181 = vmatpush.msra.mxu1 %v88_v27 }
  0xda   :  { %182 = vmatpush.msra.mxu1 %v86_v32 }
  0xdb   :  { %715 = vrot.lane.b32.xlu0 %v6581_v19, %s6405_s30 }
 0x10d   :  { %v228_v35 = vpop.permute.xlu1 %227 }
 0x115   :  { %v230_v34 = vpop.permute.xlu0 %229 }
 0x116   :  { %5602 = vmatpush.xpose.msk.msrb.mxu0 %vm231_vm1, %v230_v34 }
 0x11a   :  { %5603 = vmatpush.xpose.msk.msrb.mxu0 %vm231_vm1, %v228_v35 }
 0x11d   :  { %5604 = vmatmul.msk.f32.vlgmr.msrb.gmra.mxu0 %vm231_vm1, %v6612_v36  ;;  %v309_v38 = vpop.permute.xlu2 %308  ;;  %v268_v40 = vpop.permute.xlu1 %267 }
 0x125   :  { %v270_v39 = vpop.permute.xlu0 %269  ;;  %5605 = vmatmul.msk.f32.gmra.mxu0 %vm231_vm1, %v6617_v37  ;;  %v307_v43 = vpop.permute.xlu2 %306 }
 0x126   :  { %5606 = vmatpush.xpose.msk.msra.mxu2 %vm231_vm1, %v270_v39  ;;  %5818 = vmatpush.xpose.msk.msra.mxu3 %vm231_vm1, %v270_v39  ;;  %v82_v39 = vld [vmem:[%s9065_s1 + $0x8] sm:$0xff] }
 0x12a   :  { %5607 = vmatpush.xpose.msk.msra.mxu2 %vm231_vm1, %v268_v40  ;;  %5819 = vmatpush.xpose.msk.msra.mxu3 %vm231_vm1, %v268_v40 }
 0x12d   :  { %5608 = vmatmul.msk.f32.vlgmr.msra.gmra.mxu2 %vm231_vm1, %v6626_v41  ;;  %5609 = vmatmul.msk.f32.vlgmr.msra.gmra.mxu3 %vm231_vm1, %v6629_v42 }
 0x12e   :  { %5610 = vmatpush.xpose.msk.msrb.mxu2 %vm231_vm1, %v309_v38  ;;  %v84_v38 = vld [vmem:[%s9065_s1 + $0x18] sm:$0xff]  ;;  %s6407_s1 = smov 48  }
 0x12f   :  { %183 = vmatpush.msra.mxu1 %v84_v38 }
 0x131   :  { %184 = vmatpush.msra.mxu1 %v82_v39 }
 0x132   :  { %5611 = vmatpush.xpose.msk.msrb.mxu2 %vm231_vm1, %v307_v43  ;;  %5594 = vmatmul.msk.f32.vlgmr.msra.gmra.mxu1 %vm103_vm0, %v6525_v8  ;;  %v6747_v8 = vpop.permute.xlu2 %717 }
 0x135   :  { %5612 = vmatmul.msk.f32.vlgmr.msrb.gmra.mxu2 %vm231_vm1, %v6638_v44 }
 0x13a   :  { %5595 = vmatmul.msk.f32.gmra.mxu1 %vm103_vm0, %v6532_v9 }
 0x13d   :  { %5613 = vmatmul.msk.f32.gmra.mxu2 %vm231_vm1, %v6643_v45  ;;  %v346_v47 = vpop.permute.xlu1 %345 }
 0x142   :  { %5596 = vmatmul.msk.f32.gmra.mxu1 %vm103_vm0, %v6539_v10 }
 0x145   :  { %v348_v46 = vpop.permute.xlu0 %347 }
 0x146   :  { %5614 = vmatpush.xpose.msk.msrb.mxu3 %vm231_vm1, %v348_v46 }
 0x14a   :  { %5615 = vmatpush.xpose.msk.msrb.mxu3 %vm231_vm1, %v346_v47  ;;  %5597 = vmatmul.msk.f32.gmra.mxu1 %vm103_vm0, %v6546_v11 }
 0x14d   :  { %5616 = vmatmul.msk.f32.vlgmr.msrb.gmra.mxu3 %vm231_vm1, %v6650_v48  ;;  %v6751_v9 = vpop.permute.xlu0 %715 }
 0x152   :  { %5598 = vmatmul.msk.f32.gmra.mxu1 %vm103_vm0, %v6553_v12 }
 0x155   :  { %5617 = vmatmul.msk.f32.gmra.mxu3 %vm231_vm1, %v6655_v49 }
 0x15a   :  { %5599 = vmatmul.msk.f32.gmra.mxu1 %vm103_vm0, %v6560_v13 }
 0x162   :  { %5600 = vmatmul.msk.f32.gmra.mxu1 %vm103_vm0, %v6567_v14 }
 0x16a   :  { %5601 = vmatmul.msk.f32.gmra.mxu1 %vm103_vm0, %v6574_v15 }
 0x19a   :  { %v259_v54 = vpop.f32.mrf.mxu0 }
 0x19b   :  { %v6665_v55 = vsel %vm6659_vm2, %v259_v54, -1e+30 }
 0x19c   :  { %v395_v56 = vsel %vm394_vm3, %v6665_v55, -inf }
 0x19d   :  { %396 = vmax.xlane.f32.xlu2 %v395_v56 }
 0x1a2   :  { %v262_v59 = vpop.f32.mrf.mxu0 }
 0x1a3   :  { %v387_v60 = vsel %vm6669_vm4, %v262_v59, -1e+30 }
 0x1a4   :  { %v398_v61 = vsel %vm394_vm3, %v387_v60, -inf }
 0x1a5   :  { %399 = vmax.xlane.f32.xlu0 %v398_v61 }
 0x1b0   :  { %v298_v62 = vpop.f32.mrf.mxu2  ;;  %v301_v63 = vpop.f32.mrf.mxu3 }
 0x1b1   :  { %v6678_v0 = vsel %vm6659_vm2, %v298_v62, -1e+30  ;;  %v6682_v1 = vsel %vm6669_vm4, %v301_v63, -1e+30 }
 0x1b2   :  { %v401_v2 = vsel %vm394_vm3, %v6678_v0, -inf  ;;  %v404_v3 = vsel %vm394_vm3, %v6682_v1, -inf }
 0x1b3   :  { %402 = vmax.xlane.f32.xlu1 %v401_v2  ;;  %405 = vmax.xlane.f32.xlu2 %v404_v3 }
 0x1b8   :  { %v337_v4 = vpop.f32.mrf.mxu2 }
 0x1b9   :  { %v6690_v5 = vsel %vm6659_vm2, %v337_v4, -1e+30 }
 0x1ba   :  { %v407_v6 = vsel %vm394_vm3, %v6690_v5, -inf }
 0x1bb   :  { %408 = vmax.xlane.f32.xlu2 %v407_v6 }
 0x1c0   :  { %v340_v18 = vpop.f32.mrf.mxu2 }
 0x1c1   :  { %v6702_v20 = vsel %vm6669_vm4, %v340_v18, -1e+30  ;;  %v186_v18 = vpop.f32.mrf.mxu1 }
 0x1c2   :  { %v410_v22 = vsel %vm394_vm3, %v6702_v20, -inf }
 0x1c3   :  { %411 = vmax.xlane.f32.xlu0 %v410_v22 }
 0x1c9   :  { %v189_v27 = vpop.f32.mrf.mxu1 }
 0x1ca   :  { %v6790_v32 = vadd.f32 %v189_v27, %v100_v26 }
 0x1cc   :  { %615 = vmatpush.msra.mxu2 %v6790_v32 }
 0x1d0   :  { %v376_v30 = vpop.f32.mrf.mxu3 }
 0x1d1   :  { %v6720_v34 = vsel %vm6659_vm2, %v376_v30, -1e+30  ;;  %v6788_v30 = vadd.f32 %v186_v18, %v100_v26 }
 0x1d2   :  { %v413_v35 = vsel %vm394_vm3, %v6720_v34, -inf }
 0x1d3   :  { %414 = vmax.xlane.f32.xlu1 %v413_v35  ;;  %616 = vmatpush.msra.mxu2 %v6788_v30 }
 0x1d8   :  { %v379_v40 = vpop.f32.mrf.mxu3 }
 0x1d9   :  { %v393_v43 = vsel %vm6669_vm4, %v379_v40, -1e+30  ;;  %v192_v40 = vpop.f32.mrf.mxu1 }
 0x1da   :  { %v416_v46 = vsel %vm394_vm3, %v393_v43, -inf }
 0x1db   :  { %417 = vmax.xlane.f32.xlu2 %v416_v46 }
 0x1ec   :  { %711 = vrot.lane.b32.xlu1 %v6612_v36, %s6406_s28 }
 0x210   :  { %v397_v10 = vpop.xlane.xlu2 %396 }
 0x211   :  { %v419_v47 = vsub.f32 %v6665_v55, %v397_v10  ;;  %v195_v10 = vpop.f32.mrf.mxu1 }
 0x213   :  { %v427_v11 = vmul.f32 1.442695, %v419_v47  ;;  %v6796_v47 = vadd.f32 %v192_v40, %v100_v26 }
 0x215   :  { %5994 = vpow2.f32 %v427_v11  ;;  %v6798_v11 = vadd.f32 %v195_v10, %v100_v26 }
 0x217   :  { %644 = vmatpush.msra.mxu3 %v6798_v11 }
 0x218   :  { %v400_v50 = vpop.xlane.xlu0 %399 }
 0x219   :  { %v420_v12 = vsub.f32 %v387_v60, %v400_v50  ;;  %645 = vmatpush.msra.mxu3 %v6796_v47 }
 0x21b   :  { %v6756_v51 = vpop.eup %5994  ;;  %v429_v13 = vmul.f32 1.442695, %v420_v12  ;;  %v198_v12 = vpop.f32.mrf.mxu1 }
 0x21c   :  { %v443_v52 = vsel %vm394_vm3, %v6756_v51, 0.0 }
 0x21d   :  { %5996 = vpow2.f32 %v429_v13  ;;  %444 = vadd.xlane.f32.xlu0 %v443_v52 }
 0x223   :  { %v6760_v14 = vpop.eup %5996  ;;  %v201_v52 = vpop.f32.mrf.mxu1 }
 0x224   :  { %v446_v54 = vsel %vm394_vm3, %v6760_v14, 0.0 }
 0x225   :  { %447 = vadd.xlane.f32.xlu1 %v446_v54  ;;  %v6814_v54 = vadd.f32 %v198_v12, %v100_v26 }
 0x226   :  { %v403_v15 = vpop.xlane.xlu1 %402  ;;  %v406_v55 = vpop.xlane.xlu2 %405 }
 0x227   :  { %v421_v56 = vsub.f32 %v6678_v0, %v403_v15  ;;  %v422_v57 = vsub.f32 %v6682_v1, %v406_v55  ;;  %v6816_v15 = vadd.f32 %v201_v52, %v100_v26 }
 0x229   :  { %v431_v59 = vmul.f32 1.442695, %v421_v56  ;;  %v433_v60 = vmul.f32 1.442695, %v422_v57  ;;  %673 = vmatpush.msrb.mxu2 %v6816_v15 }
 0x22b   :  { %5998 = vpow2.f32 %v431_v59  ;;  %674 = vmatpush.msrb.mxu2 %v6814_v54  ;;  %v204_v55 = vpop.f32.mrf.mxu1 }
 0x22c   :  { %6000 = vpow2.f32 %v433_v60  ;;  %v6834_v60 = vadd.f32 %v204_v55, %v100_v26 }
 0x22e   :  { %v409_v61 = vpop.xlane.xlu2 %408 }
 0x22f   :  { %v423_v62 = vsub.f32 %v6690_v5, %v409_v61 }
 0x231   :  { %v6767_v63 = vpop.eup %5998  ;;  %v435_v2 = vmul.f32 1.442695, %v423_v62 }
 0x232   :  { %v6769_v3 = vpop.eup %6000  ;;  %v449_v4 = vsel %vm394_vm3, %v6767_v63, 0.0 }
 0x233   :  { %6002 = vpow2.f32 %v435_v2  ;;  %450 = vadd.xlane.f32.xlu2 %v449_v4  ;;  %v452_v0 = vsel %vm394_vm3, %v6769_v3, 0.0  ;;  %v207_v59 = vpop.f32.mrf.mxu1 }
 0x234   :  { %453 = vadd.xlane.f32.xlu1 %v452_v0  ;;  %v6836_v61 = vadd.f32 %v207_v59, %v100_v26 }
 0x236   :  { %v412_v35 = vpop.xlane.xlu0 %411  ;;  %702 = vmatpush.msrb.mxu3 %v6836_v61 }
 0x237   :  { %v424_v38 = vsub.f32 %v6702_v20, %v412_v35 }
 0x238   :  { %703 = vmatpush.msrb.mxu3 %v6834_v60 }
 0x239   :  { %v6775_v1 = vpop.eup %6002 }
 0x23a   :  { %v455_v6 = vsel %vm394_vm3, %v6775_v1, 0.0 }
 0x23b   :  { %456 = vadd.xlane.f32.xlu0 %v455_v6 }
 0x246   :  { %v415_v39 = vpop.xlane.xlu1 %414 }
 0x247   :  { %v425_v46 = vsub.f32 %v6720_v34, %v415_v39 }
 0x249   :  { %v439_v16 = vmul.f32 1.442695, %v425_v46 }
 0x24b   :  { %756 = vrot.lane.b32.xlu2 %v6590_v25, %s6405_s30 }
 0x24e   :  { %v418_v5 = vpop.xlane.xlu2 %417 }
 0x24f   :  { %v426_v7 = vsub.f32 %v393_v43, %v418_v5  ;;  %713 = vrot.lane.b32.xlu0 %v6617_v37, %s6406_s28  ;;  %v437_v43 = vmul.f32 1.442695, %v424_v38 }
 0x251   :  { %v441_v17 = vmul.f32 1.442695, %v426_v7 }
 0x253   :  { %6004 = vpow2.f32 %v441_v17 }
 0x254   :  { %6006 = vpow2.f32 %v437_v43 }
 0x255   :  { %6008 = vpow2.f32 %v439_v16 }
 0x259   :  { %v6783_v22 = vpop.eup %6004 }
 0x25a   :  { %v464_v24 = vsel %vm394_vm3, %v6783_v22, 0.0  ;;  %v6800_v50 = vpop.eup %6006 }
 0x25b   :  { %465 = vadd.xlane.f32.xlu1 %v464_v24  ;;  %v458_v20 = vsel %vm394_vm3, %v6800_v50, 0.0  ;;  %v6808_v34 = vpop.eup %6008 }
 0x25c   :  { %v461_v13 = vsel %vm394_vm3, %v6808_v34, 0.0 }
 0x25e   :  { %v6828_v56 = vpop.permute.xlu1 %711 }
 0x274   :  { %754 = vrot.lane.b32.xlu1 %v6587_v23, %s6405_s30  ;;  %459 = vadd.xlane.f32.xlu2 %v458_v20 }
 0x279   :  { %462 = vadd.xlane.f32.xlu0 %v461_v13 }
 0x27c   :  { %795 = vrot.lane.b32.xlu1 %v6593_v28, %s6405_s30 }
 0x284   :  { %791 = vrot.lane.b32.xlu1 %v6643_v45, %s6406_s28 }
 0x28c   :  { %828 = vrot.lane.b32.xlu1 %v6650_v48, %s6406_s28  ;;  %752 = vrot.lane.b32.xlu2 %v6629_v42, %s6406_s28 }
 0x28d   :  { %750 = vrot.lane.b32.xlu0 %v6626_v41, %s6406_s28 }
 0x290   :  { %v445_v57 = vpop.xlane.xlu0 %444 }
 0x291   :  { %6010 = vrcp.f32 %v445_v57  ;;  %v478_v6 = vand.u32 2147483648, %v445_v57  ;;  %v476_v7 = vand.u32 2147483647, %v445_v57  ;;  %vm472_vm6 = vweird.f32 %v445_v57 }
 0x293   :  { %v479_v24 = vor.u32 1.1754944e-38, %v478_v6  ;;  %vm477_vm8 = vcmp.eq.f32.partialorder %v476_v7, 8.507059e+37 }
 0x294   :  { %789 = vrot.lane.b32.xlu2 %v6638_v44, %s6406_s28 }
 0x295   :  { %793 = vrot.lane.b32.xlu0 %v6596_v29, %s6405_s30 }
 0x297   :  { %v6011_v62 = vpop.eup %6010 }
 0x298   :  { %v468_v2 = vmul.f32 %v6011_v62, %v445_v57  ;;  %v448_v4 = vpop.xlane.xlu1 %447  ;;  %vm473_vm5 = vweird.f32 %v6011_v62 }
 0x299   :  { %6012 = vrcp.f32 %v448_v4  ;;  %vm474_vm7 = vmor %vm472_vm6, %vm473_vm5  ;;  %v493_v40 = vand.u32 2147483648, %v448_v4  ;;  %v491_v46 = vand.u32 2147483647, %v448_v4  ;;  %vm487_vm10 = vweird.f32 %v448_v4 }
 0x29a   :  { %v469_v0 = vsub.f32 1.0, %v468_v2 }
 0x29b   :  { %v494_v12 = vor.u32 1.1754944e-38, %v493_v40  ;;  %vm492_vm12 = vcmp.eq.f32.partialorder %v491_v46, 8.507059e+37 }
 0x29c   :  { %v470_v5 = vmul.f32 %v6011_v62, %v469_v0  ;;  %832 = vrot.lane.b32.xlu2 %v6598_v31, %s6405_s30 }
 0x29d   :  { %834 = vrot.lane.b32.xlu0 %v6602_v33, %s6405_s30 }
 0x29e   :  { %v471_v17 = vadd.f32 %v6011_v62, %v470_v5 }
 0x29f   :  { %v6013_v18 = vpop.eup %6012 }
 0x2a0   :  { %v475_v26 = vsel %vm474_vm7, %v6011_v62, %v471_v17  ;;  %v483_v27 = vmul.f32 %v6013_v18, %v448_v4  ;;  %vm488_vm9 = vweird.f32 %v6013_v18 }
 0x2a1   :  { %v480_v35 = vsel %vm477_vm8, %v479_v24, %v475_v26  ;;  %vm489_vm11 = vmor %vm487_vm10, %vm488_vm9 }
 0x2a2   :  { %v484_v38 = vsub.f32 1.0, %v483_v27  ;;  %v587_v39 = vmul.f32 %v6756_v51, %v480_v35 }
 0x2a4   :  { %5618 = vmatmul.msk.f32.vlgmr.msra.gmra.mxu2 %vm394_vm3, %v587_v39  ;;  %v485_v43 = vmul.f32 %v6013_v18, %v484_v38 }
 0x2a5   :  { %5626 = vmatpush.xpose.msk.msra.mxu2 %vm231_vm1, %v6747_v8  ;;  %830 = vrot.lane.b32.xlu0 %v6655_v49, %s6406_s28 }
 0x2a6   :  { %v451_v16 = vpop.xlane.xlu2 %450  ;;  %v486_v10 = vadd.f32 %v6013_v18, %v485_v43 }
 0x2a7   :  { %6014 = vrcp.f32 %v451_v16  ;;  %v454_v20 = vpop.xlane.xlu1 %453  ;;  %v506_v4 = vand.u32 2147483647, %v451_v16  ;;  %v508_v0 = vand.u32 2147483648, %v451_v16  ;;  %vm502_vm14 = vweird.f32 %v451_v16 }
 0x2a8   :  { %6016 = vrcp.f32 %v454_v20  ;;  %v490_v51 = vsel %vm489_vm11, %v6013_v18, %v486_v10  ;;  %v523_v35 = vand.u32 2147483648, %v454_v20  ;;  %vm517_vm7 = vweird.f32 %v454_v20 }
 0x2a9   :  { %5627 = vmatpush.xpose.msk.msra.mxu2 %vm231_vm1, %v6751_v9  ;;  %v495_v13 = vsel %vm492_vm12, %v494_v12, %v490_v51  ;;  %vm507_vm5 = vcmp.eq.f32.partialorder %v506_v4, 8.507059e+37  ;;  %v521_v40 = vand.u32 2147483647, %v454_v20 }
 0x2aa   :  { %v588_v52 = vmul.f32 %v6760_v14, %v495_v13  ;;  %v509_v14 = vor.u32 1.1754944e-38, %v508_v0  ;;  %v524_v51 = vor.u32 1.1754944e-38, %v523_v35 }
 0x2ab   :  { %vm522_vm11 = vcmp.eq.f32.partialorder %v521_v40, 8.507059e+37 }
 0x2ac   :  { %5619 = vmatmul.msk.f32.gmra.mxu2 %vm394_vm3, %v588_v52 }
 0x2ad   :  { %v6015_v8 = vpop.eup %6014 }
 0x2ae   :  { %v6017_v55 = vpop.eup %6016  ;;  %v498_v57 = vmul.f32 %v6015_v8, %v451_v16  ;;  %v457_v59 = vpop.xlane.xlu0 %456  ;;  %vm503_vm13 = vweird.f32 %v6015_v8 }
 0x2af   :  { %v513_v62 = vmul.f32 %v6017_v55, %v454_v20  ;;  %6018 = vrcp.f32 %v457_v59  ;;  %vm504_vm15 = vmor %vm502_vm14, %vm503_vm13  ;;  %vm518_vm6 = vweird.f32 %v6017_v55  ;;  %v538_v43 = vand.u32 2147483648, %v457_v59  ;;  %v757_v46 = vpop.permute.xlu2 %756 }
 0x2b0   :  { %v499_v2 = vsub.f32 1.0, %v498_v57  ;;  %vm519_vm8 = vmor %vm517_vm7, %vm518_vm6  ;;  %v536_v16 = vand.u32 2147483647, %v457_v59  ;;  %vm532_vm10 = vweird.f32 %v457_v59 }
 0x2b1   :  { %v514_v6 = vsub.f32 1.0, %v513_v62  ;;  %v539_v52 = vor.u32 1.1754944e-38, %v538_v43 }
 0x2b2   :  { %v500_v5 = vmul.f32 %v6015_v8, %v499_v2  ;;  %vm537_vm13 = vcmp.eq.f32.partialorder %v536_v16, 8.507059e+37 }
 0x2b3   :  { %v515_v7 = vmul.f32 %v6017_v55, %v514_v6 }
 0x2b4   :  { %v501_v17 = vadd.f32 %v6015_v8, %v500_v5 }
 0x2b5   :  { %v6019_v9 = vpop.eup %6018  ;;  %v516_v26 = vadd.f32 %v6017_v55, %v515_v7 }
 0x2b6   :  { %v505_v18 = vsel %vm504_vm15, %v6015_v8, %v501_v17  ;;  %v528_v24 = vmul.f32 %v6019_v9, %v457_v59  ;;  %vm533_vm9 = vweird.f32 %v6019_v9 }
 0x2b7   :  { %v510_v27 = vsel %vm507_vm5, %v509_v14, %v505_v18  ;;  %v520_v12 = vsel %vm519_vm8, %v6017_v55, %v516_v26  ;;  %vm534_vm12 = vmor %vm532_vm10, %vm533_vm9 }
 0x2b8   :  { %v529_v38 = vsub.f32 1.0, %v528_v24  ;;  %v589_v39 = vmul.f32 %v6767_v63, %v510_v27  ;;  %v525_v63 = vsel %vm522_vm11, %v524_v51, %v520_v12 }
 0x2b9   :  { %v590_v57 = vmul.f32 %v6769_v3, %v525_v63 }
 0x2ba   :  { %v530_v10 = vmul.f32 %v6019_v9, %v529_v38  ;;  %5620 = vmatmul.msk.f32.vlgmr.msra.gmra.mxu3 %vm394_vm3, %v589_v39 }
 0x2bb   :  { %5630 = vmatpush.xpose.msk.msra.mxu3 %vm231_vm1, %v757_v46 }
 0x2bc   :  { %v531_v13 = vadd.f32 %v6019_v9, %v530_v10 }
 0x2be   :  { %v535_v8 = vsel %vm534_vm12, %v6019_v9, %v531_v13 }
 0x2bf   :  { %v540_v20 = vsel %vm537_vm13, %v539_v52, %v535_v8 }
 0x2c0   :  { %v591_v62 = vmul.f32 %v6775_v1, %v540_v20 }
 0x2c1   :  { %v6861_v2 = vpop.permute.xlu0 %713 }
 0x2c2   :  { %5621 = vmatmul.msk.f32.gmra.mxu3 %vm394_vm3, %v590_v57  ;;  %5622 = vmatmul.msk.f32.vlgmr.msrb.gmra.mxu2 %vm394_vm3, %v591_v62 }
 0x2ce   :  { %v466_v55 = vpop.xlane.xlu1 %465 }
 0x2cf   :  { %6020 = vrcp.f32 %v466_v55  ;;  %v583_v57 = vand.u32 2147483648, %v466_v55  ;;  %vm577_vm12 = vweird.f32 %v466_v55 }
 0x2d5   :  { %v6021_v0 = vpop.eup %6020 }
 0x2d6   :  { %v573_v7 = vmul.f32 %v6021_v0, %v466_v55  ;;  %vm578_vm11 = vweird.f32 %v6021_v0 }
 0x2d7   :  { %vm579_vm13 = vmor %vm577_vm12, %vm578_vm11 }
 0x2d8   :  { %v574_v18 = vsub.f32 1.0, %v573_v7 }
 0x2da   :  { %v575_v46 = vmul.f32 %v6021_v0, %v574_v18 }
 0x2dc   :  { %v576_v8 = vadd.f32 %v6021_v0, %v575_v46 }
 0x2e6   :  { %v755_v59 = vpop.permute.xlu1 %754 }
 0x2e7   :  { %5631 = vmatpush.xpose.msk.msra.mxu3 %vm231_vm1, %v755_v59  ;;  %v460_v4 = vpop.xlane.xlu2 %459  ;;  %v581_v59 = vand.u32 2147483647, %v466_v55 }
 0x2e8   :  { %6022 = vrcp.f32 %v460_v4  ;;  %v553_v9 = vand.u32 2147483648, %v460_v4  ;;  %v551_v26 = vand.u32 2147483647, %v460_v4  ;;  %vm547_vm15 = vweird.f32 %v460_v4 }
 0x2ea   :  { %v554_v39 = vor.u32 1.1754944e-38, %v553_v9  ;;  %vm552_vm6 = vcmp.eq.f32.partialorder %v551_v26, 8.507059e+37 }
 0x2ec   :  { %v463_v6 = vpop.xlane.xlu0 %462 }
 0x2ed   :  { %6024 = vrcp.f32 %v463_v6  ;;  %v568_v40 = vand.u32 2147483648, %v463_v6  ;;  %v566_v16 = vand.u32 2147483647, %v463_v6  ;;  %vm562_vm8 = vweird.f32 %v463_v6 }
 0x2ee   :  { %v6023_v5 = vpop.eup %6022  ;;  %v796_v3 = vpop.permute.xlu1 %795 }
 0x2ef   :  { %v543_v1 = vmul.f32 %v6023_v5, %v460_v4  ;;  %5634 = vmatpush.xpose.msk.msra.mxu0 %vm231_vm1, %v796_v3  ;;  %vm548_vm14 = vweird.f32 %v6023_v5  ;;  %v569_v52 = vor.u32 1.1754944e-38, %v568_v40  ;;  %vm567_vm10 = vcmp.eq.f32.partialorder %v566_v16, 8.507059e+37  ;;  %v753_v4 = vpop.permute.xlu2 %752 }
 0x2f0   :  { %vm549_vm5 = vmor %vm547_vm15, %vm548_vm14  ;;  %vm582_vm14 = vcmp.eq.f32.partialorder %v581_v59, 8.507059e+37 }
 0x2f1   :  { %v544_v17 = vsub.f32 1.0, %v543_v1 }
 0x2f3   :  { %v6025_v14 = vpop.eup %6024  ;;  %v545_v24 = vmul.f32 %v6023_v5, %v544_v17 }
 0x2f4   :  { %v558_v27 = vmul.f32 %v6025_v14, %v463_v6  ;;  %vm563_vm7 = vweird.f32 %v6025_v14  ;;  %v584_v6 = vor.u32 1.1754944e-38, %v583_v57 }
 0x2f5   :  { %v546_v35 = vadd.f32 %v6023_v5, %v545_v24  ;;  %vm564_vm9 = vmor %vm562_vm8, %vm563_vm7 }
 0x2f6   :  { %v559_v38 = vsub.f32 1.0, %v558_v27  ;;  %v792_v55 = vpop.permute.xlu1 %791 }
 0x2f7   :  { %v550_v43 = vsel %vm549_vm5, %v6023_v5, %v546_v35 }
 0x2f8   :  { %v560_v10 = vmul.f32 %v6025_v14, %v559_v38  ;;  %v555_v12 = vsel %vm552_vm6, %v554_v39, %v550_v43 }
 0x2f9   :  { %v592_v51 = vmul.f32 %v6800_v50, %v555_v12  ;;  %v580_v50 = vsel %vm579_vm13, %v6021_v0, %v576_v8 }
 0x2fa   :  { %v561_v13 = vadd.f32 %v6025_v14, %v560_v10  ;;  %v585_v3 = vsel %vm582_vm14, %v584_v6, %v580_v50 }
 0x2fb   :  { %5623 = vmatmul.msk.f32.gmra.mxu2 %vm394_vm3, %v592_v51  ;;  %v594_v7 = vmul.f32 %v6783_v22, %v585_v3 }
 0x2fc   :  { %v565_v63 = vsel %vm564_vm9, %v6025_v14, %v561_v13 }
 0x2fd   :  { %v570_v20 = vsel %vm567_vm10, %v569_v52, %v565_v63  ;;  %v6918_v52 = vpack.i.bf16 %v6788_v30, %v6790_v32  ;;  %v6922_v63 = vpack.i.bf16 %v6796_v47, %v6798_v11 }
 0x2fe   :  { %v593_v62 = vmul.f32 %v6808_v34, %v570_v20  ;;  %v790_v34 = vpop.permute.xlu2 %789  ;;  %v829_v22 = vpop.permute.xlu1 %828 }
 0x2ff   :  { %v751_v5 = vpop.permute.xlu0 %750 }
 0x300   :  { %5624 = vmatmul.msk.f32.vlgmr.msrb.gmra.mxu3 %vm394_vm3, %v593_v62 }
 0x303   :  { %5628 = vmatmul.msk.f32.vlgmr.msra.gmra.mxu2 %vm231_vm1, %v6828_v56 }
 0x306   :  { %v833_v56 = vpop.permute.xlu2 %832 }
 0x307   :  { %v794_v1 = vpop.permute.xlu0 %793 }
 0x308   :  { %5625 = vmatmul.msk.f32.gmra.mxu3 %vm394_vm3, %v594_v7  ;;  %5635 = vmatpush.xpose.msk.msra.mxu0 %vm231_vm1, %v794_v1 }
 0x30b   :  { %5629 = vmatmul.msk.f32.gmra.mxu2 %vm231_vm1, %v6861_v2  ;;  %5636 = vmatmul.msk.f32.vlgmr.msra.gmra.mxu0 %vm231_vm1, %v790_v34 }
 0x30f   :  { %v835_v0 = vpop.permute.xlu0 %834 }
 0x310   :  { %5632 = vmatmul.msk.f32.vlgmr.msra.gmra.mxu3 %vm231_vm1, %v751_v5  ;;  %5638 = vmatpush.xpose.msk.msrb.mxu1 %vm231_vm1, %v835_v0 }
 0x313   :  { %5637 = vmatmul.msk.f32.gmra.mxu0 %vm231_vm1, %v792_v55 }
 0x314   :  { %5639 = vmatpush.xpose.msk.msrb.mxu1 %vm231_vm1, %v833_v56 }
 0x317   :  { %5640 = vmatmul.msk.f32.vlgmr.msrb.gmra.mxu1 %vm231_vm1, %v829_v22  ;;  %v831_v17 = vpop.permute.xlu0 %830 }
 0x318   :  { %5633 = vmatmul.msk.f32.gmra.mxu3 %vm231_vm1, %v753_v4 }
 0x31f   :  { %5641 = vmatmul.msk.f32.gmra.mxu1 %vm231_vm1, %v831_v17 }
 0x327   :  { %v6884_v2 = vpop.f32.mrf.mxu2 }
 0x328   :  { %9082 = vst [vmem:[#allocation11_spill] sm:$0xff] %v6884_v2 }
 0x32f   :  { %v6886_v9 = vpop.f32.mrf.mxu2 }
 0x330   :  { %9083 = vst [vmem:[#allocation12_spill] sm:$0xff] %v6886_v9 }
 0x33d   :  { %v6910_v51 = vpop.f32.mrf.mxu3 }
 0x33e   :  { %9086 = vst [vmem:[#allocation15_spill] sm:$0xff] %v6910_v51 }
 0x345   :  { %v6888_v14 = vpop.f32.mrf.mxu2  ;;  %v6914_v13 = vpop.f32.mrf.mxu3 }
 0x346   :  { %9084 = vst [vmem:[#allocation13_spill] sm:$0xff] %v6888_v14 }
 0x347   :  { %9087 = vst [vmem:[#allocation16_spill] sm:$0xff] %v6914_v13 }
 0x37e   :  { %v6890_v18 = vpop.f32.mrf.mxu2 }
 0x37f   :  { %9085 = vst [vmem:[#allocation14_spill] sm:$0xff] %v6890_v18 }
 0x383   :  { %v6928_v8 = vpop.f32.mrf.mxu3 }
 0x384   :  { %9088 = vst [vmem:[#allocation17_spill] sm:$0xff] %v6928_v8 }
 0x386   :  { %v744_v24 = vpop.f32.mrf.mxu2 }
 0x387   :  { %v867_v26 = vsel %vm6659_vm2, %v744_v24, -1e+30 }
 0x388   :  { %v822_v27 = vpop.f32.mrf.mxu0  ;;  %v875_v35 = vsel %vm394_vm3, %v867_v26, -inf }
 0x389   :  { %876 = vmax.xlane.f32.xlu2 %v875_v35  ;;  %v6897_v38 = vsel %vm6659_vm2, %v822_v27, -1e+30 }
 0x38a   :  { %v887_v39 = vsel %vm394_vm3, %v6897_v38, -inf }
 0x38b   :  { %888 = vmax.xlane.f32.xlu0 %v887_v39  ;;  %v6930_v20 = vpop.f32.mrf.mxu3 }
 0x38c   :  { %9089 = vst [vmem:[#allocation18_spill] sm:$0xff] %v6930_v20 }
 0x38e   :  { %v747_v40 = vpop.f32.mrf.mxu2 }
 0x38f   :  { %v868_v43 = vsel %vm6669_vm4, %v747_v40, -1e+30 }
 0x390   :  { %v825_v46 = vpop.f32.mrf.mxu0  ;;  %v878_v10 = vsel %vm394_vm3, %v868_v43, -inf }
 0x391   :  { %879 = vmax.xlane.f32.xlu1 %v878_v10  ;;  %v6906_v16 = vsel %vm6669_vm4, %v825_v46, -1e+30 }
 0x392   :  { %v890_v12 = vsel %vm394_vm3, %v6906_v16, -inf }
 0x393   :  { %891 = vmax.xlane.f32.xlu2 %v890_v12  ;;  %v783_v57 = vpop.f32.mrf.mxu3 }
 0x394   :  { %v869_v62 = vsel %vm6659_vm2, %v783_v57, -1e+30  ;;  %v861_v46 = vpop.f32.mrf.mxu1 }
 0x395   :  { %v881_v30 = vsel %vm394_vm3, %v869_v62, -inf }
 0x39b   :  { %v786_v32 = vpop.f32.mrf.mxu3 }
 0x39c   :  { %v870_v47 = vsel %vm6669_vm4, %v786_v32, -1e+30 }
 0x39d   :  { %v884_v11 = vsel %vm394_vm3, %v870_v47, -inf }
 0x39f   :  { %1229 = vrot.lane.b32.xlu0 %v6584_v21, %s6407_s1 }
 0x3aa   :  { %5849 = vrot.lane.b32.xlu1 %v6918_v52, %s6406_s28 }
 0x3ab   :  { %5854 = vrot.lane.b32.xlu2 %v6922_v63, %s6406_s28 }
 0x3c9   :  { %882 = vmax.xlane.f32.xlu0 %v881_v30 }
 0x3d4   :  { %885 = vmax.xlane.f32.xlu2 %v884_v11  ;;  %v864_v11 = vpop.f32.mrf.mxu1 }
 0x3dd   :  { %1223 = vrot.lane.b32.xlu0 %v6612_v36, %s6408_s29 }
 0x3ec   :  { %1268 = vrot.lane.b32.xlu2 %v6590_v25, %s6407_s1 }
 0x3f4   :  { %1266 = vrot.lane.b32.xlu2 %v6587_v23, %s6407_s1 }
 0x3fc   :  { %v877_v59 = vpop.xlane.xlu2 %876  ;;  %1262 = vrot.lane.b32.xlu2 %v6626_v41, %s6408_s29 }
 0x3fd   :  { %v899_v4 = vsub.f32 %v867_v26, %v877_v59 }
 0x3fe   :  { %v889_v24 = vpop.xlane.xlu0 %888 }
 0x3ff   :  { %v907_v5 = vmul.f32 1.442695, %v899_v4  ;;  %v903_v12 = vsub.f32 %v6897_v38, %v889_v24  ;;  %v6974_v38 = vsel %vm6669_vm4, %v864_v11, -1e+30  ;;  %v6996_v24 = vpack.i.bf16 %v6834_v60, %v6836_v61 }
 0x401   :  { %6026 = vpow2.f32 %v907_v5  ;;  %v915_v57 = vmul.f32 1.442695, %v903_v12  ;;  %v6968_v5 = vsel %vm6659_vm2, %v861_v46, -1e+30 }
 0x404   :  { %v880_v50 = vpop.xlane.xlu1 %879 }
 0x405   :  { %v900_v6 = vsub.f32 %v868_v43, %v880_v50  ;;  %v893_v50 = vsel %vm394_vm3, %v6968_v5, -inf }
 0x406   :  { %v6946_v3 = vpop.xlane.xlu2 %891 }
 0x407   :  { %v6948_v7 = vpop.eup %6026  ;;  %v909_v1 = vmul.f32 1.442695, %v900_v6  ;;  %v904_v60 = vsub.f32 %v6906_v16, %v6946_v3 }
 0x408   :  { %v923_v34 = vsel %vm394_vm3, %v6948_v7, 0.0 }
 0x409   :  { %6028 = vpow2.f32 %v909_v1  ;;  %924 = vadd.xlane.f32.xlu1 %v923_v34 }
 0x40e   :  { %v5855_v55 = vpop.permute.xlu2 %5854 }
 0x40f   :  { %v6952_v0 = vpop.eup %6028  ;;  %v5856_v56 = vunpack.i.l.bf16 %v5855_v55  ;;  %v5857_v17 = vunpack.i.h.bf16 %v5855_v55 }
 0x410   :  { %v926_v22 = vsel %vm394_vm3, %v6952_v0, 0.0 }
 0x411   :  { %927 = vadd.xlane.f32.xlu0 %v926_v22  ;;  %1140 = vmatpush.msrb.mxu3 %v5856_v56  ;;  %v1230_v39 = vpop.permute.xlu0 %1229 }
 0x413   :  { %1141 = vmatpush.msrb.mxu3 %v5857_v17  ;;  %v6990_v17 = vpack.i.bf16 %v6814_v54, %v6816_v15 }
 0x41c   :  { %v5850_v26 = vpop.permute.xlu1 %5849 }
 0x41d   :  { %v5851_v27 = vunpack.i.l.bf16 %v5850_v26  ;;  %v5852_v35 = vunpack.i.h.bf16 %v5850_v26 }
 0x41f   :  { %1103 = vmatpush.msrb.mxu2 %v5851_v27 }
 0x421   :  { %1104 = vmatpush.msrb.mxu2 %v5852_v35 }
 0x422   :  { %1227 = vrot.lane.b32.xlu1 %v6581_v19, %s6407_s1 }
 0x423   :  { %5650 = vmatpush.xpose.msk.msra.mxu2 %vm231_vm1, %v1230_v39  ;;  %v917_v39 = vmul.f32 1.442695, %v904_v60 }
 0x425   :  { %1225 = vrot.lane.b32.xlu0 %v6617_v37, %s6408_s29 }
 0x43c   :  { %v883_v40 = vpop.xlane.xlu0 %882 }
 0x43d   :  { %v901_v43 = vsub.f32 %v869_v62, %v883_v40 }
 0x43f   :  { %v911_v10 = vmul.f32 1.442695, %v901_v43 }
 0x441   :  { %6030 = vpow2.f32 %v911_v10 }
 0x442   :  { %6032 = vpow2.f32 %v915_v57 }
 0x447   :  { %v6962_v30 = vpop.eup %6030  ;;  %v886_v32 = vpop.xlane.xlu2 %885 }
 0x448   :  { %v902_v59 = vsub.f32 %v870_v47, %v886_v32  ;;  %v929_v4 = vsel %vm394_vm3, %v6962_v30, 0.0  ;;  %v896_v47 = vsel %vm394_vm3, %v6974_v38, -inf  ;;  %v6978_v1 = vpop.eup %6032 }
 0x449   :  { %930 = vadd.xlane.f32.xlu2 %v929_v4  ;;  %v935_v55 = vsel %vm394_vm3, %v6978_v1, 0.0 }
 0x44a   :  { %v913_v62 = vmul.f32 1.442695, %v902_v59 }
 0x44c   :  { %6034 = vpow2.f32 %v913_v62  ;;  %894 = vmax.xlane.f32.xlu1 %v893_v50 }
 0x44f   :  { %v1269_v6 = vpop.permute.xlu2 %1268  ;;  %897 = vmax.xlane.f32.xlu0 %v896_v47  ;;  %v1224_v54 = vpop.permute.xlu0 %1223 }
 0x450   :  { %5654 = vmatpush.xpose.msk.msra.mxu3 %vm231_vm1, %v1269_v6 }
 0x452   :  { %v6981_v34 = vpop.eup %6034 }
 0x453   :  { %v932_v56 = vsel %vm394_vm3, %v6981_v34, 0.0 }
 0x454   :  { %936 = vadd.xlane.f32.xlu1 %v935_v55  ;;  %933 = vadd.xlane.f32.xlu2 %v932_v56 }
 0x457   :  { %v1267_v22 = vpop.permute.xlu2 %1266 }
 0x458   :  { %5655 = vmatpush.xpose.msk.msra.mxu3 %vm231_vm1, %v1267_v22 }
 0x463   :  { %5859 = vrot.lane.b32.xlu0 %v6990_v17, %s6406_s28 }
 0x46b   :  { %5864 = vrot.lane.b32.xlu0 %v6996_v24, %s6406_s28 }
 0x46c   :  { %1264 = vrot.lane.b32.xlu2 %v6629_v42, %s6408_s29 }
 0x473   :  { %1305 = vrot.lane.b32.xlu0 %v6596_v29, %s6407_s1 }
 0x47b   :  { %1346 = vrot.lane.b32.xlu0 %v6602_v33, %s6407_s1 }
 0x47c   :  { %v925_v15 = vpop.xlane.xlu1 %924 }
 0x47d   :  { %6036 = vrcp.f32 %v925_v15  ;;  %v958_v40 = vand.u32 2147483648, %v925_v15  ;;  %v956_v46 = vand.u32 2147483647, %v925_v15  ;;  %vm952_vm5 = vweird.f32 %v925_v15 }
 0x47f   :  { %v959_v57 = vor.u32 1.1754944e-38, %v958_v40  ;;  %vm957_vm7 = vcmp.eq.f32.partialorder %v956_v46, 8.507059e+37 }
 0x483   :  { %v6037_v26 = vpop.eup %6036  ;;  %1340 = vrot.lane.b32.xlu0 %v6650_v48, %s6408_s29 }
 0x484   :  { %v948_v61 = vmul.f32 %v6037_v26, %v925_v15  ;;  %v928_v27 = vpop.xlane.xlu0 %927  ;;  %vm953_vm15 = vweird.f32 %v6037_v26 }
 0x485   :  { %6038 = vrcp.f32 %v928_v27  ;;  %vm954_vm6 = vmor %vm952_vm5, %vm953_vm15  ;;  %v973_v4 = vand.u32 2147483648, %v928_v27  ;;  %v971_v50 = vand.u32 2147483647, %v928_v27  ;;  %vm967_vm9 = vweird.f32 %v928_v27 }
 0x486   :  { %v949_v35 = vsub.f32 1.0, %v948_v61  ;;  %6040 = vpow2.f32 %v917_v39  ;;  %v7023_v61 = vpop.permute.xlu2 %1262 }
 0x487   :  { %v974_v55 = vor.u32 1.1754944e-38, %v973_v4  ;;  %vm972_vm11 = vcmp.eq.f32.partialorder %v971_v50, 8.507059e+37 }
 0x488   :  { %v950_v43 = vmul.f32 %v6037_v26, %v949_v35 }
 0x48a   :  { %v951_v10 = vadd.f32 %v6037_v26, %v950_v43 }
 0x48b   :  { %v6039_v12 = vpop.eup %6038 }
 0x48c   :  { %v955_v32 = vsel %vm954_vm6, %v6037_v26, %v951_v10  ;;  %v963_v16 = vmul.f32 %v6039_v12, %v928_v27  ;;  %vm968_vm8 = vweird.f32 %v6039_v12  ;;  %v7012_v47 = vpop.eup %6040 }
 0x48d   :  { %v960_v3 = vsel %vm957_vm7, %v959_v57, %v955_v32  ;;  %vm969_vm10 = vmor %vm967_vm9, %vm968_vm8  ;;  %v938_v22 = vsel %vm394_vm3, %v7012_v47, 0.0 }
 0x48e   :  { %v964_v11 = vsub.f32 1.0, %v963_v16  ;;  %v1067_v59 = vmul.f32 %v6948_v7, %v960_v3 }
 0x490   :  { %5642 = vmatmul.msk.f32.vlgmr.msrb.gmra.mxu2 %vm394_vm3, %v1067_v59  ;;  %v965_v62 = vmul.f32 %v6039_v12, %v964_v11 }
 0x492   :  { %v966_v6 = vadd.f32 %v6039_v12, %v965_v62 }
 0x494   :  { %v1228_v56 = vpop.permute.xlu1 %1227  ;;  %v970_v15 = vsel %vm969_vm10, %v6039_v12, %v966_v6 }
 0x495   :  { %5651 = vmatpush.xpose.msk.msra.mxu2 %vm231_vm1, %v1228_v56  ;;  %939 = vadd.xlane.f32.xlu2 %v938_v22  ;;  %v975_v7 = vsel %vm972_vm11, %v974_v55, %v970_v15 }
 0x496   :  { %v1068_v26 = vmul.f32 %v6952_v0, %v975_v7 }
 0x497   :  { %v1226_v60 = vpop.permute.xlu0 %1225 }
 0x498   :  { %5643 = vmatmul.msk.f32.gmra.mxu2 %vm394_vm3, %v1068_v26 }
 0x4a0   :  { %5652 = vmatmul.msk.f32.vlgmr.msra.gmra.mxu2 %vm231_vm1, %v1224_v54 }
 0x4a8   :  { %5653 = vmatmul.msk.f32.gmra.mxu2 %vm231_vm1, %v1226_v60 }
 0x4ad   :  { %1301 = vrot.lane.b32.xlu2 %v6638_v44, %s6408_s29 }
 0x4bc   :  { %v931_v27 = vpop.xlane.xlu2 %930 }
 0x4bd   :  { %6042 = vrcp.f32 %v931_v27  ;;  %v988_v57 = vand.u32 2147483648, %v931_v27  ;;  %v986_v11 = vand.u32 2147483647, %v931_v27  ;;  %vm982_vm13 = vweird.f32 %v931_v27 }
 0x4bf   :  { %v895_v35 = vpop.xlane.xlu1 %894  ;;  %v989_v4 = vor.u32 1.1754944e-38, %v988_v57  ;;  %vm987_vm15 = vcmp.eq.f32.partialorder %v986_v11, 8.507059e+37 }
 0x4c0   :  { %v905_v39 = vsub.f32 %v6968_v5, %v895_v35 }
 0x4c2   :  { %v919_v40 = vmul.f32 1.442695, %v905_v39  ;;  %v898_v43 = vpop.xlane.xlu0 %897 }
 0x4c3   :  { %v6043_v0 = vpop.eup %6042  ;;  %v906_v46 = vsub.f32 %v6974_v38, %v898_v43 }
 0x4c4   :  { %v978_v10 = vmul.f32 %v6043_v0, %v931_v27  ;;  %6044 = vpow2.f32 %v919_v40  ;;  %vm983_vm12 = vweird.f32 %v6043_v0 }
 0x4c5   :  { %v921_v12 = vmul.f32 1.442695, %v906_v46  ;;  %vm984_vm14 = vmor %vm982_vm13, %vm983_vm12 }
 0x4c6   :  { %v979_v54 = vsub.f32 1.0, %v978_v10 }
 0x4c7   :  { %v937_v32 = vpop.xlane.xlu1 %936  ;;  %v934_v16 = vpop.xlane.xlu2 %933 }
 0x4c8   :  { %v980_v3 = vmul.f32 %v6043_v0, %v979_v54  ;;  %6046 = vrcp.f32 %v937_v32  ;;  %v1016_v60 = vand.u32 2147483647, %v937_v32  ;;  %v1018_v27 = vand.u32 2147483648, %v937_v32 }
 0x4c9   :  { %6048 = vrcp.f32 %v934_v16  ;;  %v1003_v43 = vand.u32 2147483648, %v934_v16  ;;  %vm1012_vm7 = vweird.f32 %v937_v32  ;;  %vm997_vm9 = vweird.f32 %v934_v16 }
 0x4ca   :  { %v7027_v59 = vpop.eup %6044  ;;  %v981_v5 = vadd.f32 %v6043_v0, %v980_v3  ;;  %6050 = vpow2.f32 %v921_v12  ;;  %v1019_v54 = vor.u32 1.1754944e-38, %v1018_v27  ;;  %vm1017_vm10 = vcmp.eq.f32.partialorder %v1016_v60, 8.507059e+37 }
 0x4cb   :  { %v941_v38 = vsel %vm394_vm3, %v7027_v59, 0.0  ;;  %v1004_v11 = vor.u32 1.1754944e-38, %v1003_v43 }
 0x4cc   :  { %v985_v62 = vsel %vm984_vm14, %v6043_v0, %v981_v5  ;;  %942 = vadd.xlane.f32.xlu1 %v941_v38 }
 0x4cd   :  { %v990_v50 = vsel %vm987_vm15, %v989_v4, %v985_v62 }
 0x4ce   :  { %v6047_v6 = vpop.eup %6046  ;;  %v1069_v55 = vmul.f32 %v6962_v30, %v990_v50  ;;  %v1001_v30 = vand.u32 2147483647, %v934_v16 }
 0x4cf   :  { %v6049_v56 = vpop.eup %6048  ;;  %v1008_v22 = vmul.f32 %v6047_v6, %v937_v32  ;;  %vm1013_vm5 = vweird.f32 %v6047_v6 }
 0x4d0   :  { %v7032_v15 = vpop.eup %6050  ;;  %v993_v7 = vmul.f32 %v6049_v56, %v934_v16  ;;  %5644 = vmatmul.msk.f32.vlgmr.msrb.gmra.mxu3 %vm394_vm3, %v1069_v55  ;;  %vm998_vm6 = vweird.f32 %v6049_v56  ;;  %vm1014_vm8 = vmor %vm1012_vm7, %vm1013_vm5  ;;  %vm1002_vm12 = vcmp.eq.f32.partialorder %v1001_v30, 8.507059e+37 }
 0x4d1   :  { %v1009_v26 = vsub.f32 1.0, %v1008_v22  ;;  %v944_v40 = vsel %vm394_vm3, %v7032_v15, 0.0  ;;  %vm999_vm11 = vmor %vm997_vm9, %vm998_vm6  ;;  %v1265_v22 = vpop.permute.xlu2 %1264 }
 0x4d2   :  { %v994_v35 = vsub.f32 1.0, %v993_v7 }
 0x4d3   :  { %v1010_v39 = vmul.f32 %v6047_v6, %v1009_v26 }
 0x4d4   :  { %945 = vadd.xlane.f32.xlu1 %v944_v40  ;;  %v995_v0 = vmul.f32 %v6049_v56, %v994_v35 }
 0x4d5   :  { %v1011_v46 = vadd.f32 %v6047_v6, %v1010_v39  ;;  %v5860_v10 = vpop.permute.xlu0 %5859 }
 0x4d6   :  { %v5861_v12 = vunpack.i.l.bf16 %v5860_v10  ;;  %v996_v57 = vadd.f32 %v6049_v56, %v995_v0  ;;  %v5862_v5 = vunpack.i.h.bf16 %v5860_v10 }
 0x4d7   :  { %v1015_v3 = vsel %vm1014_vm8, %v6047_v6, %v1011_v46 }
 0x4d8   :  { %1177 = vmatpush.msrb.mxu0 %v5861_v12  ;;  %v1000_v4 = vsel %vm999_vm11, %v6049_v56, %v996_v57  ;;  %v1020_v38 = vsel %vm1017_vm10, %v1019_v54, %v1015_v3 }
 0x4d9   :  { %v1005_v62 = vsel %vm1002_vm12, %v1004_v11, %v1000_v4  ;;  %v1071_v50 = vmul.f32 %v6978_v1, %v1020_v38 }
 0x4da   :  { %1178 = vmatpush.msrb.mxu0 %v5862_v5  ;;  %v1070_v32 = vmul.f32 %v6981_v34, %v1005_v62 }
 0x4db   :  { %5646 = vmatmul.msk.f32.vlgmr.msrb.gmra.mxu0 %vm394_vm3, %v1071_v50 }
 0x4dc   :  { %5645 = vmatmul.msk.f32.gmra.mxu3 %vm394_vm3, %v1070_v32 }
 0x4dd   :  { %v5865_v16 = vpop.permute.xlu0 %5864 }
 0x4de   :  { %v5866_v6 = vunpack.i.l.bf16 %v5865_v16  ;;  %v5867_v55 = vunpack.i.h.bf16 %v5865_v16 }
 0x4e0   :  { %1214 = vmatpush.msra.mxu1 %v5866_v6 }
 0x4e2   :  { %1215 = vmatpush.msra.mxu1 %v5867_v55 }
 0x4e4   :  { %5656 = vmatmul.msk.f32.vlgmr.msra.gmra.mxu3 %vm231_vm1, %v7023_v61 }
 0x4e5   :  { %v7043_v56 = vpop.permute.xlu0 %1305 }
 0x4ec   :  { %5657 = vmatmul.msk.f32.gmra.mxu3 %vm231_vm1, %v1265_v22 }
 0x4ed   :  { %1307 = vrot.lane.b32.xlu1 %v6593_v28, %s6407_s1  ;;  %v1347_v1 = vpop.permute.xlu0 %1346 }
 0x4ee   :  { %5662 = vmatpush.xpose.msk.msrb.mxu1 %vm231_vm1, %v1347_v1 }
 0x4f5   :  { %1303 = vrot.lane.b32.xlu1 %v6643_v45, %s6408_s29 }
 0x4fd   :  { %1344 = vrot.lane.b32.xlu1 %v6598_v31, %s6407_s1 }
 0x505   :  { %1342 = vrot.lane.b32.xlu1 %v6655_v49, %s6408_s29 }
 0x508   :  { %v940_v34 = vpop.xlane.xlu2 %939 }
 0x509   :  { %6052 = vrcp.f32 %v940_v34  ;;  %v1033_v60 = vand.u32 2147483648, %v940_v34  ;;  %v1031_v35 = vand.u32 2147483647, %v940_v34  ;;  %vm1027_vm14 = vweird.f32 %v940_v34 }
 0x50b   :  { %v1034_v40 = vor.u32 1.1754944e-38, %v1033_v60  ;;  %vm1032_vm5 = vcmp.eq.f32.partialorder %v1031_v35, 8.507059e+37 }
 0x50d   :  { %5869 = vrot.lane.b32.xlu1 %v6918_v52, %s6408_s29 }
 0x50f   :  { %v6053_v61 = vpop.eup %6052 }
 0x510   :  { %v1023_v7 = vmul.f32 %v6053_v61, %v940_v34  ;;  %vm1028_vm13 = vweird.f32 %v6053_v61 }
 0x511   :  { %vm1029_vm15 = vmor %vm1027_vm14, %vm1028_vm13 }
 0x512   :  { %v1024_v26 = vsub.f32 1.0, %v1023_v7 }
 0x514   :  { %v1025_v27 = vmul.f32 %v6053_v61, %v1024_v26 }
 0x516   :  { %v1026_v39 = vadd.f32 %v6053_v61, %v1025_v27 }
 0x518   :  { %v1030_v43 = vsel %vm1029_vm15, %v6053_v61, %v1026_v39  ;;  %v1302_v39 = vpop.permute.xlu2 %1301 }
 0x519   :  { %v1035_v0 = vsel %vm1032_vm5, %v1034_v40, %v1030_v43 }
 0x51a   :  { %v1072_v30 = vmul.f32 %v7012_v47, %v1035_v0 }
 0x51c   :  { %5647 = vmatmul.msk.f32.gmra.mxu0 %vm394_vm3, %v1072_v30 }
 0x53f   :  { %v943_v46 = vpop.xlane.xlu1 %942 }
 0x540   :  { %6054 = vrcp.f32 %v943_v46  ;;  %v1048_v3 = vand.u32 2147483648, %v943_v46  ;;  %v1046_v5 = vand.u32 2147483647, %v943_v46  ;;  %vm1042_vm7 = vweird.f32 %v943_v46 }
 0x542   :  { %v1049_v62 = vor.u32 1.1754944e-38, %v1048_v3  ;;  %vm1047_vm9 = vcmp.eq.f32.partialorder %v1046_v5, 8.507059e+37  ;;  %v7083_v3 = vpop.f32.mrf.mxu2 }
 0x546   :  { %v6055_v10 = vpop.eup %6054 }
 0x547   :  { %v1038_v54 = vmul.f32 %v6055_v10, %v943_v46  ;;  %v946_v12 = vpop.xlane.xlu1 %945  ;;  %vm1043_vm6 = vweird.f32 %v6055_v10  ;;  %v1341_v46 = vpop.permute.xlu0 %1340 }
 0x548   :  { %6056 = vrcp.f32 %v946_v12  ;;  %vm1044_vm8 = vmor %vm1042_vm7, %vm1043_vm6  ;;  %v1063_v55 = vand.u32 2147483648, %v946_v12  ;;  %v1061_v1 = vand.u32 2147483647, %v946_v12  ;;  %vm1057_vm11 = vweird.f32 %v946_v12 }
 0x549   :  { %v1039_v57 = vsub.f32 1.0, %v1038_v54 }
 0x54a   :  { %v1064_v61 = vor.u32 1.1754944e-38, %v1063_v55  ;;  %vm1062_vm13 = vcmp.eq.f32.partialorder %v1061_v1, 8.507059e+37 }
 0x54b   :  { %v1040_v11 = vmul.f32 %v6055_v10, %v1039_v57 }
 0x54d   :  { %v1041_v4 = vadd.f32 %v6055_v10, %v1040_v11 }
 0x54e   :  { %v6057_v38 = vpop.eup %6056 }
 0x54f   :  { %v1045_v50 = vsel %vm1044_vm8, %v6055_v10, %v1041_v4  ;;  %v1053_v47 = vmul.f32 %v6057_v38, %v946_v12  ;;  %vm1058_vm10 = vweird.f32 %v6057_v38 }
 0x550   :  { %v1050_v32 = vsel %vm1047_vm9, %v1049_v62, %v1045_v50  ;;  %vm1059_vm12 = vmor %vm1057_vm11, %vm1058_vm10  ;;  %v7093_v62 = vpop.f32.mrf.mxu2 }
 0x551   :  { %v1054_v16 = vsub.f32 1.0, %v1053_v47  ;;  %v1073_v6 = vmul.f32 %v7027_v59, %v1050_v32 }
 0x553   :  { %5648 = vmatmul.msk.f32.vlgmr.msra.gmra.mxu1 %vm394_vm3, %v1073_v6  ;;  %v1055_v22 = vmul.f32 %v6057_v38, %v1054_v16  ;;  %v7061_v7 = vpop.f32.mrf.mxu3 }
 0x554   :  { %9090 = vst [vmem:[#allocation19_spill] sm:$0xff] %v7061_v7 }
 0x555   :  { %v1056_v34 = vadd.f32 %v6057_v38, %v1055_v22 }
 0x557   :  { %v1060_v26 = vsel %vm1059_vm12, %v6057_v38, %v1056_v34 }
 0x558   :  { %v1065_v60 = vsel %vm1062_vm13, %v1064_v61, %v1060_v26  ;;  %v7081_v57 = vpop.f32.mrf.mxu0  ;;  %v1256_v55 = vpop.f32.mrf.mxu2 }
 0x559   :  { %v1074_v27 = vmul.f32 %v7032_v15, %v1065_v60  ;;  %v1379_v61 = vsel %vm6659_vm2, %v1256_v55, -1e+30 }
 0x55a   :  { %v1387_v26 = vsel %vm394_vm3, %v1379_v61, -inf }
 0x55b   :  { %5649 = vmatmul.msk.f32.gmra.mxu1 %vm394_vm3, %v1074_v27 }
 0x55f   :  { %v7065_v59 = vpop.f32.mrf.mxu3  ;;  %v1308_v35 = vpop.permute.xlu1 %1307 }
 0x560   :  { %9091 = vst [vmem:[#allocation20_spill] sm:$0xff] %v7065_v59  ;;  %5658 = vmatpush.xpose.msk.msra.mxu0 %vm231_vm1, %v1308_v35  ;;  %v1259_v60 = vpop.f32.mrf.mxu2 }
 0x561   :  { %v1380_v35 = vsel %vm6669_vm4, %v1259_v60, -1e+30 }
 0x564   :  { %5659 = vmatpush.xpose.msk.msra.mxu0 %vm231_vm1, %v7043_v56 }
 0x567   :  { %v1295_v40 = vpop.f32.mrf.mxu3  ;;  %v1304_v43 = vpop.permute.xlu1 %1303  ;;  %5660 = vmatmul.msk.f32.vlgmr.msra.gmra.mxu0 %vm231_vm1, %v1302_v39 }
 0x568   :  { %v7073_v0 = vsel %vm6659_vm2, %v1295_v40, -1e+30  ;;  %v1390_v40 = vsel %vm394_vm3, %v1380_v35, -inf }
 0x569   :  { %v1393_v15 = vsel %vm394_vm3, %v7073_v0, -inf }
 0x56a   :  { %1394 = vmax.xlane.f32.xlu1 %v1393_v15 }
 0x56f   :  { %v1345_v30 = vpop.permute.xlu1 %1344  ;;  %5661 = vmatmul.msk.f32.gmra.mxu0 %vm231_vm1, %v1304_v43  ;;  %v1298_v27 = vpop.f32.mrf.mxu3 }
 0x570   :  { %5663 = vmatpush.xpose.msk.msrb.mxu1 %vm231_vm1, %v1345_v30  ;;  %v1382_v39 = vsel %vm6669_vm4, %v1298_v27, -1e+30 }
 0x571   :  { %v1396_v43 = vsel %vm394_vm3, %v1382_v39, -inf }
 0x573   :  { %5664 = vmatmul.msk.f32.vlgmr.msrb.gmra.mxu1 %vm231_vm1, %v1341_v46 }
 0x577   :  { %v1343_v56 = vpop.permute.xlu1 %1342 }
 0x57b   :  { %5665 = vmatmul.msk.f32.gmra.mxu1 %vm231_vm1, %v1343_v56 }
 0x57f   :  { %v5870_v10 = vpop.permute.xlu1 %5869 }
 0x580   :  { %v5871_v54 = vunpack.i.l.bf16 %v5870_v10  ;;  %v5872_v12 = vunpack.i.h.bf16 %v5870_v10 }
 0x582   :  { %1613 = vmatpush.msrb.mxu2 %v5871_v54 }
 0x584   :  { %1614 = vmatpush.msrb.mxu2 %v5872_v12 }
 0x599   :  { %v7085_v11 = vpop.f32.mrf.mxu0 }
 0x59a   :  { %9092 = vst [vmem:[#allocation21_spill] sm:$0xff] %v7085_v11 }
 0x5d0   :  { %v7087_v5 = vpop.f32.mrf.mxu1 }
 0x5d1   :  { %9093 = vst [vmem:[#allocation22_spill] sm:$0xff] %v7087_v5 }
 0x5d8   :  { %v7097_v47 = vpop.f32.mrf.mxu1 }
 0x5d9   :  { %9094 = vst [vmem:[#allocation23_spill] sm:$0xff] %v7097_v47 }
 0x5dd   :  { %v1395_v60 = vpop.xlane.xlu1 %1394 }
 0x5e4   :  { %v1334_v4 = vpop.f32.mrf.mxu0 }
 0x5e5   :  { %v7091_v38 = vsel %vm6659_vm2, %v1334_v4, -1e+30 }
 0x5e6   :  { %v1399_v50 = vsel %vm394_vm3, %v7091_v38, -inf }
 0x5e7   :  { %1400 = vmax.xlane.f32.xlu0 %v1399_v50 }
 0x5ec   :  { %v1337_v32 = vpop.f32.mrf.mxu0 }
 0x5ed   :  { %v1384_v16 = vsel %vm6669_vm4, %v1337_v32, -1e+30 }
 0x5ee   :  { %v1402_v6 = vsel %vm394_vm3, %v1384_v16, -inf }
 0x5ef   :  { %1403 = vmax.xlane.f32.xlu0 %v1402_v6 }
 0x5f0   :  { %v1373_v22 = vpop.f32.mrf.mxu1 }
 0x5f1   :  { %v7104_v1 = vsel %vm6659_vm2, %v1373_v22, -1e+30 }
 0x5f2   :  { %v1405_v34 = vsel %vm394_vm3, %v7104_v1, -inf }
 0x5f3   :  { %1406 = vmax.xlane.f32.xlu2 %v1405_v34 }
 0x5f7   :  { %1388 = vmax.xlane.f32.xlu0 %v1387_v26 }
 0x60b   :  { %5874 = vrot.lane.b32.xlu2 %v6922_v63, %s6408_s29  ;;  %1733 = vrot.lane.b32.xlu0 %v6584_v21, %s6409_s14 }
 0x634   :  { %1391 = vmax.xlane.f32.xlu2 %v1390_v40 }
 0x635   :  { %1397 = vmax.xlane.f32.xlu0 %v1396_v43 }
 0x649   :  { %1727 = vrot.lane.b32.xlu0 %v6612_v36, %s6410_s15 }
 0x651   :  { %1729 = vrot.lane.b32.xlu0 %v6617_v37, %s6410_s15 }
 0x659   :  { %1770 = vrot.lane.b32.xlu0 %v6587_v23, %s6409_s14 }
 0x65a   :  { %v7127_v15 = vpop.xlane.xlu0 %1400 }
 0x661   :  { %1768 = vrot.lane.b32.xlu0 %v6629_v42, %s6410_s15 }
 0x662   :  { %v1404_v30 = vpop.xlane.xlu0 %1403 }
 0x663   :  { %v1416_v55 = vsub.f32 %v1384_v16, %v1404_v30  ;;  %v1413_v16 = vsub.f32 %v7073_v0, %v1395_v60  ;;  %v1376_v60 = vpop.f32.mrf.mxu1 }
 0x665   :  { %v1429_v22 = vmul.f32 1.442695, %v1416_v55  ;;  %v1423_v43 = vmul.f32 1.442695, %v1413_v16 }
 0x666   :  { %v1407_v46 = vpop.xlane.xlu2 %1406 }
 0x66a   :  { %v1389_v56 = vpop.xlane.xlu0 %1388 }
 0x66b   :  { %v1411_v10 = vsub.f32 %v1379_v61, %v1389_v56 }
 0x66d   :  { %v1419_v54 = vmul.f32 1.442695, %v1411_v10 }
 0x66e   :  { %v5875_v12 = vpop.permute.xlu2 %5874 }
 0x66f   :  { %6058 = vpow2.f32 %v1419_v54  ;;  %v5876_v4 = vunpack.i.l.bf16 %v5875_v12  ;;  %v5877_v50 = vunpack.i.h.bf16 %v5875_v12 }
 0x670   :  { %6060 = vpow2.f32 %v1429_v22 }
 0x671   :  { %1648 = vmatpush.msrb.mxu3 %v5876_v4 }
 0x673   :  { %1649 = vmatpush.msrb.mxu3 %v5877_v50 }
 0x675   :  { %v7131_v32 = vpop.eup %6058 }
 0x676   :  { %v1435_v6 = vsel %vm394_vm3, %v7131_v32, 0.0  ;;  %v7136_v61 = vpop.eup %6060 }
 0x677   :  { %1436 = vadd.xlane.f32.xlu2 %v1435_v6  ;;  %v1450_v26 = vsel %vm394_vm3, %v7136_v61, 0.0 }
 0x67d   :  { %v1734_v34 = vpop.permute.xlu0 %1733 }
 0x67e   :  { %5674 = vmatpush.xpose.msk.msra.mxu2 %vm231_vm1, %v1734_v34  ;;  %v1417_v34 = vsub.f32 %v7104_v1, %v1407_v46 }
 0x68b   :  { %1451 = vadd.xlane.f32.xlu0 %v1450_v26  ;;  %v1415_v26 = vsub.f32 %v7091_v38, %v7127_v15 }
 0x68f   :  { %1772 = vrot.lane.b32.xlu2 %v6590_v25, %s6409_s14 }
 0x69f   :  { %1811 = vrot.lane.b32.xlu0 %v6593_v28, %s6409_s14 }
 0x6a7   :  { %v1392_v27 = vpop.xlane.xlu2 %1391  ;;  %1807 = vrot.lane.b32.xlu0 %v6643_v45, %s6410_s15 }
 0x6a8   :  { %v1412_v40 = vsub.f32 %v1380_v35, %v1392_v27  ;;  %v1398_v56 = vpop.xlane.xlu0 %1397  ;;  %v1431_v27 = vmul.f32 1.442695, %v1417_v34 }
 0x6a9   :  { %v1414_v10 = vsub.f32 %v1382_v39, %v1398_v56  ;;  %v7177_v56 = vsel %vm6669_vm4, %v1376_v60, -1e+30 }
 0x6aa   :  { %v1421_v30 = vmul.f32 1.442695, %v1412_v40  ;;  %v1408_v38 = vsel %vm394_vm3, %v7177_v56, -inf }
 0x6ab   :  { %v1425_v12 = vmul.f32 1.442695, %v1414_v10 }
 0x6ac   :  { %6062 = vpow2.f32 %v1421_v30  ;;  %v1427_v30 = vmul.f32 1.442695, %v1415_v26 }
 0x6ad   :  { %6064 = vpow2.f32 %v1423_v43 }
 0x6ae   :  { %6066 = vpow2.f32 %v1425_v12 }
 0x6af   :  { %1844 = vrot.lane.b32.xlu0 %v6650_v48, %s6410_s15 }
 0x6b2   :  { %v7149_v54 = vpop.eup %6062 }
 0x6b3   :  { %v1438_v0 = vsel %vm394_vm3, %v7149_v54, 0.0  ;;  %v7153_v4 = vpop.eup %6064 }
 0x6b4   :  { %1439 = vadd.xlane.f32.xlu1 %v1438_v0  ;;  %v1441_v35 = vsel %vm394_vm3, %v7153_v4, 0.0  ;;  %v7159_v39 = vpop.eup %6066 }
 0x6b5   :  { %v1444_v50 = vsel %vm394_vm3, %v7159_v39, 0.0 }
 0x6b7   :  { %2237 = vrot.lane.b32.xlu0 %v6584_v21, %s6411_s16 }
 0x6b8   :  { %1442 = vadd.xlane.f32.xlu2 %v1441_v35 }
 0x6bb   :  { %v7167_v6 = vpop.permute.xlu0 %1727 }
 0x6c0   :  { %1445 = vadd.xlane.f32.xlu2 %v1444_v50 }
 0x6c3   :  { %v7169_v22 = vpop.permute.xlu0 %1729 }
 0x6cb   :  { %v1771_v0 = vpop.permute.xlu0 %1770 }
 0x6cd   :  { %1731 = vrot.lane.b32.xlu1 %v6581_v19, %s6409_s14 }
 0x6d8   :  { %1766 = vrot.lane.b32.xlu2 %v6626_v41, %s6410_s15 }
 0x6ea   :  { %v1437_v55 = vpop.xlane.xlu2 %1436 }
 0x6eb   :  { %6068 = vrcp.f32 %v1437_v55  ;;  %v1470_v12 = vand.u32 2147483648, %v1437_v55  ;;  %v1468_v46 = vand.u32 2147483647, %v1437_v55  ;;  %vm1464_vm15 = vweird.f32 %v1437_v55 }
 0x6ec   :  { %6070 = vpow2.f32 %v1431_v27 }
 0x6ed   :  { %6072 = vpow2.f32 %v1427_v30  ;;  %v1471_v35 = vor.u32 1.1754944e-38, %v1470_v12  ;;  %vm1469_vm6 = vcmp.eq.f32.partialorder %v1468_v46, 8.507059e+37 }
 0x6f1   :  { %v6069_v16 = vpop.eup %6068 }
 0x6f2   :  { %v1460_v40 = vmul.f32 %v6069_v16, %v1437_v55  ;;  %v1773_v43 = vpop.permute.xlu2 %1772  ;;  %vm1465_vm14 = vweird.f32 %v6069_v16  ;;  %v7182_v34 = vpop.eup %6070 }
 0x6f3   :  { %5678 = vmatpush.xpose.msk.msra.mxu3 %vm231_vm1, %v1773_v43  ;;  %vm1466_vm5 = vmor %vm1464_vm15, %vm1465_vm14  ;;  %v7185_v27 = vpop.eup %6072 }
 0x6f4   :  { %v1461_v10 = vsub.f32 1.0, %v1460_v40  ;;  %v1453_v40 = vsel %vm394_vm3, %v7182_v34, 0.0  ;;  %v1447_v55 = vsel %vm394_vm3, %v7185_v27, 0.0 }
 0x6f6   :  { %v1462_v1 = vmul.f32 %v6069_v16, %v1461_v10 }
 0x6f7   :  { %1409 = vmax.xlane.f32.xlu1 %v1408_v38  ;;  %5679 = vmatpush.xpose.msk.msra.mxu3 %vm231_vm1, %v1771_v0 }
 0x6f8   :  { %v1463_v15 = vadd.f32 %v6069_v16, %v1462_v1 }
 0x6fa   :  { %v1467_v50 = vsel %vm1466_vm5, %v6069_v16, %v1463_v15 }
 0x6fb   :  { %v1472_v26 = vsel %vm1469_vm6, %v1471_v35, %v1467_v50 }
 0x6fc   :  { %v1579_v60 = vmul.f32 %v7131_v32, %v1472_v26 }
 0x6fe   :  { %5666 = vmatmul.msk.f32.vlgmr.msrb.gmra.mxu2 %vm394_vm3, %v1579_v60 }
 0x6ff   :  { %1454 = vadd.xlane.f32.xlu1 %v1453_v40 }
 0x701   :  { %1448 = vadd.xlane.f32.xlu2 %v1447_v55 }
 0x718   :  { %5879 = vrot.lane.b32.xlu1 %v6990_v17, %s6408_s29 }
 0x720   :  { %1809 = vrot.lane.b32.xlu1 %v6596_v29, %s6409_s14 }
 0x727   :  { %v1440_v16 = vpop.xlane.xlu1 %1439 }
 0x728   :  { %6074 = vrcp.f32 %v1440_v16  ;;  %1805 = vrot.lane.b32.xlu1 %v6638_v44, %s6410_s15  ;;  %v1483_v0 = vand.u32 2147483647, %v1440_v16  ;;  %v1485_v1 = vand.u32 2147483648, %v1440_v16  ;;  %vm1479_vm8 = vweird.f32 %v1440_v16 }
 0x72a   :  { %vm1484_vm10 = vcmp.eq.f32.partialorder %v1483_v0, 8.507059e+37  ;;  %v1486_v60 = vor.u32 1.1754944e-38, %v1485_v1 }
 0x72b   :  { %v1443_v32 = vpop.xlane.xlu2 %1442 }
 0x72c   :  { %6076 = vrcp.f32 %v1443_v32  ;;  %v1500_v26 = vand.u32 2147483648, %v1443_v32  ;;  %v1498_v55 = vand.u32 2147483647, %v1443_v32  ;;  %vm1494_vm12 = vweird.f32 %v1443_v32 }
 0x72e   :  { %v6075_v43 = vpop.eup %6074  ;;  %vm1499_vm14 = vcmp.eq.f32.partialorder %v1498_v55, 8.507059e+37 }
 0x72f   :  { %v1475_v30 = vmul.f32 %v6075_v43, %v1440_v16  ;;  %vm1480_vm7 = vweird.f32 %v6075_v43 }
 0x730   :  { %1850 = vrot.lane.b32.xlu1 %v6602_v33, %s6409_s14  ;;  %vm1481_vm9 = vmor %vm1479_vm8, %vm1480_vm7 }
 0x731   :  { %v1476_v10 = vsub.f32 1.0, %v1475_v30 }
 0x732   :  { %v6077_v12 = vpop.eup %6076 }
 0x733   :  { %v1490_v46 = vmul.f32 %v6077_v12, %v1443_v32  ;;  %v1446_v38 = vpop.xlane.xlu2 %1445  ;;  %v1477_v15 = vmul.f32 %v6075_v43, %v1476_v10  ;;  %vm1495_vm11 = vweird.f32 %v6077_v12 }
 0x734   :  { %6078 = vrcp.f32 %v1446_v38  ;;  %vm1496_vm13 = vmor %vm1494_vm12, %vm1495_vm11  ;;  %v1513_v32 = vand.u32 2147483647, %v1446_v38  ;;  %vm1509_vm5 = vweird.f32 %v1446_v38 }
 0x735   :  { %v1491_v35 = vsub.f32 1.0, %v1490_v46  ;;  %v1478_v50 = vadd.f32 %v6075_v43, %v1477_v15  ;;  %v1501_v46 = vor.u32 1.1754944e-38, %v1500_v26 }
 0x736   :  { %vm1514_vm7 = vcmp.eq.f32.partialorder %v1513_v32, 8.507059e+37 }
 0x737   :  { %v1492_v40 = vmul.f32 %v6077_v12, %v1491_v35  ;;  %v1482_v20 = vsel %vm1481_vm9, %v6075_v43, %v1478_v50  ;;  %v1515_v35 = vand.u32 2147483648, %v1446_v38 }
 0x738   :  { %1846 = vrot.lane.b32.xlu1 %v6655_v49, %s6410_s15  ;;  %v1487_v30 = vsel %vm1484_vm10, %v1486_v60, %v1482_v20 }
 0x739   :  { %v1493_v8 = vadd.f32 %v6077_v12, %v1492_v40  ;;  %v1580_v10 = vmul.f32 %v7149_v54, %v1487_v30  ;;  %v1516_v54 = vor.u32 1.1754944e-38, %v1515_v35  ;;  %v1769_v40 = vpop.permute.xlu0 %1768 }
 0x73a   :  { %v6079_v18 = vpop.eup %6078 }
 0x73b   :  { %v1497_v16 = vsel %vm1496_vm13, %v6077_v12, %v1493_v8  ;;  %v1505_v15 = vmul.f32 %v6079_v18, %v1446_v38  ;;  %5667 = vmatmul.msk.f32.gmra.mxu2 %vm394_vm3, %v1580_v10  ;;  %vm1510_vm15 = vweird.f32 %v6079_v18  ;;  %v1767_v60 = vpop.permute.xlu2 %1766 }
 0x73c   :  { %v1502_v0 = vsel %vm1499_vm14, %v1501_v46, %v1497_v16  ;;  %vm1511_vm6 = vmor %vm1509_vm5, %vm1510_vm15 }
 0x73d   :  { %v1506_v1 = vsub.f32 1.0, %v1505_v15  ;;  %v1581_v43 = vmul.f32 %v7153_v4, %v1502_v0 }
 0x73f   :  { %v1732_v50 = vpop.permute.xlu1 %1731  ;;  %5668 = vmatmul.msk.f32.vlgmr.msrb.gmra.mxu3 %vm394_vm3, %v1581_v43  ;;  %v1507_v20 = vmul.f32 %v6079_v18, %v1506_v1 }
 0x740   :  { %5889 = vrot.lane.b32.xlu1 %v6918_v52, %s6410_s15  ;;  %5675 = vmatpush.xpose.msk.msra.mxu2 %vm231_vm1, %v1732_v50 }
 0x741   :  { %v1508_v8 = vadd.f32 %v6079_v18, %v1507_v20 }
 0x743   :  { %5676 = vmatmul.msk.f32.vlgmr.msra.gmra.mxu2 %vm231_vm1, %v7167_v6  ;;  %v1512_v4 = vsel %vm1511_vm6, %v6079_v18, %v1508_v8  ;;  %v1452_v18 = vpop.xlane.xlu0 %1451 }
 0x744   :  { %v1517_v12 = vsel %vm1514_vm7, %v1516_v54, %v1512_v4  ;;  %vm1539_vm13 = vweird.f32 %v1452_v18 }
 0x745   :  { %v1582_v26 = vmul.f32 %v7159_v39, %v1517_v12 }
 0x747   :  { %5669 = vmatmul.msk.f32.gmra.mxu3 %vm394_vm3, %v1582_v26 }
 0x74b   :  { %5677 = vmatmul.msk.f32.gmra.mxu2 %vm231_vm1, %v7169_v22 }
 0x74f   :  { %5680 = vmatmul.msk.f32.vlgmr.msra.gmra.mxu3 %vm231_vm1, %v1767_v60 }
 0x757   :  { %5681 = vmatmul.msk.f32.gmra.mxu3 %vm231_vm1, %v1769_v40 }
 0x76a   :  { %v1410_v38 = vpop.xlane.xlu1 %1409 }
 0x76b   :  { %v1418_v55 = vsub.f32 %v7177_v56, %v1410_v38  ;;  %v1545_v38 = vand.u32 2147483648, %v1452_v18 }
 0x76d   :  { %v1433_v6 = vmul.f32 1.442695, %v1418_v55 }
 0x76f   :  { %6080 = vpow2.f32 %v1433_v6  ;;  %v1543_v6 = vand.u32 2147483647, %v1452_v18 }
 0x771   :  { %vm1544_vm15 = vcmp.eq.f32.partialorder %v1543_v6, 8.507059e+37 }
 0x772   :  { %v7222_v43 = vpop.xlane.xlu1 %1454 }
 0x773   :  { %vm1554_vm6 = vweird.f32 %v7222_v43 }
 0x774   :  { %v1449_v30 = vpop.xlane.xlu2 %1448 }
 0x775   :  { %v7218_v10 = vpop.eup %6080  ;;  %6082 = vrcp.f32 %v1449_v30  ;;  %v1530_v50 = vand.u32 2147483648, %v1449_v30  ;;  %vm1524_vm9 = vweird.f32 %v1449_v30  ;;  %v1528_v20 = vand.u32 2147483647, %v1449_v30 }
 0x776   :  { %v1456_v39 = vsel %vm394_vm3, %v7218_v10, 0.0  ;;  %6084 = vrcp.f32 %v1452_v18 }
 0x777   :  { %1457 = vadd.xlane.f32.xlu2 %v1456_v39  ;;  %v1531_v54 = vor.u32 1.1754944e-38, %v1530_v50  ;;  %vm1529_vm11 = vcmp.eq.f32.partialorder %v1528_v20, 8.507059e+37  ;;  %6086 = vrcp.f32 %v7222_v43 }
 0x77b   :  { %v6083_v22 = vpop.eup %6082 }
 0x77c   :  { %v1520_v46 = vmul.f32 %v6083_v22, %v1449_v30  ;;  %v6085_v16 = vpop.eup %6084  ;;  %vm1525_vm8 = vweird.f32 %v6083_v22  ;;  %v1812_v30 = vpop.permute.xlu0 %1811 }
 0x77d   :  { %v1535_v0 = vmul.f32 %v6085_v16, %v1452_v18  ;;  %vm1526_vm10 = vmor %vm1524_vm9, %vm1525_vm8  ;;  %vm1540_vm12 = vweird.f32 %v6085_v16 }
 0x77e   :  { %v1521_v15 = vsub.f32 1.0, %v1520_v46  ;;  %vm1541_vm14 = vmor %vm1539_vm13, %vm1540_vm12 }
 0x77f   :  { %v1536_v56 = vsub.f32 1.0, %v1535_v0 }
 0x780   :  { %v1522_v1 = vmul.f32 %v6083_v22, %v1521_v15 }
 0x781   :  { %v1537_v8 = vmul.f32 %v6085_v16, %v1536_v56 }
 0x782   :  { %v1523_v35 = vadd.f32 %v6083_v22, %v1522_v1 }
 0x783   :  { %v1538_v60 = vadd.f32 %v6085_v16, %v1537_v8 }
 0x784   :  { %v1527_v32 = vsel %vm1526_vm10, %v6083_v22, %v1523_v35  ;;  %v1546_v22 = vor.u32 1.1754944e-38, %v1545_v38 }
 0x785   :  { %v1532_v26 = vsel %vm1529_vm11, %v1531_v54, %v1527_v32  ;;  %v1542_v39 = vsel %vm1541_vm14, %v6085_v16, %v1538_v60  ;;  %v1808_v16 = vpop.permute.xlu0 %1807 }
 0x786   :  { %v1583_v55 = vmul.f32 %v7185_v27, %v1532_v26  ;;  %v1547_v15 = vsel %vm1544_vm15, %v1546_v22, %v1542_v39 }
 0x787   :  { %v1584_v27 = vmul.f32 %v7136_v61, %v1547_v15  ;;  %v7240_v61 = vpop.f32.mrf.mxu2 }
 0x78a   :  { %v5880_v4 = vpop.permute.xlu1 %5879 }
 0x78b   :  { %v5881_v12 = vunpack.i.l.bf16 %v5880_v4  ;;  %v5882_v40 = vunpack.i.h.bf16 %v5880_v4 }
 0x78d   :  { %1683 = vmatpush.msrb.mxu0 %v5881_v12  ;;  %v7238_v56 = vpop.permute.xlu0 %1844 }
 0x78f   :  { %1684 = vmatpush.msrb.mxu0 %v5882_v40  ;;  %5884 = vrot.lane.b32.xlu2 %v6996_v24, %s6408_s29 }
 0x790   :  { %5670 = vmatmul.msk.f32.vlgmr.msrb.gmra.mxu0 %vm394_vm3, %v1583_v55 }
 0x791   :  { %5682 = vmatpush.xpose.msk.msra.mxu0 %vm231_vm1, %v1812_v30  ;;  %v6087_v30 = vpop.eup %6086 }
 0x792   :  { %v1810_v46 = vpop.permute.xlu1 %1809  ;;  %v1550_v39 = vmul.f32 %v6087_v30, %v7222_v43  ;;  %vm1555_vm5 = vweird.f32 %v6087_v30 }
 0x793   :  { %vm1556_vm7 = vmor %vm1554_vm6, %vm1555_vm5 }
 0x794   :  { %v1551_v22 = vsub.f32 1.0, %v1550_v39 }
 0x795   :  { %5683 = vmatpush.xpose.msk.msra.mxu0 %vm231_vm1, %v1810_v46  ;;  %v2238_v32 = vpop.permute.xlu0 %2237 }
 0x796   :  { %v1552_v46 = vmul.f32 %v6087_v30, %v1551_v22 }
 0x797   :  { %1848 = vrot.lane.b32.xlu2 %v6598_v31, %s6409_s14 }
 0x798   :  { %5671 = vmatmul.msk.f32.gmra.mxu0 %vm394_vm3, %v1584_v27  ;;  %v1553_v27 = vadd.f32 %v6087_v30, %v1552_v46 }
 0x79a   :  { %v1806_v18 = vpop.permute.xlu1 %1805 }
 0x7a0   :  { %5684 = vmatmul.msk.f32.vlgmr.msra.gmra.mxu0 %vm231_vm1, %v1806_v18  ;;  %v1560_v18 = vand.u32 2147483648, %v7222_v43 }
 0x7a2   :  { %v1851_v0 = vpop.permute.xlu1 %1850 }
 0x7a8   :  { %5685 = vmatmul.msk.f32.gmra.mxu0 %vm231_vm1, %v1808_v16  ;;  %v1558_v16 = vand.u32 2147483647, %v7222_v43 }
 0x7aa   :  { %v7236_v1 = vpop.permute.xlu1 %1846  ;;  %vm1559_vm8 = vcmp.eq.f32.partialorder %v1558_v16, 8.507059e+37 }
 0x7b2   :  { %v5890_v35 = vpop.permute.xlu1 %5889 }
 0x7b3   :  { %v5891_v50 = vunpack.i.l.bf16 %v5890_v35  ;;  %v5892_v20 = vunpack.i.h.bf16 %v5890_v35  ;;  %v1557_v35 = vsel %vm1556_vm7, %v6087_v30, %v1553_v27 }
 0x7b5   :  { %2117 = vmatpush.msrb.mxu2 %v5891_v50 }
 0x7b7   :  { %2118 = vmatpush.msrb.mxu2 %v5892_v20  ;;  %v1561_v20 = vor.u32 1.1754944e-38, %v1560_v18 }
 0x7b9   :  { %5698 = vmatpush.xpose.msk.msra.mxu2 %vm231_vm1, %v2238_v32 }
 0x7be   :  { %v7243_v8 = vpop.f32.mrf.mxu2 }
 0x7c2   :  { %v7245_v54 = vpop.f32.mrf.mxu3 }
 0x7c3   :  { %9095 = vst [vmem:[#allocation24_spill] sm:$0xff] %v7245_v54 }
 0x7c6   :  { %v1760_v4 = vpop.f32.mrf.mxu2 }
 0x7ca   :  { %v7247_v12 = vpop.f32.mrf.mxu3 }
 0x7ce   :  { %v1763_v26 = vpop.f32.mrf.mxu2 }
 0x7cf   :  { %v7251_v60 = vsel %vm6669_vm4, %v1763_v26, -1e+30 }
 0x7d0   :  { %v1894_v40 = vsel %vm394_vm3, %v7251_v60, -inf }
 0x7d1   :  { %1895 = vmax.xlane.f32.xlu0 %v1894_v40 }
 0x7d2   :  { %v1799_v38 = vpop.f32.mrf.mxu3 }
 0x7d3   :  { %v7257_v55 = vsel %vm6659_vm2, %v1799_v38, -1e+30  ;;  %v1562_v38 = vsel %vm1559_vm8, %v1561_v20, %v1557_v35 }
 0x7d4   :  { %v1897_v6 = vsel %vm394_vm3, %v7257_v55, -inf  ;;  %v1585_v46 = vmul.f32 %v7182_v34, %v1562_v38 }
 0x7d5   :  { %1898 = vmax.xlane.f32.xlu1 %v1897_v6 }
 0x7ea   :  { %v1458_v15 = vpop.xlane.xlu2 %1457 }
 0x7eb   :  { %6088 = vrcp.f32 %v1458_v15  ;;  %v1575_v22 = vand.u32 2147483648, %v1458_v15  ;;  %v1573_v14 = vand.u32 2147483647, %v1458_v15  ;;  %vm1569_vm10 = vweird.f32 %v1458_v15 }
 0x7ed   :  { %v1576_v30 = vor.u32 1.1754944e-38, %v1575_v22  ;;  %vm1574_vm12 = vcmp.eq.f32.partialorder %v1573_v14, 8.507059e+37 }
 0x7f1   :  { %v6089_v50 = vpop.eup %6088 }
 0x7f2   :  { %v1565_v32 = vmul.f32 %v6089_v50, %v1458_v15  ;;  %v5885_v26 = vpop.permute.xlu2 %5884  ;;  %vm1570_vm9 = vweird.f32 %v6089_v50 }
 0x7f3   :  { %v5886_v40 = vunpack.i.l.bf16 %v5885_v26  ;;  %v5887_v39 = vunpack.i.h.bf16 %v5885_v26  ;;  %vm1571_vm11 = vmor %vm1569_vm10, %vm1570_vm9 }
 0x7f4   :  { %v1566_v6 = vsub.f32 1.0, %v1565_v32 }
 0x7f5   :  { %1718 = vmatpush.msra.mxu1 %v5886_v40 }
 0x7f6   :  { %v1567_v47 = vmul.f32 %v6089_v50, %v1566_v6 }
 0x7f7   :  { %1719 = vmatpush.msra.mxu1 %v5887_v39 }
 0x7f8   :  { %5672 = vmatmul.msk.f32.vlgmr.msra.gmra.mxu1 %vm394_vm3, %v1585_v46  ;;  %v1568_v43 = vadd.f32 %v6089_v50, %v1567_v47 }
 0x7f9   :  { %5686 = vmatpush.xpose.msk.msrb.mxu1 %vm231_vm1, %v1851_v0 }
 0x7fa   :  { %v1849_v27 = vpop.permute.xlu2 %1848  ;;  %v1572_v18 = vsel %vm1571_vm11, %v6089_v50, %v1568_v43  ;;  %v1802_v43 = vpop.f32.mrf.mxu3 }
 0x7fb   :  { %v1577_v16 = vsel %vm1574_vm12, %v1576_v30, %v1572_v18  ;;  %v1886_v30 = vsel %vm6669_vm4, %v1802_v43, -1e+30 }
 0x7fc   :  { %v1586_v34 = vmul.f32 %v7218_v10, %v1577_v16  ;;  %v1883_v10 = vsel %vm6659_vm2, %v1760_v4, -1e+30  ;;  %v1900_v18 = vsel %vm394_vm3, %v1886_v30, -inf }
 0x7fd   :  { %5687 = vmatpush.xpose.msk.msrb.mxu1 %vm231_vm1, %v1849_v27  ;;  %v1891_v50 = vsel %vm394_vm3, %v1883_v10, -inf }
 0x800   :  { %5673 = vmatmul.msk.f32.gmra.mxu1 %vm394_vm3, %v1586_v34 }
 0x808   :  { %5688 = vmatmul.msk.f32.vlgmr.msrb.gmra.mxu1 %vm231_vm1, %v7238_v56 }
 0x80d   :  { %v7274_v35 = vpop.f32.mrf.mxu0 }
 0x80e   :  { %9096 = vst [vmem:[#allocation25_spill] sm:$0xff] %v7274_v35 }
 0x810   :  { %5689 = vmatmul.msk.f32.gmra.mxu1 %vm231_vm1, %v7236_v1 }
 0x815   :  { %v7278_v47 = vpop.f32.mrf.mxu0 }
 0x816   :  { %9097 = vst [vmem:[#allocation26_spill] sm:$0xff] %v7278_v47 }
 0x81d   :  { %v1838_v0 = vpop.f32.mrf.mxu0 }
 0x81e   :  { %v1887_v14 = vsel %vm6659_vm2, %v1838_v0, -1e+30 }
 0x81f   :  { %v1903_v15 = vsel %vm394_vm3, %v1887_v14, -inf }
 0x820   :  { %1904 = vmax.xlane.f32.xlu2 %v1903_v15 }
 0x825   :  { %v1841_v56 = vpop.f32.mrf.mxu0 }
 0x826   :  { %v7288_v20 = vsel %vm6669_vm4, %v1841_v56, -1e+30 }
 0x827   :  { %v1906_v1 = vsel %vm394_vm3, %v7288_v20, -inf }
 0x828   :  { %1892 = vmax.xlane.f32.xlu2 %v1891_v50 }
 0x830   :  { %1907 = vmax.xlane.f32.xlu2 %v1906_v1 }
 0x844   :  { %v1896_v32 = vpop.xlane.xlu0 %1895 }
 0x845   :  { %v1916_v26 = vsub.f32 %v7251_v60, %v1896_v32 }
 0x847   :  { %v1925_v40 = vmul.f32 1.442695, %v1916_v26 }
 0x849   :  { %6090 = vpow2.f32 %v1925_v40 }
 0x84f   :  { %v7293_v38 = vpop.eup %6090 }
 0x850   :  { %v1942_v4 = vsel %vm394_vm3, %v7293_v38, 0.0 }
 0x851   :  { %1943 = vadd.xlane.f32.xlu1 %v1942_v4 }
 0x86a   :  { %2235 = vrot.lane.b32.xlu1 %v6581_v19, %s6411_s16 }
 0x875   :  { %v7299_v6 = vpop.f32.mrf.mxu1 }
 0x876   :  { %9098 = vst [vmem:[#allocation27_spill] sm:$0xff] %v7299_v6 }
 0x87d   :  { %v7301_v39 = vpop.f32.mrf.mxu1 }
 0x87e   :  { %9099 = vst [vmem:[#allocation28_spill] sm:$0xff] %v7301_v39 }
 0x885   :  { %v1877_v22 = vpop.f32.mrf.mxu1 }
 0x886   :  { %v1889_v46 = vsel %vm6659_vm2, %v1877_v22, -1e+30 }
 0x887   :  { %v1909_v60 = vsel %vm394_vm3, %v1889_v46, -inf }
 0x888   :  { %1910 = vmax.xlane.f32.xlu2 %v1909_v60 }
 0x88d   :  { %v1880_v27 = vpop.f32.mrf.mxu1 }
 0x88e   :  { %v1890_v16 = vsel %vm6669_vm4, %v1880_v27, -1e+30 }
 0x88f   :  { %v1912_v0 = vsel %vm394_vm3, %v1890_v16, -inf }
 0x890   :  { %1901 = vmax.xlane.f32.xlu2 %v1900_v18 }
 0x893   :  { %v1905_v34 = vpop.xlane.xlu2 %1904 }
 0x894   :  { %1913 = vmax.xlane.f32.xlu1 %v1912_v0  ;;  %v1919_v26 = vsub.f32 %v1887_v14, %v1905_v34 }
 0x896   :  { %v1931_v40 = vmul.f32 1.442695, %v1919_v26 }
 0x89b   :  { %v1893_v15 = vpop.xlane.xlu2 %1892 }
 0x89c   :  { %v1915_v50 = vsub.f32 %v1883_v10, %v1893_v15  ;;  %v1899_v10 = vpop.xlane.xlu1 %1898 }
 0x89d   :  { %v1917_v27 = vsub.f32 %v7257_v55, %v1899_v10 }
 0x89e   :  { %v1923_v56 = vmul.f32 1.442695, %v1915_v50 }
 0x89f   :  { %v1927_v18 = vmul.f32 1.442695, %v1917_v27 }
 0x8a0   :  { %6092 = vpow2.f32 %v1923_v56 }
 0x8a1   :  { %6094 = vpow2.f32 %v1931_v40 }
 0x8a2   :  { %6096 = vpow2.f32 %v1927_v18 }
 0x8a3   :  { %v7338_v14 = vpop.xlane.xlu2 %1907 }
 0x8a6   :  { %v7312_v1 = vpop.eup %6092 }
 0x8a7   :  { %v1939_v32 = vsel %vm394_vm3, %v7312_v1, 0.0  ;;  %v7330_v60 = vpop.eup %6094 }
 0x8a8   :  { %1940 = vadd.xlane.f32.xlu0 %v1939_v32  ;;  %5894 = vrot.lane.b32.xlu2 %v6922_v63, %s6410_s15  ;;  %v1951_v43 = vsel %vm394_vm3, %v7330_v60, 0.0  ;;  %v7336_v0 = vpop.eup %6096 }
 0x8a9   :  { %v1945_v34 = vsel %vm394_vm3, %v7336_v0, 0.0 }
 0x8b0   :  { %2276 = vrot.lane.b32.xlu2 %v6590_v25, %s6411_s16 }
 0x8b8   :  { %2270 = vrot.lane.b32.xlu2 %v6626_v41, %s6412_s17 }
 0x8bc   :  { %2231 = vrot.lane.b32.xlu0 %v6612_v36, %s6412_s17 }
 0x8c4   :  { %2233 = vrot.lane.b32.xlu0 %v6617_v37, %s6412_s17  ;;  %v7328_v4 = vpop.xlane.xlu1 %1943 }
 0x8c5   :  { %vm1983_vm7 = vweird.f32 %v7328_v4 }
 0x8cc   :  { %2274 = vrot.lane.b32.xlu0 %v6587_v23, %s6411_s16 }
 0x8dc   :  { %v2236_v22 = vpop.permute.xlu1 %2235 }
 0x8dd   :  { %5699 = vmatpush.xpose.msk.msra.mxu2 %vm231_vm1, %v2236_v22 }
 0x8e1   :  { %1952 = vadd.xlane.f32.xlu2 %v1951_v43 }
 0x8f6   :  { %1946 = vadd.xlane.f32.xlu0 %v1945_v34 }
 0x8fb   :  { %v1911_v15 = vpop.xlane.xlu2 %1910 }
 0x8fc   :  { %v1921_v50 = vsub.f32 %v1889_v46, %v1911_v15 }
 0x8fe   :  { %v1935_v56 = vmul.f32 1.442695, %v1921_v50 }
 0x900   :  { %6098 = vpow2.f32 %v1935_v56 }
 0x903   :  { %v1902_v32 = vpop.xlane.xlu2 %1901 }
 0x904   :  { %v1918_v26 = vsub.f32 %v1886_v30, %v1902_v32 }
 0x906   :  { %v7342_v40 = vpop.eup %6098  ;;  %v1929_v22 = vmul.f32 1.442695, %v1918_v26 }
 0x907   :  { %v1914_v55 = vpop.xlane.xlu1 %1913  ;;  %v1957_v10 = vsel %vm394_vm3, %v7342_v40, 0.0 }
 0x908   :  { %6100 = vpow2.f32 %v1929_v22  ;;  %v1922_v43 = vsub.f32 %v1890_v16, %v1914_v55  ;;  %1958 = vadd.xlane.f32.xlu1 %v1957_v10 }
 0x90a   :  { %v1937_v27 = vmul.f32 1.442695, %v1922_v43 }
 0x90b   :  { %v5895_v18 = vpop.permute.xlu2 %5894 }
 0x90c   :  { %6102 = vpow2.f32 %v1937_v27  ;;  %v5896_v34 = vunpack.i.l.bf16 %v5895_v18  ;;  %v5897_v46 = vunpack.i.h.bf16 %v5895_v18 }
 0x90d   :  { %6104 = vrcp.f32 %v7328_v4 }
 0x90e   :  { %v7346_v39 = vpop.eup %6100  ;;  %2152 = vmatpush.msrb.mxu3 %v5896_v34 }
 0x90f   :  { %v1948_v30 = vsel %vm394_vm3, %v7346_v39, 0.0 }
 0x910   :  { %1949 = vadd.xlane.f32.xlu0 %v1948_v30  ;;  %2153 = vmatpush.msrb.mxu3 %v5897_v46 }
 0x912   :  { %v7350_v15 = vpop.eup %6102 }
 0x913   :  { %v2277_v50 = vpop.permute.xlu2 %2276  ;;  %v1960_v16 = vsel %vm394_vm3, %v7350_v15, 0.0  ;;  %v6105_v32 = vpop.eup %6104 }
 0x914   :  { %5702 = vmatpush.xpose.msk.msra.mxu3 %vm231_vm1, %v2277_v50  ;;  %1961 = vadd.xlane.f32.xlu2 %v1960_v16  ;;  %v1979_v26 = vmul.f32 %v6105_v32, %v7328_v4  ;;  %vm1984_vm6 = vweird.f32 %v6105_v32 }
 0x915   :  { %vm1985_vm8 = vmor %vm1983_vm7, %vm1984_vm6 }
 0x916   :  { %v1980_v55 = vsub.f32 1.0, %v1979_v26 }
 0x918   :  { %v1981_v46 = vmul.f32 %v6105_v32, %v1980_v55 }
 0x91a   :  { %v1982_v26 = vadd.f32 %v6105_v32, %v1981_v46 }
 0x91b   :  { %v1941_v56 = vpop.xlane.xlu0 %1940  ;;  %v7395_v46 = vpop.permute.xlu2 %2270 }
 0x91c   :  { %6106 = vrcp.f32 %v1941_v56  ;;  %v1974_v27 = vand.u32 2147483648, %v1941_v56  ;;  %v1972_v34 = vand.u32 2147483647, %v1941_v56  ;;  %vm1968_vm14 = vweird.f32 %v1941_v56 }
 0x91e   :  { %v1975_v50 = vor.u32 1.1754944e-38, %v1974_v27  ;;  %vm1973_vm5 = vcmp.eq.f32.partialorder %v1972_v34, 8.507059e+37 }
 0x921   :  { %5899 = vrot.lane.b32.xlu1 %v6990_v17, %s6410_s15 }
 0x922   :  { %v6107_v22 = vpop.eup %6106 }
 0x923   :  { %v1964_v10 = vmul.f32 %v6107_v22, %v1941_v56  ;;  %vm1969_vm13 = vweird.f32 %v6107_v22  ;;  %v1987_v56 = vand.u32 2147483647, %v7328_v4 }
 0x924   :  { %2272 = vrot.lane.b32.xlu0 %v6629_v42, %s6412_s17  ;;  %vm1970_vm15 = vmor %vm1968_vm14, %vm1969_vm13 }
 0x925   :  { %v1965_v43 = vsub.f32 1.0, %v1964_v10  ;;  %vm1988_vm9 = vcmp.eq.f32.partialorder %v1987_v56, 8.507059e+37 }
 0x927   :  { %v1966_v18 = vmul.f32 %v6107_v22, %v1965_v43  ;;  %v1989_v43 = vand.u32 2147483648, %v7328_v4 }
 0x929   :  { %v1967_v30 = vadd.f32 %v6107_v22, %v1966_v18  ;;  %2315 = vrot.lane.b32.xlu1 %v6593_v28, %s6411_s16  ;;  %v1990_v27 = vor.u32 1.1754944e-38, %v1989_v43 }
 0x92b   :  { %v1971_v16 = vsel %vm1970_vm15, %v6107_v22, %v1967_v30  ;;  %v1986_v22 = vsel %vm1985_vm8, %v6105_v32, %v1982_v26 }
 0x92c   :  { %2313 = vrot.lane.b32.xlu2 %v6596_v29, %s6411_s16  ;;  %v1976_v10 = vsel %vm1973_vm5, %v1975_v50, %v1971_v16  ;;  %v1991_v18 = vsel %vm1988_vm9, %v1990_v27, %v1986_v22 }
 0x92d   :  { %v2083_v6 = vmul.f32 %v7312_v1, %v1976_v10  ;;  %v2084_v1 = vmul.f32 %v7293_v38, %v1991_v18 }
 0x92e   :  { %v2232_v55 = vpop.permute.xlu0 %2231 }
 0x92f   :  { %5690 = vmatmul.msk.f32.vlgmr.msrb.gmra.mxu2 %vm394_vm3, %v2083_v6  ;;  %v1920_v6 = vsub.f32 %v7288_v20, %v7338_v14 }
 0x931   :  { %2309 = vrot.lane.b32.xlu1 %v6638_v44, %s6412_s17  ;;  %v1933_v32 = vmul.f32 1.442695, %v1920_v6 }
 0x933   :  { %6108 = vpow2.f32 %v1933_v32 }
 0x934   :  { %2348 = vrot.lane.b32.xlu2 %v6650_v48, %s6412_s17 }
 0x936   :  { %v2234_v34 = vpop.permute.xlu0 %2233 }
 0x937   :  { %5691 = vmatmul.msk.f32.gmra.mxu2 %vm394_vm3, %v2084_v1 }
 0x939   :  { %2311 = vrot.lane.b32.xlu1 %v6643_v45, %s6412_s17  ;;  %v7387_v38 = vpop.eup %6108 }
 0x93a   :  { %v1954_v20 = vsel %vm394_vm3, %v7387_v38, 0.0 }
 0x93e   :  { %v2275_v4 = vpop.permute.xlu0 %2274 }
 0x93f   :  { %5700 = vmatmul.msk.f32.vlgmr.msra.gmra.mxu2 %vm231_vm1, %v2232_v55  ;;  %5703 = vmatpush.xpose.msk.msra.mxu3 %vm231_vm1, %v2275_v4 }
 0x941   :  { %2352 = vrot.lane.b32.xlu1 %v6598_v31, %s6411_s16 }
 0x947   :  { %5701 = vmatmul.msk.f32.gmra.mxu2 %vm231_vm1, %v2234_v34 }
 0x949   :  { %5909 = vrot.lane.b32.xlu1 %v6918_v52, %s6412_s17 }
 0x94e   :  { %1955 = vadd.xlane.f32.xlu0 %v1954_v20 }
 0x954   :  { %v1953_v10 = vpop.xlane.xlu2 %1952 }
 0x955   :  { %vm2028_vm15 = vweird.f32 %v1953_v10 }
 0x962   :  { %5904 = vrot.lane.b32.xlu0 %v6996_v24, %s6410_s15 }
 0x969   :  { %v1947_v14 = vpop.xlane.xlu0 %1946 }
 0x96a   :  { %6110 = vrcp.f32 %v1947_v14  ;;  %2354 = vrot.lane.b32.xlu0 %v6602_v33, %s6411_s16  ;;  %v2004_v26 = vand.u32 2147483648, %v1947_v14  ;;  %v2002_v56 = vand.u32 2147483647, %v1947_v14  ;;  %vm1998_vm11 = vweird.f32 %v1947_v14 }
 0x96b   :  { %6112 = vrcp.f32 %v1953_v10 }
 0x96c   :  { %v2005_v22 = vor.u32 1.1754944e-38, %v2004_v26  ;;  %vm2003_vm13 = vcmp.eq.f32.partialorder %v2002_v56, 8.507059e+37 }
 0x970   :  { %v6111_v30 = vpop.eup %6110 }
 0x971   :  { %v1994_v50 = vmul.f32 %v6111_v30, %v1947_v14  ;;  %vm1999_vm10 = vweird.f32 %v6111_v30  ;;  %v6113_v34 = vpop.eup %6112 }
 0x972   :  { %2350 = vrot.lane.b32.xlu0 %v6655_v49, %s6412_s17  ;;  %vm2000_vm12 = vmor %vm1998_vm11, %vm1999_vm10  ;;  %v2024_v6 = vmul.f32 %v6113_v34, %v1953_v10  ;;  %vm2029_vm14 = vweird.f32 %v6113_v34 }
 0x973   :  { %v1995_v16 = vsub.f32 1.0, %v1994_v50  ;;  %vm2030_vm6 = vmor %vm2028_vm15, %vm2029_vm14 }
 0x974   :  { %v2025_v32 = vsub.f32 1.0, %v2024_v6 }
 0x975   :  { %v1996_v43 = vmul.f32 %v6111_v30, %v1995_v16 }
 0x976   :  { %v2026_v20 = vmul.f32 %v6113_v34, %v2025_v32 }
 0x977   :  { %v1997_v55 = vadd.f32 %v6111_v30, %v1996_v43 }
 0x978   :  { %v2027_v43 = vadd.f32 %v6113_v34, %v2026_v20 }
 0x979   :  { %v2001_v27 = vsel %vm2000_vm12, %v6111_v30, %v1997_v55  ;;  %v2034_v30 = vand.u32 2147483648, %v1953_v10  ;;  %v2032_v55 = vand.u32 2147483647, %v1953_v10 }
 0x97a   :  { %v2006_v18 = vsel %vm2003_vm13, %v2005_v22, %v2001_v27  ;;  %v2031_v27 = vsel %vm2030_vm6, %v6113_v34, %v2027_v43 }
 0x97b   :  { %v2085_v1 = vmul.f32 %v7336_v0, %v2006_v18  ;;  %v7401_v16 = vpop.xlane.xlu1 %1958  ;;  %vm2033_vm9 = vcmp.eq.f32.partialorder %v2032_v55, 8.507059e+37 }
 0x97c   :  { %vm2058_vm14 = vweird.f32 %v7401_v16 }
 0x97d   :  { %5692 = vmatmul.msk.f32.vlgmr.msrb.gmra.mxu3 %vm394_vm3, %v2085_v1  ;;  %v2035_v1 = vor.u32 1.1754944e-38, %v2034_v30 }
 0x97f   :  { %v2036_v51 = vsel %vm2033_vm9, %v2035_v1, %v2031_v27 }
 0x980   :  { %v2087_v34 = vmul.f32 %v7330_v60, %v2036_v51 }
 0x983   :  { %v1950_v4 = vpop.xlane.xlu0 %1949 }
 0x984   :  { %6114 = vrcp.f32 %v1950_v4  ;;  %v2019_v56 = vand.u32 2147483648, %v1950_v4  ;;  %v2017_v22 = vand.u32 2147483647, %v1950_v4  ;;  %vm2013_vm7 = vweird.f32 %v1950_v4 }
 0x985   :  { %6116 = vrcp.f32 %v7401_v16 }
 0x986   :  { %v2020_v6 = vor.u32 1.1754944e-38, %v2019_v56  ;;  %vm2018_vm10 = vcmp.eq.f32.partialorder %v2017_v22, 8.507059e+37 }
 0x987   :  { %v7403_v9 = vpop.xlane.xlu2 %1961 }
 0x988   :  { %6118 = vrcp.f32 %v7403_v9  ;;  %vm2073_vm9 = vweird.f32 %v7403_v9 }
 0x98a   :  { %v6115_v50 = vpop.eup %6114 }
 0x98b   :  { %v2009_v14 = vmul.f32 %v6115_v50, %v1950_v4  ;;  %vm2014_vm5 = vweird.f32 %v6115_v50 }
 0x98c   :  { %vm2015_vm8 = vmor %vm2013_vm7, %vm2014_vm5 }
 0x98d   :  { %v2010_v26 = vsub.f32 1.0, %v2009_v14 }
 0x98f   :  { %v2011_v0 = vmul.f32 %v6115_v50, %v2010_v26 }
 0x991   :  { %v2012_v18 = vadd.f32 %v6115_v50, %v2011_v0  ;;  %v6117_v0 = vpop.eup %6116 }
 0x992   :  { %v2054_v27 = vmul.f32 %v6117_v0, %v7401_v16  ;;  %vm2059_vm12 = vweird.f32 %v6117_v0 }
 0x993   :  { %v5900_v32 = vpop.permute.xlu1 %5899  ;;  %v2016_v13 = vsel %vm2015_vm8, %v6115_v50, %v2012_v18  ;;  %v2314_v50 = vpop.permute.xlu2 %2313  ;;  %vm2060_vm5 = vmor %vm2058_vm14, %vm2059_vm12 }
 0x994   :  { %v5901_v20 = vunpack.i.l.bf16 %v5900_v32  ;;  %v2021_v14 = vsel %vm2018_vm10, %v2020_v6, %v2016_v13  ;;  %v5902_v26 = vunpack.i.h.bf16 %v5900_v32  ;;  %v2055_v32 = vsub.f32 1.0, %v2054_v27 }
 0x995   :  { %v2086_v10 = vmul.f32 %v7346_v39, %v2021_v14  ;;  %v2062_v27 = vand.u32 2147483647, %v7401_v16 }
 0x996   :  { %2187 = vmatpush.msrb.mxu0 %v5901_v20  ;;  %v2273_v39 = vpop.permute.xlu0 %2272  ;;  %v6119_v20 = vpop.eup %6118 }
 0x997   :  { %5693 = vmatmul.msk.f32.gmra.mxu3 %vm394_vm3, %v2086_v10  ;;  %vm2063_vm7 = vcmp.eq.f32.partialorder %v2062_v27, 8.507059e+37  ;;  %vm2074_vm8 = vweird.f32 %v6119_v20 }
 0x998   :  { %2188 = vmatpush.msrb.mxu0 %v5902_v26  ;;  %v2056_v26 = vmul.f32 %v6117_v0, %v2055_v32  ;;  %vm2075_vm10 = vmor %vm2073_vm9, %vm2074_vm8 }
 0x999   :  { %5694 = vmatmul.msk.f32.vlgmr.msrb.gmra.mxu0 %vm394_vm3, %v2087_v34  ;;  %v2069_v34 = vmul.f32 %v6119_v20, %v7403_v9 }
 0x99b   :  { %v2316_v4 = vpop.permute.xlu1 %2315 }
 0x99c   :  { %5706 = vmatpush.xpose.msk.msra.mxu0 %vm231_vm1, %v2316_v4 }
 0x99f   :  { %5704 = vmatmul.msk.f32.vlgmr.msra.gmra.mxu3 %vm231_vm1, %v7395_v46 }
 0x9a0   :  { %5707 = vmatpush.xpose.msk.msra.mxu0 %vm231_vm1, %v2314_v50 }
 0x9a3   :  { %v7413_v13 = vpop.permute.xlu1 %2309 }
 0x9a7   :  { %5705 = vmatmul.msk.f32.gmra.mxu3 %vm231_vm1, %v2273_v39 }
 0x9ab   :  { %v7416_v43 = vpop.permute.xlu1 %2311 }
 0x9b2   :  { %v7418_v51 = vpop.f32.mrf.mxu2 }
 0x9b3   :  { %v7420_v60 = vpop.permute.xlu1 %2352 }
 0x9ba   :  { %v7423_v30 = vpop.f32.mrf.mxu2 }
 0x9bb   :  { %v5910_v56 = vpop.permute.xlu1 %5909 }
 0x9bc   :  { %v5911_v55 = vunpack.i.l.bf16 %v5910_v56  ;;  %v5912_v46 = vunpack.i.h.bf16 %v5910_v56 }
 0x9be   :  { %2621 = vmatpush.msrb.mxu2 %v5911_v55  ;;  %v2057_v55 = vadd.f32 %v6117_v0, %v2056_v26 }
 0x9c0   :  { %2622 = vmatpush.msrb.mxu2 %v5912_v46  ;;  %v2070_v46 = vsub.f32 1.0, %v2069_v34 }
 0x9c1   :  { %v1956_v22 = vpop.xlane.xlu0 %1955 }
 0x9c2   :  { %6120 = vrcp.f32 %v1956_v22  ;;  %v2264_v18 = vpop.f32.mrf.mxu2  ;;  %v2049_v50 = vand.u32 2147483648, %v1956_v22  ;;  %v2047_v56 = vand.u32 2147483647, %v1956_v22  ;;  %vm2043_vm13 = vweird.f32 %v1956_v22 }
 0x9c3   :  { %v7429_v1 = vsel %vm6659_vm2, %v2264_v18, -1e+30  ;;  %v2064_v18 = vand.u32 2147483648, %v7401_v16  ;;  %v2071_v5 = vmul.f32 %v6119_v20, %v2070_v46 }
 0x9c4   :  { %v2395_v6 = vsel %vm394_vm3, %v7429_v1, -inf  ;;  %vm2048_vm6 = vcmp.eq.f32.partialorder %v2047_v56, 8.507059e+37 }
 0x9c5   :  { %2396 = vmax.xlane.f32.xlu1 %v2395_v6  ;;  %v2050_v6 = vor.u32 1.1754944e-38, %v2049_v50  ;;  %v2065_v47 = vor.u32 1.1754944e-38, %v2064_v18  ;;  %v2079_v50 = vand.u32 2147483648, %v7403_v9 }
 0x9c8   :  { %v6121_v14 = vpop.eup %6120 }
 0x9c9   :  { %v2039_v10 = vmul.f32 %v6121_v14, %v1956_v22  ;;  %vm2044_vm11 = vweird.f32 %v6121_v14 }
 0x9ca   :  { %vm2045_vm15 = vmor %vm2043_vm13, %vm2044_vm11 }
 0x9cb   :  { %v2040_v4 = vsub.f32 1.0, %v2039_v10  ;;  %v2061_v10 = vsel %vm2060_vm5, %v6117_v0, %v2057_v55  ;;  %v2077_v0 = vand.u32 2147483647, %v7403_v9 }
 0x9cc   :  { %v2066_v22 = vsel %vm2063_vm7, %v2065_v47, %v2061_v10 }
 0x9cd   :  { %v2041_v39 = vmul.f32 %v6121_v14, %v2040_v4  ;;  %vm2078_vm11 = vcmp.eq.f32.partialorder %v2077_v0, 8.507059e+37 }
 0x9cf   :  { %v2042_v2 = vadd.f32 %v6121_v14, %v2041_v39  ;;  %v2072_v39 = vadd.f32 %v6119_v20, %v2071_v5  ;;  %v2349_v5 = vpop.permute.xlu2 %2348 }
 0x9d1   :  { %v2046_v32 = vsel %vm2045_vm15, %v6121_v14, %v2042_v2  ;;  %v2089_v2 = vmul.f32 %v7342_v40, %v2066_v22  ;;  %v2080_v14 = vor.u32 1.1754944e-38, %v2079_v50 }
 0x9d2   :  { %v2051_v4 = vsel %vm2048_vm6, %v2050_v6, %v2046_v32 }
 0x9d3   :  { %v2088_v26 = vmul.f32 %v7387_v38, %v2051_v4  ;;  %v2076_v38 = vsel %vm2075_vm10, %v6119_v20, %v2072_v39 }
 0x9d4   :  { %v5905_v34 = vpop.permute.xlu0 %5904 }
 0x9d5   :  { %v5906_v11 = vunpack.i.l.bf16 %v5905_v34  ;;  %5695 = vmatmul.msk.f32.gmra.mxu0 %vm394_vm3, %v2088_v26  ;;  %v5907_v16 = vunpack.i.h.bf16 %v5905_v34 }
 0x9d7   :  { %2222 = vmatpush.msra.mxu1 %v5906_v11  ;;  %v2081_v11 = vsel %vm2078_vm11, %v2080_v14, %v2076_v38  ;;  %v2267_v38 = vpop.f32.mrf.mxu2 }
 0x9d8   :  { %v2090_v9 = vmul.f32 %v7350_v15, %v2081_v11  ;;  %v2388_v14 = vsel %vm6669_vm4, %v2267_v38, -1e+30 }
 0x9d9   :  { %2223 = vmatpush.msra.mxu1 %v5907_v16 }
 0x9da   :  { %5696 = vmatmul.msk.f32.vlgmr.msra.gmra.mxu1 %vm394_vm3, %v2089_v2 }
 0x9dc   :  { %v2355_v56 = vpop.permute.xlu0 %2354 }
 0x9dd   :  { %5708 = vmatmul.msk.f32.vlgmr.msra.gmra.mxu0 %vm231_vm1, %v7413_v13  ;;  %5710 = vmatpush.xpose.msk.msrb.mxu1 %vm231_vm1, %v2355_v56  ;;  %v2398_v56 = vsel %vm394_vm3, %v2388_v14, -inf }
 0x9de   :  { %2739 = vrot.lane.b32.xlu1 %v6581_v19, %s6413_s18 }
 0x9e1   :  { %5711 = vmatpush.xpose.msk.msrb.mxu1 %vm231_vm1, %v7420_v60 }
 0x9e2   :  { %5697 = vmatmul.msk.f32.gmra.mxu1 %vm394_vm3, %v2090_v9 }
 0x9e4   :  { %v2351_v47 = vpop.permute.xlu0 %2350 }
 0x9e5   :  { %5709 = vmatmul.msk.f32.gmra.mxu0 %vm231_vm1, %v7416_v43 }
 0x9e6   :  { %2737 = vrot.lane.b32.xlu1 %v6617_v37, %s6414_s2 }
 0x9ea   :  { %5712 = vmatmul.msk.f32.vlgmr.msrb.gmra.mxu1 %vm231_vm1, %v2349_v5 }
 0x9ee   :  { %2778 = vrot.lane.b32.xlu1 %v6587_v23, %s6413_s18 }
 0x9f2   :  { %5713 = vmatmul.msk.f32.gmra.mxu1 %vm231_vm1, %v2351_v47 }
 0xa00   :  { %v7461_v40 = vpop.f32.mrf.mxu3 }
 0xa16   :  { %v7471_v55 = vpop.f32.mrf.mxu0 }
 0xa17   :  { %9101 = vst [vmem:[#allocation30_spill] sm:$0xff] %v7471_v55 }
 0xa1a   :  { %v7463_v15 = vpop.f32.mrf.mxu3 }
 0xa1b   :  { %9100 = vst [vmem:[#allocation29_spill] sm:$0xff] %v7463_v15 }
 0xa22   :  { %v2303_v13 = vpop.f32.mrf.mxu3 }
 0xa23   :  { %v2389_v11 = vsel %vm6659_vm2, %v2303_v13, -1e+30 }
 0xa24   :  { %v2401_v9 = vsel %vm394_vm3, %v2389_v11, -inf }
 0xa2a   :  { %v2306_v60 = vpop.f32.mrf.mxu3 }
 0xa2b   :  { %v7467_v43 = vsel %vm6669_vm4, %v2306_v60, -1e+30 }
 0xa2c   :  { %v2404_v20 = vsel %vm394_vm3, %v7467_v43, -inf }
 0xa2d   :  { %2405 = vmax.xlane.f32.xlu1 %v2404_v20 }
 0xa38   :  { %v2397_v5 = vpop.xlane.xlu1 %2396 }
 0xa39   :  { %v2419_v47 = vsub.f32 %v7429_v1, %v2397_v5 }
 0xa3b   :  { %v2427_v60 = vmul.f32 1.442695, %v2419_v47 }
 0xa3d   :  { %6122 = vpow2.f32 %v2427_v60 }
 0xa43   :  { %v7509_v20 = vpop.eup %6122 }
 0xa52   :  { %v7473_v46 = vpop.f32.mrf.mxu0 }
 0xa53   :  { %9102 = vst [vmem:[#allocation31_spill] sm:$0xff] %v7473_v46 }
 0xa57   :  { %v7475_v18 = vpop.f32.mrf.mxu1 }
 0xa58   :  { %9103 = vst [vmem:[#allocation32_spill] sm:$0xff] %v7475_v18 }
 0xa5a   :  { %v2342_v27 = vpop.f32.mrf.mxu0 }
 0xa5b   :  { %v2391_v6 = vsel %vm6659_vm2, %v2342_v27, -1e+30  ;;  %v2443_v27 = vsel %vm394_vm3, %v7509_v20, 0.0 }
 0xa5c   :  { %v2407_v32 = vsel %vm394_vm3, %v2391_v6, -inf }
 0xa5d   :  { %2408 = vmax.xlane.f32.xlu0 %v2407_v32 }
 0xa5f   :  { %v7480_v10 = vpop.f32.mrf.mxu1 }
 0xa60   :  { %9104 = vst [vmem:[#allocation33_spill] sm:$0xff] %v7480_v10 }
 0xa62   :  { %v2345_v4 = vpop.f32.mrf.mxu0 }
 0xa63   :  { %v2392_v26 = vsel %vm6669_vm4, %v2345_v4, -1e+30 }
 0xa64   :  { %v2410_v34 = vsel %vm394_vm3, %v2392_v26, -inf }
 0xa65   :  { %2411 = vmax.xlane.f32.xlu2 %v2410_v34 }
 0xa67   :  { %v2381_v22 = vpop.f32.mrf.mxu1 }
 0xa68   :  { %v7487_v39 = vsel %vm6659_vm2, %v2381_v22, -1e+30 }
 0xa69   :  { %v2413_v16 = vsel %vm394_vm3, %v7487_v39, -inf }
 0xa6d   :  { %2414 = vmax.xlane.f32.xlu2 %v2413_v16 }
 0xa6f   :  { %v2384_v50 = vpop.f32.mrf.mxu1 }
 0xa70   :  { %v2394_v2 = vsel %vm6669_vm4, %v2384_v50, -1e+30 }
 0xa71   :  { %2741 = vrot.lane.b32.xlu0 %v6584_v21, %s6413_s18  ;;  %v2416_v0 = vsel %vm394_vm3, %v2394_v2, -inf }
 0xa75   :  { %2417 = vmax.xlane.f32.xlu2 %v2416_v0  ;;  %v2740_v0 = vpop.permute.xlu1 %2739 }
 0xa79   :  { %2735 = vrot.lane.b32.xlu0 %v6612_v36, %s6414_s2 }
 0xa7d   :  { %2399 = vmax.xlane.f32.xlu2 %v2398_v56 }
 0xa95   :  { %5914 = vrot.lane.b32.xlu2 %v6922_v63, %s6412_s17 }
 0xaa3   :  { %2402 = vmax.xlane.f32.xlu0 %v2401_v9 }
 0xab7   :  { %2780 = vrot.lane.b32.xlu0 %v6590_v25, %s6413_s18 }
 0xabe   :  { %2444 = vadd.xlane.f32.xlu2 %v2443_v27 }
 0xad0   :  { %v2409_v32 = vpop.xlane.xlu0 %2408 }
 0xad1   :  { %v2423_v4 = vsub.f32 %v2391_v6, %v2409_v32 }
 0xad3   :  { %v2435_v13 = vmul.f32 1.442695, %v2423_v4 }
 0xad5   :  { %6124 = vpow2.f32 %v2435_v13 }
 0xad6   :  { %2774 = vrot.lane.b32.xlu2 %v6626_v41, %s6414_s2 }
 0xad8   :  { %v2412_v34 = vpop.xlane.xlu2 %2411 }
 0xad9   :  { %v2424_v9 = vsub.f32 %v2392_v26, %v2412_v34 }
 0xadb   :  { %v7515_v1 = vpop.eup %6124  ;;  %v2437_v5 = vmul.f32 1.442695, %v2424_v9 }
 0xadc   :  { %v2455_v16 = vsel %vm394_vm3, %v7515_v1, 0.0 }
 0xae0   :  { %v2415_v22 = vpop.xlane.xlu2 %2414 }
 0xae1   :  { %2456 = vadd.xlane.f32.xlu0 %v2455_v16 }
 0xae3   :  { %v2742_v50 = vpop.permute.xlu0 %2741 }
 0xae4   :  { %5722 = vmatpush.xpose.msk.msra.mxu2 %vm231_vm1, %v2742_v50 }
 0xae8   :  { %5723 = vmatpush.xpose.msk.msra.mxu2 %vm231_vm1, %v2740_v0  ;;  %v2418_v6 = vpop.xlane.xlu2 %2417  ;;  %v7533_v0 = vpop.permute.xlu1 %2737 }
 0xae9   :  { %v2426_v38 = vsub.f32 %v2394_v2, %v2418_v6 }
 0xaeb   :  { %v2441_v56 = vmul.f32 1.442695, %v2426_v38  ;;  %v7535_v38 = vpop.permute.xlu0 %2735 }
 0xaed   :  { %6126 = vpow2.f32 %v2441_v56 }
 0xaee   :  { %6128 = vpow2.f32 %v2437_v5 }
 0xaf0   :  { %v2400_v47 = vpop.xlane.xlu2 %2399  ;;  %v2779_v6 = vpop.permute.xlu1 %2778 }
 0xaf1   :  { %v2420_v60 = vsub.f32 %v2388_v14, %v2400_v47 }
 0xaf3   :  { %v7521_v27 = vpop.eup %6126  ;;  %v2429_v32 = vmul.f32 1.442695, %v2420_v60 }
 0xaf4   :  { %v2464_v4 = vsel %vm394_vm3, %v7521_v27, 0.0  ;;  %v7525_v50 = vpop.eup %6128 }
 0xaf5   :  { %6130 = vpow2.f32 %v2429_v32  ;;  %2465 = vadd.xlane.f32.xlu0 %v2464_v4  ;;  %v2458_v34 = vsel %vm394_vm3, %v7525_v50, 0.0 }
 0xaf8   :  { %v5915_v13 = vpop.permute.xlu2 %5914  ;;  %v2406_v56 = vpop.xlane.xlu1 %2405 }
 0xaf9   :  { %v5916_v16 = vunpack.i.l.bf16 %v5915_v13  ;;  %v5917_v26 = vunpack.i.h.bf16 %v5915_v13  ;;  %v2422_v47 = vsub.f32 %v7467_v43, %v2406_v56 }
 0xafb   :  { %v7527_v2 = vpop.eup %6130  ;;  %2656 = vmatpush.msrb.mxu3 %v5916_v16  ;;  %v2433_v32 = vmul.f32 1.442695, %v2422_v47 }
 0xafc   :  { %v2446_v14 = vsel %vm394_vm3, %v7527_v2, 0.0 }
 0xafd   :  { %2447 = vadd.xlane.f32.xlu1 %v2446_v14  ;;  %2657 = vmatpush.msrb.mxu3 %v5917_v26  ;;  %v2425_v26 = vsub.f32 %v7487_v39, %v2415_v22 }
 0xaff   :  { %2459 = vadd.xlane.f32.xlu2 %v2458_v34  ;;  %v2439_v34 = vmul.f32 1.442695, %v2425_v26 }
 0xb16   :  { %v2403_v9 = vpop.xlane.xlu0 %2402  ;;  %2776 = vrot.lane.b32.xlu1 %v6629_v42, %s6414_s2 }
 0xb17   :  { %v2421_v5 = vsub.f32 %v2389_v11, %v2403_v9  ;;  %5919 = vrot.lane.b32.xlu2 %v6990_v17, %s6412_s17 }
 0xb19   :  { %v2431_v60 = vmul.f32 1.442695, %v2421_v5 }
 0xb1b   :  { %6132 = vpow2.f32 %v2431_v60 }
 0xb1c   :  { %6134 = vpow2.f32 %v2433_v32 }
 0xb1f   :  { %2817 = vrot.lane.b32.xlu2 %v6596_v29, %s6413_s18 }
 0xb21   :  { %v7544_v4 = vpop.eup %6132 }
 0xb22   :  { %v2449_v13 = vsel %vm394_vm3, %v7544_v4, 0.0  ;;  %v7548_v16 = vpop.eup %6134 }
 0xb23   :  { %2450 = vadd.xlane.f32.xlu0 %v2449_v13  ;;  %v2452_v43 = vsel %vm394_vm3, %v7548_v16, 0.0 }
 0xb27   :  { %2815 = vrot.lane.b32.xlu2 %v6643_v45, %s6414_s2 }
 0xb29   :  { %v2781_v11 = vpop.permute.xlu0 %2780 }
 0xb2a   :  { %5726 = vmatpush.xpose.msk.msra.mxu3 %vm231_vm1, %v2781_v11 }
 0xb2b   :  { %2453 = vadd.xlane.f32.xlu0 %v2452_v43 }
 0xb2e   :  { %5727 = vmatpush.xpose.msk.msra.mxu3 %vm231_vm1, %v2779_v6 }
 0xb2f   :  { %2852 = vrot.lane.b32.xlu2 %v6650_v48, %s6414_s2 }
 0xb31   :  { %v2445_v14 = vpop.xlane.xlu2 %2444 }
 0xb32   :  { %6136 = vrcp.f32 %v2445_v14  ;;  %v2478_v60 = vand.u32 2147483648, %v2445_v14  ;;  %v2476_v13 = vand.u32 2147483647, %v2445_v14  ;;  %vm2472_vm13 = vweird.f32 %v2445_v14 }
 0xb33   :  { %6138 = vpow2.f32 %v2439_v34 }
 0xb34   :  { %v2479_v22 = vor.u32 1.1754944e-38, %v2478_v60  ;;  %vm2477_vm15 = vcmp.eq.f32.partialorder %v2476_v13, 8.507059e+37 }
 0xb38   :  { %v6137_v56 = vpop.eup %6136 }
 0xb39   :  { %v2468_v9 = vmul.f32 %v6137_v56, %v2445_v14  ;;  %v7559_v47 = vpop.eup %6138  ;;  %vm2473_vm12 = vweird.f32 %v6137_v56 }
 0xb3a   :  { %v2461_v39 = vsel %vm394_vm3, %v7559_v47, 0.0  ;;  %vm2474_vm14 = vmor %vm2472_vm13, %vm2473_vm12 }
 0xb3b   :  { %v2469_v5 = vsub.f32 1.0, %v2468_v9 }
 0xb3d   :  { %v2470_v32 = vmul.f32 %v6137_v56, %v2469_v5 }
 0xb3f   :  { %v2471_v11 = vadd.f32 %v6137_v56, %v2470_v32  ;;  %2819 = vrot.lane.b32.xlu0 %v6593_v28, %s6413_s18 }
 0xb40   :  { %2462 = vadd.xlane.f32.xlu1 %v2461_v39 }
 0xb41   :  { %v2475_v6 = vsel %vm2474_vm14, %v6137_v56, %v2471_v11 }
 0xb42   :  { %v2480_v43 = vsel %vm2477_vm15, %v2479_v22, %v2475_v6 }
 0xb43   :  { %v2587_v26 = vmul.f32 %v7509_v20, %v2480_v43  ;;  %v7577_v20 = vpop.permute.xlu2 %2774 }
 0xb45   :  { %5714 = vmatmul.msk.f32.vlgmr.msrb.gmra.mxu2 %vm394_vm3, %v2587_v26 }
 0xb47   :  { %2813 = vrot.lane.b32.xlu0 %v6638_v44, %s6414_s2 }
 0xb4f   :  { %2856 = vrot.lane.b32.xlu0 %v6598_v31, %s6413_s18 }
 0xb54   :  { %v2457_v14 = vpop.xlane.xlu0 %2456 }
 0xb55   :  { %6140 = vrcp.f32 %v2457_v14  ;;  %v2538_v11 = vand.u32 2147483648, %v2457_v14  ;;  %vm2532_vm6 = vweird.f32 %v2457_v14  ;;  %v2536_v39 = vand.u32 2147483647, %v2457_v14 }
 0xb57   :  { %v2539_v43 = vor.u32 1.1754944e-38, %v2538_v11  ;;  %vm2537_vm8 = vcmp.eq.f32.partialorder %v2536_v39, 8.507059e+37 }
 0xb59   :  { %5924 = vrot.lane.b32.xlu1 %v6996_v24, %s6412_s17 }
 0xb5b   :  { %v6141_v34 = vpop.eup %6140 }
 0xb5c   :  { %v2528_v56 = vmul.f32 %v6141_v34, %v2457_v14  ;;  %vm2533_vm5 = vweird.f32 %v6141_v34 }
 0xb5d   :  { %vm2534_vm7 = vmor %vm2532_vm6, %vm2533_vm5 }
 0xb5e   :  { %v2529_v9 = vsub.f32 1.0, %v2528_v56 }
 0xb60   :  { %v2530_v5 = vmul.f32 %v6141_v34, %v2529_v9 }
 0xb61   :  { %2858 = vrot.lane.b32.xlu1 %v6602_v33, %s6413_s18 }
 0xb62   :  { %v2531_v13 = vadd.f32 %v6141_v34, %v2530_v5 }
 0xb64   :  { %v2535_v6 = vsel %vm2534_vm7, %v6141_v34, %v2531_v13 }
 0xb65   :  { %v2540_v18 = vsel %vm2537_vm8, %v2539_v43, %v2535_v6 }
 0xb66   :  { %v2591_v54 = vmul.f32 %v7515_v1, %v2540_v18 }
 0xb69   :  { %2854 = vrot.lane.b32.xlu1 %v6655_v49, %s6414_s2 }
 0xb70   :  { %v2448_v60 = vpop.xlane.xlu1 %2447 }
 0xb71   :  { %6142 = vrcp.f32 %v2448_v60  ;;  %v2493_v35 = vand.u32 2147483648, %v2448_v60  ;;  %v2491_v15 = vand.u32 2147483647, %v2448_v60  ;;  %vm2487_vm10 = vweird.f32 %v2448_v60 }
 0xb72   :  { %v2460_v32 = vpop.xlane.xlu2 %2459 }
 0xb73   :  { %6144 = vrcp.f32 %v2460_v32  ;;  %v2553_v14 = vand.u32 2147483648, %v2460_v32  ;;  %v2551_v11 = vand.u32 2147483647, %v2460_v32  ;;  %v2494_v39 = vor.u32 1.1754944e-38, %v2493_v35 }
 0xb74   :  { %vm2547_vm13 = vweird.f32 %v2460_v32  ;;  %vm2492_vm14 = vcmp.eq.f32.partialorder %v2491_v15, 8.507059e+37 }
 0xb75   :  { %v2554_v43 = vor.u32 1.1754944e-38, %v2553_v14  ;;  %vm2552_vm5 = vcmp.eq.f32.partialorder %v2551_v11, 8.507059e+37 }
 0xb77   :  { %v6143_v22 = vpop.eup %6142 }
 0xb78   :  { %v2483_v26 = vmul.f32 %v6143_v22, %v2448_v60  ;;  %vm2488_vm9 = vweird.f32 %v6143_v22 }
 0xb79   :  { %v6145_v10 = vpop.eup %6144  ;;  %vm2489_vm12 = vmor %vm2487_vm10, %vm2488_vm9 }
 0xb7a   :  { %v2484_v46 = vsub.f32 1.0, %v2483_v26  ;;  %v2543_v56 = vmul.f32 %v6145_v10, %v2460_v32  ;;  %v5920_v9 = vpop.permute.xlu2 %5919  ;;  %vm2548_vm11 = vweird.f32 %v6145_v10 }
 0xb7b   :  { %v5921_v55 = vunpack.i.l.bf16 %v5920_v9  ;;  %v5922_v7 = vunpack.i.h.bf16 %v5920_v9  ;;  %vm2549_vm15 = vmor %vm2547_vm13, %vm2548_vm11 }
 0xb7c   :  { %v2544_v59 = vsub.f32 1.0, %v2543_v56  ;;  %v2485_v5 = vmul.f32 %v6143_v22, %v2484_v46 }
 0xb7d   :  { %2691 = vmatpush.msrb.mxu0 %v5921_v55 }
 0xb7e   :  { %v2545_v34 = vmul.f32 %v6145_v10, %v2544_v59  ;;  %v2486_v13 = vadd.f32 %v6143_v22, %v2485_v5 }
 0xb7f   :  { %2692 = vmatpush.msrb.mxu0 %v5922_v7 }
 0xb80   :  { %5718 = vmatmul.msk.f32.vlgmr.msrb.gmra.mxu0 %vm394_vm3, %v2591_v54  ;;  %v2490_v6 = vsel %vm2489_vm12, %v6143_v22, %v2486_v13  ;;  %v2546_v46 = vadd.f32 %v6145_v10, %v2545_v34  ;;  %v7587_v54 = vpop.xlane.xlu0 %2465 }
 0xb81   :  { %v2495_v18 = vsel %vm2492_vm14, %v2494_v39, %v2490_v6 }
 0xb82   :  { %v2588_v1 = vmul.f32 %v7527_v2, %v2495_v18  ;;  %v2550_v55 = vsel %vm2549_vm15, %v6145_v10, %v2546_v46 }
 0xb83   :  { %v2555_v59 = vsel %vm2552_vm5, %v2554_v43, %v2550_v55 }
 0xb84   :  { %5715 = vmatmul.msk.f32.gmra.mxu2 %vm394_vm3, %v2588_v1  ;;  %v2592_v7 = vmul.f32 %v7525_v50, %v2555_v59 }
 0xb88   :  { %5719 = vmatmul.msk.f32.gmra.mxu0 %vm394_vm3, %v2592_v7  ;;  %v2777_v6 = vpop.permute.xlu1 %2776  ;;  %v2818_v7 = vpop.permute.xlu2 %2817 }
 0xb8c   :  { %5724 = vmatmul.msk.f32.vlgmr.msra.gmra.mxu2 %vm231_vm1, %v7535_v38 }
 0xb94   :  { %5725 = vmatmul.msk.f32.gmra.mxu2 %vm231_vm1, %v7533_v0 }
 0xb96   :  { %v2451_v35 = vpop.xlane.xlu0 %2450 }
 0xb97   :  { %6146 = vrcp.f32 %v2451_v35  ;;  %v2508_v32 = vand.u32 2147483648, %v2451_v35  ;;  %v2506_v50 = vand.u32 2147483647, %v2451_v35  ;;  %vm2502_vm7 = vweird.f32 %v2451_v35 }
 0xb99   :  { %v2509_v38 = vor.u32 1.1754944e-38, %v2508_v32  ;;  %vm2507_vm9 = vcmp.eq.f32.partialorder %v2506_v50, 8.507059e+37  ;;  %v2816_v32 = vpop.permute.xlu2 %2815 }
 0xb9d   :  { %v6147_v15 = vpop.eup %6146 }
 0xb9e   :  { %v2498_v10 = vmul.f32 %v6147_v15, %v2451_v35  ;;  %v2454_v2 = vpop.xlane.xlu0 %2453  ;;  %vm2503_vm6 = vweird.f32 %v6147_v15 }
 0xb9f   :  { %6148 = vrcp.f32 %v2454_v2  ;;  %vm2504_vm8 = vmor %vm2502_vm7, %vm2503_vm6  ;;  %v2523_v13 = vand.u32 2147483648, %v2454_v2  ;;  %v2521_v39 = vand.u32 2147483647, %v2454_v2  ;;  %vm2517_vm11 = vweird.f32 %v2454_v2 }
 0xba0   :  { %v2499_v60 = vsub.f32 1.0, %v2498_v10 }
 0xba1   :  { %v2524_v43 = vor.u32 1.1754944e-38, %v2523_v13  ;;  %vm2522_vm13 = vcmp.eq.f32.partialorder %v2521_v39, 8.507059e+37  ;;  %v2583_v39 = vand.u32 2147483648, %v7587_v54 }
 0xba2   :  { %v2500_v22 = vmul.f32 %v6147_v15, %v2499_v60 }
 0xba4   :  { %v2501_v26 = vadd.f32 %v6147_v15, %v2500_v22 }
 0xba5   :  { %v6149_v56 = vpop.eup %6148 }
 0xba6   :  { %v2505_v9 = vsel %vm2504_vm8, %v6147_v15, %v2501_v26  ;;  %v2513_v5 = vmul.f32 %v6149_v56, %v2454_v2  ;;  %vm2518_vm10 = vweird.f32 %v6149_v56  ;;  %vm2577_vm8 = vweird.f32 %v7587_v54 }
 0xba7   :  { %v2510_v0 = vsel %vm2507_vm9, %v2509_v38, %v2505_v9  ;;  %vm2519_vm12 = vmor %vm2517_vm11, %vm2518_vm10 }
 0xba8   :  { %v2514_v14 = vsub.f32 1.0, %v2513_v5  ;;  %v2589_v34 = vmul.f32 %v7544_v4, %v2510_v0 }
 0xbaa   :  { %5716 = vmatmul.msk.f32.vlgmr.msrb.gmra.mxu3 %vm394_vm3, %v2589_v34  ;;  %v2515_v11 = vmul.f32 %v6149_v56, %v2514_v14 }
 0xbac   :  { %v2516_v46 = vadd.f32 %v6149_v56, %v2515_v11 }
 0xbae   :  { %v2520_v18 = vsel %vm2519_vm12, %v6149_v56, %v2516_v46  ;;  %v2581_v46 = vand.u32 2147483647, %v7587_v54 }
 0xbaf   :  { %v2525_v1 = vsel %vm2522_vm13, %v2524_v43, %v2520_v18  ;;  %v2584_v18 = vor.u32 1.1754944e-38, %v2583_v39 }
 0xbb0   :  { %v2590_v55 = vmul.f32 %v7548_v16, %v2525_v1  ;;  %vm2582_vm10 = vcmp.eq.f32.partialorder %v2581_v46, 8.507059e+37 }
 0xbb1   :  { %v2820_v59 = vpop.permute.xlu0 %2819 }
 0xbb2   :  { %5717 = vmatmul.msk.f32.gmra.mxu3 %vm394_vm3, %v2590_v55  ;;  %5730 = vmatpush.xpose.msk.msra.mxu0 %vm231_vm1, %v2820_v59 }
 0xbb3   :  { %v2463_v4 = vpop.xlane.xlu1 %2462 }
 0xbb4   :  { %6150 = vrcp.f32 %v2463_v4  ;;  %v2568_v56 = vand.u32 2147483648, %v2463_v4  ;;  %vm2562_vm15 = vweird.f32 %v2463_v4  ;;  %v2566_v38 = vand.u32 2147483647, %v2463_v4 }
 0xbb5   :  { %6152 = vrcp.f32 %v7587_v54 }
 0xbb6   :  { %5731 = vmatpush.xpose.msk.msra.mxu0 %vm231_vm1, %v2818_v7  ;;  %v2569_v5 = vor.u32 1.1754944e-38, %v2568_v56  ;;  %vm2567_vm6 = vcmp.eq.f32.partialorder %v2566_v38, 8.507059e+37 }
 0xbb9   :  { %v2814_v35 = vpop.permute.xlu0 %2813 }
 0xbba   :  { %v6151_v15 = vpop.eup %6150  ;;  %5728 = vmatmul.msk.f32.vlgmr.msra.gmra.mxu3 %vm231_vm1, %v7577_v20  ;;  %5732 = vmatmul.msk.f32.vlgmr.msra.gmra.mxu0 %vm231_vm1, %v2814_v35 }
 0xbbb   :  { %v2558_v16 = vmul.f32 %v6151_v15, %v2463_v4  ;;  %v6153_v2 = vpop.eup %6152  ;;  %vm2563_vm14 = vweird.f32 %v6151_v15 }
 0xbbc   :  { %v2573_v60 = vmul.f32 %v6153_v2, %v7587_v54  ;;  %vm2564_vm5 = vmor %vm2562_vm15, %vm2563_vm14  ;;  %vm2578_vm7 = vweird.f32 %v6153_v2 }
 0xbbd   :  { %v2559_v10 = vsub.f32 1.0, %v2558_v16  ;;  %vm2579_vm9 = vmor %vm2577_vm8, %vm2578_vm7 }
 0xbbe   :  { %v2574_v50 = vsub.f32 1.0, %v2573_v60 }
 0xbbf   :  { %v2560_v22 = vmul.f32 %v6151_v15, %v2559_v10 }
 0xbc0   :  { %v2575_v9 = vmul.f32 %v6153_v2, %v2574_v50 }
 0xbc1   :  { %v2561_v26 = vadd.f32 %v6151_v15, %v2560_v22  ;;  %v2857_v59 = vpop.permute.xlu0 %2856 }
 0xbc2   :  { %5729 = vmatmul.msk.f32.gmra.mxu3 %vm231_vm1, %v2777_v6  ;;  %5733 = vmatmul.msk.f32.gmra.mxu0 %vm231_vm1, %v2816_v32  ;;  %v2576_v13 = vadd.f32 %v6153_v2, %v2575_v9 }
 0xbc3   :  { %v2565_v20 = vsel %vm2564_vm5, %v6151_v15, %v2561_v26 }
 0xbc4   :  { %v2570_v34 = vsel %vm2567_vm6, %v2569_v5, %v2565_v20  ;;  %v2580_v43 = vsel %vm2579_vm9, %v6153_v2, %v2576_v13 }
 0xbc5   :  { %v2593_v6 = vmul.f32 %v7559_v47, %v2570_v34  ;;  %v2585_v55 = vsel %vm2582_vm10, %v2584_v18, %v2580_v43  ;;  %v2853_v47 = vpop.permute.xlu2 %2852 }
 0xbc6   :  { %v2594_v4 = vmul.f32 %v7521_v27, %v2585_v55 }
 0xbc8   :  { %v7652_v9 = vpop.f32.mrf.mxu2 }
 0xbcb   :  { %v5925_v0 = vpop.permute.xlu1 %5924 }
 0xbcc   :  { %v5926_v14 = vunpack.i.l.bf16 %v5925_v0  ;;  %v5927_v11 = vunpack.i.h.bf16 %v5925_v0 }
 0xbce   :  { %2726 = vmatpush.msra.mxu1 %v5926_v14 }
 0xbd0   :  { %2727 = vmatpush.msra.mxu1 %v5927_v11 }
 0xbd1   :  { %5720 = vmatmul.msk.f32.vlgmr.msra.gmra.mxu1 %vm394_vm3, %v2593_v6 }
 0xbd3   :  { %v2859_v1 = vpop.permute.xlu1 %2858 }
 0xbd4   :  { %5734 = vmatpush.xpose.msk.msrb.mxu1 %vm231_vm1, %v2859_v1 }
 0xbd8   :  { %5735 = vmatpush.xpose.msk.msrb.mxu1 %vm231_vm1, %v2857_v59 }
 0xbd9   :  { %5721 = vmatmul.msk.f32.gmra.mxu1 %vm394_vm3, %v2594_v4 }
 0xbdb   :  { %v2855_v54 = vpop.permute.xlu1 %2854 }
 0xbe1   :  { %5736 = vmatmul.msk.f32.vlgmr.msrb.gmra.mxu1 %vm231_vm1, %v2853_v47 }
 0xbe9   :  { %5737 = vmatmul.msk.f32.gmra.mxu1 %vm231_vm1, %v2855_v54 }
 0xbfd   :  { %v7615_v7 = vpop.f32.mrf.mxu0 }
 0xc05   :  { %v7617_v35 = vpop.f32.mrf.mxu0 }
 0xc06   :  { %9105 = vst [vmem:[#allocation34_spill] sm:$0xff] %v7617_v35 }
 0xc07   :  { %v7658_v14 = vpop.f32.mrf.mxu2 }
 0xc0f   :  { %v2768_v13 = vpop.f32.mrf.mxu2 }
 0xc10   :  { %v2891_v39 = vsel %vm6659_vm2, %v2768_v13, -1e+30 }
 0xc11   :  { %v2899_v46 = vsel %vm394_vm3, %v2891_v39, -inf }
 0xc17   :  { %v2771_v6 = vpop.f32.mrf.mxu2 }
 0xc18   :  { %v2892_v43 = vsel %vm6669_vm4, %v2771_v6, -1e+30 }
 0xc19   :  { %v2902_v1 = vsel %vm394_vm3, %v2892_v43, -inf }
 0xc2d   :  { %v7656_v0 = vpop.f32.mrf.mxu3 }
 0xc35   :  { %v7660_v34 = vpop.f32.mrf.mxu3 }
 0xc36   :  { %9108 = vst [vmem:[#allocation37_spill] sm:$0xff] %v7660_v34 }
 0xc37   :  { %v2846_v15 = vpop.f32.mrf.mxu0 }
 0xc38   :  { %v2895_v16 = vsel %vm6659_vm2, %v2846_v15, -1e+30 }
 0xc39   :  { %v2911_v27 = vsel %vm394_vm3, %v2895_v16, -inf }
 0xc3a   :  { %2912 = vmax.xlane.f32.xlu2 %v2911_v27 }
 0xc3d   :  { %v2807_v11 = vpop.f32.mrf.mxu3 }
 0xc3e   :  { %v2893_v54 = vsel %vm6659_vm2, %v2807_v11, -1e+30 }
 0xc3f   :  { %v2849_v10 = vpop.f32.mrf.mxu0  ;;  %v2905_v27 = vsel %vm394_vm3, %v2893_v54, -inf }
 0xc40   :  { %v7624_v2 = vsel %vm6669_vm4, %v2849_v10, -1e+30 }
 0xc41   :  { %v2914_v60 = vsel %vm394_vm3, %v7624_v2, -inf }
 0xc42   :  { %2915 = vmax.xlane.f32.xlu0 %v2914_v60 }
 0xc45   :  { %v2810_v18 = vpop.f32.mrf.mxu3 }
 0xc46   :  { %v2894_v55 = vsel %vm6669_vm4, %v2810_v18, -1e+30 }
 0xc47   :  { %v2908_v59 = vsel %vm394_vm3, %v2894_v55, -inf }
 0xc4e   :  { %v7628_v32 = vpop.f32.mrf.mxu1 }
 0xc4f   :  { %9106 = vst [vmem:[#allocation35_spill] sm:$0xff] %v7628_v32 }
 0xc52   :  { %5929 = vrot.lane.b32.xlu2 %v6918_v52, %s6414_s2 }
 0xc56   :  { %v7632_v22 = vpop.f32.mrf.mxu1  ;;  %5934 = vrot.lane.b32.xlu0 %v6922_v63, %s6414_s2 }
 0xc57   :  { %9107 = vst [vmem:[#allocation36_spill] sm:$0xff] %v7632_v22 }
 0xc5a   :  { %3243 = vrot.lane.b32.xlu2 %v6581_v19, %s6415_s19 }
 0xc5e   :  { %v2885_v50 = vpop.f32.mrf.mxu1  ;;  %3241 = vrot.lane.b32.xlu0 %v6617_v37, %s6416_s20 }
 0xc5f   :  { %v7642_v26 = vsel %vm6659_vm2, %v2885_v50, -1e+30 }
 0xc60   :  { %v2917_v56 = vsel %vm394_vm3, %v7642_v26, -inf }
 0xc61   :  { %2918 = vmax.xlane.f32.xlu1 %v2917_v56 }
 0xc62   :  { %3239 = vrot.lane.b32.xlu2 %v6612_v36, %s6416_s20 }
 0xc66   :  { %v2888_v38 = vpop.f32.mrf.mxu1 }
 0xc67   :  { %v7650_v20 = vsel %vm6669_vm4, %v2888_v38, -1e+30 }
 0xc68   :  { %v2920_v5 = vsel %vm394_vm3, %v7650_v20, -inf }
 0xc69   :  { %2921 = vmax.xlane.f32.xlu1 %v2920_v5 }
 0xc82   :  { %3245 = vrot.lane.b32.xlu1 %v6584_v21, %s6415_s19 }
 0xc88   :  { %2900 = vmax.xlane.f32.xlu0 %v2899_v46 }
 0xc8a   :  { %3284 = vrot.lane.b32.xlu1 %v6590_v25, %s6415_s19 }
 0xc8b   :  { %2903 = vmax.xlane.f32.xlu2 %v2902_v1 }
 0xc90   :  { %2909 = vmax.xlane.f32.xlu0 %v2908_v59 }
 0xcad   :  { %v2913_v4 = vpop.xlane.xlu2 %2912 }
 0xcae   :  { %v2927_v47 = vsub.f32 %v2895_v16, %v2913_v4 }
 0xcb0   :  { %v2939_v15 = vmul.f32 1.442695, %v2927_v47 }
 0xcb2   :  { %6154 = vpow2.f32 %v2939_v15 }
 0xcb4   :  { %2906 = vmax.xlane.f32.xlu1 %v2905_v27 }
 0xcb5   :  { %v5930_v10 = vpop.permute.xlu2 %5929  ;;  %v7682_v16 = vpop.xlane.xlu0 %2915 }
 0xcb6   :  { %v5931_v60 = vunpack.i.l.bf16 %v5930_v10  ;;  %v5932_v56 = vunpack.i.h.bf16 %v5930_v10 }
 0xcb8   :  { %v7678_v50 = vpop.eup %6154  ;;  %3125 = vmatpush.msrb.mxu2 %v5931_v60 }
 0xcb9   :  { %v2959_v38 = vsel %vm394_vm3, %v7678_v50, 0.0 }
 0xcba   :  { %3126 = vmatpush.msrb.mxu2 %v5932_v56  ;;  %2960 = vadd.xlane.f32.xlu0 %v2959_v38 }
 0xcbd   :  { %v3244_v46 = vpop.permute.xlu2 %3243 }
 0xcc5   :  { %v7699_v4 = vpop.permute.xlu2 %3239 }
 0xcc8   :  { %v5935_v5 = vpop.permute.xlu0 %5934 }
 0xcc9   :  { %v5936_v13 = vunpack.i.l.bf16 %v5935_v5  ;;  %v5937_v11 = vunpack.i.h.bf16 %v5935_v5 }
 0xccb   :  { %3160 = vmatpush.msrb.mxu3 %v5936_v13 }
 0xccd   :  { %3161 = vmatpush.msrb.mxu3 %v5937_v11 }
 0xcce   :  { %5939 = vrot.lane.b32.xlu0 %v6990_v17, %s6414_s2 }
 0xcd0   :  { %v7696_v1 = vpop.permute.xlu0 %3241 }
 0xcd4   :  { %v7690_v6 = vpop.xlane.xlu1 %2918 }
 0xcd6   :  { %3321 = vrot.lane.b32.xlu0 %v6596_v29, %s6415_s19 }
 0xcdc   :  { %v7694_v18 = vpop.xlane.xlu1 %2921 }
 0xcde   :  { %3317 = vrot.lane.b32.xlu0 %v6638_v44, %s6416_s20 }
 0xce6   :  { %3319 = vrot.lane.b32.xlu0 %v6643_v45, %s6416_s20 }
 0xcf4   :  { %v3246_v59 = vpop.permute.xlu1 %3245 }
 0xcf5   :  { %5746 = vmatpush.xpose.msk.msra.mxu2 %vm231_vm1, %v3246_v59 }
 0xcf9   :  { %5747 = vmatpush.xpose.msk.msra.mxu2 %vm231_vm1, %v3244_v46 }
 0xcfb   :  { %v2901_v47 = vpop.xlane.xlu0 %2900 }
 0xcfc   :  { %v2923_v15 = vsub.f32 %v2891_v39, %v2901_v47  ;;  %v3285_v27 = vpop.permute.xlu1 %3284 }
 0xcfd   :  { %5750 = vmatpush.xpose.msk.msra.mxu3 %vm231_vm1, %v3285_v27 }
 0xcfe   :  { %v2931_v10 = vmul.f32 1.442695, %v2923_v15  ;;  %v2904_v60 = vpop.xlane.xlu2 %2903 }
 0xcff   :  { %v2924_v56 = vsub.f32 %v2892_v43, %v2904_v60 }
 0xd00   :  { %6156 = vpow2.f32 %v2931_v10 }
 0xd01   :  { %v2933_v38 = vmul.f32 1.442695, %v2924_v56 }
 0xd03   :  { %6158 = vpow2.f32 %v2933_v38  ;;  %v2910_v43 = vpop.xlane.xlu0 %2909 }
 0xd04   :  { %v2926_v47 = vsub.f32 %v2894_v55, %v2910_v43  ;;  %v2928_v55 = vsub.f32 %v7624_v2, %v7682_v16  ;;  %v2930_v16 = vsub.f32 %v7650_v20, %v7694_v18 }
 0xd06   :  { %v7703_v5 = vpop.eup %6156  ;;  %v2937_v10 = vmul.f32 1.442695, %v2926_v47 }
 0xd07   :  { %v2947_v13 = vsel %vm394_vm3, %v7703_v5, 0.0 }
 0xd08   :  { %2948 = vadd.xlane.f32.xlu1 %v2947_v13 }
 0xd09   :  { %v7707_v11 = vpop.eup %6158 }
 0xd0a   :  { %v2950_v39 = vsel %vm394_vm3, %v7707_v11, 0.0 }
 0xd0b   :  { %2951 = vadd.xlane.f32.xlu2 %v2950_v39 }
 0xd21   :  { %3278 = vrot.lane.b32.xlu1 %v6626_v41, %s6416_s20 }
 0xd23   :  { %3282 = vrot.lane.b32.xlu2 %v6587_v23, %s6415_s19 }
 0xd27   :  { %v2907_v46 = vpop.xlane.xlu1 %2906 }
 0xd28   :  { %v2925_v59 = vsub.f32 %v2893_v54, %v2907_v46 }
 0xd29   :  { %3280 = vrot.lane.b32.xlu1 %v6629_v42, %s6416_s20 }
 0xd2a   :  { %v2935_v15 = vmul.f32 1.442695, %v2925_v59 }
 0xd2c   :  { %6160 = vpow2.f32 %v2935_v15 }
 0xd2d   :  { %v2961_v27 = vpop.xlane.xlu0 %2960 }
 0xd2e   :  { %6162 = vrcp.f32 %v2961_v27  ;;  %v3042_v59 = vand.u32 2147483648, %v2961_v27  ;;  %vm3036_vm12 = vweird.f32 %v2961_v27  ;;  %v3040_v15 = vand.u32 2147483647, %v2961_v27 }
 0xd2f   :  { %6164 = vpow2.f32 %v2937_v10  ;;  %v2941_v10 = vmul.f32 1.442695, %v2928_v55  ;;  %v2945_v55 = vmul.f32 1.442695, %v2930_v16 }
 0xd30   :  { %v3043_v22 = vor.u32 1.1754944e-38, %v3042_v59  ;;  %vm3041_vm14 = vcmp.eq.f32.partialorder %v3040_v15, 8.507059e+37 }
 0xd31   :  { %6166 = vpow2.f32 %v2941_v10 }
 0xd32   :  { %v7717_v60 = vpop.eup %6160 }
 0xd33   :  { %v2953_v56 = vsel %vm394_vm3, %v7717_v60, 0.0 }
 0xd34   :  { %v6163_v38 = vpop.eup %6162  ;;  %2954 = vadd.xlane.f32.xlu0 %v2953_v56 }
 0xd35   :  { %v3032_v13 = vmul.f32 %v6163_v38, %v2961_v27  ;;  %v7721_v54 = vpop.eup %6164  ;;  %vm3037_vm11 = vweird.f32 %v6163_v38 }
 0xd36   :  { %v2956_v47 = vsel %vm394_vm3, %v7721_v54, 0.0  ;;  %vm3038_vm13 = vmor %vm3036_vm12, %vm3037_vm11 }
 0xd37   :  { %v3033_v39 = vsub.f32 1.0, %v3032_v13 }
 0xd39   :  { %v3034_v46 = vmul.f32 %v6163_v38, %v3033_v39  ;;  %v2929_v39 = vsub.f32 %v7642_v26, %v7690_v6 }
 0xd3b   :  { %v3035_v43 = vadd.f32 %v6163_v38, %v3034_v46 }
 0xd3c   :  { %2957 = vadd.xlane.f32.xlu0 %v2956_v47  ;;  %v2943_v47 = vmul.f32 1.442695, %v2929_v39 }
 0xd3d   :  { %v3039_v56 = vsel %vm3038_vm13, %v6163_v38, %v3035_v43  ;;  %v7733_v38 = vpop.eup %6166 }
 0xd3e   :  { %v3044_v32 = vsel %vm3041_vm14, %v3043_v22, %v3039_v56  ;;  %6168 = vpow2.f32 %v2943_v47  ;;  %v2962_v22 = vsel %vm394_vm3, %v7733_v38, 0.0 }
 0xd3f   :  { %v3095_v27 = vmul.f32 %v7678_v50, %v3044_v32  ;;  %6170 = vpow2.f32 %v2945_v55 }
 0xd40   :  { %v5940_v13 = vpop.permute.xlu0 %5939 }
 0xd41   :  { %v5941_v2 = vunpack.i.l.bf16 %v5940_v13  ;;  %v5942_v46 = vunpack.i.h.bf16 %v5940_v13 }
 0xd43   :  { %3195 = vmatpush.msrb.mxu0 %v5941_v2 }
 0xd44   :  { %v7737_v26 = vpop.eup %6168 }
 0xd45   :  { %3196 = vmatpush.msrb.mxu0 %v5942_v46  ;;  %v7739_v20 = vpop.eup %6170  ;;  %v2965_v32 = vsel %vm394_vm3, %v7737_v26, 0.0 }
 0xd46   :  { %5742 = vmatmul.msk.f32.vlgmr.msrb.gmra.mxu0 %vm394_vm3, %v3095_v27  ;;  %v2968_v50 = vsel %vm394_vm3, %v7739_v20, 0.0 }
 0xd4c   :  { %2963 = vadd.xlane.f32.xlu2 %v2962_v22  ;;  %v7758_v22 = vpop.permute.xlu0 %3321 }
 0xd50   :  { %3356 = vrot.lane.b32.xlu0 %v6650_v48, %s6416_s20 }
 0xd53   :  { %2966 = vadd.xlane.f32.xlu1 %v2965_v32 }
 0xd54   :  { %2969 = vadd.xlane.f32.xlu2 %v2968_v50 }
 0xd6c   :  { %3323 = vrot.lane.b32.xlu2 %v6593_v28, %s6415_s19  ;;  %5944 = vrot.lane.b32.xlu1 %v6996_v24, %s6414_s2 }
 0xd74   :  { %3362 = vrot.lane.b32.xlu2 %v6602_v33, %s6415_s19  ;;  %3360 = vrot.lane.b32.xlu1 %v6598_v31, %s6415_s19 }
 0xd7b   :  { %v2949_v6 = vpop.xlane.xlu1 %2948 }
 0xd7c   :  { %6172 = vrcp.f32 %v2949_v6  ;;  %3358 = vrot.lane.b32.xlu2 %v6655_v49, %s6416_s20  ;;  %v2982_v56 = vand.u32 2147483648, %v2949_v6  ;;  %v2980_v16 = vand.u32 2147483647, %v2949_v6  ;;  %vm2976_vm5 = vweird.f32 %v2949_v6 }
 0xd7e   :  { %v2952_v18 = vpop.xlane.xlu2 %2951  ;;  %v2983_v47 = vor.u32 1.1754944e-38, %v2982_v56  ;;  %vm2981_vm7 = vcmp.eq.f32.partialorder %v2980_v16, 8.507059e+37 }
 0xd7f   :  { %6174 = vrcp.f32 %v2952_v18  ;;  %v2997_v35 = vand.u32 2147483648, %v2952_v18  ;;  %vm2991_vm9 = vweird.f32 %v2952_v18  ;;  %v2995_v34 = vand.u32 2147483647, %v2952_v18 }
 0xd81   :  { %vm2996_vm11 = vcmp.eq.f32.partialorder %v2995_v34, 8.507059e+37 }
 0xd82   :  { %v6173_v43 = vpop.eup %6172 }
 0xd83   :  { %v2972_v59 = vmul.f32 %v6173_v43, %v2949_v6  ;;  %vm2977_vm15 = vweird.f32 %v6173_v43  ;;  %v2998_v6 = vor.u32 1.1754944e-38, %v2997_v35 }
 0xd84   :  { %vm2978_vm6 = vmor %vm2976_vm5, %vm2977_vm15 }
 0xd85   :  { %v6175_v15 = vpop.eup %6174  ;;  %v2973_v10 = vsub.f32 1.0, %v2972_v59 }
 0xd86   :  { %v2987_v13 = vmul.f32 %v6175_v15, %v2952_v18  ;;  %v3283_v39 = vpop.permute.xlu2 %3282  ;;  %vm2992_vm8 = vweird.f32 %v6175_v15 }
 0xd87   :  { %v2974_v2 = vmul.f32 %v6173_v43, %v2973_v10  ;;  %5751 = vmatpush.xpose.msk.msra.mxu3 %vm231_vm1, %v3283_v39  ;;  %vm2993_vm10 = vmor %vm2991_vm9, %vm2992_vm8  ;;  %v7762_v39 = vpop.permute.xlu0 %3317 }
 0xd88   :  { %v2988_v46 = vsub.f32 1.0, %v2987_v13 }
 0xd89   :  { %v2975_v27 = vadd.f32 %v6173_v43, %v2974_v2 }
 0xd8a   :  { %v2989_v55 = vmul.f32 %v6175_v15, %v2988_v46 }
 0xd8b   :  { %v2979_v32 = vsel %vm2978_vm6, %v6173_v43, %v2975_v27 }
 0xd8c   :  { %v2984_v50 = vsel %vm2981_vm7, %v2983_v47, %v2979_v32  ;;  %v2990_v59 = vadd.f32 %v6175_v15, %v2989_v55 }
 0xd8d   :  { %v3091_v10 = vmul.f32 %v7703_v5, %v2984_v50 }
 0xd8e   :  { %v2994_v13 = vsel %vm2993_vm10, %v6175_v15, %v2990_v59 }
 0xd8f   :  { %5738 = vmatmul.msk.f32.vlgmr.msrb.gmra.mxu2 %vm394_vm3, %v3091_v10  ;;  %v2999_v56 = vsel %vm2996_vm11, %v2998_v6, %v2994_v13  ;;  %v7766_v2 = vpop.permute.xlu0 %3319 }
 0xd90   :  { %v3092_v43 = vmul.f32 %v7707_v11, %v2999_v56 }
 0xd93   :  { %v3279_v27 = vpop.permute.xlu1 %3278 }
 0xd97   :  { %5739 = vmatmul.msk.f32.gmra.mxu2 %vm394_vm3, %v3092_v43 }
 0xd9f   :  { %5748 = vmatmul.msk.f32.vlgmr.msra.gmra.mxu2 %vm231_vm1, %v7699_v4 }
 0xda7   :  { %5749 = vmatmul.msk.f32.gmra.mxu2 %vm231_vm1, %v7696_v1  ;;  %v2955_v5 = vpop.xlane.xlu0 %2954 }
 0xda8   :  { %6176 = vrcp.f32 %v2955_v5  ;;  %v3012_v16 = vand.u32 2147483648, %v2955_v5  ;;  %v3010_v11 = vand.u32 2147483647, %v2955_v5  ;;  %vm3006_vm13 = vweird.f32 %v2955_v5 }
 0xdaa   :  { %v3013_v4 = vor.u32 1.1754944e-38, %v3012_v16  ;;  %vm3011_vm15 = vcmp.eq.f32.partialorder %v3010_v11, 8.507059e+37 }
 0xdae   :  { %v6177_v18 = vpop.eup %6176 }
 0xdaf   :  { %v3002_v35 = vmul.f32 %v6177_v18, %v2955_v5  ;;  %v2958_v34 = vpop.xlane.xlu0 %2957  ;;  %vm3007_vm12 = vweird.f32 %v6177_v18 }
 0xdb0   :  { %6178 = vrcp.f32 %v2958_v34  ;;  %vm3008_vm14 = vmor %vm3006_vm13, %vm3007_vm12  ;;  %v3027_v6 = vand.u32 2147483648, %v2958_v34  ;;  %v3025_v56 = vand.u32 2147483647, %v2958_v34  ;;  %vm3021_vm6 = vweird.f32 %v2958_v34 }
 0xdb1   :  { %v3003_v15 = vsub.f32 1.0, %v3002_v35  ;;  %v3281_v35 = vpop.permute.xlu1 %3280 }
 0xdb2   :  { %v3028_v5 = vor.u32 1.1754944e-38, %v3027_v6  ;;  %vm3026_vm8 = vcmp.eq.f32.partialorder %v3025_v56, 8.507059e+37 }
 0xdb3   :  { %v3004_v46 = vmul.f32 %v6177_v18, %v3003_v15 }
 0xdb5   :  { %v3005_v47 = vadd.f32 %v6177_v18, %v3004_v46 }
 0xdb6   :  { %v6179_v55 = vpop.eup %6178 }
 0xdb7   :  { %v3009_v32 = vsel %vm3008_vm14, %v6177_v18, %v3005_v47  ;;  %v3017_v1 = vmul.f32 %v6179_v55, %v2958_v34  ;;  %vm3022_vm5 = vweird.f32 %v6179_v55 }
 0xdb8   :  { %v3014_v50 = vsel %vm3011_vm15, %v3013_v4, %v3009_v32  ;;  %vm3023_vm7 = vmor %vm3021_vm6, %vm3022_vm5 }
 0xdb9   :  { %v3093_v59 = vmul.f32 %v7717_v60, %v3014_v50  ;;  %v3018_v10 = vsub.f32 1.0, %v3017_v1 }
 0xdbb   :  { %v3019_v13 = vmul.f32 %v6179_v55, %v3018_v10  ;;  %5740 = vmatmul.msk.f32.vlgmr.msrb.gmra.mxu3 %vm394_vm3, %v3093_v59 }
 0xdbd   :  { %v3020_v43 = vadd.f32 %v6179_v55, %v3019_v13 }
 0xdbf   :  { %v2964_v15 = vpop.xlane.xlu2 %2963  ;;  %v3024_v16 = vsel %vm3023_vm7, %v6179_v55, %v3020_v43 }
 0xdc0   :  { %6180 = vrcp.f32 %v2964_v15  ;;  %v3029_v18 = vsel %vm3026_vm8, %v3028_v5, %v3024_v16  ;;  %v3057_v34 = vand.u32 2147483648, %v2964_v15  ;;  %v3055_v50 = vand.u32 2147483647, %v2964_v15 }
 0xdc1   :  { %v3094_v46 = vmul.f32 %v7721_v54, %v3029_v18  ;;  %vm3051_vm10 = vweird.f32 %v2964_v15 }
 0xdc2   :  { %v3058_v54 = vor.u32 1.1754944e-38, %v3057_v34  ;;  %vm3056_vm12 = vcmp.eq.f32.partialorder %v3055_v50, 8.507059e+37 }
 0xdc3   :  { %5741 = vmatmul.msk.f32.gmra.mxu3 %vm394_vm3, %v3094_v46 }
 0xdc6   :  { %v6181_v60 = vpop.eup %6180  ;;  %v2967_v11 = vpop.xlane.xlu1 %2966 }
 0xdc7   :  { %v3047_v47 = vmul.f32 %v6181_v60, %v2964_v15  ;;  %6182 = vrcp.f32 %v2967_v11  ;;  %v2970_v4 = vpop.xlane.xlu2 %2969  ;;  %vm3052_vm9 = vweird.f32 %v6181_v60  ;;  %vm3066_vm14 = vweird.f32 %v2967_v11 }
 0xdc8   :  { %6184 = vrcp.f32 %v2970_v4  ;;  %vm3053_vm11 = vmor %vm3051_vm10, %vm3052_vm9  ;;  %vm3081_vm7 = vweird.f32 %v2970_v4 }
 0xdc9   :  { %v3048_v32 = vsub.f32 1.0, %v3047_v47  ;;  %v3070_v47 = vand.u32 2147483647, %v2967_v11 }
 0xdcb   :  { %v3049_v1 = vmul.f32 %v6181_v60, %v3048_v32  ;;  %5752 = vmatmul.msk.f32.vlgmr.msra.gmra.mxu3 %vm231_vm1, %v3279_v27  ;;  %vm3071_vm5 = vcmp.eq.f32.partialorder %v3070_v47, 8.507059e+37 }
 0xdcd   :  { %v6183_v55 = vpop.eup %6182  ;;  %v3050_v59 = vadd.f32 %v6181_v60, %v3049_v1 }
 0xdce   :  { %v3062_v10 = vmul.f32 %v6183_v55, %v2967_v11  ;;  %v6185_v5 = vpop.eup %6184  ;;  %vm3067_vm13 = vweird.f32 %v6183_v55 }
 0xdcf   :  { %v3324_v13 = vpop.permute.xlu2 %3323  ;;  %v3054_v6 = vsel %vm3053_vm11, %v6181_v60, %v3050_v59  ;;  %v3077_v27 = vmul.f32 %v6185_v5, %v2970_v4  ;;  %v3072_v60 = vand.u32 2147483648, %v2967_v11  ;;  %vm3068_vm15 = vmor %vm3066_vm14, %vm3067_vm13  ;;  %vm3082_vm6 = vweird.f32 %v6185_v5 }
 0xdd0   :  { %v3063_v56 = vsub.f32 1.0, %v3062_v10  ;;  %5754 = vmatpush.xpose.msk.msra.mxu0 %vm231_vm1, %v3324_v13  ;;  %v3059_v43 = vsel %vm3056_vm12, %v3058_v54, %v3054_v6  ;;  %v3085_v11 = vand.u32 2147483647, %v2970_v4  ;;  %vm3083_vm8 = vmor %vm3081_vm7, %vm3082_vm6 }
 0xdd1   :  { %v3096_v16 = vmul.f32 %v7733_v38, %v3059_v43  ;;  %v3078_v46 = vsub.f32 1.0, %v3077_v27  ;;  %v3073_v34 = vor.u32 1.1754944e-38, %v3072_v60  ;;  %v7795_v43 = vpop.f32.mrf.mxu0 }
 0xdd2   :  { %v3064_v18 = vmul.f32 %v6183_v55, %v3063_v56  ;;  %vm3086_vm9 = vcmp.eq.f32.partialorder %v3085_v11, 8.507059e+37 }
 0xdd3   :  { %5743 = vmatmul.msk.f32.gmra.mxu0 %vm394_vm3, %v3096_v16  ;;  %5753 = vmatmul.msk.f32.gmra.mxu3 %vm231_vm1, %v3281_v35  ;;  %v3079_v32 = vmul.f32 %v6185_v5, %v3078_v46 }
 0xdd4   :  { %5755 = vmatpush.xpose.msk.msra.mxu0 %vm231_vm1, %v7758_v22  ;;  %v3065_v15 = vadd.f32 %v6183_v55, %v3064_v18  ;;  %v3087_v22 = vand.u32 2147483648, %v2970_v4  ;;  %v3357_v4 = vpop.permute.xlu0 %3356 }
 0xdd5   :  { %v3080_v59 = vadd.f32 %v6185_v5, %v3079_v32 }
 0xdd6   :  { %v3069_v38 = vsel %vm3068_vm15, %v6183_v55, %v3065_v15  ;;  %v3088_v13 = vor.u32 1.1754944e-38, %v3087_v22 }
 0xdd7   :  { %v3074_v50 = vsel %vm3071_vm5, %v3073_v34, %v3069_v38  ;;  %v3084_v55 = vsel %vm3083_vm8, %v6185_v5, %v3080_v59 }
 0xdd8   :  { %v3097_v10 = vmul.f32 %v7737_v26, %v3074_v50  ;;  %v3089_v56 = vsel %vm3086_vm9, %v3088_v13, %v3084_v55 }
 0xdd9   :  { %v3098_v26 = vmul.f32 %v7739_v20, %v3089_v56 }
 0xddb   :  { %5756 = vmatmul.msk.f32.vlgmr.msra.gmra.mxu0 %vm231_vm1, %v7762_v39  ;;  %v3363_v39 = vpop.permute.xlu2 %3362 }
 0xdde   :  { %v5945_v1 = vpop.permute.xlu1 %5944 }
 0xddf   :  { %v5946_v35 = vunpack.i.l.bf16 %v5945_v1  ;;  %v5947_v54 = vunpack.i.h.bf16 %v5945_v1 }
 0xde1   :  { %3230 = vmatpush.msra.mxu1 %v5946_v35 }
 0xde3   :  { %3231 = vmatpush.msra.mxu1 %v5947_v54  ;;  %5757 = vmatmul.msk.f32.gmra.mxu0 %vm231_vm1, %v7766_v2  ;;  %v3359_v2 = vpop.permute.xlu2 %3358 }
 0xde4   :  { %5744 = vmatmul.msk.f32.vlgmr.msra.gmra.mxu1 %vm394_vm3, %v3097_v10 }
 0xde5   :  { %5758 = vmatpush.xpose.msk.msrb.mxu1 %vm231_vm1, %v3363_v39 }
 0xde6   :  { %v3361_v6 = vpop.permute.xlu1 %3360 }
 0xde9   :  { %5759 = vmatpush.xpose.msk.msrb.mxu1 %vm231_vm1, %v3361_v6 }
 0xdec   :  { %5745 = vmatmul.msk.f32.gmra.mxu1 %vm394_vm3, %v3098_v26 }
 0xdf4   :  { %5760 = vmatmul.msk.f32.vlgmr.msrb.gmra.mxu1 %vm231_vm1, %v3357_v4 }
 0xdfc   :  { %5761 = vmatmul.msk.f32.gmra.mxu1 %vm231_vm1, %v3359_v2 }
 0xe12   :  { %v7830_v22 = vpop.f32.mrf.mxu2 }
 0xe1a   :  { %v7836_v10 = vpop.f32.mrf.mxu2 }
 0xe22   :  { %v3272_v55 = vpop.f32.mrf.mxu2 }
 0xe23   :  { %v3395_v26 = vsel %vm6659_vm2, %v3272_v55, -1e+30 }
 0xe24   :  { %v3403_v4 = vsel %vm394_vm3, %v3395_v26, -inf }
 0xe3e   :  { %v7828_v59 = vpop.f32.mrf.mxu3 }
 0xe46   :  { %v7832_v54 = vpop.f32.mrf.mxu3 }
 0xe4e   :  { %v3311_v11 = vpop.f32.mrf.mxu3 }
 0xe4f   :  { %v3397_v39 = vsel %vm6659_vm2, %v3311_v11, -1e+30 }
 0xe50   :  { %v7797_v5 = vpop.f32.mrf.mxu0  ;;  %v3409_v13 = vsel %vm394_vm3, %v3397_v39, -inf }
 0xe56   :  { %v3314_v2 = vpop.f32.mrf.mxu3 }
 0xe58   :  { %v3350_v16 = vpop.f32.mrf.mxu0 }
 0xe59   :  { %v3399_v18 = vsel %vm6659_vm2, %v3350_v16, -1e+30  ;;  %v7851_v16 = vsel %vm6669_vm4, %v3314_v2, -1e+30 }
 0xe5a   :  { %v3415_v27 = vsel %vm394_vm3, %v3399_v18, -inf }
 0xe5b   :  { %3416 = vmax.xlane.f32.xlu0 %v3415_v27  ;;  %v3412_v27 = vsel %vm394_vm3, %v7851_v16, -inf }
 0xe60   :  { %v3353_v20 = vpop.f32.mrf.mxu0 }
 0xe61   :  { %v7804_v15 = vsel %vm6669_vm4, %v3353_v20, -1e+30  ;;  %v7806_v46 = vpop.f32.mrf.mxu1 }
 0xe62   :  { %v3418_v60 = vsel %vm394_vm3, %v7804_v15, -inf }
 0xe63   :  { %3419 = vmax.xlane.f32.xlu2 %v3418_v60 }
 0xe69   :  { %v7810_v47 = vpop.f32.mrf.mxu1 }
 0xe71   :  { %v3389_v38 = vpop.f32.mrf.mxu1 }
 0xe72   :  { %v7814_v32 = vsel %vm6659_vm2, %v3389_v38, -1e+30 }
 0xe73   :  { %v3421_v34 = vsel %vm394_vm3, %v7814_v32, -inf }
 0xe74   :  { %3422 = vmax.xlane.f32.xlu0 %v3421_v34 }
 0xe79   :  { %v3392_v1 = vpop.f32.mrf.mxu1 }
 0xe7a   :  { %v7820_v50 = vsel %vm6669_vm4, %v3392_v1, -1e+30 }
 0xe7b   :  { %v3424_v35 = vsel %vm394_vm3, %v7820_v50, -inf  ;;  %5949 = vrot.lane.b32.xlu2 %v6918_v52, %s6416_s20 }
 0xe7c   :  { %3425 = vmax.xlane.f32.xlu1 %v3424_v35 }
 0xe88   :  { %3749 = vrot.lane.b32.xlu0 %v6584_v21, %s6417_s6  ;;  %v3275_v21 = vpop.f32.mrf.mxu2 }
 0xe89   :  { %v3396_v6 = vsel %vm6669_vm4, %v3275_v21, -1e+30 }
 0xe8a   :  { %v3406_v56 = vsel %vm394_vm3, %v3396_v6, -inf }
 0xe95   :  { %5954 = vrot.lane.b32.xlu1 %v6922_v63, %s6416_s20 }
 0xea4   :  { %3410 = vmax.xlane.f32.xlu2 %v3409_v13 }
 0xeb2   :  { %3407 = vmax.xlane.f32.xlu0 %v3406_v56 }
 0xebc   :  { %3747 = vrot.lane.b32.xlu2 %v6581_v19, %s6417_s6 }
 0xebf   :  { %3404 = vmax.xlane.f32.xlu1 %v3403_v4 }
 0xec6   :  { %3743 = vrot.lane.b32.xlu0 %v6612_v36, %s6418_s21 }
 0xec7   :  { %3413 = vmax.xlane.f32.xlu1 %v3412_v27 }
 0xece   :  { %3745 = vrot.lane.b32.xlu0 %v6617_v37, %s6418_s21  ;;  %v3417_v19 = vpop.xlane.xlu0 %3416 }
 0xecf   :  { %v3431_v20 = vsub.f32 %v3399_v18, %v3417_v19 }
 0xed1   :  { %v3443_v38 = vmul.f32 1.442695, %v3431_v20 }
 0xed3   :  { %6186 = vpow2.f32 %v3443_v38 }
 0xed6   :  { %3786 = vrot.lane.b32.xlu0 %v6587_v23, %s6417_s6  ;;  %v3420_v60 = vpop.xlane.xlu2 %3419 }
 0xed9   :  { %v7861_v35 = vpop.eup %6186 }
 0xeda   :  { %v3463_v36 = vsel %vm394_vm3, %v7861_v35, 0.0 }
 0xede   :  { %v5950_v34 = vpop.permute.xlu2 %5949 }
 0xedf   :  { %v5951_v1 = vunpack.i.l.bf16 %v5950_v34  ;;  %v5952_v11 = vunpack.i.h.bf16 %v5950_v34 }
 0xee1   :  { %3629 = vmatpush.msrb.mxu2 %v5951_v1 }
 0xee3   :  { %3630 = vmatpush.msrb.mxu2 %v5952_v11 }
 0xee5   :  { %3464 = vadd.xlane.f32.xlu2 %v3463_v36 }
 0xee7   :  { %v3423_v37 = vpop.xlane.xlu0 %3422 }
 0xeef   :  { %v3426_v18 = vpop.xlane.xlu1 %3425 }
 0xefa   :  { %v3750_v55 = vpop.permute.xlu0 %3749 }
 0xefb   :  { %5770 = vmatpush.xpose.msk.msra.mxu2 %vm231_vm1, %v3750_v55 }
 0xf07   :  { %v5955_v23 = vpop.permute.xlu1 %5954 }
 0xf08   :  { %v5956_v13 = vunpack.i.l.bf16 %v5955_v23  ;;  %v5957_v21 = vunpack.i.h.bf16 %v5955_v23 }
 0xf0a   :  { %3664 = vmatpush.msrb.mxu3 %v5956_v13 }
 0xf0c   :  { %3665 = vmatpush.msrb.mxu3 %v5957_v21  ;;  %v3433_v21 = vsub.f32 %v7814_v32, %v3423_v37 }
 0xf17   :  { %v3411_v56 = vpop.xlane.xlu2 %3410 }
 0xf18   :  { %v3429_v4 = vsub.f32 %v3397_v39, %v3411_v56  ;;  %v3447_v56 = vmul.f32 1.442695, %v3433_v21 }
 0xf1a   :  { %v3439_v2 = vmul.f32 1.442695, %v3429_v4 }
 0xf1c   :  { %6188 = vpow2.f32 %v3439_v2 }
 0xf1f   :  { %v3748_v27 = vpop.permute.xlu2 %3747 }
 0xf20   :  { %5771 = vmatpush.xpose.msk.msra.mxu2 %vm231_vm1, %v3748_v27 }
 0xf22   :  { %v7867_v19 = vpop.eup %6188 }
 0xf23   :  { %v3457_v20 = vsel %vm394_vm3, %v7867_v19, 0.0 }
 0xf24   :  { %3458 = vadd.xlane.f32.xlu0 %v3457_v20 }
 0xf25   :  { %v3408_v38 = vpop.xlane.xlu0 %3407 }
 0xf26   :  { %v3428_v34 = vsub.f32 %v3396_v6, %v3408_v38 }
 0xf28   :  { %v3437_v1 = vmul.f32 1.442695, %v3428_v34 }
 0xf2a   :  { %6190 = vpow2.f32 %v3437_v1 }
 0xf30   :  { %v7871_v11 = vpop.eup %6190 }
 0xf31   :  { %v3454_v39 = vsel %vm394_vm3, %v7871_v11, 0.0 }
 0xf32   :  { %v3405_v36 = vpop.xlane.xlu1 %3404  ;;  %3455 = vadd.xlane.f32.xlu2 %v3454_v39 }
 0xf33   :  { %v3427_v55 = vsub.f32 %v3395_v26, %v3405_v36 }
 0xf35   :  { %v3435_v23 = vmul.f32 1.442695, %v3427_v55 }
 0xf37   :  { %6192 = vpow2.f32 %v3435_v23 }
 0xf38   :  { %3782 = vrot.lane.b32.xlu0 %v6626_v41, %s6418_s21  ;;  %6194 = vpow2.f32 %v3447_v56  ;;  %v3434_v41 = vsub.f32 %v7820_v50, %v3426_v18  ;;  %v7899_v18 = vpop.permute.xlu0 %3743 }
 0xf3a   :  { %v3449_v2 = vmul.f32 1.442695, %v3434_v41 }
 0xf3c   :  { %6196 = vpow2.f32 %v3449_v2 }
 0xf3d   :  { %v7877_v13 = vpop.eup %6192 }
 0xf3e   :  { %v3451_v6 = vsel %vm394_vm3, %v7877_v13, 0.0  ;;  %v7886_v26 = vpop.eup %6194 }
 0xf3f   :  { %3452 = vadd.xlane.f32.xlu1 %v3451_v6  ;;  %v3469_v4 = vsel %vm394_vm3, %v7886_v26, 0.0 }
 0xf42   :  { %v7891_v27 = vpop.eup %6196 }
 0xf43   :  { %v3472_v32 = vsel %vm394_vm3, %v7891_v27, 0.0 }
 0xf4a   :  { %3784 = vrot.lane.b32.xlu2 %v6629_v42, %s6418_s21  ;;  %v3432_v42 = vsub.f32 %v7804_v15, %v3420_v60  ;;  %v7907_v60 = vpop.permute.xlu0 %3745 }
 0xf4c   :  { %v3445_v37 = vmul.f32 1.442695, %v3432_v42 }
 0xf4e   :  { %6198 = vpow2.f32 %v3445_v37 }
 0xf54   :  { %v7901_v38 = vpop.eup %6198 }
 0xf55   :  { %v3466_v15 = vsel %vm394_vm3, %v7901_v38, 0.0 }
 0xf58   :  { %3788 = vrot.lane.b32.xlu1 %v6590_v25, %s6417_s6  ;;  %v3414_v25 = vpop.xlane.xlu1 %3413  ;;  %v7921_v55 = vpop.xlane.xlu2 %3464 }
 0xf59   :  { %v3430_v50 = vsub.f32 %v7851_v16, %v3414_v25 }
 0xf5b   :  { %v3441_v20 = vmul.f32 1.442695, %v3430_v50 }
 0xf5d   :  { %6200 = vpow2.f32 %v3441_v20 }
 0xf62   :  { %3470 = vadd.xlane.f32.xlu0 %v3469_v4 }
 0xf63   :  { %v7909_v34 = vpop.eup %6200 }
 0xf73   :  { %3473 = vadd.xlane.f32.xlu2 %v3472_v32 }
 0xf76   :  { %3827 = vrot.lane.b32.xlu0 %v6593_v28, %s6417_s6  ;;  %v3460_v28 = vsel %vm394_vm3, %v7909_v34, 0.0 }
 0xf7e   :  { %3825 = vrot.lane.b32.xlu0 %v6596_v29, %s6417_s6  ;;  %v7919_v29 = vpop.permute.xlu0 %3786 }
 0xf82   :  { %3467 = vadd.xlane.f32.xlu1 %v3466_v15 }
 0xf86   :  { %3823 = vrot.lane.b32.xlu0 %v6643_v45, %s6418_s21 }
 0xf8a   :  { %3461 = vadd.xlane.f32.xlu1 %v3460_v28 }
 0xf8b   :  { %3860 = vrot.lane.b32.xlu2 %v6650_v48, %s6418_s21 }
 0xf8e   :  { %3864 = vrot.lane.b32.xlu0 %v6598_v31, %s6417_s6 }
 0xf97   :  { %v3459_v16 = vpop.xlane.xlu0 %3458 }
 0xf98   :  { %6202 = vrcp.f32 %v3459_v16  ;;  %v3516_v45 = vand.u32 2147483648, %v3459_v16  ;;  %v3514_v6 = vand.u32 2147483647, %v3459_v16  ;;  %vm3510_vm11 = vweird.f32 %v3459_v16 }
 0xf9a   :  { %v3517_v31 = vor.u32 1.1754944e-38, %v3516_v45  ;;  %vm3515_vm13 = vcmp.eq.f32.partialorder %v3514_v6, 8.507059e+37 }
 0xf9e   :  { %v6203_v1 = vpop.eup %6202 }
 0xf9f   :  { %v3506_v39 = vmul.f32 %v6203_v1, %v3459_v16  ;;  %vm3511_vm10 = vweird.f32 %v6203_v1 }
 0xfa0   :  { %vm3512_vm12 = vmor %vm3510_vm11, %vm3511_vm10 }
 0xfa1   :  { %v3507_v36 = vsub.f32 1.0, %v3506_v39 }
 0xfa3   :  { %v3508_v23 = vmul.f32 %v6203_v1, %v3507_v36  ;;  %5959 = vrot.lane.b32.xlu1 %v6990_v17, %s6416_s20 }
 0xfa5   :  { %v3509_v48 = vadd.f32 %v6203_v1, %v3508_v23  ;;  %v3456_v4 = vpop.xlane.xlu2 %3455 }
 0xfa6   :  { %6204 = vrcp.f32 %v3456_v4  ;;  %v3501_v45 = vand.u32 2147483648, %v3456_v4  ;;  %vm3495_vm8 = vweird.f32 %v3456_v4 }
 0xfa7   :  { %v3513_v21 = vsel %vm3512_vm12, %v6203_v1, %v3509_v48 }
 0xfa8   :  { %v3518_v56 = vsel %vm3515_vm13, %v3517_v31, %v3513_v21  ;;  %v3502_v31 = vor.u32 1.1754944e-38, %v3501_v45 }
 0xfa9   :  { %v3597_v41 = vmul.f32 %v7867_v19, %v3518_v56 }
 0xfab   :  { %5964 = vrot.lane.b32.xlu1 %v6996_v24, %s6416_s20  ;;  %5764 = vmatmul.msk.f32.vlgmr.msrb.gmra.mxu3 %vm394_vm3, %v3597_v41 }
 0xfac   :  { %v6205_v42 = vpop.eup %6204 }
 0xfad   :  { %v3491_v32 = vmul.f32 %v6205_v42, %v3456_v4  ;;  %vm3496_vm6 = vweird.f32 %v6205_v42 }
 0xfae   :  { %vm3497_vm9 = vmor %vm3495_vm8, %vm3496_vm6 }
 0xfaf   :  { %v3492_v25 = vsub.f32 1.0, %v3491_v32 }
 0xfb1   :  { %v3493_v15 = vmul.f32 %v6205_v42, %v3492_v25 }
 0xfb2   :  { %v3453_v2 = vpop.xlane.xlu1 %3452 }
 0xfb3   :  { %6206 = vrcp.f32 %v3453_v2  ;;  %3821 = vrot.lane.b32.xlu1 %v6638_v44, %s6418_s21  ;;  %v3486_v20 = vand.u32 2147483648, %v3453_v2  ;;  %v3484_v16 = vand.u32 2147483647, %v3453_v2  ;;  %vm3480_vm15 = vweird.f32 %v3453_v2 }
 0xfb4   :  { %v3494_v36 = vadd.f32 %v6205_v42, %v3493_v15  ;;  %6208 = vrcp.f32 %v7921_v55 }
 0xfb5   :  { %v3487_v39 = vor.u32 1.1754944e-38, %v3486_v20  ;;  %vm3485_vm7 = vcmp.eq.f32.partialorder %v3484_v16, 8.507059e+37 }
 0xfb6   :  { %v3498_v48 = vsel %vm3497_vm9, %v6205_v42, %v3494_v36  ;;  %v7953_v42 = vpop.permute.xlu2 %3784 }
 0xfb9   :  { %v6207_v37 = vpop.eup %6206 }
 0xfba   :  { %v3476_v50 = vmul.f32 %v6207_v37, %v3453_v2  ;;  %vm3481_vm14 = vweird.f32 %v6207_v37 }
 0xfbb   :  { %3866 = vrot.lane.b32.xlu1 %v6602_v33, %s6417_s6  ;;  %vm3482_vm5 = vmor %vm3480_vm15, %vm3481_vm14  ;;  %v3499_v33 = vand.u32 2147483647, %v3456_v4 }
 0xfbc   :  { %v3477_v19 = vsub.f32 1.0, %v3476_v50 }
 0xfbd   :  { %vm3500_vm10 = vcmp.eq.f32.partialorder %v3499_v33, 8.507059e+37 }
 0xfbe   :  { %v3478_v28 = vmul.f32 %v6207_v37, %v3477_v19  ;;  %v3503_v21 = vsel %vm3500_vm10, %v3502_v31, %v3498_v48 }
 0xfbf   :  { %v3596_v41 = vmul.f32 %v7871_v11, %v3503_v21  ;;  %v6209_v11 = vpop.eup %6208 }
 0xfc0   :  { %v3479_v1 = vadd.f32 %v6207_v37, %v3478_v28  ;;  %vm3541_vm15 = vweird.f32 %v6209_v11 }
 0xfc2   :  { %v3483_v44 = vsel %vm3482_vm5, %v6207_v37, %v3479_v1  ;;  %vm3540_vm5 = vweird.f32 %v7921_v55 }
 0xfc3   :  { %v3488_v23 = vsel %vm3485_vm7, %v3487_v39, %v3483_v44  ;;  %3862 = vrot.lane.b32.xlu1 %v6655_v49, %s6418_s21  ;;  %vm3542_vm6 = vmor %vm3540_vm5, %vm3541_vm15 }
 0xfc4   :  { %v3595_v6 = vmul.f32 %v7877_v13, %v3488_v23  ;;  %v7948_v13 = vpop.permute.xlu0 %3782 }
 0xfc6   :  { %5762 = vmatmul.msk.f32.vlgmr.msrb.gmra.mxu2 %vm394_vm3, %v3595_v6 }
 0xfca   :  { %v3789_v56 = vpop.permute.xlu1 %3788 }
 0xfcb   :  { %5774 = vmatpush.xpose.msk.msra.mxu3 %vm231_vm1, %v3789_v56  ;;  %v3546_v56 = vand.u32 2147483648, %v7921_v55 }
 0xfce   :  { %5763 = vmatmul.msk.f32.gmra.mxu2 %vm394_vm3, %v3596_v41  ;;  %v3544_v41 = vand.u32 2147483647, %v7921_v55 }
 0xfcf   :  { %5775 = vmatpush.xpose.msk.msra.mxu3 %vm231_vm1, %v7919_v29 }
 0xfd0   :  { %vm3545_vm7 = vcmp.eq.f32.partialorder %v3544_v41, 8.507059e+37 }
 0xfd5   :  { %v7951_v2 = vpop.xlane.xlu0 %3470 }
 0xfd6   :  { %5772 = vmatmul.msk.f32.vlgmr.msra.gmra.mxu2 %vm231_vm1, %v7899_v18  ;;  %v3536_v18 = vmul.f32 %v6209_v11, %v7921_v55  ;;  %vm3570_vm10 = vweird.f32 %v7951_v2 }
 0xfd8   :  { %v3537_v32 = vsub.f32 1.0, %v3536_v18 }
 0xfda   :  { %v3538_v16 = vmul.f32 %v6209_v11, %v3537_v32  ;;  %v3547_v32 = vor.u32 1.1754944e-38, %v3546_v56 }
 0xfdc   :  { %v3539_v33 = vadd.f32 %v6209_v11, %v3538_v16  ;;  %v3576_v16 = vand.u32 2147483648, %v7951_v2 }
 0xfde   :  { %5773 = vmatmul.msk.f32.gmra.mxu2 %vm231_vm1, %v7907_v60 }
 0xfe6   :  { %v7960_v25 = vpop.xlane.xlu2 %3473 }
 0xff5   :  { %v7946_v49 = vpop.xlane.xlu1 %3467 }
 0xffd   :  { %v3462_v4 = vpop.xlane.xlu1 %3461 }
 0xffe   :  { %6210 = vrcp.f32 %v3462_v4  ;;  %v3531_v20 = vand.u32 2147483648, %v3462_v4  ;;  %v3529_v28 = vand.u32 2147483647, %v3462_v4  ;;  %vm3525_vm12 = vweird.f32 %v3462_v4 }
 0xfff   :  { %6212 = vrcp.f32 %v7951_v2 }
0x1000   :  { %6214 = vrcp.f32 %v7946_v49  ;;  %v3532_v44 = vor.u32 1.1754944e-38, %v3531_v20  ;;  %vm3530_vm14 = vcmp.eq.f32.partialorder %v3529_v28, 8.507059e+37 }
0x1001   :  { %6216 = vrcp.f32 %v7960_v25 }
0x1004   :  { %v6211_v60 = vpop.eup %6210 }
0x1005   :  { %v3521_v29 = vmul.f32 %v6211_v60, %v3462_v4  ;;  %v7958_v37 = vpop.eup %6212  ;;  %vm3526_vm11 = vweird.f32 %v6211_v60  ;;  %v3543_v4 = vsel %vm3542_vm6, %v6209_v11, %v3539_v33  ;;  %vm3585_vm6 = vweird.f32 %v7960_v25 }
0x1006   :  { %v7962_v19 = vpop.eup %6214  ;;  %v3566_v1 = vmul.f32 %v7958_v37, %v7951_v2  ;;  %vm3527_vm13 = vmor %vm3525_vm12, %vm3526_vm11  ;;  %v3548_v20 = vsel %vm3545_vm7, %v3547_v32, %v3543_v4  ;;  %vm3571_vm8 = vweird.f32 %v7958_v37  ;;  %vm3555_vm12 = vweird.f32 %v7946_v49 }
0x1007   :  { %v3522_v50 = vsub.f32 1.0, %v3521_v29  ;;  %v3551_v39 = vmul.f32 %v7962_v19, %v7946_v49  ;;  %v7970_v21 = vpop.eup %6216  ;;  %v3828_v29 = vpop.permute.xlu0 %3827  ;;  %vm3556_vm9 = vweird.f32 %v7962_v19  ;;  %vm7988_vm11 = vmor %vm3570_vm10, %vm3571_vm8 }
0x1008   :  { %v3567_v6 = vsub.f32 1.0, %v3566_v1  ;;  %v3561_v1 = vand.u32 2147483648, %v7946_v49  ;;  %vm3586_vm5 = vweird.f32 %v7970_v21 }
0x1009   :  { %v3523_v15 = vmul.f32 %v6211_v60, %v3522_v50  ;;  %v3552_v48 = vsub.f32 1.0, %v3551_v39  ;;  %vm3587_vm7 = vmor %vm3585_vm6, %vm3586_vm5 }
0x100a   :  { %v3568_v18 = vmul.f32 %v7958_v37, %v3567_v6 }
0x100b   :  { %v3524_v36 = vadd.f32 %v6211_v60, %v3523_v15 }
0x100c   :  { %v3569_v55 = vadd.f32 %v7958_v37, %v3568_v18  ;;  %v3591_v18 = vand.u32 2147483648, %v7960_v25 }
0x100d   :  { %v3528_v45 = vsel %vm3527_vm13, %v6211_v60, %v3524_v36  ;;  %v3581_v60 = vmul.f32 %v7970_v21, %v7960_v25  ;;  %v3599_v36 = vmul.f32 %v7861_v35, %v3548_v20  ;;  %vm7997_vm13 = vmor %vm3555_vm12, %vm3556_vm9 }
0x100e   :  { %v3533_v23 = vsel %vm3530_vm14, %v3532_v44, %v3528_v45  ;;  %v3574_v45 = vand.u32 2147483647, %v7951_v2  ;;  %v3573_v35 = vsel %vm7988_vm11, %v7958_v37, %v3569_v55  ;;  %v3577_v2 = vor.u32 1.1754944e-38, %v3576_v16 }
0x100f   :  { %v3598_v31 = vmul.f32 %v7909_v34, %v3533_v23  ;;  %v3553_v34 = vmul.f32 %v7962_v19, %v3552_v48  ;;  %v3582_v28 = vsub.f32 1.0, %v3581_v60  ;;  %v3559_v23 = vand.u32 2147483647, %v7946_v49 }
0x1010   :  { %v3562_v48 = vor.u32 1.1754944e-38, %v3561_v1  ;;  %vm3575_vm14 = vcmp.eq.f32.partialorder %v3574_v45, 8.507059e+37 }
0x1011   :  { %5765 = vmatmul.msk.f32.gmra.mxu3 %vm394_vm3, %v3598_v31  ;;  %v3554_v11 = vadd.f32 %v7962_v19, %v3553_v34  ;;  %v3583_v6 = vmul.f32 %v7970_v21, %v3582_v28  ;;  %vm3560_vm15 = vcmp.eq.f32.partialorder %v3559_v23, 8.507059e+37  ;;  %v3578_v56 = vsel %vm3575_vm14, %v3577_v2, %v3573_v35 }
0x1013   :  { %v3558_v49 = vsel %vm7997_vm13, %v7962_v19, %v3554_v11  ;;  %v3584_v37 = vadd.f32 %v7970_v21, %v3583_v6  ;;  %v3601_v19 = vmul.f32 %v7886_v26, %v3578_v56 }
0x1014   :  { %v3563_v4 = vsel %vm3560_vm15, %v3562_v48, %v3558_v49 }
0x1015   :  { %v5960_v50 = vpop.permute.xlu1 %5959  ;;  %v3600_v34 = vmul.f32 %v7901_v38, %v3563_v4  ;;  %v3588_v32 = vsel %vm3587_vm7, %v7970_v21, %v3584_v37  ;;  %v3861_v21 = vpop.permute.xlu2 %3860 }
0x1016   :  { %v5961_v15 = vunpack.i.l.bf16 %v5960_v50  ;;  %v5962_v39 = vunpack.i.h.bf16 %v5960_v50  ;;  %v3592_v50 = vor.u32 1.1754944e-38, %v3591_v18 }
0x1018   :  { %3699 = vmatpush.msrb.mxu0 %v5961_v15 }
0x1019   :  { %5776 = vmatmul.msk.f32.vlgmr.msra.gmra.mxu3 %vm231_vm1, %v7948_v13  ;;  %v3826_v13 = vpop.permute.xlu0 %3825 }
0x101a   :  { %3700 = vmatpush.msrb.mxu0 %v5962_v39 }
0x101b   :  { %5766 = vmatmul.msk.f32.vlgmr.msrb.gmra.mxu0 %vm394_vm3, %v3599_v36 }
0x101c   :  { %5778 = vmatpush.xpose.msk.msra.mxu0 %vm231_vm1, %v3828_v29  ;;  %v3589_v29 = vand.u32 2147483647, %v7960_v25 }
0x101d   :  { %v5965_v31 = vpop.permute.xlu1 %5964 }
0x101e   :  { %v5966_v41 = vunpack.i.l.bf16 %v5965_v31  ;;  %v5967_v60 = vunpack.i.h.bf16 %v5965_v31  ;;  %vm3590_vm8 = vcmp.eq.f32.partialorder %v3589_v29, 8.507059e+37 }
0x101f   :  { %v3593_v20 = vsel %vm3590_vm8, %v3592_v50, %v3588_v32 }
0x1020   :  { %5779 = vmatpush.xpose.msk.msra.mxu0 %vm231_vm1, %v3826_v13  ;;  %3734 = vmatpush.msra.mxu1 %v5966_v41  ;;  %v3602_v25 = vmul.f32 %v7891_v27, %v3593_v20 }
0x1021   :  { %5777 = vmatmul.msk.f32.gmra.mxu3 %vm231_vm1, %v7953_v42  ;;  %v3824_v15 = vpop.permute.xlu0 %3823 }
0x1022   :  { %3735 = vmatpush.msra.mxu1 %v5967_v60 }
0x1023   :  { %5767 = vmatmul.msk.f32.gmra.mxu0 %vm394_vm3, %v3600_v34  ;;  %5768 = vmatmul.msk.f32.vlgmr.msra.gmra.mxu1 %vm394_vm3, %v3601_v19 }
0x1025   :  { %v3822_v26 = vpop.permute.xlu1 %3821 }
0x1029   :  { %v3865_v42 = vpop.permute.xlu0 %3864 }
0x102b   :  { %5769 = vmatmul.msk.f32.gmra.mxu1 %vm394_vm3, %v3602_v25  ;;  %5780 = vmatmul.msk.f32.vlgmr.msra.gmra.mxu0 %vm231_vm1, %v3822_v26 }
0x102d   :  { %v3867_v38 = vpop.permute.xlu1 %3866 }
0x102e   :  { %5782 = vmatpush.xpose.msk.msrb.mxu1 %vm231_vm1, %v3867_v38  ;;  %v8041_v45 = vpop.f32.mrf.mxu3 }
0x1032   :  { %5783 = vmatpush.xpose.msk.msrb.mxu1 %vm231_vm1, %v3865_v42 }
0x1033   :  { %5781 = vmatmul.msk.f32.gmra.mxu0 %vm231_vm1, %v3824_v15 }
0x1035   :  { %5784 = vmatmul.msk.f32.vlgmr.msrb.gmra.mxu1 %vm231_vm1, %v3861_v21  ;;  %v3863_v55 = vpop.permute.xlu1 %3862 }
0x103d   :  { %5785 = vmatmul.msk.f32.gmra.mxu1 %vm231_vm1, %v3863_v55 }
0x1049   :  { %v8031_v28 = vpop.f32.mrf.mxu2 }
0x1051   :  { %v8033_v27 = vpop.f32.mrf.mxu2 }
0x1059   :  { %v3776_v11 = vpop.f32.mrf.mxu2 }
0x105a   :  { %v3899_v16 = vsel %vm6659_vm2, %v3776_v11, -1e+30 }
0x105b   :  { %v3907_v1 = vsel %vm394_vm3, %v3899_v16, -inf }
0x105c   :  { %3908 = vmax.xlane.f32.xlu0 %v3907_v1 }
0x1061   :  { %v3779_v39 = vpop.f32.mrf.mxu2 }
0x1062   :  { %v3900_v36 = vsel %vm6669_vm4, %v3779_v39, -1e+30 }
0x1063   :  { %v3910_v44 = vsel %vm394_vm3, %v3900_v36, -inf }
0x1064   :  { %3911 = vmax.xlane.f32.xlu1 %v3910_v44 }
0x1094   :  { %v8043_v23 = vpop.f32.mrf.mxu3 }
0x1098   :  { %v8045_v33 = vpop.f32.mrf.mxu0 }
0x109c   :  { %v3815_v35 = vpop.f32.mrf.mxu3 }
0x109d   :  { %v3901_v6 = vsel %vm6659_vm2, %v3815_v35, -1e+30 }
0x109e   :  { %v3913_v49 = vsel %vm394_vm3, %v3901_v6, -inf }
0x109f   :  { %3914 = vmax.xlane.f32.xlu2 %v3913_v49 }
0x10a0   :  { %v8050_v2 = vpop.f32.mrf.mxu0  ;;  %v8052_v48 = vpop.f32.mrf.mxu1 }
0x10a4   :  { %v3818_v29 = vpop.f32.mrf.mxu3 }
0x10a5   :  { %v3902_v32 = vsel %vm6669_vm4, %v3818_v29, -1e+30 }
0x10a6   :  { %v3916_v50 = vsel %vm394_vm3, %v3902_v32, -inf }
0x10a8   :  { %v3854_v13 = vpop.f32.mrf.mxu0  ;;  %v8056_v56 = vpop.f32.mrf.mxu1 }
0x10a9   :  { %v3903_v31 = vsel %vm6659_vm2, %v3854_v13, -1e+30 }
0x10aa   :  { %v3919_v41 = vsel %vm394_vm3, %v3903_v31, -inf }
0x10ab   :  { %3920 = vmax.xlane.f32.xlu1 %v3919_v41 }
0x10b0   :  { %v3857_v4 = vpop.f32.mrf.mxu0 }
0x10b1   :  { %v3904_v37 = vsel %vm6669_vm4, %v3857_v4, -1e+30 }
0x10b2   :  { %v3922_v18 = vsel %vm394_vm3, %v3904_v37, -inf  ;;  %v3893_v60 = vpop.f32.mrf.mxu1 }
0x10b3   :  { %v3905_v19 = vsel %vm6659_vm2, %v3893_v60, -1e+30  ;;  %3923 = vmax.xlane.f32.xlu0 %v3922_v18 }
0x10b4   :  { %v3925_v34 = vsel %vm394_vm3, %v3905_v19, -inf }
0x10b5   :  { %3926 = vmax.xlane.f32.xlu2 %v3925_v34 }
0x10ba   :  { %v3896_v26 = vpop.f32.mrf.mxu1 }
0x10bb   :  { %v3906_v20 = vsel %vm6669_vm4, %v3896_v26, -1e+30  ;;  %3917 = vmax.xlane.f32.xlu0 %v3916_v50 }
0x10bc   :  { %v3928_v15 = vsel %vm394_vm3, %v3906_v20, -inf }
0x10bd   :  { %3929 = vmax.xlane.f32.xlu1 %v3928_v15 }
0x10cf   :  { %v3909_v53 = vpop.xlane.xlu0 %3908 }
0x10d0   :  { %v3931_v25 = vsub.f32 %v3899_v16, %v3909_v53 }
0x10d2   :  { %v3939_v38 = vmul.f32 1.442695, %v3931_v25 }
0x10d4   :  { %6218 = vpow2.f32 %v3939_v38 }
0x10d7   :  { %v3912_v42 = vpop.xlane.xlu1 %3911 }
0x10d8   :  { %v3932_v21 = vsub.f32 %v3900_v36, %v3912_v42 }
0x10da   :  { %v8071_v55 = vpop.eup %6218  ;;  %v3941_v11 = vmul.f32 1.442695, %v3932_v21 }
0x10db   :  { %v3955_v1 = vsel %vm394_vm3, %v8071_v55, 0.0 }
0x10dc   :  { %6220 = vpow2.f32 %v3941_v11  ;;  %3956 = vadd.xlane.f32.xlu1 %v3955_v1 }
0x10e2   :  { %v8075_v58 = vpop.eup %6220 }
0x10e3   :  { %v3958_v39 = vsel %vm394_vm3, %v8075_v58, 0.0 }
0x10e4   :  { %3959 = vadd.xlane.f32.xlu0 %v3958_v39 }
0x10f8   :  { %5969 = vrot.lane.b32.xlu0 %v6918_v52, %s6418_s21 }
0x1112   :  { %v3915_v16 = vpop.xlane.xlu2 %3914 }
0x1113   :  { %v3933_v44 = vsub.f32 %v3901_v6, %v3915_v16 }
0x1115   :  { %v3943_v36 = vmul.f32 1.442695, %v3933_v44 }
0x1117   :  { %6222 = vpow2.f32 %v3943_v36 }
0x111d   :  { %v8081_v35 = vpop.eup %6222 }
0x111e   :  { %v3921_v49 = vpop.xlane.xlu1 %3920  ;;  %v3961_v13 = vsel %vm394_vm3, %v8081_v35, 0.0 }
0x111f   :  { %v3935_v41 = vsub.f32 %v3903_v31, %v3921_v49  ;;  %3962 = vadd.xlane.f32.xlu2 %v3961_v13 }
0x1121   :  { %v3947_v4 = vmul.f32 1.442695, %v3935_v41 }
0x1123   :  { %6224 = vpow2.f32 %v3947_v4 }
0x1126   :  { %v3924_v18 = vpop.xlane.xlu0 %3923 }
0x1127   :  { %v3936_v60 = vsub.f32 %v3904_v37, %v3924_v18 }
0x1128   :  { %v3927_v29 = vpop.xlane.xlu2 %3926 }
0x1129   :  { %v8085_v34 = vpop.eup %6224  ;;  %v3949_v52 = vmul.f32 1.442695, %v3936_v60  ;;  %v3937_v50 = vsub.f32 %v3905_v19, %v3927_v29 }
0x112a   :  { %v3967_v6 = vsel %vm394_vm3, %v8085_v34, 0.0 }
0x112b   :  { %6226 = vpow2.f32 %v3949_v52  ;;  %v3951_v26 = vmul.f32 1.442695, %v3937_v50  ;;  %3968 = vadd.xlane.f32.xlu1 %v3967_v6 }
0x112d   :  { %6228 = vpow2.f32 %v3951_v26 }
0x112e   :  { %v3918_v15 = vpop.xlane.xlu0 %3917 }
0x112f   :  { %v3934_v53 = vsub.f32 %v3902_v32, %v3918_v15 }
0x1130   :  { %v3930_v21 = vpop.xlane.xlu1 %3929 }
0x1131   :  { %v8089_v31 = vpop.eup %6226  ;;  %v3945_v25 = vmul.f32 1.442695, %v3934_v53  ;;  %v3938_v11 = vsub.f32 %v3906_v20, %v3930_v21 }
0x1132   :  { %v3970_v37 = vsel %vm394_vm3, %v8089_v31, 0.0 }
0x1133   :  { %v8093_v38 = vpop.eup %6228  ;;  %6230 = vpow2.f32 %v3945_v25  ;;  %3971 = vadd.xlane.f32.xlu1 %v3970_v37  ;;  %v3953_v39 = vmul.f32 1.442695, %v3938_v11 }
0x1134   :  { %v3973_v19 = vsel %vm394_vm3, %v8093_v38, 0.0 }
0x1135   :  { %3974 = vadd.xlane.f32.xlu0 %v3973_v19 }
0x1137   :  { %5974 = vrot.lane.b32.xlu2 %v6922_v63, %s6418_s21 }
0x1139   :  { %v8099_v42 = vpop.eup %6230 }
0x113a   :  { %v3964_v32 = vsel %vm394_vm3, %v8099_v42, 0.0 }
0x113b   :  { %3965 = vadd.xlane.f32.xlu1 %v3964_v32 }
0x1149   :  { %4287 = vrot.lane.b32.xlu0 %v7240_v61, %s6415_s19 }
0x114f   :  { %v3957_v1 = vpop.xlane.xlu1 %3956 }
0x1150   :  { %6232 = vrcp.f32 %v3957_v1  ;;  %vm3984_vm4 = vweird.f32 %v3957_v1  ;;  %v3988_v4 = vand.u32 2147483647, %v3957_v1 }
0x1151   :  { %4415 = vrot.lane.b32.xlu0 %v8031_v28, %s6407_s1  ;;  %6234 = vpow2.f32 %v3953_v39  ;;  %v9117_v39 = vld [vmem:[#allocation37_spill] sm:$0xff] }
0x1152   :  { %vm3989_vm10 = vcmp.eq.f32.partialorder %v3988_v4, 8.507059e+37 }
0x1154   :  { %5979 = vrot.lane.b32.xlu1 %v6990_v17, %s6418_s21 }
0x1156   :  { %v6233_v63 = vpop.eup %6232 }
0x1157   :  { %v3960_v16 = vpop.xlane.xlu0 %3959  ;;  %v3980_v44 = vmul.f32 %v6233_v63, %v3957_v1  ;;  %v8111_v36 = vpop.eup %6234  ;;  %vm3985_vm2 = vweird.f32 %v6233_v63 }
0x1158   :  { %6236 = vrcp.f32 %v3960_v16  ;;  %v3976_v28 = vsel %vm394_vm3, %v8111_v36, 0.0  ;;  %vm3986_vm9 = vmor %vm3984_vm4, %vm3985_vm2  ;;  %vm3999_vm12 = vweird.f32 %v3960_v16  ;;  %v4003_v15 = vand.u32 2147483647, %v3960_v16 }
0x1159   :  { %4257 = vrot.lane.b32.xlu0 %v7093_v62, %s6417_s6  ;;  %v3981_v61 = vsub.f32 1.0, %v3980_v44  ;;  %v3990_v62 = vand.u32 2147483648, %v3957_v1 }
0x115a   :  { %vm4004_vm14 = vcmp.eq.f32.partialorder %v4003_v15, 8.507059e+37  ;;  %v9121_v15 = vld [vmem:[#allocation26_spill] sm:$0xff] }
0x115b   :  { %v3982_v49 = vmul.f32 %v6233_v63, %v3981_v61  ;;  %v3991_v60 = vor.u32 1.1754944e-38, %v3990_v62 }
0x115c   :  { %5984 = vrot.lane.b32.xlu1 %v6996_v24, %s6418_s21 }
0x115d   :  { %v3983_v13 = vadd.f32 %v6233_v63, %v3982_v49 }
0x115e   :  { %v6237_v20 = vpop.eup %6236 }
0x115f   :  { %v3995_v17 = vmul.f32 %v6237_v20, %v3960_v16  ;;  %v3987_v24 = vsel %vm3986_vm9, %v6233_v63, %v3983_v13  ;;  %vm4000_vm11 = vweird.f32 %v6237_v20  ;;  %v9118_v63 = vld [vmem:[#allocation25_spill] sm:$0xff] }
0x1160   :  { %3977 = vadd.xlane.f32.xlu2 %v3976_v28  ;;  %v3992_v52 = vsel %vm3989_vm10, %v3991_v60, %v3987_v24  ;;  %vm4001_vm13 = vmor %vm3999_vm12, %vm4000_vm11 }
0x1161   :  { %4353 = vrot.lane.b32.xlu0 %v7658_v14, %s6411_s16  ;;  %v3996_v41 = vsub.f32 1.0, %v3995_v17  ;;  %v4099_v26 = vmul.f32 %v8071_v55, %v3992_v52  ;;  %v9120_v52 = vld [vmem:[#allocation21_spill] sm:$0xff] }
0x1163   :  { %v3997_v18 = vmul.f32 %v6237_v20, %v3996_v41 }
0x1164   :  { %4255 = vrot.lane.b32.xlu1 %v7083_v3, %s6417_s6  ;;  %v4005_v3 = vand.u32 2147483648, %v3960_v16 }
0x1165   :  { %v3998_v50 = vadd.f32 %v6237_v20, %v3997_v18 }
0x1166   :  { %v4006_v53 = vor.u32 1.1754944e-38, %v4005_v3 }
0x1169   :  { %4323 = vrot.lane.b32.xlu0 %v7461_v40, %s6413_s18  ;;  %v4002_v40 = vsel %vm4001_vm13, %v6237_v20, %v3998_v50 }
0x116a   :  { %v5970_v29 = vpop.permute.xlu0 %5969  ;;  %v4007_v25 = vsel %vm4004_vm14, %v4006_v53, %v4002_v40 }
0x116b   :  { %v5971_v14 = vunpack.i.l.bf16 %v5970_v29  ;;  %v5972_v6 = vunpack.i.h.bf16 %v5970_v29 }
0x116c   :  { %4319 = vrot.lane.b32.xlu1 %v7418_v51, %s6413_s18  ;;  %v4100_v51 = vmul.f32 %v8075_v58, %v4007_v25 }
0x116d   :  { %4133 = vmatpush.msrb.mxu2 %v5971_v14 }
0x116f   :  { %4134 = vmatpush.msrb.mxu2 %v5972_v6 }
0x1170   :  { %5786 = vmatmul.msk.f32.vlgmr.msrb.gmra.mxu2 %vm394_vm3, %v4099_v26 }
0x1171   :  { %4419 = vrot.lane.b32.xlu0 %v8041_v45, %s6407_s1 }
0x1174   :  { %4383 = vrot.lane.b32.xlu1 %v7830_v22, %s6409_s14 }
0x1178   :  { %4351 = vrot.lane.b32.xlu2 %v7652_v9, %s6411_s16  ;;  %5787 = vmatmul.msk.f32.gmra.mxu2 %vm394_vm3, %v4100_v51 }
0x1179   :  { %4293 = vrot.lane.b32.xlu0 %v7247_v12, %s6415_s19  ;;  %v9113_v12 = vld [vmem:[#allocation19_spill] sm:$0xff] }
0x117c   :  { %4289 = vrot.lane.b32.xlu1 %v7243_v8, %s6415_s19  ;;  %v9114_v8 = vld [vmem:[#allocation24_spill] sm:$0xff] }
0x1180   :  { %4321 = vrot.lane.b32.xlu2 %v7423_v30, %s6413_s18 }
0x1181   :  { %4389 = vrot.lane.b32.xlu0 %v7832_v54, %s6409_s14 }
0x1184   :  { %4385 = vrot.lane.b32.xlu1 %v7836_v10, %s6409_s14 }
0x1188   :  { %4417 = vrot.lane.b32.xlu2 %v8033_v27, %s6407_s1  ;;  %v9115_v27 = vld [vmem:[#allocation29_spill] sm:$0xff] }
0x1189   :  { %4263 = vrot.lane.b32.xlu0 %v7081_v57, %s6417_s6 }
0x118c   :  { %4259 = vrot.lane.b32.xlu1 %v9113_v12, %s6417_s6 }
0x1190   :  { %4291 = vrot.lane.b32.xlu2 %v9114_v8, %s6415_s19 }
0x1191   :  { %4359 = vrot.lane.b32.xlu0 %v7615_v7, %s6411_s16 }
0x1192   :  { %v3963_v30 = vpop.xlane.xlu2 %3962 }
0x1193   :  { %6238 = vrcp.f32 %v3963_v30  ;;  %v4020_v45 = vand.u32 2147483648, %v3963_v30  ;;  %v4018_v58 = vand.u32 2147483647, %v3963_v30  ;;  %vm4014_vm5 = vweird.f32 %v3963_v30 }
0x1194   :  { %4355 = vrot.lane.b32.xlu1 %v7656_v0, %s6411_s16 }
0x1195   :  { %v4021_v19 = vor.u32 1.1754944e-38, %v4020_v45  ;;  %vm4019_vm7 = vcmp.eq.f32.partialorder %v4018_v58, 8.507059e+37 }
0x1198   :  { %4387 = vrot.lane.b32.xlu2 %v7828_v59, %s6409_s14  ;;  %v9116_v59 = vld [vmem:[#allocation20_spill] sm:$0xff] }
0x1199   :  { %v6239_v9 = vpop.eup %6238 }
0x119a   :  { %v4010_v22 = vmul.f32 %v6239_v9, %v3963_v30  ;;  %v5975_v57 = vpop.permute.xlu2 %5974  ;;  %vm4015_vm15 = vweird.f32 %v6239_v9 }
0x119b   :  { %v5976_v54 = vunpack.i.l.bf16 %v5975_v57  ;;  %v5977_v55 = vunpack.i.h.bf16 %v5975_v57  ;;  %vm4016_vm6 = vmor %vm4014_vm5, %vm4015_vm15 }
0x119c   :  { %v4011_v10 = vsub.f32 1.0, %v4010_v22  ;;  %4325 = vrot.lane.b32.xlu1 %v9115_v27, %s6413_s18 }
0x119d   :  { %4168 = vmatpush.msrb.mxu3 %v5976_v54 }
0x119e   :  { %v4012_v7 = vmul.f32 %v6239_v9, %v4011_v10  ;;  %v8161_v37 = vpop.xlane.xlu1 %3968 }
0x119f   :  { %4169 = vmatpush.msrb.mxu3 %v5977_v55  ;;  %6240 = vrcp.f32 %v8161_v37  ;;  %v4050_v53 = vand.u32 2147483648, %v8161_v37  ;;  %vm4044_vm11 = vweird.f32 %v8161_v37  ;;  %v4048_v25 = vand.u32 2147483647, %v8161_v37 }
0x11a0   :  { %v4013_v0 = vadd.f32 %v6239_v9, %v4012_v7  ;;  %4261 = vrot.lane.b32.xlu2 %v9116_v59, %s6417_s6  ;;  %v9128_v7 = vld [vmem:[#allocation15_spill] sm:$0xff] }
0x11a1   :  { %v4051_v30 = vor.u32 1.1754944e-38, %v4050_v53  ;;  %vm4049_vm13 = vcmp.eq.f32.partialorder %v4048_v25, 8.507059e+37  ;;  %v9126_v53 = vld [vmem:[#allocation12_spill] sm:$0xff] }
0x11a2   :  { %v4017_v32 = vsel %vm4016_vm6, %v6239_v9, %v4013_v0 }
0x11a3   :  { %v4022_v21 = vsel %vm4019_vm7, %v4021_v19, %v4017_v32 }
0x11a4   :  { %v4101_v11 = vmul.f32 %v8081_v35, %v4022_v21  ;;  %4421 = vrot.lane.b32.xlu1 %v8043_v23, %s6407_s1  ;;  %v9119_v35 = vld [vmem:[#allocation30_spill] sm:$0xff] }
0x11a5   :  { %v6241_v44 = vpop.eup %6240 }
0x11a6   :  { %5788 = vmatmul.msk.f32.vlgmr.msrb.gmra.mxu3 %vm394_vm3, %v4101_v11  ;;  %v8169_v1 = vpop.xlane.xlu1 %3971  ;;  %v4040_v23 = vmul.f32 %v6241_v44, %v8161_v37  ;;  %vm4045_vm10 = vweird.f32 %v6241_v44 }
0x11a7   :  { %vm4046_vm12 = vmor %vm4044_vm11, %vm4045_vm10  ;;  %vm4059_vm5 = vweird.f32 %v8169_v1  ;;  %v4065_v10 = vand.u32 2147483648, %v8169_v1  ;;  %v4063_v58 = vand.u32 2147483647, %v8169_v1 }
0x11a8   :  { %4357 = vrot.lane.b32.xlu2 %v9117_v39, %s6411_s16  ;;  %v8176_v61 = vpop.xlane.xlu0 %3974  ;;  %v4041_v49 = vsub.f32 1.0, %v4040_v23  ;;  %v9124_v39 = vld [vmem:[#allocation22_spill] sm:$0xff] }
0x11a9   :  { %v4080_v27 = vand.u32 2147483648, %v8176_v61  ;;  %vm4074_vm7 = vweird.f32 %v8176_v61  ;;  %v4066_v59 = vor.u32 1.1754944e-38, %v4065_v10 }
0x11aa   :  { %v4042_v18 = vmul.f32 %v6241_v44, %v4041_v49  ;;  %v9125_v49 = vld [vmem:[#allocation11_spill] sm:$0xff] }
0x11ab   :  { %v4081_v19 = vor.u32 1.1754944e-38, %v4080_v27  ;;  %v9127_v27 = vld [vmem:[#allocation34_spill] sm:$0xff] }
0x11ac   :  { %4295 = vrot.lane.b32.xlu1 %v9118_v63, %s6415_s19  ;;  %v4043_v3 = vadd.f32 %v6241_v44, %v4042_v18 }
0x11ae   :  { %v3966_v16 = vpop.xlane.xlu1 %3965  ;;  %v4047_v51 = vsel %vm4046_vm12, %v6241_v44, %v4043_v3 }
0x11af   :  { %6242 = vrcp.f32 %v3966_v16  ;;  %v4035_v62 = vand.u32 2147483648, %v3966_v16  ;;  %v4033_v24 = vand.u32 2147483647, %v3966_v16  ;;  %vm4029_vm2 = vweird.f32 %v3966_v16 }
0x11b0   :  { %4327 = vrot.lane.b32.xlu2 %v9119_v35, %s6413_s18  ;;  %6244 = vrcp.f32 %v8169_v1  ;;  %v4052_v22 = vsel %vm4049_vm13, %v4051_v30, %v4047_v51 }
0x11b1   :  { %6246 = vrcp.f32 %v8176_v61  ;;  %vm4034_vm9 = vcmp.eq.f32.partialorder %v4033_v24, 8.507059e+37  ;;  %v4103_v55 = vmul.f32 %v8085_v34, %v4052_v22 }
0x11b4   :  { %4391 = vrot.lane.b32.xlu1 %v7795_v43, %s6409_s14 }
0x11b5   :  { %v6243_v20 = vpop.eup %6242 }
0x11b6   :  { %v4025_v28 = vmul.f32 %v6243_v20, %v3966_v16  ;;  %v8185_v17 = vpop.eup %6244  ;;  %vm4030_vm8 = vweird.f32 %v6243_v20 }
0x11b7   :  { %v8189_v41 = vpop.eup %6246  ;;  %v4055_v60 = vmul.f32 %v8185_v17, %v8169_v1  ;;  %vm4031_vm4 = vmor %vm4029_vm2, %vm4030_vm8  ;;  %vm4060_vm14 = vweird.f32 %v8185_v17  ;;  %vm4064_vm2 = vcmp.eq.f32.partialorder %v4063_v58, 8.507059e+37 }
0x11b8   :  { %v4026_v13 = vsub.f32 1.0, %v4025_v28  ;;  %4423 = vrot.lane.b32.xlu2 %v8045_v33, %s6407_s1  ;;  %v4070_v43 = vmul.f32 %v8189_v41, %v8176_v61  ;;  %v4036_v33 = vor.u32 1.1754944e-38, %v4035_v62  ;;  %vm4075_vm15 = vweird.f32 %v8189_v41  ;;  %vm8216_vm6 = vmor %vm4059_vm5, %vm4060_vm14 }
0x11b9   :  { %v4056_v6 = vsub.f32 1.0, %v4055_v60  ;;  %vm4076_vm8 = vmor %vm4074_vm7, %vm4075_vm15  ;;  %vm4496_vm14 = vcmask 261120   ;;  %vm4505_vm15 = vcmask 326656   ;;  %vm4514_vm5 = vcmask 392192  }
0x11ba   :  { %v4027_v4 = vmul.f32 %v6243_v20, %v4026_v13  ;;  %v4071_v26 = vsub.f32 1.0, %v4070_v43 }
0x11bb   :  { %v4057_v12 = vmul.f32 %v8185_v17, %v4056_v6  ;;  %v4288_v37 = vpop.permute.xlu0 %4287 }
0x11bc   :  { %v4028_v29 = vadd.f32 %v6243_v20, %v4027_v4  ;;  %4265 = vrot.lane.b32.xlu1 %v9120_v52, %s6417_s6  ;;  %v4072_v8 = vmul.f32 %v8189_v41, %v4071_v26 }
0x11bd   :  { %v4058_v57 = vadd.f32 %v8185_v17, %v4057_v12 }
0x11be   :  { %v4032_v14 = vsel %vm4031_vm4, %v6243_v20, %v4028_v29  ;;  %v4073_v54 = vadd.f32 %v8189_v41, %v4072_v8 }
0x11bf   :  { %v4037_v50 = vsel %vm4034_vm9, %v4036_v33, %v4032_v14  ;;  %v4062_v34 = vsel %vm8216_vm6, %v8185_v17, %v4058_v57  ;;  %vm4487_vm9 = vcmask 195584   ;;  %vm4523_vm6 = vcmask 457728  }
0x11c0   :  { %4297 = vrot.lane.b32.xlu2 %v9121_v15, %s6415_s19  ;;  %v4102_v40 = vmul.f32 %v8099_v42, %v4037_v50  ;;  %v4077_v0 = vsel %vm4076_vm8, %v8189_v41, %v4073_v54  ;;  %v4067_v1 = vsel %vm4064_vm2, %v4066_v59, %v4062_v34 }
0x11c1   :  { %v4104_v44 = vmul.f32 %v8089_v31, %v4067_v1 }
0x11c2   :  { %5789 = vmatmul.msk.f32.gmra.mxu3 %vm394_vm3, %v4102_v40 }
0x11c3   :  { %v8234_v35 = vpop.permute.xlu0 %4415 }
0x11c6   :  { %v5980_v9 = vpop.permute.xlu1 %5979 }
0x11c7   :  { %v5981_v42 = vunpack.i.l.bf16 %v5980_v9  ;;  %v5982_v45 = vunpack.i.h.bf16 %v5980_v9 }
0x11c8   :  { %4393 = vrot.lane.b32.xlu2 %v7797_v5, %s6409_s14  ;;  %v4078_v5 = vand.u32 2147483647, %v8176_v61 }
0x11c9   :  { %4203 = vmatpush.msrb.mxu0 %v5981_v42 }
0x11ca   :  { %vm4079_vm4 = vcmp.eq.f32.partialorder %v4078_v5, 8.507059e+37 }
0x11cb   :  { %4204 = vmatpush.msrb.mxu0 %v5982_v45  ;;  %v4082_v21 = vsel %vm4079_vm4, %v4081_v19, %v4077_v0  ;;  %v4258_v4 = vpop.permute.xlu0 %4257 }
0x11cc   :  { %5790 = vmatmul.msk.f32.vlgmr.msrb.gmra.mxu0 %vm394_vm3, %v4103_v55  ;;  %v4105_v16 = vmul.f32 %v8093_v38, %v4082_v21  ;;  %v4472_v25 = vsel %vm231_vm1, %v9126_v53, %v4258_v4  ;;  %v9131_v53 = vld [vmem:[#allocation35_spill] sm:$0xff] }
0x11ce   :  { %v5985_v32 = vpop.permute.xlu1 %5984 }
0x11cf   :  { %v5986_v11 = vunpack.i.l.bf16 %v5985_v32  ;;  %v5987_v63 = vunpack.i.h.bf16 %v5985_v32  ;;  %v9129_v32 = vld [vmem:[#allocation16_spill] sm:$0xff] }
0x11d0   :  { %4267 = vrot.lane.b32.xlu2 %v9124_v39, %s6417_s6 }
0x11d1   :  { %4238 = vmatpush.msra.mxu1 %v5986_v11 }
0x11d3   :  { %v3978_v61 = vpop.xlane.xlu2 %3977  ;;  %4239 = vmatpush.msra.mxu1 %v5987_v63  ;;  %v4354_v15 = vpop.permute.xlu0 %4353 }
0x11d4   :  { %6248 = vrcp.f32 %v3978_v61  ;;  %5791 = vmatmul.msk.f32.gmra.mxu0 %vm394_vm3, %v4104_v44  ;;  %5792 = vmatmul.msk.f32.vlgmr.msra.gmra.mxu1 %vm394_vm3, %v4105_v16  ;;  %v4095_v41 = vand.u32 2147483648, %v3978_v61  ;;  %v4093_v18 = vand.u32 2147483647, %v3978_v61  ;;  %vm4089_vm11 = vweird.f32 %v3978_v61 }
0x11d6   :  { %v4256_v23 = vpop.permute.xlu1 %4255  ;;  %v4096_v29 = vor.u32 1.1754944e-38, %v4095_v41  ;;  %vm4094_vm13 = vcmp.eq.f32.partialorder %v4093_v18, 8.507059e+37 }
0x11d7   :  { %v4471_v17 = vsel %vm231_vm1, %v9125_v49, %v4256_v23 }
0x11d8   :  { %v4479_v31 = vsel %vm394_vm3, %v4471_v17, %v4288_v37  ;;  %v9130_v17 = vld [vmem:[#allocation13_spill] sm:$0xff] }
0x11da   :  { %v6249_v20 = vpop.eup %6248 }
0x11db   :  { %v4085_v28 = vmul.f32 %v6249_v20, %v3978_v61  ;;  %v4352_v13 = vpop.permute.xlu2 %4351  ;;  %vm4090_vm10 = vweird.f32 %v6249_v20  ;;  %v4324_v30 = vpop.permute.xlu0 %4323 }
0x11dc   :  { %vm4091_vm12 = vmor %vm4089_vm11, %vm4090_vm10 }
0x11dd   :  { %v4086_v38 = vsub.f32 1.0, %v4085_v28 }
0x11de   :  { %v4320_v62 = vpop.permute.xlu1 %4319 }
0x11df   :  { %v4087_v24 = vmul.f32 %v6249_v20, %v4086_v38  ;;  %v4488_v60 = vsel %vm4487_vm9, %v4479_v31, %v4320_v62 }
0x11e0   :  { %v4497_v3 = vsel %vm4496_vm14, %v4488_v60, %v4352_v13 }
0x11e1   :  { %v4088_v43 = vadd.f32 %v6249_v20, %v4087_v24 }
0x11e3   :  { %v4322_v52 = vpop.permute.xlu2 %4321  ;;  %v4092_v33 = vsel %vm4091_vm12, %v6249_v20, %v4088_v43  ;;  %v8256_v10 = vpop.permute.xlu0 %4419  ;;  %v4539_v43 = vld [vmem:[%s9067_s3 + $0x38] sm:$0xff] }
0x11e4   :  { %v4097_v14 = vsel %vm4094_vm13, %v4096_v29, %v4092_v33  ;;  %4576 = vmatpush.msra.mxu2 %v4539_v43  ;;  %5820 = vmatpush.msra.mxu3 %v4539_v43  ;;  %v4538_v29 = vld [vmem:[%s9067_s3 + $0x30] sm:$0xff]  ;;  %v4536_v33 = vld [vmem:[%s9067_s3 + $0x20] sm:$0xff] }
0x11e5   :  { %v4106_v50 = vmul.f32 %v8111_v36, %v4097_v14  ;;  %v4535_v14 = vld [vmem:[%s9067_s3 + $0x18] sm:$0xff] }
0x11e6   :  { %v4384_v6 = vpop.permute.xlu1 %4383  ;;  %4577 = vmatpush.msra.mxu2 %v4538_v29  ;;  %5821 = vmatpush.msra.mxu3 %v4538_v29 }
0x11e7   :  { %v8243_v26 = vsel %vm4505_vm15, %v4497_v3, %v4384_v6  ;;  %5793 = vmatmul.msk.f32.gmra.mxu1 %vm394_vm3, %v4106_v50  ;;  %v4534_v50 = vld [vmem:[%s9067_s3 + $0x10] sm:$0xff]  ;;  %v4533_v3 = vld [vmem:[%s9067_s3 + $0x8] sm:$0xff] }
0x11eb   :  { %v4418_v40 = vpop.permute.xlu2 %4417  ;;  %v4294_v34 = vpop.permute.xlu0 %4293 }
0x11ee   :  { %v4290_v51 = vpop.permute.xlu1 %4289 }
0x11ef   :  { %v4480_v12 = vsel %vm394_vm3, %v4472_v25, %v4290_v51  ;;  %v9132_v51 = vld [vmem:[#allocation31_spill] sm:$0xff] }
0x11f0   :  { %v4489_v8 = vsel %vm4487_vm9, %v4480_v12, %v4322_v52  ;;  %v4537_v52 = vld [vmem:[%s9067_s3 + $0x28] sm:$0xff] }
0x11f1   :  { %v4498_v36 = vsel %vm4496_vm14, %v4489_v8, %v4354_v15  ;;  %4578 = vmatpush.msra.mxu2 %v4537_v52  ;;  %5822 = vmatpush.msra.mxu3 %v4537_v52  ;;  %v4532_v15 = vld [vmem:[%s9067_s3] sm:$0xff] }
0x11f3   :  { %v4292_v9 = vpop.permute.xlu2 %4291  ;;  %v4136_v22 = vpop.f32.mrf.mxu2  ;;  %4579 = vmatpush.msra.mxu2 %v4536_v33  ;;  %5823 = vmatpush.msra.mxu3 %v4536_v33 }
0x11f4   :  { %4447 = vrot.lane.b32.xlu1 %v4136_v22, %s6405_s30  ;;  %v4390_v63 = vpop.permute.xlu0 %4389  ;;  %v4515_v22 = vsel %vm4514_vm5, %v8243_v26, %v8234_v35 }
0x11f5   :  { %4580 = vmatpush.msra.mxu2 %v4535_v14  ;;  %5824 = vmatpush.msra.mxu3 %v4535_v14 }
0x11f6   :  { %v4386_v42 = vpop.permute.xlu1 %4385 }
0x11f7   :  { %v4507_v57 = vsel %vm4505_vm15, %v4498_v36, %v4386_v42  ;;  %4581 = vmatpush.msra.mxu2 %v4534_v50  ;;  %5825 = vmatpush.msra.mxu3 %v4534_v50  ;;  %v9133_v36 = vld [vmem:[#allocation32_spill] sm:$0xff] }
0x11f8   :  { %v8254_v54 = vsel %vm4514_vm5, %v4507_v57, %v4418_v40 }
0x11f9   :  { %4582 = vmatpush.msra.mxu2 %v4533_v3  ;;  %5826 = vmatpush.msra.mxu3 %v4533_v3 }
0x11fb   :  { %v8260_v45 = vpop.permute.xlu2 %4387  ;;  %4583 = vmatpush.msra.mxu2 %v4532_v15  ;;  %5827 = vmatpush.msra.mxu3 %v4532_v15  ;;  %v4139_v8 = vpop.f32.mrf.mxu2  ;;  %v6316_v15 = vld [vmem:[%s9064_s0] sm:$0xff] }
0x11fc   :  { %4361 = vrot.lane.b32.xlu1 %v9127_v27, %s6411_s16  ;;  %v4264_v28 = vpop.permute.xlu0 %4263  ;;  %v9135_v27 = vld [vmem:[#allocation27_spill] sm:$0xff] }
0x11fd   :  { %v4475_v13 = vsel %vm231_vm1, %v9130_v17, %v4264_v28 }
0x11fe   :  { %v4260_v55 = vpop.permute.xlu1 %4259 }
0x11ff   :  { %v4473_v58 = vsel %vm231_vm1, %v9128_v7, %v4260_v55 }
0x1200   :  { %v4481_v5 = vsel %vm394_vm3, %v4473_v58, %v4292_v9 }
0x1201   :  { %v4490_v37 = vsel %vm4487_vm9, %v4481_v5, %v4324_v30  ;;  %v9134_v30 = vld [vmem:[#allocation33_spill] sm:$0xff] }
0x1203   :  { %v4262_v19 = vpop.permute.xlu2 %4261 }
0x1204   :  { %v4474_v21 = vsel %vm231_vm1, %v9129_v32, %v4262_v19  ;;  %v4360_v62 = vpop.permute.xlu0 %4359 }
0x1205   :  { %v4482_v1 = vsel %vm394_vm3, %v4474_v21, %v4294_v34  ;;  %v9139_v34 = vld [vmem:[#allocation14_spill] sm:$0xff] }
0x1206   :  { %v4356_v0 = vpop.permute.xlu1 %4355 }
0x1207   :  { %v8267_v59 = vsel %vm4496_vm14, %v4490_v37, %v4356_v0 }
0x120b   :  { %v4358_v16 = vpop.permute.xlu2 %4357 }
0x120e   :  { %v4326_v11 = vpop.permute.xlu1 %4325 }
0x120f   :  { %v4491_v39 = vsel %vm4487_vm9, %v4482_v1, %v4326_v11 }
0x1210   :  { %v4500_v44 = vsel %vm4496_vm14, %v4491_v39, %v4358_v16  ;;  %v4508_v16 = vsel %vm4505_vm15, %v8267_v59, %v8260_v45 }
0x1211   :  { %v4509_v61 = vsel %vm4505_vm15, %v4500_v44, %v4390_v63 }
0x1213   :  { %v4328_v41 = vpop.permute.xlu2 %4327 }
0x1216   :  { %v4422_v23 = vpop.permute.xlu1 %4421 }
0x1217   :  { %v8276_v20 = vsel %vm4514_vm5, %v4509_v61, %v4422_v23  ;;  %v4517_v23 = vsel %vm4514_vm5, %v4508_v16, %v8256_v10 }
0x121b   :  { %v4424_v26 = vpop.permute.xlu2 %4423 }
0x121e   :  { %v4296_v49 = vpop.permute.xlu1 %4295 }
0x121f   :  { %v4483_v38 = vsel %vm394_vm3, %v4475_v13, %v4296_v49 }
0x1220   :  { %v4492_v31 = vsel %vm4487_vm9, %v4483_v38, %v4328_v41  ;;  %v9140_v41 = vld [vmem:[#allocation17_spill] sm:$0xff] }
0x1221   :  { %v4501_v4 = vsel %vm4496_vm14, %v4492_v31, %v4360_v62 }
0x1223   :  { %v4298_v55 = vpop.permute.xlu2 %4297 }
0x1226   :  { %v4392_v24 = vpop.permute.xlu1 %4391 }
0x1227   :  { %v4510_v18 = vsel %vm4505_vm15, %v4501_v4, %v4392_v24 }
0x1228   :  { %v4519_v7 = vsel %vm4514_vm5, %v4510_v18, %v4424_v26 }
0x1229   :  { %v4171_v60 = vpop.f32.mrf.mxu3 }
0x122a   :  { %4451 = vrot.lane.b32.xlu1 %v4171_v60, %s6405_s30 }
0x122e   :  { %v4266_v9 = vpop.permute.xlu1 %4265 }
0x122f   :  { %v4476_v19 = vsel %vm231_vm1, %v9139_v34, %v4266_v9 }
0x1230   :  { %v4484_v11 = vsel %vm394_vm3, %v4476_v19, %v4298_v55  ;;  %v6318_v19 = vld [vmem:[%s9064_s0 + $0x20] sm:$0xff] }
0x1245   :  { %v4174_v6 = vpop.f32.mrf.mxu3 }
0x1246   :  { %4453 = vrot.lane.b32.xlu2 %v4174_v6, %s6405_s30 }
0x1249   :  { %v4206_v40 = vpop.f32.mrf.mxu0 }
0x124a   :  { %4455 = vrot.lane.b32.xlu0 %v4206_v40, %s6405_s30 }
0x124e   :  { %4363 = vrot.lane.b32.xlu2 %v9131_v53, %s6411_s16  ;;  %v9141_v53 = vld [vmem:[#allocation18_spill] sm:$0xff] }
0x1251   :  { %v4209_v25 = vpop.f32.mrf.mxu0  ;;  %v4241_v12 = vpop.f32.mrf.mxu1 }
0x1252   :  { %4329 = vrot.lane.b32.xlu0 %v9132_v51, %s6413_s18  ;;  %4457 = vrot.lane.b32.xlu1 %v4209_v25, %s6405_s30 }
0x1256   :  { %4459 = vrot.lane.b32.xlu2 %v4241_v12, %s6405_s30 }
0x125a   :  { %4449 = vrot.lane.b32.xlu0 %v4139_v8, %s6405_s30  ;;  %4331 = vrot.lane.b32.xlu1 %v9133_v36, %s6413_s18 }
0x125e   :  { %4333 = vrot.lane.b32.xlu2 %v9134_v30, %s6413_s18 }
0x1262   :  { %4425 = vrot.lane.b32.xlu0 %v8050_v2, %s6407_s1  ;;  %4427 = vrot.lane.b32.xlu1 %v8052_v48, %s6407_s1  ;;  %v9136_v2 = vld [vmem:[#allocation28_spill] sm:$0xff]  ;;  %v9137_v48 = vld [vmem:[#allocation23_spill] sm:$0xff] }
0x1264   :  { %v4244_v35 = vpop.f32.mrf.mxu1 }
0x1266   :  { %4429 = vrot.lane.b32.xlu2 %v8056_v56, %s6407_s1  ;;  %v4448_v42 = vpop.permute.xlu1 %4447  ;;  %v9138_v56 = vld [vmem:[#allocation36_spill] sm:$0xff] }
0x1267   :  { %v4524_v57 = vsel %vm4523_vm6, %v4515_v22, %v4448_v42 }
0x1268   :  { %5794 = vmatmul.msk.f32.vlgmr.msra.gmra.mxu2 %vm103_vm0, %v4524_v57 }
0x126a   :  { %4299 = vrot.lane.b32.xlu0 %v9135_v27, %s6415_s19  ;;  %4301 = vrot.lane.b32.xlu1 %v9136_v2, %s6415_s19 }
0x1272   :  { %4395 = vrot.lane.b32.xlu0 %v7806_v46, %s6409_s14  ;;  %4397 = vrot.lane.b32.xlu1 %v7810_v47, %s6409_s14  ;;  %v4394_v46 = vpop.permute.xlu2 %4393  ;;  %v4362_v47 = vpop.permute.xlu1 %4361 }
0x127a   :  { %4269 = vrot.lane.b32.xlu0 %v9137_v48, %s6417_s6  ;;  %v4268_v32 = vpop.permute.xlu2 %4267 }
0x127b   :  { %v4477_v31 = vsel %vm231_vm1, %v9140_v41, %v4268_v32 }
0x1282   :  { %4365 = vrot.lane.b32.xlu0 %v9138_v56, %s6411_s16  ;;  %v6419_v56 = vmov 64.0   ;;  %s5572_s16 = sshll.u32 %s9077_s13, 4  ;;  %s5573_s16 = int_to_ptr.hbm [resolvable:$true] %s5572_s16 }
0x1283   :  { %6250 = vrcp.f32 %v6419_v56 }
0x128a   :  { %4461 = vrot.lane.b32.xlu0 %v4244_v35, %s6405_s30  ;;  %v6251_v35 = vpop.eup %6250 }
0x129c   :  { %v4452_v0 = vpop.permute.xlu1 %4451 }
0x12a0   :  { %v4454_v61 = vpop.permute.xlu2 %4453 }
0x12a1   :  { %v4527_v10 = vsel %vm4523_vm6, %v8276_v20, %v4454_v61  ;;  %v8383_v20 = vld [vmem:[%s9068_s4] ss:$0 sm:$0xff] }
0x12a8   :  { %v4364_v59 = vpop.permute.xlu2 %4363 }
0x12b0   :  { %v4460_v29 = vpop.permute.xlu2 %4459 }
0x12b8   :  { %v4334_v51 = vpop.permute.xlu2 %4333 }
0x12bc   :  { %v4456_v58 = vpop.permute.xlu0 %4455 }
0x12bd   :  { %v4528_v5 = vsel %vm4523_vm6, %v4519_v7, %v4456_v58  ;;  %v4644_v58 = vmul.f32 64.0, %v6251_v35 }
0x12be   :  { %5798 = vmatmul.msk.f32.vlgmr.msra.gmra.mxu3 %vm103_vm0, %v4528_v5  ;;  %v6317_v5 = vld [vmem:[%s9064_s0 + $0x8] sm:$0xff] }
0x12c0   :  { %v4430_v57 = vpop.permute.xlu2 %4429 }
0x12c4   :  { %v4330_v37 = vpop.permute.xlu0 %4329  ;;  %v4458_v63 = vpop.permute.xlu1 %4457 }
0x12c5   :  { %v4493_v39 = vsel %vm4487_vm9, %v4484_v11, %v4330_v37 }
0x12c6   :  { %v4502_v44 = vsel %vm4496_vm14, %v4493_v39, %v4362_v47  ;;  %v6319_v39 = vld [vmem:[%s9064_s0 + $0x10] sm:$0xff] }
0x12c7   :  { %v4511_v28 = vsel %vm4505_vm15, %v4502_v44, %v4394_v46 }
0x12cc   :  { %v4450_v21 = vpop.permute.xlu0 %4449  ;;  %v4332_v45 = vpop.permute.xlu1 %4331 }
0x12cd   :  { %v4525_v1 = vsel %vm4523_vm6, %v8254_v54, %v4450_v21  ;;  %v4526_v54 = vsel %vm4523_vm6, %v4517_v23, %v4452_v0  ;;  %v4645_v0 = vsub.f32 1.0, %v4644_v58 }
0x12ce   :  { %5795 = vmatmul.msk.f32.gmra.mxu2 %vm103_vm0, %v4525_v1 }
0x12cf   :  { %v4646_v1 = vmul.f32 %v6251_v35, %v4645_v0  ;;  %v4967_v0 = vld [vmem:[%s9071_s7 + $0x78] sm:$0xff] }
0x12d0   :  { %5047 = vmatpush.msra.mxu0 %v4967_v0 }
0x12d1   :  { %v4647_v23 = vadd.f32 %v6251_v35, %v4646_v1  ;;  %v4963_v1 = vld [vmem:[%s9071_s7 + $0x58] sm:$0xff] }
0x12d4   :  { %v4426_v49 = vpop.permute.xlu0 %4425  ;;  %v4428_v24 = vpop.permute.xlu1 %4427 }
0x12d5   :  { %v4520_v17 = vsel %vm4514_vm5, %v4511_v28, %v4426_v49  ;;  %v6320_v49 = vld [vmem:[%s9064_s0 + $0x28] sm:$0xff] }
0x12d6   :  { %5796 = vmatmul.msk.f32.gmra.mxu2 %vm103_vm0, %v4526_v54  ;;  %v4529_v13 = vsel %vm4523_vm6, %v4520_v17, %v4458_v63 }
0x12d7   :  { %5799 = vmatmul.msk.f32.gmra.mxu3 %vm103_vm0, %v4529_v13 }
0x12dc   :  { %v4300_v38 = vpop.permute.xlu0 %4299  ;;  %v4302_v6 = vpop.permute.xlu1 %4301 }
0x12dd   :  { %v4485_v62 = vsel %vm394_vm3, %v4477_v31, %v4300_v38 }
0x12de   :  { %5797 = vmatmul.msk.f32.gmra.mxu2 %vm103_vm0, %v4527_v10  ;;  %v4494_v4 = vsel %vm4487_vm9, %v4485_v62, %v4332_v45  ;;  %v6321_v45 = vld [vmem:[%s9064_s0 + $0x18] sm:$0xff] }
0x12df   :  { %v4503_v60 = vsel %vm4496_vm14, %v4494_v4, %v4364_v59 }
0x12e4   :  { %v4396_v18 = vpop.permute.xlu0 %4395  ;;  %v4398_v22 = vpop.permute.xlu1 %4397 }
0x12e5   :  { %v4512_v43 = vsel %vm4505_vm15, %v4503_v60, %v4396_v18  ;;  %v6322_v60 = vld [vmem:[%s9064_s0 + $0x30] sm:$0xff] }
0x12e6   :  { %v4521_v52 = vsel %vm4514_vm5, %v4512_v43, %v4428_v24 }
0x12e7   :  { %v4530_v33 = vsel %vm4523_vm6, %v4521_v52, %v4460_v29 }
0x12e8   :  { %5800 = vmatmul.msk.f32.gmra.mxu3 %vm103_vm0, %v4530_v33 }
0x12eb   :  { %v4585_v14 = vpop.f32.mrf.mxu2 }
0x12ec   :  { %v4270_v50 = vpop.permute.xlu0 %4269  ;;  %v4586_v3 = vadd.f32 %v8383_v20, %v4585_v14 }
0x12ed   :  { %v4478_v25 = vsel %vm231_vm1, %v9141_v53, %v4270_v50  ;;  %vm4648_vm1 = vweird.f32 %v6251_v35  ;;  %v6323_v50 = vld [vmem:[%s9064_s0 + $0x38] sm:$0xff] }
0x12ee   :  { %v4609_v40 = vadd.f32 %v6316_v15, %v4586_v3  ;;  %v4486_v8 = vsel %vm394_vm3, %v4478_v25, %v4302_v6  ;;  %v8419_v13 = vsel %vm4648_vm1, %v6251_v35, %v4647_v23  ;;  %v4958_v23 = vld [vmem:[%s9071_s7 + $0x30] sm:$0xff] }
0x12ef   :  { %v4495_v30 = vsel %vm4487_vm9, %v4486_v8, %v4334_v51 }
0x12f0   :  { %v4619_v12 = vsel %vm103_vm0, %v4609_v40, 0.0 }
0x12f1   :  { %4620 = vadd.xlane.f32.xlu1 %v4619_v12 }
0x12f4   :  { %v4366_v36 = vpop.permute.xlu0 %4365 }
0x12f5   :  { %v4504_v9 = vsel %vm4496_vm14, %v4495_v30, %v4366_v36 }
0x12f6   :  { %v4513_v42 = vsel %vm4505_vm15, %v4504_v9, %v4398_v22 }
0x12f7   :  { %v4522_v2 = vsel %vm4514_vm5, %v4513_v42, %v4430_v57 }
0x12fc   :  { %v4462_v27 = vpop.permute.xlu0 %4461 }
0x12fd   :  { %v4531_v48 = vsel %vm4523_vm6, %v4522_v2, %v4462_v27 }
0x12fe   :  { %5801 = vmatmul.msk.f32.gmra.mxu3 %vm103_vm0, %v4531_v48 }
0x1341   :  { %v4597_v7 = vpop.f32.mrf.mxu3 }
0x1342   :  { %v4598_v47 = vadd.f32 %v8383_v20, %v4597_v7 }
0x1344   :  { %v4613_v32 = vadd.f32 %v6318_v19, %v4598_v47 }
0x1346   :  { %v4631_v61 = vsel %vm103_vm0, %v4613_v32, 0.0 }
0x1351   :  { %v4588_v26 = vpop.f32.mrf.mxu2 }
0x1352   :  { %v4589_v55 = vadd.f32 %v8383_v20, %v4588_v26 }
0x1354   :  { %v4610_v46 = vadd.f32 %v6317_v5, %v4589_v55 }
0x1356   :  { %v4622_v37 = vsel %vm103_vm0, %v4610_v46, 0.0 }
0x1357   :  { %4623 = vadd.xlane.f32.xlu2 %v4622_v37  ;;  %v4966_v37 = vld [vmem:[%s9071_s7 + $0x70] sm:$0xff] }
0x1358   :  { %5006 = vmatpush.msrb.mxu3 %v4966_v37 }
0x1359   :  { %v4591_v34 = vpop.f32.mrf.mxu2 }
0x135a   :  { %v4592_v21 = vadd.f32 %v8383_v20, %v4591_v34  ;;  %v4600_v11 = vpop.f32.mrf.mxu3  ;;  %v4964_v34 = vld [vmem:[%s9071_s7 + $0x60] sm:$0xff] }
0x135b   :  { %v4601_v16 = vadd.f32 %v8383_v20, %v4600_v11  ;;  %v4962_v11 = vld [vmem:[%s9071_s7 + $0x50] sm:$0xff]  ;;  %5007 = vmatpush.msrb.mxu3 %v4964_v34 }
0x135c   :  { %v4611_v63 = vadd.f32 %v6319_v39, %v4592_v21 }
0x135d   :  { %v4614_v54 = vadd.f32 %v6320_v49, %v4601_v16  ;;  %v4960_v16 = vld [vmem:[%s9071_s7 + $0x40] sm:$0xff]  ;;  %5008 = vmatpush.msrb.mxu3 %v4962_v11 }
0x135e   :  { %v4625_v44 = vsel %vm103_vm0, %v4611_v63, 0.0 }
0x135f   :  { %4626 = vadd.xlane.f32.xlu0 %v4625_v44  ;;  %4632 = vadd.xlane.f32.xlu2 %v4631_v61  ;;  %v4634_v10 = vsel %vm103_vm0, %v4614_v54, 0.0  ;;  %v4961_v44 = vld [vmem:[%s9071_s7 + $0x48] sm:$0xff] }
0x1360   :  { %5009 = vmatpush.msrb.mxu3 %v4960_v16 }
0x1361   :  { %v4594_v28 = vpop.f32.mrf.mxu2 }
0x1362   :  { %v4595_v17 = vadd.f32 %v8383_v20, %v4594_v28  ;;  %v4959_v28 = vld [vmem:[%s9071_s7 + $0x38] sm:$0xff]  ;;  %5010 = vmatpush.msrb.mxu3 %v4958_v23 }
0x1364   :  { %v4612_v59 = vadd.f32 %v6321_v45, %v4595_v17  ;;  %v4621_v38 = vpop.xlane.xlu1 %4620  ;;  %v4957_v17 = vld [vmem:[%s9071_s7 + $0x28] sm:$0xff] }
0x1365   :  { %v4650_v41 = vmul.f32 %v8419_v13, %v4621_v38 }
0x1366   :  { %v4628_v31 = vsel %vm103_vm0, %v4612_v59, 0.0 }
0x1367   :  { %4629 = vadd.xlane.f32.xlu1 %v4628_v31  ;;  %4635 = vadd.xlane.f32.xlu0 %v4634_v10  ;;  %v8427_v62 = vsub.f32 %v4609_v40, %v4650_v41  ;;  %v4955_v41 = vld [vmem:[%s9071_s7 + $0x18] sm:$0xff]  ;;  %v4952_v10 = vld [vmem:[%s9071_s7] sm:$0xff] }
0x1369   :  { %v4666_v4 = vmul.f32 %v8427_v62, %v8427_v62 }
0x136b   :  { %v4603_v24 = vpop.f32.mrf.mxu3  ;;  %v4674_v29 = vsel %vm103_vm0, %v4666_v4, 0.0  ;;  %v4953_v4 = vld [vmem:[%s9071_s7 + $0x8] sm:$0xff] }
0x136c   :  { %v4604_v18 = vadd.f32 %v8383_v20, %v4603_v24 }
0x136e   :  { %v4615_v43 = vadd.f32 %v6322_v60, %v4604_v18 }
0x136f   :  { %4675 = vadd.xlane.f32.xlu1 %v4674_v29 }
0x1370   :  { %v4637_v52 = vsel %vm103_vm0, %v4615_v43, 0.0 }
0x1371   :  { %4638 = vadd.xlane.f32.xlu2 %v4637_v52 }
0x1381   :  { %v4606_v33 = vpop.f32.mrf.mxu3 }
0x1382   :  { %v4607_v14 = vadd.f32 %v8383_v20, %v4606_v33 }
0x1384   :  { %v8441_v3 = vadd.f32 %v6323_v50, %v4607_v14 }
0x1386   :  { %v4640_v6 = vsel %vm103_vm0, %v8441_v3, 0.0 }
0x1387   :  { %4641 = vadd.xlane.f32.xlu1 %v4640_v6 }
0x13ca   :  { %v4624_v15 = vpop.xlane.xlu2 %4623 }
0x13cb   :  { %v4651_v40 = vmul.f32 %v8419_v13, %v4624_v15 }
0x13cd   :  { %v8446_v53 = vsub.f32 %v4610_v46, %v4651_v40 }
0x13cf   :  { %v4667_v25 = vmul.f32 %v8446_v53, %v8446_v53 }
0x13d1   :  { %v4677_v20 = vsel %vm103_vm0, %v4667_v25, 0.0 }
0x13d2   :  { %v4633_v51 = vpop.xlane.xlu2 %4632  ;;  %v4627_v12 = vpop.xlane.xlu0 %4626  ;;  %4678 = vadd.xlane.f32.xlu0 %v4677_v20 }
0x13d3   :  { %v4654_v8 = vmul.f32 %v8419_v13, %v4633_v51  ;;  %v4652_v36 = vmul.f32 %v8419_v13, %v4627_v12 }
0x13d5   :  { %v8453_v30 = vsub.f32 %v4613_v32, %v4654_v8  ;;  %v8455_v9 = vsub.f32 %v4611_v63, %v4652_v36  ;;  %v4965_v32 = vld [vmem:[%s9071_s7 + $0x68] sm:$0xff] }
0x13d6   :  { %5048 = vmatpush.msra.mxu0 %v4965_v32 }
0x13d7   :  { %v4668_v22 = vmul.f32 %v8455_v9, %v8455_v9  ;;  %v4670_v42 = vmul.f32 %v8453_v30, %v8453_v30 }
0x13d8   :  { %5049 = vmatpush.msra.mxu0 %v4963_v1 }
0x13d9   :  { %v4680_v57 = vsel %vm103_vm0, %v4668_v22, 0.0  ;;  %v4686_v27 = vsel %vm103_vm0, %v4670_v42, 0.0 }
0x13da   :  { %v4636_v2 = vpop.xlane.xlu0 %4635  ;;  %4681 = vadd.xlane.f32.xlu2 %v4680_v57  ;;  %4687 = vadd.xlane.f32.xlu1 %v4686_v27  ;;  %v4630_v48 = vpop.xlane.xlu1 %4629 }
0x13db   :  { %v4655_v56 = vmul.f32 %v8419_v13, %v4636_v2  ;;  %v4653_v35 = vmul.f32 %v8419_v13, %v4630_v48  ;;  %5050 = vmatpush.msra.mxu0 %v4961_v44 }
0x13dd   :  { %v8465_v26 = vsub.f32 %v4614_v54, %v4655_v56  ;;  %v8467_v55 = vsub.f32 %v4612_v59, %v4653_v35  ;;  %v4956_v54 = vld [vmem:[%s9071_s7 + $0x20] sm:$0xff]  ;;  %5051 = vmatpush.msra.mxu0 %v4959_v28  ;;  %v4954_v59 = vld [vmem:[%s9071_s7 + $0x10] sm:$0xff]  ;;  %v5127_v28 = vld [vmem:[%s9073_s9 + $0xf8] sm:$0xff]  ;;  %s6420_s7 = smov [#allocation7]  }
0x13de   :  { %5011 = vmatpush.msrb.mxu3 %v4956_v54  ;;  %v8543_v56 = vld [vmem:[#allocation5] ss:$0 sm:$0xff]  ;;  %5173 = vmatpush.msrb.mxu2 %v5127_v28  ;;  %s5570_s18 = sshll.u32 %s6420_s7, 4  ;;  %s5571_s18 = int_to_ptr.vmem [resolvable:$true] %s5570_s18 }
0x13df   :  { %v4671_v7 = vmul.f32 %v8465_v26, %v8465_v26  ;;  %v4669_v58 = vmul.f32 %v8467_v55, %v8467_v55  ;;  %5052 = vmatpush.msra.mxu0 %v4957_v17 }
0x13e0   :  { %5012 = vmatpush.msrb.mxu3 %v4954_v59 }
0x13e1   :  { %v4689_v5 = vsel %vm103_vm0, %v4671_v7, 0.0  ;;  %v4683_v46 = vsel %vm103_vm0, %v4669_v58, 0.0  ;;  %5053 = vmatpush.msra.mxu0 %v4955_v41  ;;  %v5126_v41 = vld [vmem:[%s9073_s9 + $0xf0] sm:$0xff] }
0x13e2   :  { %4690 = vadd.xlane.f32.xlu2 %v4689_v5  ;;  %4684 = vadd.xlane.f32.xlu0 %v4683_v46  ;;  %v4676_v47 = vpop.xlane.xlu1 %4675 }
0x13e3   :  { %v4698_v19 = vmul.f32 %v4676_v47, %v8419_v13  ;;  %5013 = vmatpush.msrb.mxu3 %v4952_v10  ;;  %5054 = vmatpush.msra.mxu0 %v4953_v4 }
0x13e4   :  { %v4639_v21 = vpop.xlane.xlu2 %4638  ;;  %5174 = vmatpush.msrb.mxu2 %v5126_v41 }
0x13e5   :  { %v4706_v39 = vadd.f32 1e-05, %v4698_v19  ;;  %v4656_v63 = vmul.f32 %v8419_v13, %v4639_v21 }
0x13e7   :  { %6252 = vrsqrt.f32 %v4706_v39  ;;  %v8501_v61 = vsub.f32 %v4615_v43, %v4656_v63  ;;  %vm4721_vm3 = vcmp.eq.f32.partialorder %v4706_v39, inf  ;;  %v4724_v52 = vand.u32 2147483648, %v4706_v39 }
0x13e8   :  { %vm4723_vm7 = vcmp.eq.f32.partialorder %v4706_v39, 0.0 }
0x13e9   :  { %v4672_v49 = vmul.f32 %v8501_v61, %v8501_v61 }
0x13eb   :  { %v4692_v45 = vsel %vm103_vm0, %v4672_v49, 0.0 }
0x13ec   :  { %4693 = vadd.xlane.f32.xlu0 %v4692_v45 }
0x13ed   :  { %v6253_v38 = vpop.eup %6252 }
0x13ee   :  { %v4715_v31 = vmul.f32 %v6253_v38, %v4706_v39 }
0x13f0   :  { %v4716_v24 = vmul.f32 %v6253_v38, %v4715_v31 }
0x13f2   :  { %v4717_v18 = vmul.f32 0.5, %v4716_v24  ;;  %v5125_v24 = vld [vmem:[%s9073_s9 + $0xe8] sm:$0xff] }
0x13f3   :  { %5175 = vmatpush.msrb.mxu2 %v5125_v24  ;;  %v5118_v24 = vld [vmem:[%s9073_s9 + $0xb0] sm:$0xff] }
0x13f4   :  { %v4718_v60 = vsub.f32 1.5, %v4717_v18 }
0x13f6   :  { %v4719_v43 = vmul.f32 %v6253_v38, %v4718_v60 }
0x13f8   :  { %v4720_v29 = vmul.f32 %v4719_v43, %v4706_v39 }
0x13fa   :  { %v4722_v33 = vsel %vm4721_vm3, %v4706_v39, %v4720_v29  ;;  %v4642_v14 = vpop.xlane.xlu1 %4641 }
0x13fb   :  { %v4725_v50 = vsel %vm4723_vm7, %v4724_v52, %v4722_v33  ;;  %v4657_v6 = vmul.f32 %v8419_v13, %v4642_v14  ;;  %v5111_v52 = vld [vmem:[%s9073_s9 + $0x78] sm:$0xff]  ;;  %v5124_v33 = vld [vmem:[%s9073_s9 + $0xe0] sm:$0xff] }
0x13fc   :  { %6254 = vrcp.f32 %v4725_v50  ;;  %v4821_v8 = vand.u32 2147483648, %v4725_v50  ;;  %v4819_v22 = vand.u32 2147483647, %v4725_v50  ;;  %vm4815_vm2 = vweird.f32 %v4725_v50  ;;  %5132 = vmatpush.msrb.mxu1 %v5111_v52  ;;  %5176 = vmatpush.msrb.mxu2 %v5124_v33  ;;  %v5117_v52 = vld [vmem:[%s9073_s9 + $0xa8] sm:$0xff]  ;;  %v5103_v33 = vld [vmem:[%s9073_s9 + $0x38] sm:$0xff] }
0x13fd   :  { %v8532_v15 = vsub.f32 %v8441_v3, %v4657_v6  ;;  %v8540_v3 = vld [vmem:[%s9069_s5] ss:$0 sm:$0xff]  ;;  %s6421_s5 = smov 128  }
0x13fe   :  { %v4822_v57 = vor.u32 1.1754944e-38, %v4821_v8  ;;  %vm4820_vm9 = vcmp.eq.f32.partialorder %v4819_v22, 8.507059e+37 }
0x13ff   :  { %v4673_v40 = vmul.f32 %v8532_v15, %v8532_v15 }
0x1401   :  { %v4695_v25 = vsel %vm103_vm0, %v4673_v40, 0.0  ;;  %v5110_v40 = vld [vmem:[%s9073_s9 + $0x70] sm:$0xff] }
0x1402   :  { %v6255_v20 = vpop.eup %6254  ;;  %4696 = vadd.xlane.f32.xlu1 %v4695_v25  ;;  %v5123_v25 = vld [vmem:[%s9073_s9 + $0xd8] sm:$0xff]  ;;  %5133 = vmatpush.msrb.mxu1 %v5110_v40 }
0x1403   :  { %v4811_v51 = vmul.f32 %v6255_v20, %v4725_v50  ;;  %vm4816_vm8 = vweird.f32 %v6255_v20  ;;  %5177 = vmatpush.msrb.mxu2 %v5123_v25  ;;  %v5116_v25 = vld [vmem:[%s9073_s9 + $0xa0] sm:$0xff] }
0x1404   :  { %vm4817_vm4 = vmor %vm4815_vm2, %vm4816_vm8 }
0x1405   :  { %v4812_v12 = vsub.f32 1.0, %v4811_v51 }
0x1407   :  { %v4813_v36 = vmul.f32 %v6255_v20, %v4812_v12 }
0x1409   :  { %v4814_v42 = vadd.f32 %v6255_v20, %v4813_v36 }
0x140b   :  { %v4818_v27 = vsel %vm4817_vm4, %v6255_v20, %v4814_v42 }
0x140c   :  { %v4823_v2 = vsel %vm4820_vm9, %v4822_v57, %v4818_v27  ;;  %v5109_v57 = vld [vmem:[%s9073_s9 + $0x68] sm:$0xff]  ;;  %v5122_v27 = vld [vmem:[%s9073_s9 + $0xd0] sm:$0xff] }
0x140d   :  { %v4824_v48 = vmul.f32 %v4823_v2, %v8427_v62  ;;  %5134 = vmatpush.msrb.mxu1 %v5109_v57  ;;  %5178 = vmatpush.msrb.mxu2 %v5122_v27 }
0x140f   :  { %v4933_v35 = vmul.f32 %v8540_v3, %v4824_v48 }
0x1411   :  { %v8547_v7 = vadd.f32 %v8543_v56, %v4933_v35 }
0x1413   :  { %5802 = vmatmul.msk.f32.vlgmr.msrb.gmra.mxu3 %vm103_vm0, %v8547_v7  ;;  %5810 = vmatmul.msk.f32.vlgmr.msra.gmra.mxu0 %vm103_vm0, %v8547_v7 }
0x1445   :  { %v4679_v58 = vpop.xlane.xlu0 %4678 }
0x1446   :  { %v4699_v5 = vmul.f32 %v4679_v58, %v8419_v13 }
0x1448   :  { %v4707_v46 = vadd.f32 1e-05, %v4699_v5 }
0x144a   :  { %6256 = vrsqrt.f32 %v4707_v46  ;;  %vm4733_vm10 = vcmp.eq.f32.partialorder %v4707_v46, inf  ;;  %v4736_v18 = vand.u32 2147483648, %v4707_v46  ;;  %vm4735_vm11 = vcmp.eq.f32.partialorder %v4707_v46, 0.0 }
0x144d   :  { %v4682_v47 = vpop.xlane.xlu2 %4681  ;;  %v4688_v62 = vpop.xlane.xlu1 %4687 }
0x144e   :  { %v4700_v37 = vmul.f32 %v4682_v47, %v8419_v13  ;;  %v4702_v0 = vmul.f32 %v4688_v62, %v8419_v13  ;;  %v5121_v47 = vld [vmem:[%s9073_s9 + $0xc8] sm:$0xff] }
0x144f   :  { %5179 = vmatpush.msrb.mxu2 %v5121_v47 }
0x1450   :  { %v6257_v34 = vpop.eup %6256  ;;  %v8556_v19 = vadd.f32 1e-05, %v4700_v37  ;;  %v8558_v32 = vadd.f32 1e-05, %v4702_v0 }
0x1451   :  { %v4727_v21 = vmul.f32 %v6257_v34, %v4707_v46 }
0x1452   :  { %6258 = vrsqrt.f32 %v8556_v19  ;;  %vm4745_vm12 = vcmp.eq.f32.partialorder %v8556_v19, inf  ;;  %vm4769_vm13 = vcmp.eq.f32.partialorder %v8558_v32, inf  ;;  %vm4747_vm14 = vcmp.eq.f32.partialorder %v8556_v19, 0.0 }
0x1453   :  { %v4728_v11 = vmul.f32 %v6257_v34, %v4727_v21  ;;  %6260 = vrsqrt.f32 %v8558_v32  ;;  %vm4771_vm15 = vcmp.eq.f32.partialorder %v8558_v32, 0.0 }
0x1455   :  { %v4729_v1 = vmul.f32 0.5, %v4728_v11  ;;  %v4691_v39 = vpop.xlane.xlu2 %4690  ;;  %v4685_v63 = vpop.xlane.xlu0 %4684  ;;  %v5107_v11 = vld [vmem:[%s9073_s9 + $0x58] sm:$0xff] }
0x1456   :  { %v4703_v16 = vmul.f32 %v4691_v39, %v8419_v13  ;;  %v4701_v44 = vmul.f32 %v4685_v63, %v8419_v13 }
0x1457   :  { %v4730_v23 = vsub.f32 1.5, %v4729_v1  ;;  %v5120_v1 = vld [vmem:[%s9073_s9 + $0xc0] sm:$0xff] }
0x1458   :  { %v6259_v49 = vpop.eup %6258  ;;  %v8567_v54 = vadd.f32 1e-05, %v4703_v16  ;;  %v8569_v17 = vadd.f32 1e-05, %v4701_v44  ;;  %5180 = vmatpush.msrb.mxu2 %v5120_v1  ;;  %v4772_v44 = vand.u32 2147483648, %v8558_v32 }
0x1459   :  { %v6261_v45 = vpop.eup %6260  ;;  %v4731_v59 = vmul.f32 %v6257_v34, %v4730_v23  ;;  %v4739_v38 = vmul.f32 %v6259_v49, %v8556_v19  ;;  %v4748_v34 = vand.u32 2147483648, %v8556_v19 }
0x145a   :  { %v4763_v31 = vmul.f32 %v6261_v45, %v8558_v32  ;;  %6262 = vrsqrt.f32 %v8567_v54  ;;  %vm4757_vm6 = vcmp.eq.f32.partialorder %v8569_v17, inf  ;;  %vm4759_vm7 = vcmp.eq.f32.partialorder %v8569_v17, 0.0 }
0x145b   :  { %v4732_v10 = vmul.f32 %v4731_v59, %v4707_v46  ;;  %v4740_v4 = vmul.f32 %v6259_v49, %v4739_v38  ;;  %6264 = vrsqrt.f32 %v8569_v17  ;;  %vm4781_vm2 = vcmp.eq.f32.partialorder %v8567_v54, inf }
0x145c   :  { %v4764_v60 = vmul.f32 %v6261_v45, %v4763_v31  ;;  %vm4783_vm4 = vcmp.eq.f32.partialorder %v8567_v54, 0.0 }
0x145d   :  { %v4741_v43 = vmul.f32 0.5, %v4740_v4  ;;  %v4734_v29 = vsel %vm4733_vm10, %v4707_v46, %v4732_v10  ;;  %v5108_v46 = vld [vmem:[%s9073_s9 + $0x60] sm:$0xff]  ;;  %v5105_v4 = vld [vmem:[%s9073_s9 + $0x48] sm:$0xff] }
0x145e   :  { %v4765_v14 = vmul.f32 0.5, %v4764_v60  ;;  %v8587_v50 = vsel %vm4735_vm11, %v4736_v18, %v4734_v29  ;;  %5135 = vmatpush.msrb.mxu1 %v5108_v46  ;;  %v5104_v29 = vld [vmem:[%s9073_s9 + $0x40] sm:$0xff]  ;;  %v4784_v46 = vand.u32 2147483648, %v8567_v54 }
0x145f   :  { %v4742_v6 = vsub.f32 1.5, %v4741_v43  ;;  %6266 = vrcp.f32 %v8587_v50  ;;  %v4694_v12 = vpop.xlane.xlu0 %4693  ;;  %v4834_v31 = vand.u32 2147483647, %v8587_v50  ;;  %v4836_v10 = vand.u32 2147483648, %v8587_v50 }
0x1460   :  { %v6263_v20 = vpop.eup %6262  ;;  %v4766_v51 = vsub.f32 1.5, %v4765_v14  ;;  %v4704_v42 = vmul.f32 %v4694_v12, %v8419_v13  ;;  %5136 = vmatpush.msrb.mxu1 %v5107_v11  ;;  %vm4830_vm1 = vweird.f32 %v8587_v50 }
0x1461   :  { %v6265_v8 = vpop.eup %6264  ;;  %v4743_v36 = vmul.f32 %v6259_v49, %v4742_v6  ;;  %v4775_v22 = vmul.f32 %v6263_v20, %v8567_v54  ;;  %v5106_v49 = vld [vmem:[%s9073_s9 + $0x50] sm:$0xff]  ;;  %v4837_v12 = vor.u32 1.1754944e-38, %v4836_v10  ;;  %vm4835_vm8 = vcmp.eq.f32.partialorder %v4834_v31, 8.507059e+37  ;;  %v5112_v10 = vld [vmem:[%s9073_s9 + $0x80] sm:$0xff] }
0x1462   :  { %v4767_v2 = vmul.f32 %v6261_v45, %v4766_v51  ;;  %v4751_v48 = vmul.f32 %v6265_v8, %v8569_v17  ;;  %v8606_v5 = vadd.f32 1e-05, %v4704_v42  ;;  %v5119_v45 = vld [vmem:[%s9073_s9 + $0xb8] sm:$0xff]  ;;  %5137 = vmatpush.msrb.mxu1 %v5106_v49  ;;  %v4760_v51 = vand.u32 2147483648, %v8569_v17 }
0x1463   :  { %v4744_v35 = vmul.f32 %v4743_v36, %v8556_v19  ;;  %v4776_v58 = vmul.f32 %v6263_v20, %v4775_v22  ;;  %5181 = vmatpush.msrb.mxu2 %v5119_v45 }
0x1464   :  { %v4768_v62 = vmul.f32 %v4767_v2, %v8558_v32  ;;  %v4752_v37 = vmul.f32 %v6265_v8, %v4751_v48  ;;  %6268 = vrsqrt.f32 %v8606_v5  ;;  %5138 = vmatpush.msrb.mxu1 %v5105_v4  ;;  %v5102_v2 = vld [vmem:[%s9073_s9 + $0x30] sm:$0xff]  ;;  %v5115_v48 = vld [vmem:[%s9073_s9 + $0x98] sm:$0xff]  ;;  %vm4793_vm11 = vcmp.eq.f32.partialorder %v8606_v5, inf }
0x1465   :  { %v8616_v0 = vpop.eup %6266  ;;  %v4777_v21 = vmul.f32 0.5, %v4776_v58  ;;  %v4746_v16 = vsel %vm4745_vm12, %v8556_v19, %v4744_v35  ;;  %5182 = vmatpush.msrb.mxu2 %v5118_v24 }
0x1466   :  { %v4753_v39 = vmul.f32 0.5, %v4752_v37  ;;  %v4826_v63 = vmul.f32 %v8616_v0, %v8587_v50  ;;  %v8632_v28 = vsel %vm4747_vm14, %v4748_v34, %v4746_v16  ;;  %v4770_v59 = vsel %vm4769_vm13, %v8558_v32, %v4768_v62  ;;  %5139 = vmatpush.msrb.mxu1 %v5104_v29 }
0x1467   :  { %v4778_v23 = vsub.f32 1.5, %v4777_v21  ;;  %6270 = vrcp.f32 %v8632_v28  ;;  %v8653_v18 = vsel %vm4771_vm15, %v4772_v44, %v4770_v59  ;;  %vm4831_vm5 = vweird.f32 %v8616_v0  ;;  %5183 = vmatpush.msrb.mxu2 %v5117_v52 }
0x1468   :  { %v4754_v19 = vsub.f32 1.5, %v4753_v39  ;;  %v4827_v38 = vsub.f32 1.0, %v4826_v63  ;;  %6272 = vrcp.f32 %v8653_v18  ;;  %vm4832_vm3 = vmor %vm4830_vm1, %vm4831_vm5  ;;  %5140 = vmatpush.msrb.mxu1 %v5103_v33  ;;  %v4851_v21 = vand.u32 2147483648, %v8632_v28  ;;  %v5101_v39 = vld [vmem:[%s9073_s9 + $0x28] sm:$0xff]  ;;  %v5114_v63 = vld [vmem:[%s9073_s9 + $0x90] sm:$0xff] }
0x1469   :  { %v4779_v41 = vmul.f32 %v6263_v20, %v4778_v23  ;;  %5184 = vmatpush.msrb.mxu2 %v5116_v25  ;;  %v4849_v11 = vand.u32 2147483647, %v8632_v28  ;;  %v5113_v23 = vld [vmem:[%s9073_s9 + $0x88] sm:$0xff]  ;;  %vm4845_vm10 = vweird.f32 %v8632_v28  ;;  %vm4795_vm14 = vcmp.eq.f32.partialorder %v8606_v5, 0.0 }
0x146a   :  { %v4755_v60 = vmul.f32 %v6265_v8, %v4754_v19  ;;  %v4828_v43 = vmul.f32 %v8616_v0, %v4827_v38  ;;  %v6269_v32 = vpop.eup %6268  ;;  %5141 = vmatpush.msrb.mxu1 %v5102_v2  ;;  %v4852_v31 = vor.u32 1.1754944e-38, %v4851_v21  ;;  %vm4875_vm15 = vweird.f32 %v8653_v18 }
0x146b   :  { %v4787_v6 = vmul.f32 %v6269_v32, %v8606_v5  ;;  %v4780_v20 = vmul.f32 %v4779_v41, %v8567_v54  ;;  %5185 = vmatpush.msrb.mxu2 %v5115_v48  ;;  %vm4850_vm13 = vcmp.eq.f32.partialorder %v4849_v11, 8.507059e+37 }
0x146c   :  { %v4756_v14 = vmul.f32 %v4755_v60, %v8569_v17  ;;  %v4829_v40 = vadd.f32 %v8616_v0, %v4828_v43  ;;  %5142 = vmatpush.msrb.mxu1 %v5101_v39  ;;  %v4796_v43 = vand.u32 2147483648, %v8606_v5 }
0x146d   :  { %v8680_v8 = vpop.eup %6270  ;;  %v4788_v36 = vmul.f32 %v6269_v32, %v4787_v6  ;;  %v4782_v37 = vsel %vm4781_vm2, %v8567_v54, %v4780_v20  ;;  %5186 = vmatpush.msrb.mxu2 %v5114_v63  ;;  %v5100_v54 = vld [vmem:[%s9073_s9 + $0x20] sm:$0xff] }
0x146e   :  { %v4833_v50 = vsel %vm4832_vm3, %v8616_v0, %v4829_v40  ;;  %v4758_v22 = vsel %vm4757_vm6, %v8569_v17, %v4756_v14  ;;  %v4841_v57 = vmul.f32 %v8680_v8, %v8632_v28  ;;  %v8696_v35 = vpop.eup %6272  ;;  %vm4846_vm9 = vweird.f32 %v8680_v8  ;;  %v5099_v28 = vld [vmem:[%s9073_s9 + $0x18] sm:$0xff]  ;;  %5143 = vmatpush.msrb.mxu1 %v5100_v54  ;;  %v5098_v14 = vld [vmem:[%s9073_s9 + $0x10] sm:$0xff] }
0x146f   :  { %v4838_v42 = vsel %vm4835_vm8, %v4837_v12, %v4833_v50  ;;  %v8688_v27 = vsel %vm4759_vm7, %v4760_v51, %v4758_v22  ;;  %v4789_v17 = vmul.f32 0.5, %v4788_v36  ;;  %v4871_v62 = vmul.f32 %v8696_v35, %v8653_v18  ;;  %vm4847_vm12 = vmor %vm4845_vm10, %vm4846_vm9  ;;  %5187 = vmatpush.msrb.mxu2 %v5113_v23 }
0x1470   :  { %v4839_v58 = vmul.f32 %v4838_v42, %v8446_v53  ;;  %6274 = vrcp.f32 %v8688_v27  ;;  %v4842_v47 = vsub.f32 1.0, %v4841_v57  ;;  %v8726_v49 = vsel %vm4783_vm4, %v4784_v46, %v4782_v37  ;;  %5144 = vmatpush.msrb.mxu1 %v5099_v28 }
0x1471   :  { %v4790_v0 = vsub.f32 1.5, %v4789_v17  ;;  %v4872_v1 = vsub.f32 1.0, %v4871_v62  ;;  %6276 = vrcp.f32 %v8726_v49  ;;  %5188 = vmatpush.msrb.mxu2 %v5112_v10  ;;  %v4864_v40 = vand.u32 2147483647, %v8688_v27 }
0x1472   :  { %v4934_v34 = vmul.f32 %v8540_v3, %v4839_v58  ;;  %v4843_v53 = vmul.f32 %v8680_v8, %v4842_v47  ;;  %v4866_v25 = vand.u32 2147483648, %v8688_v27  ;;  %vm4876_vm5 = vweird.f32 %v8696_v35  ;;  %5145 = vmatpush.msrb.mxu1 %v5098_v14 }
0x1473   :  { %v4791_v16 = vmul.f32 %v6269_v32, %v4790_v0  ;;  %v4873_v60 = vmul.f32 %v8696_v35, %v4872_v1  ;;  %v4879_v36 = vand.u32 2147483647, %v8653_v18  ;;  %v4881_v50 = vand.u32 2147483648, %v8653_v18  ;;  %vm8785_vm3 = vmor %vm4875_vm15, %vm4876_vm5 }
0x1474   :  { %v8718_v44 = vadd.f32 %v8543_v56, %v4934_v34  ;;  %v4844_v59 = vadd.f32 %v8680_v8, %v4843_v53  ;;  %vm4860_vm1 = vweird.f32 %v8688_v27  ;;  %v4867_v17 = vor.u32 1.1754944e-38, %v4866_v25 }
0x1475   :  { %v4697_v45 = vpop.xlane.xlu1 %4696  ;;  %v4792_v38 = vmul.f32 %v4791_v16, %v8606_v5  ;;  %vm4865_vm8 = vcmp.eq.f32.partialorder %v4864_v40, 8.507059e+37  ;;  %v4882_v62 = vor.u32 1.1754944e-38, %v4881_v50  ;;  %vm4880_vm2 = vcmp.eq.f32.partialorder %v4879_v36, 8.507059e+37 }
0x1476   :  { %v6275_v19 = vpop.eup %6274  ;;  %v4705_v41 = vmul.f32 %v4697_v45, %v8419_v13  ;;  %5803 = vmatmul.msk.f32.gmra.mxu3 %vm103_vm0, %v8718_v44  ;;  %5811 = vmatmul.msk.f32.gmra.mxu0 %vm103_vm0, %v8718_v44  ;;  %v4848_v4 = vsel %vm4847_vm12, %v8680_v8, %v4844_v59  ;;  %v4874_v8 = vadd.f32 %v8696_v35, %v4873_v60  ;;  %vm4890_vm9 = vweird.f32 %v8726_v49 }
0x1477   :  { %v4856_v24 = vmul.f32 %v6275_v19, %v8688_v27  ;;  %v4853_v29 = vsel %vm4850_vm13, %v4852_v31, %v4848_v4  ;;  %v4794_v6 = vsel %vm4793_vm11, %v8606_v5, %v4792_v38  ;;  %v6277_v20 = vpop.eup %6276  ;;  %vm4861_vm6 = vweird.f32 %v6275_v19  ;;  %v5096_v5 = vld [vmem:[%s9073_s9] sm:$0xff] }
0x1478   :  { %v8750_v32 = vadd.f32 1e-05, %v4705_v41  ;;  %v4854_v52 = vmul.f32 %v4853_v29, %v8455_v9  ;;  %v5097_v9 = vld [vmem:[%s9073_s9 + $0x8] sm:$0xff]  ;;  %v4886_v22 = vmul.f32 %v6277_v20, %v8726_v49  ;;  %v8775_v42 = vsel %vm4795_vm14, %v4796_v43, %v4794_v6  ;;  %vm4862_vm7 = vmor %vm4860_vm1, %vm4861_vm6 }
0x1479   :  { %v4857_v33 = vsub.f32 1.0, %v4856_v24  ;;  %5146 = vmatpush.msrb.mxu1 %v5097_v9  ;;  %v4878_v27 = vsel %vm8785_vm3, %v8696_v35, %v4874_v8  ;;  %vm4891_vm4 = vweird.f32 %v6277_v20  ;;  %v4896_v35 = vand.u32 2147483648, %v8726_v49 }
0x147a   :  { %6278 = vrsqrt.f32 %v8750_v32  ;;  %v4935_v51 = vmul.f32 %v8540_v3, %v4854_v52  ;;  %v4887_v58 = vsub.f32 1.0, %v4886_v22  ;;  %v4883_v21 = vsel %vm4880_vm2, %v4882_v62, %v4878_v27  ;;  %vm4892_vm10 = vmor %vm4890_vm9, %vm4891_vm4 }
0x147b   :  { %v4858_v12 = vmul.f32 %v6275_v19, %v4857_v33  ;;  %6280 = vrcp.f32 %v8775_v42  ;;  %5147 = vmatpush.msrb.mxu1 %v5096_v5  ;;  %v4894_v23 = vand.u32 2147483647, %v8726_v49  ;;  %v4897_v41 = vor.u32 1.1754944e-38, %v4896_v35 }
0x147c   :  { %v8778_v57 = vadd.f32 %v8543_v56, %v4935_v51  ;;  %v4888_v37 = vmul.f32 %v6277_v20, %v4887_v58  ;;  %vm4805_vm12 = vcmp.eq.f32.partialorder %v8750_v32, inf  ;;  %v4808_v60 = vand.u32 2147483648, %v8750_v32 }
0x147d   :  { %v4859_v2 = vadd.f32 %v6275_v19, %v4858_v12  ;;  %vm4895_vm11 = vcmp.eq.f32.partialorder %v4894_v23, 8.507059e+37  ;;  %vm4905_vm14 = vweird.f32 %v8775_v42  ;;  %v4911_v43 = vand.u32 2147483648, %v8775_v42 }
0x147e   :  { %5804 = vmatmul.msk.f32.gmra.mxu3 %vm103_vm0, %v8778_v57  ;;  %5812 = vmatmul.msk.f32.gmra.mxu0 %vm103_vm0, %v8778_v57  ;;  %v4889_v39 = vadd.f32 %v6277_v20, %v4888_v37  ;;  %vm4807_vm15 = vcmp.eq.f32.partialorder %v8750_v32, 0.0  ;;  %v4909_v33 = vand.u32 2147483647, %v8775_v42 }
0x147f   :  { %v4863_v18 = vsel %vm4862_vm7, %v6275_v19, %v4859_v2  ;;  %v4968_v19 = vld [vmem:[%s9072_s8] sm:$0x3]  ;;  %v4912_v9 = vor.u32 1.1754944e-38, %v4911_v43 }
0x1480   :  { %v6279_v46 = vpop.eup %6278  ;;  %v4868_v47 = vsel %vm4865_vm8, %v4867_v17, %v4863_v18  ;;  %v4893_v38 = vsel %vm4892_vm10, %v6277_v20, %v4889_v39  ;;  %v8819_v49 = vperm.slane %v4968_v19, 1  ;;  %vm4910_vm6 = vcmp.eq.f32.partialorder %v4909_v33, 8.507059e+37  ;;  %v8879_v33 = vld [vmem:[%s9074_s10] ss:$0 sm:$0xff] }
0x1481   :  { %v4799_v0 = vmul.f32 %v6279_v46, %v8750_v32  ;;  %v4869_v34 = vmul.f32 %v4868_v47, %v8467_v55  ;;  %v6281_v53 = vpop.eup %6280  ;;  %v4884_v55 = vmul.f32 %v4883_v21, %v8453_v30  ;;  %v4898_v10 = vsel %vm4895_vm11, %v4897_v41, %v4893_v38 }
0x1482   :  { %v4901_v63 = vmul.f32 %v6281_v53, %v8775_v42  ;;  %vm4906_vm13 = vweird.f32 %v6281_v53  ;;  %v4899_v52 = vmul.f32 %v4898_v10, %v8465_v26 }
0x1483   :  { %v4800_v11 = vmul.f32 %v6279_v46, %v4799_v0  ;;  %v4936_v1 = vmul.f32 %v8540_v3, %v4869_v34  ;;  %v4937_v30 = vmul.f32 %v8540_v3, %v4884_v55  ;;  %vm4907_vm5 = vmor %vm4905_vm14, %vm4906_vm13 }
0x1484   :  { %v4902_v45 = vsub.f32 1.0, %v4901_v63  ;;  %v4938_v26 = vmul.f32 %v8540_v3, %v4899_v52 }
0x1485   :  { %v4801_v16 = vmul.f32 0.5, %v4800_v11  ;;  %v8807_v54 = vadd.f32 %v8543_v56, %v4936_v1  ;;  %v8828_v29 = vadd.f32 %v8543_v56, %v4937_v30 }
0x1486   :  { %v4903_v31 = vmul.f32 %v6281_v53, %v4902_v45  ;;  %v8842_v36 = vadd.f32 %v8543_v56, %v4938_v26 }
0x1487   :  { %v4802_v59 = vsub.f32 1.5, %v4801_v16  ;;  %5805 = vmatmul.msk.f32.gmra.mxu3 %vm103_vm0, %v8807_v54  ;;  %5813 = vmatmul.msk.f32.gmra.mxu0 %vm103_vm0, %v8807_v54 }
0x1488   :  { %v4904_v24 = vadd.f32 %v6281_v53, %v4903_v31 }
0x1489   :  { %v4803_v28 = vmul.f32 %v6279_v46, %v4802_v59 }
0x148a   :  { %v4908_v40 = vsel %vm4907_vm5, %v6281_v53, %v4904_v24 }
0x148b   :  { %v4804_v4 = vmul.f32 %v4803_v28, %v8750_v32  ;;  %v4913_v51 = vsel %vm4910_vm6, %v4912_v9, %v4908_v40 }
0x148c   :  { %v4914_v50 = vmul.f32 %v4913_v51, %v8501_v61 }
0x148d   :  { %v4806_v14 = vsel %vm4805_vm12, %v8750_v32, %v4804_v4  ;;  %v8839_v32 = vperm.slane %v4968_v19, 0 }
0x148e   :  { %v4809_v6 = vsel %vm4807_vm15, %v4808_v60, %v4806_v14  ;;  %v4939_v17 = vmul.f32 %v8540_v3, %v4914_v50 }
0x148f   :  { %5806 = vmatmul.msk.f32.gmra.mxu3 %vm103_vm0, %v8828_v29  ;;  %5814 = vmatmul.msk.f32.gmra.mxu0 %vm103_vm0, %v8828_v29  ;;  %6282 = vrcp.f32 %v4809_v6  ;;  %v4926_v58 = vand.u32 2147483648, %v4809_v6  ;;  %v4924_v27 = vand.u32 2147483647, %v4809_v6  ;;  %vm4920_vm3 = vweird.f32 %v4809_v6 }
0x1490   :  { %v5056_v25 = vpop.f32.mrf.mxu0  ;;  %v8852_v46 = vadd.f32 %v8543_v56, %v4939_v17 }
0x1491   :  { %v5057_v20 = vadd.f32 %v5056_v25, %v8819_v49  ;;  %v4927_v47 = vor.u32 1.1754944e-38, %v4926_v58  ;;  %vm4925_vm8 = vcmp.eq.f32.partialorder %v4924_v27, 8.507059e+37 }
0x1493   :  { %v5081_v12 = vmax.f32 %v5057_v20, 0.0 }
0x1495   :  { %v6283_v8 = vpop.eup %6282  ;;  %5189 = vmatmul.f32.vlgmr.msrb.gmra.mxu2 %v5081_v12 }
0x1496   :  { %v5015_v22 = vpop.f32.mrf.mxu3  ;;  %v4916_v42 = vmul.f32 %v6283_v8, %v4809_v6  ;;  %vm4921_vm1 = vweird.f32 %v6283_v8 }
0x1497   :  { %v5016_v2 = vadd.f32 %v5015_v22, %v8839_v32  ;;  %5807 = vmatmul.msk.f32.gmra.mxu3 %vm103_vm0, %v8842_v36  ;;  %5815 = vmatmul.msk.f32.gmra.mxu0 %vm103_vm0, %v8842_v36  ;;  %vm4922_vm7 = vmor %vm4920_vm3, %vm4921_vm1 }
0x1498   :  { %v4917_v48 = vsub.f32 1.0, %v4916_v42 }
0x1499   :  { %v5080_v5 = vmax.f32 %v5016_v2, 0.0 }
0x149a   :  { %v4918_v18 = vmul.f32 %v6283_v8, %v4917_v48 }
0x149b   :  { %5148 = vmatmul.f32.vlgmr.msrb.gmra.mxu1 %v5080_v5 }
0x149c   :  { %v4919_v61 = vadd.f32 %v6283_v8, %v4918_v18 }
0x149e   :  { %v4923_v62 = vsel %vm4922_vm7, %v6283_v8, %v4919_v61 }
0x149f   :  { %5808 = vmatmul.msk.f32.gmra.mxu3 %vm103_vm0, %v8852_v46  ;;  %5816 = vmatmul.msk.f32.gmra.mxu0 %vm103_vm0, %v8852_v46  ;;  %v4928_v37 = vsel %vm4925_vm8, %v4927_v47, %v4923_v62 }
0x14a0   :  { %v4929_v0 = vmul.f32 %v4928_v37, %v8532_v15 }
0x14a2   :  { %v4940_v34 = vmul.f32 %v8540_v3, %v4929_v0 }
0x14a4   :  { %v8861_v21 = vadd.f32 %v8543_v56, %v4940_v34 }
0x14a7   :  { %5809 = vmatmul.msk.f32.gmra.mxu3 %vm103_vm0, %v8861_v21  ;;  %5817 = vmatmul.msk.f32.gmra.mxu0 %vm103_vm0, %v8861_v21 }
0x14f3   :  { %v5059_v53 = vpop.f32.mrf.mxu0 }
0x14f4   :  { %v5060_v11 = vadd.f32 %v5059_v53, %v8819_v49 }
0x14f6   :  { %v5083_v1 = vmax.f32 %v5060_v11, 0.0 }
0x14f8   :  { %5192 = vmatmul.f32.gmra.mxu2 %v5083_v1 }
0x14f9   :  { %v5018_v39 = vpop.f32.mrf.mxu3 }
0x14fa   :  { %v5019_v35 = vadd.f32 %v5018_v39, %v8839_v32 }
0x14fb   :  { %v5062_v63 = vpop.f32.mrf.mxu0 }
0x14fc   :  { %v5082_v15 = vmax.f32 %v5019_v35, 0.0  ;;  %v5063_v3 = vadd.f32 %v5062_v63, %v8819_v49 }
0x14fe   :  { %5151 = vmatmul.f32.gmra.mxu1 %v5082_v15  ;;  %v5085_v56 = vmax.f32 %v5063_v3, 0.0 }
0x1500   :  { %5195 = vmatmul.f32.gmra.mxu2 %v5085_v56 }
0x1501   :  { %v5021_v16 = vpop.f32.mrf.mxu3 }
0x1502   :  { %v5022_v55 = vadd.f32 %v5021_v16, %v8839_v32 }
0x1504   :  { %v5065_v23 = vpop.f32.mrf.mxu0  ;;  %v5084_v45 = vmax.f32 %v5022_v55, 0.0 }
0x1505   :  { %v5066_v59 = vadd.f32 %v5065_v23, %v8819_v49 }
0x1506   :  { %5154 = vmatmul.f32.gmra.mxu1 %v5084_v45 }
0x1507   :  { %v5087_v19 = vmax.f32 %v5066_v59, 0.0 }
0x1509   :  { %5198 = vmatmul.f32.gmra.mxu2 %v5087_v19 }
0x150a   :  { %v5024_v38 = vpop.f32.mrf.mxu3 }
0x150b   :  { %v5025_v41 = vadd.f32 %v5024_v38, %v8839_v32 }
0x150c   :  { %v5068_v31 = vpop.f32.mrf.mxu0 }
0x150d   :  { %v5086_v28 = vmax.f32 %v5025_v41, 0.0  ;;  %v5069_v30 = vadd.f32 %v5068_v31, %v8819_v49 }
0x150f   :  { %v5089_v10 = vmax.f32 %v5069_v30, 0.0  ;;  %5157 = vmatmul.f32.gmra.mxu1 %v5086_v28 }
0x1511   :  { %5201 = vmatmul.f32.gmra.mxu2 %v5089_v10 }
0x1512   :  { %v5027_v4 = vpop.f32.mrf.mxu3 }
0x1513   :  { %v5028_v24 = vadd.f32 %v5027_v4, %v8839_v32 }
0x1514   :  { %v5071_v60 = vpop.f32.mrf.mxu0 }
0x1515   :  { %v5088_v43 = vmax.f32 %v5028_v24, 0.0  ;;  %v5072_v52 = vadd.f32 %v5071_v60, %v8819_v49 }
0x1517   :  { %v5091_v14 = vmax.f32 %v5072_v52, 0.0  ;;  %5160 = vmatmul.f32.gmra.mxu1 %v5088_v43 }
0x1518   :  { %v5149_v6 = vpop.f32.mrf.mxu1  ;;  %v5190_v25 = vpop.f32.mrf.mxu2 }
0x1519   :  { %v5150_v40 = vadd.f32 %v8879_v33, %v5149_v6  ;;  %5204 = vmatmul.f32.gmra.mxu2 %v5091_v14 }
0x151a   :  { %v5030_v9 = vpop.f32.mrf.mxu3 }
0x151b   :  { %v5191_v20 = vadd.f32 %v5190_v25, %v5150_v40  ;;  %v5031_v26 = vadd.f32 %v5030_v9, %v8839_v32 }
0x151c   :  { %v5074_v51 = vpop.f32.mrf.mxu0 }
0x151d   :  { %v5214_v12 = vmax.f32 %v5191_v20, 0.0  ;;  %v5090_v8 = vmax.f32 %v5031_v26, 0.0  ;;  %v5075_v50 = vadd.f32 %v5074_v51, %v8819_v49 }
0x151f   :  { %v5222_v22 = vadd.f32 %v5214_v12, %v8547_v7  ;;  %v5093_v42 = vmax.f32 %v5075_v50, 0.0  ;;  %5163 = vmatmul.f32.gmra.mxu1 %v5090_v8 }
0x1521   :  { %5207 = vmatmul.f32.gmra.mxu2 %v5093_v42  ;;  %v5232_v2 = vsel %vm103_vm0, %v5222_v22, 0.0 }
0x1522   :  { %v5033_v48 = vpop.f32.mrf.mxu3  ;;  %5233 = vadd.xlane.f32.xlu2 %v5232_v2 }
0x1523   :  { %v5034_v5 = vadd.f32 %v5033_v48, %v8839_v32 }
0x1524   :  { %v5077_v17 = vpop.f32.mrf.mxu0 }
0x1525   :  { %v5092_v58 = vmax.f32 %v5034_v5, 0.0  ;;  %v5078_v18 = vadd.f32 %v5077_v17, %v8819_v49 }
0x1527   :  { %v5095_v27 = vmax.f32 %v5078_v18, 0.0  ;;  %5166 = vmatmul.f32.gmra.mxu1 %v5092_v58 }
0x1529   :  { %5210 = vmatmul.f32.gmra.mxu2 %v5095_v27 }
0x152a   :  { %v5036_v61 = vpop.f32.mrf.mxu3 }
0x152b   :  { %v5037_v47 = vadd.f32 %v5036_v61, %v8839_v32 }
0x152d   :  { %v5094_v7 = vmax.f32 %v5037_v47, 0.0 }
0x152f   :  { %5169 = vmatmul.f32.gmra.mxu1 %v5094_v7 }
0x157b   :  { %v5152_v62 = vpop.f32.mrf.mxu1  ;;  %v5193_v37 = vpop.f32.mrf.mxu2 }
0x157c   :  { %v5153_v0 = vadd.f32 %v8879_v33, %v5152_v62 }
0x157e   :  { %v5194_v34 = vadd.f32 %v5193_v37, %v5153_v0 }
0x1580   :  { %v5215_v53 = vmax.f32 %v5194_v34, 0.0 }
0x1582   :  { %v5223_v11 = vadd.f32 %v5215_v53, %v8718_v44 }
0x1583   :  { %v5155_v1 = vpop.f32.mrf.mxu1  ;;  %v5196_v39 = vpop.f32.mrf.mxu2 }
0x1584   :  { %v5235_v49 = vsel %vm103_vm0, %v5223_v11, 0.0  ;;  %v5156_v35 = vadd.f32 %v8879_v33, %v5155_v1 }
0x1585   :  { %5236 = vadd.xlane.f32.xlu0 %v5235_v49 }
0x1586   :  { %v5197_v15 = vadd.f32 %v5196_v39, %v5156_v35 }
0x1588   :  { %v5216_v63 = vmax.f32 %v5197_v15, 0.0 }
0x158a   :  { %v5224_v32 = vadd.f32 %v5216_v63, %v8778_v57 }
0x158c   :  { %v5158_v3 = vpop.f32.mrf.mxu1  ;;  %v5199_v56 = vpop.f32.mrf.mxu2  ;;  %v5238_v55 = vsel %vm103_vm0, %v5224_v32, 0.0 }
0x158d   :  { %v5159_v16 = vadd.f32 %v8879_v33, %v5158_v3  ;;  %5239 = vadd.xlane.f32.xlu1 %v5238_v55 }
0x158f   :  { %v5200_v23 = vadd.f32 %v5199_v56, %v5159_v16 }
0x1591   :  { %v5217_v44 = vmax.f32 %v5200_v23, 0.0 }
0x1593   :  { %v5225_v45 = vadd.f32 %v5217_v44, %v8807_v54 }
0x1594   :  { %v5161_v59 = vpop.f32.mrf.mxu1  ;;  %v5202_v19 = vpop.f32.mrf.mxu2 }
0x1595   :  { %v5162_v38 = vadd.f32 %v8879_v33, %v5161_v59  ;;  %v5241_v41 = vsel %vm103_vm0, %v5225_v45, 0.0  ;;  %v5234_v60 = vpop.xlane.xlu2 %5233 }
0x1596   :  { %5242 = vadd.xlane.f32.xlu2 %v5241_v41  ;;  %v5256_v43 = vmul.f32 %v5234_v60, %v8419_v13 }
0x1597   :  { %v5203_v31 = vadd.f32 %v5202_v19, %v5162_v38 }
0x1598   :  { %v8904_v25 = vsub.f32 %v5222_v22, %v5256_v43 }
0x1599   :  { %v5218_v57 = vmax.f32 %v5203_v31, 0.0 }
0x159a   :  { %v5272_v51 = vmul.f32 %v8904_v25, %v8904_v25 }
0x159b   :  { %v5226_v28 = vadd.f32 %v5218_v57, %v8828_v29 }
0x159c   :  { %v5164_v30 = vpop.f32.mrf.mxu1  ;;  %v5205_v10 = vpop.f32.mrf.mxu2  ;;  %v5280_v22 = vsel %vm103_vm0, %v5272_v51, 0.0 }
0x159d   :  { %v5165_v4 = vadd.f32 %v8879_v33, %v5164_v30  ;;  %v5244_v24 = vsel %vm103_vm0, %v5226_v28, 0.0 }
0x159e   :  { %5245 = vadd.xlane.f32.xlu0 %v5244_v24 }
0x159f   :  { %v5206_v54 = vadd.f32 %v5205_v10, %v5165_v4 }
0x15a1   :  { %v5219_v52 = vmax.f32 %v5206_v54, 0.0 }
0x15a3   :  { %v5227_v14 = vadd.f32 %v5219_v52, %v8842_v36 }
0x15a4   :  { %v5167_v6 = vpop.f32.mrf.mxu1  ;;  %v5208_v40 = vpop.f32.mrf.mxu2 }
0x15a5   :  { %v5168_v29 = vadd.f32 %v8879_v33, %v5167_v6  ;;  %v5247_v9 = vsel %vm103_vm0, %v5227_v14, 0.0 }
0x15a6   :  { %5248 = vadd.xlane.f32.xlu1 %v5247_v9 }
0x15a7   :  { %v5209_v20 = vadd.f32 %v5208_v40, %v5168_v29 }
0x15a9   :  { %v5220_v26 = vmax.f32 %v5209_v20, 0.0 }
0x15ab   :  { %v5228_v12 = vadd.f32 %v5220_v26, %v8852_v46 }
0x15ac   :  { %v5170_v8 = vpop.f32.mrf.mxu1  ;;  %v5211_v42 = vpop.f32.mrf.mxu2 }
0x15ad   :  { %v5171_v50 = vadd.f32 %v8879_v33, %v5170_v8  ;;  %v5250_v36 = vsel %vm103_vm0, %v5228_v12, 0.0 }
0x15ae   :  { %5251 = vadd.xlane.f32.xlu2 %v5250_v36  ;;  %5281 = vadd.xlane.f32.xlu1 %v5280_v22  ;;  %v8962_v22 = vld [vmem:[%s9075_s11] ss:$0 sm:$0xff] }
0x15af   :  { %v5212_v2 = vadd.f32 %v5211_v42, %v5171_v50 }
0x15b1   :  { %v5221_v48 = vmax.f32 %v5212_v2, 0.0 }
0x15b3   :  { %v5229_v5 = vadd.f32 %v5221_v48, %v8861_v21  ;;  %v8967_v48 = vld [vmem:[%s9076_s12] ss:$0 sm:$0xff] }
0x15b5   :  { %v5253_v17 = vsel %vm103_vm0, %v5229_v5, 0.0 }
0x15b6   :  { %5254 = vadd.xlane.f32.xlu0 %v5253_v17 }
0x15f8   :  { %v5237_v58 = vpop.xlane.xlu0 %5236 }
0x15f9   :  { %v5257_v46 = vmul.f32 %v5237_v58, %v8419_v13 }
0x15fb   :  { %v8917_v18 = vsub.f32 %v5223_v11, %v5257_v46 }
0x15fd   :  { %v5273_v33 = vmul.f32 %v8917_v18, %v8917_v18 }
0x15ff   :  { %v5283_v27 = vsel %vm103_vm0, %v5273_v33, 0.0 }
0x1600   :  { %5284 = vadd.xlane.f32.xlu2 %v5283_v27  ;;  %v5240_v61 = vpop.xlane.xlu1 %5239 }
0x1601   :  { %v5258_v47 = vmul.f32 %v5240_v61, %v8419_v13 }
0x1603   :  { %v8923_v7 = vsub.f32 %v5224_v32, %v5258_v47 }
0x1605   :  { %v5274_v21 = vmul.f32 %v8923_v7, %v8923_v7 }
0x1607   :  { %v5286_v62 = vsel %vm103_vm0, %v5274_v21, 0.0 }
0x1608   :  { %5287 = vadd.xlane.f32.xlu0 %v5286_v62 }
0x1609   :  { %v5243_v37 = vpop.xlane.xlu2 %5242 }
0x160a   :  { %v5259_v0 = vmul.f32 %v5243_v37, %v8419_v13 }
0x160c   :  { %v8929_v34 = vsub.f32 %v5225_v45, %v5259_v0 }
0x160e   :  { %v5275_v53 = vmul.f32 %v8929_v34, %v8929_v34 }
0x1610   :  { %v5289_v11 = vsel %vm103_vm0, %v5275_v53, 0.0 }
0x1611   :  { %5290 = vadd.xlane.f32.xlu1 %v5289_v11  ;;  %v5246_v1 = vpop.xlane.xlu0 %5245 }
0x1612   :  { %v5260_v39 = vmul.f32 %v5246_v1, %v8419_v13 }
0x1614   :  { %v8935_v49 = vsub.f32 %v5226_v28, %v5260_v39 }
0x1616   :  { %v5276_v35 = vmul.f32 %v8935_v49, %v8935_v49 }
0x1618   :  { %v5292_v15 = vsel %vm103_vm0, %v5276_v35, 0.0 }
0x1619   :  { %5293 = vadd.xlane.f32.xlu2 %v5292_v15  ;;  %v5249_v63 = vpop.xlane.xlu1 %5248 }
0x161a   :  { %v5261_v32 = vmul.f32 %v5249_v63, %v8419_v13 }
0x161c   :  { %v8941_v3 = vsub.f32 %v5227_v14, %v5261_v32 }
0x161e   :  { %v5277_v56 = vmul.f32 %v8941_v3, %v8941_v3 }
0x1620   :  { %v5295_v16 = vsel %vm103_vm0, %v5277_v56, 0.0 }
0x1621   :  { %v5252_v55 = vpop.xlane.xlu2 %5251  ;;  %5296 = vadd.xlane.f32.xlu0 %v5295_v16  ;;  %v5282_v23 = vpop.xlane.xlu1 %5281 }
0x1622   :  { %v5262_v44 = vmul.f32 %v5252_v55, %v8419_v13  ;;  %v5304_v45 = vmul.f32 %v5282_v23, %v8419_v13 }
0x1624   :  { %v8948_v59 = vsub.f32 %v5228_v12, %v5262_v44  ;;  %v5312_v19 = vadd.f32 1e-05, %v5304_v45 }
0x1626   :  { %6284 = vrsqrt.f32 %v5312_v19  ;;  %v5278_v38 = vmul.f32 %v8948_v59, %v8948_v59  ;;  %vm5327_vm2 = vcmp.eq.f32.partialorder %v5312_v19, inf  ;;  %v5330_v6 = vand.u32 2147483648, %v5312_v19 }
0x1627   :  { %vm5329_vm4 = vcmp.eq.f32.partialorder %v5312_v19, 0.0 }
0x1628   :  { %v5298_v41 = vsel %vm103_vm0, %v5278_v38, 0.0 }
0x1629   :  { %v5255_v31 = vpop.xlane.xlu0 %5254  ;;  %5299 = vadd.xlane.f32.xlu1 %v5298_v41 }
0x162a   :  { %v5263_v57 = vmul.f32 %v5255_v31, %v8419_v13 }
0x162c   :  { %v6285_v28 = vpop.eup %6284  ;;  %v8954_v30 = vsub.f32 %v5229_v5, %v5263_v57 }
0x162d   :  { %v5321_v10 = vmul.f32 %v6285_v28, %v5312_v19 }
0x162e   :  { %v5279_v4 = vmul.f32 %v8954_v30, %v8954_v30 }
0x162f   :  { %v5322_v24 = vmul.f32 %v6285_v28, %v5321_v10 }
0x1630   :  { %v5301_v60 = vsel %vm103_vm0, %v5279_v4, 0.0 }
0x1631   :  { %v5323_v54 = vmul.f32 0.5, %v5322_v24  ;;  %5302 = vadd.xlane.f32.xlu2 %v5301_v60 }
0x1633   :  { %v5324_v43 = vsub.f32 1.5, %v5323_v54 }
0x1635   :  { %v5325_v52 = vmul.f32 %v6285_v28, %v5324_v43 }
0x1637   :  { %v5326_v14 = vmul.f32 %v5325_v52, %v5312_v19 }
0x1639   :  { %v5328_v40 = vsel %vm5327_vm2, %v5312_v19, %v5326_v14 }
0x163a   :  { %v5331_v29 = vsel %vm5329_vm4, %v5330_v6, %v5328_v40 }
0x163b   :  { %6286 = vrcp.f32 %v5331_v29  ;;  %v5427_v51 = vand.u32 2147483648, %v5331_v29  ;;  %v5425_v8 = vand.u32 2147483647, %v5331_v29  ;;  %vm5421_vm10 = vweird.f32 %v5331_v29 }
0x163d   :  { %v5428_v36 = vor.u32 1.1754944e-38, %v5427_v51  ;;  %vm5426_vm12 = vcmp.eq.f32.partialorder %v5425_v8, 8.507059e+37 }
0x1641   :  { %v6287_v9 = vpop.eup %6286 }
0x1642   :  { %v5417_v20 = vmul.f32 %v6287_v9, %v5331_v29  ;;  %vm5422_vm9 = vweird.f32 %v6287_v9 }
0x1643   :  { %vm5423_vm11 = vmor %vm5421_vm10, %vm5422_vm9 }
0x1644   :  { %v5418_v26 = vsub.f32 1.0, %v5417_v20 }
0x1646   :  { %v5419_v12 = vmul.f32 %v6287_v9, %v5418_v26 }
0x1648   :  { %v5420_v50 = vadd.f32 %v6287_v9, %v5419_v12 }
0x164a   :  { %v5424_v42 = vsel %vm5423_vm11, %v6287_v9, %v5420_v50 }
0x164b   :  { %v5429_v2 = vsel %vm5426_vm12, %v5428_v36, %v5424_v42 }
0x164c   :  { %v5430_v5 = vmul.f32 %v5429_v2, %v8904_v25 }
0x164e   :  { %v5539_v17 = vmul.f32 %v8962_v22, %v5430_v5 }
0x1650   :  { %v5550_v58 = vadd.f32 %v8967_v48, %v5539_v17 }
0x1652   :  { %5558 = vst.msk [vmem:[#allocation7] sm:$0xff] %vm103_vm0, %v5550_v58 }
0x1673   :  { %v5285_v46 = vpop.xlane.xlu2 %5284 }
0x1674   :  { %v5305_v33 = vmul.f32 %v5285_v46, %v8419_v13 }
0x1676   :  { %v5313_v27 = vadd.f32 1e-05, %v5305_v33 }
0x1678   :  { %6288 = vrsqrt.f32 %v5313_v27  ;;  %vm5339_vm13 = vcmp.eq.f32.partialorder %v5313_v27, inf  ;;  %v5342_v56 = vand.u32 2147483648, %v5313_v27  ;;  %vm5341_vm14 = vcmp.eq.f32.partialorder %v5313_v27, 0.0 }
0x167b   :  { %v5288_v61 = vpop.xlane.xlu0 %5287 }
0x167c   :  { %v5306_v47 = vmul.f32 %v5288_v61, %v8419_v13 }
0x167e   :  { %v6289_v21 = vpop.eup %6288  ;;  %v5314_v37 = vadd.f32 1e-05, %v5306_v47 }
0x167f   :  { %v5333_v62 = vmul.f32 %v6289_v21, %v5313_v27 }
0x1680   :  { %6290 = vrsqrt.f32 %v5314_v37  ;;  %vm5351_vm15 = vcmp.eq.f32.partialorder %v5314_v37, inf  ;;  %v5354_v60 = vand.u32 2147483648, %v5314_v37  ;;  %vm5353_vm5 = vcmp.eq.f32.partialorder %v5314_v37, 0.0 }
0x1681   :  { %v5334_v0 = vmul.f32 %v6289_v21, %v5333_v62 }
0x1683   :  { %v5335_v25 = vmul.f32 0.5, %v5334_v0 }
0x1684   :  { %v5291_v53 = vpop.xlane.xlu1 %5290 }
0x1685   :  { %v5336_v11 = vsub.f32 1.5, %v5335_v25  ;;  %v5307_v1 = vmul.f32 %v5291_v53, %v8419_v13 }
0x1686   :  { %v6291_v39 = vpop.eup %6290 }
0x1687   :  { %v5337_v35 = vmul.f32 %v6289_v21, %v5336_v11  ;;  %v8976_v15 = vadd.f32 1e-05, %v5307_v1  ;;  %v5345_v63 = vmul.f32 %v6291_v39, %v5314_v37 }
0x1689   :  { %v5338_v32 = vmul.f32 %v5337_v35, %v5313_v27  ;;  %6292 = vrsqrt.f32 %v8976_v15  ;;  %v5346_v16 = vmul.f32 %v6291_v39, %v5345_v63  ;;  %vm5363_vm8 = vcmp.eq.f32.partialorder %v8976_v15, inf }
0x168a   :  { %v5366_v33 = vand.u32 2147483648, %v8976_v15  ;;  %vm5365_vm2 = vcmp.eq.f32.partialorder %v8976_v15, 0.0 }
0x168b   :  { %v5340_v55 = vsel %vm5339_vm13, %v5313_v27, %v5338_v32  ;;  %v5347_v44 = vmul.f32 0.5, %v5346_v16 }
0x168c   :  { %v5343_v23 = vsel %vm5341_vm14, %v5342_v56, %v5340_v55  ;;  %v5294_v45 = vpop.xlane.xlu2 %5293 }
0x168d   :  { %6294 = vrcp.f32 %v5343_v23  ;;  %v5348_v19 = vsub.f32 1.5, %v5347_v44  ;;  %v5308_v38 = vmul.f32 %v5294_v45, %v8419_v13  ;;  %v5442_v9 = vand.u32 2147483648, %v5343_v23 }
0x168e   :  { %v5440_v8 = vand.u32 2147483647, %v5343_v23  ;;  %vm5436_vm1 = vweird.f32 %v5343_v23 }
0x168f   :  { %v6293_v41 = vpop.eup %6292  ;;  %v5349_v31 = vmul.f32 %v6291_v39, %v5348_v19  ;;  %v8981_v28 = vadd.f32 1e-05, %v5308_v38  ;;  %v5443_v2 = vor.u32 1.1754944e-38, %v5442_v9 }
0x1690   :  { %v5357_v57 = vmul.f32 %v6293_v41, %v8976_v15  ;;  %vm5441_vm7 = vcmp.eq.f32.partialorder %v5440_v8, 8.507059e+37 }
0x1691   :  { %v5350_v10 = vmul.f32 %v5349_v31, %v5314_v37  ;;  %6296 = vrsqrt.f32 %v8981_v28  ;;  %vm5375_vm11 = vcmp.eq.f32.partialorder %v8981_v28, inf  ;;  %vm5377_vm13 = vcmp.eq.f32.partialorder %v8981_v28, 0.0 }
0x1692   :  { %v5358_v4 = vmul.f32 %v6293_v41, %v5357_v57  ;;  %v5378_v57 = vand.u32 2147483648, %v8981_v28 }
0x1693   :  { %v6295_v24 = vpop.eup %6294  ;;  %v5352_v43 = vsel %vm5351_vm15, %v5314_v37, %v5350_v10 }
0x1694   :  { %v5432_v54 = vmul.f32 %v6295_v24, %v5343_v23  ;;  %v5359_v52 = vmul.f32 0.5, %v5358_v4  ;;  %v5297_v14 = vpop.xlane.xlu0 %5296  ;;  %v5355_v6 = vsel %vm5353_vm5, %v5354_v60, %v5352_v43  ;;  %vm5437_vm6 = vweird.f32 %v6295_v24 }
0x1695   :  { %v5309_v40 = vmul.f32 %v5297_v14, %v8419_v13  ;;  %6298 = vrcp.f32 %v5355_v6  ;;  %vm5438_vm3 = vmor %vm5436_vm1, %vm5437_vm6  ;;  %v5457_v39 = vand.u32 2147483648, %v5355_v6  ;;  %vm5451_vm9 = vweird.f32 %v5355_v6 }
0x1696   :  { %v5433_v29 = vsub.f32 1.0, %v5432_v54  ;;  %v5360_v20 = vsub.f32 1.5, %v5359_v52 }
0x1697   :  { %v8985_v26 = vadd.f32 1e-05, %v5309_v40  ;;  %v6297_v51 = vpop.eup %6296  ;;  %v5458_v44 = vor.u32 1.1754944e-38, %v5457_v39 }
0x1698   :  { %v5434_v12 = vmul.f32 %v6295_v24, %v5433_v29  ;;  %v5361_v50 = vmul.f32 %v6293_v41, %v5360_v20  ;;  %v5369_v36 = vmul.f32 %v6297_v51, %v8981_v28 }
0x1699   :  { %6300 = vrsqrt.f32 %v8985_v26  ;;  %vm5387_vm15 = vcmp.eq.f32.partialorder %v8985_v26, inf  ;;  %vm5389_vm1 = vcmp.eq.f32.partialorder %v8985_v26, 0.0 }
0x169a   :  { %v5435_v42 = vadd.f32 %v6295_v24, %v5434_v12  ;;  %v5362_v5 = vmul.f32 %v5361_v50, %v8976_v15  ;;  %v5370_v17 = vmul.f32 %v6297_v51, %v5369_v36  ;;  %v5390_v50 = vand.u32 2147483648, %v8985_v26 }
0x169b   :  { %v6299_v58 = vpop.eup %6298 }
0x169c   :  { %v5439_v46 = vsel %vm5438_vm3, %v6295_v24, %v5435_v42  ;;  %v5447_v61 = vmul.f32 %v6299_v58, %v5355_v6  ;;  %v5364_v47 = vsel %vm5363_vm8, %v8976_v15, %v5362_v5  ;;  %v5300_v21 = vpop.xlane.xlu1 %5299  ;;  %v5371_v0 = vmul.f32 0.5, %v5370_v17 }
0x169d   :  { %v5444_v27 = vsel %vm5441_vm7, %v5443_v2, %v5439_v46  ;;  %v8995_v37 = vsel %vm5365_vm2, %v5366_v33, %v5364_v47  ;;  %v5310_v25 = vmul.f32 %v5300_v21, %v8419_v13  ;;  %vm5452_vm4 = vweird.f32 %v6299_v58 }
0x169e   :  { %v5445_v62 = vmul.f32 %v5444_v27, %v8917_v18  ;;  %v5448_v11 = vsub.f32 1.0, %v5447_v61  ;;  %6302 = vrcp.f32 %v8995_v37  ;;  %v5372_v35 = vsub.f32 1.5, %v5371_v0  ;;  %vm5453_vm10 = vmor %vm5451_vm9, %vm5452_vm4 }
0x169f   :  { %v6301_v53 = vpop.eup %6300  ;;  %v5455_v15 = vand.u32 2147483647, %v5355_v6  ;;  %v9001_v56 = vadd.f32 1e-05, %v5310_v25  ;;  %vm5466_vm5 = vweird.f32 %v8995_v37 }
0x16a0   :  { %v5540_v1 = vmul.f32 %v8962_v22, %v5445_v62  ;;  %v5381_v63 = vmul.f32 %v6301_v53, %v8985_v26  ;;  %v5449_v32 = vmul.f32 %v6299_v58, %v5448_v11  ;;  %v5373_v16 = vmul.f32 %v6297_v51, %v5372_v35 }
0x16a1   :  { %6304 = vrsqrt.f32 %v9001_v56  ;;  %vm5456_vm12 = vcmp.eq.f32.partialorder %v5455_v15, 8.507059e+37  ;;  %vm5399_vm8 = vcmp.eq.f32.partialorder %v9001_v56, inf  ;;  %vm5401_vm9 = vcmp.eq.f32.partialorder %v9001_v56, 0.0 }
0x16a2   :  { %v5551_v18 = vadd.f32 %v8967_v48, %v5540_v1  ;;  %v5382_v55 = vmul.f32 %v6301_v53, %v5381_v63  ;;  %v5450_v23 = vadd.f32 %v6299_v58, %v5449_v32  ;;  %v5374_v45 = vmul.f32 %v5373_v16, %v8981_v28 }
0x16a3   :  { %v5402_v16 = vand.u32 2147483648, %v9001_v56 }
0x16a4   :  { %5559 = vst.msk [vmem:[#allocation7 + $0x8] sm:$0xff] %vm103_vm0, %v5551_v18  ;;  %v5383_v19 = vmul.f32 0.5, %v5382_v55  ;;  %v5303_v38 = vpop.xlane.xlu2 %5302  ;;  %v6303_v41 = vpop.eup %6302  ;;  %v5454_v31 = vsel %vm5453_vm10, %v6299_v58, %v5450_v23  ;;  %v5376_v60 = vsel %vm5375_vm11, %v8981_v28, %v5374_v45  ;;  %v5470_v28 = vand.u32 2147483647, %v8995_v37 }
0x16a5   :  { %v5311_v10 = vmul.f32 %v5303_v38, %v8419_v13  ;;  %v5459_v4 = vsel %vm5456_vm12, %v5458_v44, %v5454_v31  ;;  %v5462_v24 = vmul.f32 %v6303_v41, %v8995_v37  ;;  %v5379_v43 = vsel %vm5377_vm13, %v5378_v57, %v5376_v60 }
0x16a6   :  { %v5460_v54 = vmul.f32 %v5459_v4, %v8923_v7  ;;  %v5384_v52 = vsub.f32 1.5, %v5383_v19  ;;  %6306 = vrcp.f32 %v5379_v43  ;;  %v5472_v13 = vand.u32 2147483648, %v8995_v37 }
0x16a7   :  { %v9014_v14 = vadd.f32 1e-05, %v5311_v10  ;;  %v5463_v6 = vsub.f32 1.0, %v5462_v24  ;;  %v6305_v40 = vpop.eup %6304  ;;  %vm5467_vm14 = vweird.f32 %v6303_v41  ;;  %vm5471_vm3 = vcmp.eq.f32.partialorder %v5470_v28, 8.507059e+37 }
0x16a8   :  { %v5541_v29 = vmul.f32 %v8962_v22, %v5460_v54  ;;  %v5385_v9 = vmul.f32 %v6301_v53, %v5384_v52  ;;  %v5393_v7 = vmul.f32 %v6305_v40, %v9001_v56  ;;  %vm5468_vm6 = vmor %vm5466_vm5, %vm5467_vm14  ;;  %v5473_v42 = vor.u32 1.1754944e-38, %v5472_v13 }
0x16a9   :  { %6308 = vrsqrt.f32 %v9014_v14  ;;  %v5464_v20 = vmul.f32 %v6303_v41, %v5463_v6  ;;  %v5485_v25 = vand.u32 2147483647, %v5379_v43  ;;  %v5487_v53 = vand.u32 2147483648, %v5379_v43 }
0x16aa   :  { %v5552_v51 = vadd.f32 %v8967_v48, %v5541_v29  ;;  %v5386_v12 = vmul.f32 %v5385_v9, %v8985_v26  ;;  %v5394_v36 = vmul.f32 %v6305_v40, %v5393_v7  ;;  %vm5481_vm2 = vweird.f32 %v5379_v43 }
0x16ab   :  { %v5465_v8 = vadd.f32 %v6303_v41, %v5464_v20  ;;  %v5488_v15 = vor.u32 1.1754944e-38, %v5487_v53  ;;  %vm5486_vm10 = vcmp.eq.f32.partialorder %v5485_v25, 8.507059e+37  ;;  %vm5411_vm14 = vcmp.eq.f32.partialorder %v9014_v14, inf }
0x16ac   :  { %5560 = vst.msk [vmem:[#allocation7 + $0x10] sm:$0xff] %vm103_vm0, %v5552_v51  ;;  %v5388_v2 = vsel %vm5387_vm15, %v8985_v26, %v5386_v12  ;;  %v6307_v5 = vpop.eup %6306  ;;  %v5395_v46 = vmul.f32 0.5, %v5394_v36  ;;  %vm5413_vm5 = vcmp.eq.f32.partialorder %v9014_v14, 0.0 }
0x16ad   :  { %v5469_v17 = vsel %vm5468_vm6, %v6303_v41, %v5465_v8  ;;  %v5391_v58 = vsel %vm5389_vm1, %v5390_v50, %v5388_v2  ;;  %v5477_v61 = vmul.f32 %v6307_v5, %v5379_v43  ;;  %vm5482_vm7 = vweird.f32 %v6307_v5 }
0x16ae   :  { %v5474_v27 = vsel %vm5471_vm3, %v5473_v42, %v5469_v17  ;;  %6310 = vrcp.f32 %v5391_v58  ;;  %v5396_v62 = vsub.f32 1.5, %v5395_v46  ;;  %vm5483_vm4 = vmor %vm5481_vm2, %vm5482_vm7  ;;  %v5502_v31 = vand.u32 2147483648, %v5391_v58 }
0x16af   :  { %v6309_v33 = vpop.eup %6308  ;;  %v5475_v47 = vmul.f32 %v5474_v27, %v8929_v34  ;;  %v5478_v21 = vsub.f32 1.0, %v5477_v61  ;;  %v5500_v10 = vand.u32 2147483647, %v5391_v58  ;;  %vm5496_vm12 = vweird.f32 %v5391_v58 }
0x16b0   :  { %v5405_v37 = vmul.f32 %v6309_v33, %v9014_v14  ;;  %v5397_v11 = vmul.f32 %v6305_v40, %v5396_v62  ;;  %v5503_v43 = vor.u32 1.1754944e-38, %v5502_v31 }
0x16b1   :  { %v5542_v0 = vmul.f32 %v8962_v22, %v5475_v47  ;;  %v5479_v26 = vmul.f32 %v6307_v5, %v5478_v21  ;;  %vm5501_vm15 = vcmp.eq.f32.partialorder %v5500_v10, 8.507059e+37 }
0x16b2   :  { %v5406_v1 = vmul.f32 %v6309_v33, %v5405_v37  ;;  %v5398_v34 = vmul.f32 %v5397_v11, %v9001_v56 }
0x16b3   :  { %v5553_v39 = vadd.f32 %v8967_v48, %v5542_v0  ;;  %v5480_v63 = vadd.f32 %v6307_v5, %v5479_v26 }
0x16b4   :  { %v6311_v35 = vpop.eup %6310  ;;  %v5407_v32 = vmul.f32 0.5, %v5406_v1  ;;  %v5400_v23 = vsel %vm5399_vm8, %v9001_v56, %v5398_v34 }
0x16b5   :  { %5561 = vst.msk [vmem:[#allocation7 + $0x18] sm:$0xff] %vm103_vm0, %v5553_v39  ;;  %v5492_v18 = vmul.f32 %v6311_v35, %v5391_v58  ;;  %v5484_v55 = vsel %vm5483_vm4, %v6307_v5, %v5480_v63  ;;  %v5403_v38 = vsel %vm5401_vm9, %v5402_v16, %v5400_v23  ;;  %vm5497_vm11 = vweird.f32 %v6311_v35 }
0x16b6   :  { %v5408_v44 = vsub.f32 1.5, %v5407_v32  ;;  %v5489_v45 = vsel %vm5486_vm10, %v5488_v15, %v5484_v55  ;;  %6312 = vrcp.f32 %v5403_v38  ;;  %vm5498_vm13 = vmor %vm5496_vm12, %vm5497_vm11  ;;  %v5517_v51 = vand.u32 2147483648, %v5403_v38 }
0x16b7   :  { %v5493_v19 = vsub.f32 1.0, %v5492_v18  ;;  %v5490_v41 = vmul.f32 %v5489_v45, %v8935_v49  ;;  %v5414_v49 = vand.u32 2147483648, %v9014_v14  ;;  %v5515_v50 = vand.u32 2147483647, %v5403_v38 }
0x16b8   :  { %v5409_v4 = vmul.f32 %v6309_v33, %v5408_v44  ;;  %vm5511_vm1 = vweird.f32 %v5403_v38  ;;  %v5518_v42 = vor.u32 1.1754944e-38, %v5517_v51 }
0x16b9   :  { %v5494_v57 = vmul.f32 %v6311_v35, %v5493_v19  ;;  %v5543_v24 = vmul.f32 %v8962_v22, %v5490_v41  ;;  %vm5516_vm7 = vcmp.eq.f32.partialorder %v5515_v50, 8.507059e+37 }
0x16ba   :  { %v5410_v54 = vmul.f32 %v5409_v4, %v9014_v14 }
0x16bb   :  { %v5495_v60 = vadd.f32 %v6311_v35, %v5494_v57  ;;  %v5554_v56 = vadd.f32 %v8967_v48, %v5543_v24 }
0x16bc   :  { %v5412_v6 = vsel %vm5411_vm14, %v9014_v14, %v5410_v54  ;;  %v6313_v40 = vpop.eup %6312 }
0x16bd   :  { %v5499_v52 = vsel %vm5498_vm13, %v6311_v35, %v5495_v60  ;;  %5562 = vst.msk [vmem:[#allocation7 + $0x20] sm:$0xff] %vm103_vm0, %v5554_v56  ;;  %v5415_v13 = vsel %vm5413_vm5, %v5414_v49, %v5412_v6  ;;  %v5507_v20 = vmul.f32 %v6313_v40, %v5403_v38  ;;  %vm5512_vm6 = vweird.f32 %v6313_v40 }
0x16be   :  { %v5504_v29 = vsel %vm5501_vm15, %v5503_v43, %v5499_v52  ;;  %6314 = vrcp.f32 %v5415_v13  ;;  %vm5513_vm3 = vmor %vm5511_vm1, %vm5512_vm6  ;;  %v5532_v46 = vand.u32 2147483648, %v5415_v13  ;;  %v5530_v27 = vand.u32 2147483647, %v5415_v13 }
0x16bf   :  { %v5505_v9 = vmul.f32 %v5504_v29, %v8941_v3  ;;  %v5508_v7 = vsub.f32 1.0, %v5507_v20  ;;  %vm5526_vm2 = vweird.f32 %v5415_v13 }
0x16c0   :  { %v5533_v62 = vor.u32 1.1754944e-38, %v5532_v46  ;;  %vm5531_vm9 = vcmp.eq.f32.partialorder %v5530_v27, 8.507059e+37 }
0x16c1   :  { %v5544_v28 = vmul.f32 %v8962_v22, %v5505_v9  ;;  %v5509_v8 = vmul.f32 %v6313_v40, %v5508_v7 }
0x16c3   :  { %v5555_v12 = vadd.f32 %v8967_v48, %v5544_v28  ;;  %v5510_v14 = vadd.f32 %v6313_v40, %v5509_v8 }
0x16c4   :  { %v6315_v36 = vpop.eup %6314 }
0x16c5   :  { %5563 = vst.msk [vmem:[#allocation7 + $0x28] sm:$0xff] %vm103_vm0, %v5555_v12  ;;  %v5522_v2 = vmul.f32 %v6315_v36, %v5415_v13  ;;  %v5514_v3 = vsel %vm5513_vm3, %v6313_v40, %v5510_v14  ;;  %vm5527_vm8 = vweird.f32 %v6315_v36 }
0x16c6   :  { %v5519_v5 = vsel %vm5516_vm7, %v5518_v42, %v5514_v3  ;;  %vm5528_vm4 = vmor %vm5526_vm2, %vm5527_vm8 }
0x16c7   :  { %v5523_v17 = vsub.f32 1.0, %v5522_v2  ;;  %v5520_v58 = vmul.f32 %v5519_v5, %v8948_v59 }
0x16c9   :  { %v5524_v33 = vmul.f32 %v6315_v36, %v5523_v17  ;;  %v5545_v61 = vmul.f32 %v8962_v22, %v5520_v58 }
0x16cb   :  { %v5525_v47 = vadd.f32 %v6315_v36, %v5524_v33  ;;  %v5556_v21 = vadd.f32 %v8967_v48, %v5545_v61 }
0x16cd   :  { %v5529_v37 = vsel %vm5528_vm4, %v6315_v36, %v5525_v47  ;;  %5564 = vst.msk [vmem:[#allocation7 + $0x30] sm:$0xff] %vm103_vm0, %v5556_v21 }
0x16ce   :  { %v5534_v0 = vsel %vm5531_vm9, %v5533_v62, %v5529_v37 }
0x16cf   :  { %v5535_v25 = vmul.f32 %v5534_v0, %v8954_v30 }
0x16d1   :  { %v5546_v59 = vmul.f32 %v8962_v22, %v5535_v25 }
0x16d3   :  { %v5557_v53 = vadd.f32 %v8967_v48, %v5546_v59 }
0x16d5   :  { %5565 = vst.msk [vmem:[#allocation7 + $0x38] sm:$0xff] %vm103_vm0, %v5557_v53 }
0x16d6   :  { %5578 = dma.vmem_to_hbm [thread:$0]  %s5571_s18, 1024, %s5573_s16, [#allocation4], %s6421_s5, %s6421_s5, %s6417_s6  }
0x16d7   :  { %6400 = dma.done.wait [#allocation4], 1024  }
0x16d8   :  { %6401 = vsyncadd [#allocation4], 4294966272 }
0x16d9   :  { %5583 = vsyncpa [#allocation3], 1 }
0x16da   :  { %5584 = vsyncpa [#allocation6], 1 }
0x16db   :  { %5585 = vsyncpa [#allocation4], 1 }

</bundles_post_ra>
